<compile_context>
chip_gen: v7x
topology: tpu7x:2x2x1
jax: 0.10.0
libtpu: 0.0.40
codegen_flags: <defaults>
</compile_context>

<pallas_src>
import functools

import jax
import jax.numpy as jnp
from jax import lax
from jax.experimental import pallas as pl
from jax.experimental.pallas import tpu as pltpu

BN_EPS = 1e-4
LANE = 128


# ----------------------------- small helpers --------------------------------

def _elu(x):
    # torch.nn.ELU(alpha=1.0); f32 elementwise (VPU/EUP), safe on v5e.
    return jnp.where(x > 0, x, jnp.exp(jnp.minimum(x, 0.0)) - 1.0)


def _round_up(x, m):
    return (x + m - 1) // m * m


def _pick_flat_tile(m, cap=4096):
    """Largest multiple-of-8 divisor of m that is <= cap (fallback: m)."""
    best = None
    for t in range(8, min(m, cap) + 1, 8):
        if m % t == 0:
            best = t
    return best if best is not None else m


def _pack_w(w_hwio, cin_p, cout_p):
    """(3,3,Cin,Cout) -> (9*Cin_p, Cout_p) bf16, zero-padded channels.

    K-row ordering is k*Cin_p + ci with k = ky*3 + kx, matching the LHS slab
    assembled inside the kernels."""
    kh, kw, cin, cout = w_hwio.shape
    w = jnp.pad(w_hwio.astype(jnp.float32),
                ((0, 0), (0, 0), (0, cin_p - cin), (0, cout_p - cout)))
    return w.reshape(kh * kw * cin_p, cout_p).astype(jnp.bfloat16)


def _pad_vec(v, cp):
    return jnp.pad(v.astype(jnp.float32), (0, cp - v.shape[0]))


def _bn_scale_shift(psum, psumsq, count, gamma_p, beta_p):
    """Fold BN (train mode, biased var) into a per-channel scale/shift.

    NOTE: var = E[x^2]-E[x]^2 in f32; fine for conv outputs (|mean| << std),
    a Welford combine would be safer for strongly offset activations."""
    mean = jnp.sum(psum, axis=(0, 1)) / count
    var = jnp.maximum(jnp.sum(psumsq, axis=(0, 1)) / count - mean * mean, 0.0)
    scale = gamma_p * lax.rsqrt(var + BN_EPS)
    shift = beta_p - mean * scale
    return (scale.reshape(1, -1).astype(jnp.float32),
            shift.reshape(1, -1).astype(jnp.float32))


# ----------------------------- Pallas kernels --------------------------------

def _build_slab(pad_ref, slab_ref, *, h, w, c):
    """Assemble the (h*w, 9*c) LHS slab for a 3x3 'same' conv from the
    zero-padded (h+2, wp2, c) VMEM tile.  The 3 column-shift loads are reused
    for the 3 row shifts; lane offsets k*c are 128-aligned."""
    tm = h * w
    xt = pad_ref[...]                                   # (h+2, wp2, c)
    for dx in range(3):
        col = xt[:, dx:dx + w, :]                       # (h+2, w, c)
        for dy in range(3):
            k = dy * 3 + dx
            slab_ref[:, pl.ds(k * c, c)] = col[dy:dy + h].reshape(tm, c)


def _stage1_kernel(x_ref, w13_ref, b3_ref,
                   t1_ref, skip_ref, s1_ref, q1_ref,
                   xpad_ref, slab_ref,
                   *, h, w, cin_p, cmid_p, cout_p, identity_skip):
    """t1 = conv1(x) (bias cancels in BN1), skip = conv3(x)+b3 (or x),
    plus per-image partial BN1 statistics of t1."""
    xv = x_ref[...]                                     # (h, w, cin_p) bf16
    # zero-padded conv window assembled in VMEM (no HBM halo copy)
    xpad_ref[...] = jnp.zeros_like(xpad_ref)
    xpad_ref[pl.ds(1, h), pl.ds(1, w), :] = xv
    _build_slab(xpad_ref, slab_ref, h=h, w=w, c=cin_p)
    # Single MXU dot: K = 9*cin_p, N = cmid_p (+ cout_p), f32 accumulation.
    acc = jnp.dot(slab_ref[...], w13_ref[...],
                  preferred_element_type=jnp.float32)
    t1 = acc[:, :cmid_p]
    s1_ref[...] = jnp.sum(t1, axis=0, keepdims=True)
    q1_ref[...] = jnp.sum(t1 * t1, axis=0, keepdims=True)
    t1_ref[...] = t1.reshape(h, w, cmid_p).astype(t1_ref.dtype)
    if identity_skip:
        skip_ref[...] = xv[:, :, :cout_p]
    else:
        skip = acc[:, cmid_p:cmid_p + cout_p] + b3_ref[...]
        skip_ref[...] = skip.reshape(h, w, cout_p).astype(skip_ref.dtype)


def _stage2_kernel(t1_ref, sc1_ref, sh1_ref, w2_ref,
                   t2_ref, s2_ref, q2_ref,
                   hpad_ref, slab_ref,
                   *, h, w, cmid_p, cout_p):
    """h = ELU(BN1(t1)), t2 = conv2(h), per-image partial BN2 statistics.

    Image-border zero padding falls out of assembling h into a zeroed VMEM
    tile (ELU is only applied to real pixels)."""
    hv = _elu(t1_ref[...].astype(jnp.float32) * sc1_ref[...] + sh1_ref[...])
    hpad_ref[...] = jnp.zeros_like(hpad_ref)
    hpad_ref[pl.ds(1, h), pl.ds(1, w), :] = hv.astype(hpad_ref.dtype)
    _build_slab(hpad_ref, slab_ref, h=h, w=w, c=cmid_p)
    acc = jnp.dot(slab_ref[...], w2_ref[...],
                  preferred_element_type=jnp.float32)
    s2_ref[...] = jnp.sum(acc, axis=0, keepdims=True)
    q2_ref[...] = jnp.sum(acc * acc, axis=0, keepdims=True)
    t2_ref[...] = acc.reshape(h, w, cout_p).astype(t2_ref.dtype)


def _finalize_kernel(t2_ref, skip_ref, sc2_ref, sh2_ref, out_ref):
    """out = ELU(BN2(t2) + skip)   (pure elementwise, f32)."""
    t2 = t2_ref[...].astype(jnp.float32)
    sk = skip_ref[...].astype(jnp.float32)
    out_ref[...] = _elu(t2 * sc2_ref[...] + sh2_ref[...] + sk)


# ----------------------------- pallas_call wrappers ---------------------------

def _stage1_call(x, w13, b3, *, n, h, w, cin_p, cmid_p, cout_p, identity_skip):
    wp2 = _round_up(w + 2, 8)           # sublane-aligned scratch width
    nout1 = w13.shape[-1]
    m = n * h * w
    kern = functools.partial(_stage1_kernel, h=h, w=w, cin_p=cin_p,
                             cmid_p=cmid_p, cout_p=cout_p,
                             identity_skip=identity_skip)
    flops = 2 * m * (9 * cin_p) * nout1
    bytes_acc = int(x.size * 2 + w13.size * 2 + b3.size * 4
                    + m * (cmid_p + cout_p) * 2 + n * 2 * cmid_p * 4)
    return pl.pallas_call(
        kern,
        grid=(n,),
        in_specs=[
            pl.BlockSpec((None, h, w, cin_p), lambda i: (i, 0, 0, 0)),
            pl.BlockSpec((9 * cin_p, nout1), lambda i: (0, 0)),
            pl.BlockSpec((1, cout_p), lambda i: (0, 0)),
        ],
        out_specs=(
            pl.BlockSpec((None, h, w, cmid_p), lambda i: (i, 0, 0, 0)),
            pl.BlockSpec((None, h, w, cout_p), lambda i: (i, 0, 0, 0)),
            pl.BlockSpec((None, 1, cmid_p), lambda i: (i, 0, 0)),
            pl.BlockSpec((None, 1, cmid_p), lambda i: (i, 0, 0)),
        ),
        out_shape=(
            jax.ShapeDtypeStruct((n, h, w, cmid_p), jnp.bfloat16),
            jax.ShapeDtypeStruct((n, h, w, cout_p), jnp.bfloat16),
            jax.ShapeDtypeStruct((n, 1, cmid_p), jnp.float32),
            jax.ShapeDtypeStruct((n, 1, cmid_p), jnp.float32),
        ),
        scratch_shapes=[
            pltpu.VMEM((h + 2, wp2, cin_p), jnp.bfloat16),     # padded x tile
            pltpu.VMEM((h * w, 9 * cin_p), jnp.bfloat16),      # LHS slab
        ],
        compiler_params=pltpu.CompilerParams(
            dimension_semantics=("parallel",)),
        cost_estimate=pl.CostEstimate(flops=int(flops), transcendentals=0,
                                      bytes_accessed=bytes_acc),
    )(x, w13, b3)


def _stage2_call(t1, sc1, sh1, w2p, *, n, h, w, cmid_p, cout_p):
    wp2 = _round_up(w + 2, 8)
    m = n * h * w
    kern = functools.partial(_stage2_kernel, h=h, w=w,
                             cmid_p=cmid_p, cout_p=cout_p)
    flops = 2 * m * (9 * cmid_p) * cout_p
    bytes_acc = int(t1.size * 2 + w2p.size * 2 + 2 * cmid_p * 4
                    + m * cout_p * 2 + n * 2 * cout_p * 4)
    return pl.pallas_call(
        kern,
        grid=(n,),
        in_specs=[
            pl.BlockSpec((None, h, w, cmid_p), lambda i: (i, 0, 0, 0)),
            pl.BlockSpec((1, cmid_p), lambda i: (0, 0)),
            pl.BlockSpec((1, cmid_p), lambda i: (0, 0)),
            pl.BlockSpec((9 * cmid_p, cout_p), lambda i: (0, 0)),
        ],
        out_specs=(
            pl.BlockSpec((None, h, w, cout_p), lambda i: (i, 0, 0, 0)),
            pl.BlockSpec((None, 1, cout_p), lambda i: (i, 0, 0)),
            pl.BlockSpec((None, 1, cout_p), lambda i: (i, 0, 0)),
        ),
        out_shape=(
            jax.ShapeDtypeStruct((n, h, w, cout_p), jnp.bfloat16),
            jax.ShapeDtypeStruct((n, 1, cout_p), jnp.float32),
            jax.ShapeDtypeStruct((n, 1, cout_p), jnp.float32),
        ),
        scratch_shapes=[
            pltpu.VMEM((h + 2, wp2, cmid_p), jnp.bfloat16),    # padded h tile
            pltpu.VMEM((h * w, 9 * cmid_p), jnp.bfloat16),     # LHS slab
        ],
        compiler_params=pltpu.CompilerParams(
            dimension_semantics=("parallel",)),
        cost_estimate=pl.CostEstimate(flops=int(flops),
                                      transcendentals=int(m * cmid_p),
                                      bytes_accessed=bytes_acc),
    )(t1, sc1, sh1, w2p)


def _finalize_call(t2_flat, skip_flat, sc2, sh2):
    m, cout_p = t2_flat.shape
    tm = _pick_flat_tile(m)
    # TODO(synk): output is lane-padded f32 (cout_p lanes); a narrow masked
    # store or bf16 output would cut writeback traffic when cout << 128.
    return pl.pallas_call(
        _finalize_kernel,
        grid=(m // tm,),
        in_specs=[
            pl.BlockSpec((tm, cout_p), lambda i: (i, 0)),
            pl.BlockSpec((tm, cout_p), lambda i: (i, 0)),
            pl.BlockSpec((1, cout_p), lambda i: (0, 0)),
            pl.BlockSpec((1, cout_p), lambda i: (0, 0)),
        ],
        out_specs=pl.BlockSpec((tm, cout_p), lambda i: (i, 0)),
        out_shape=jax.ShapeDtypeStruct((m, cout_p), jnp.float32),
        compiler_params=pltpu.CompilerParams(
            dimension_semantics=("parallel",)),
        cost_estimate=pl.CostEstimate(flops=int(4 * m * cout_p),
                                      transcendentals=int(m * cout_p),
                                      bytes_accessed=int(m * cout_p * 8)),
    )(t2_flat, skip_flat, sc2, sh2)


# ----------------------------- forward wrapper --------------------------------

def resblock_forward(x_nchw, params):
    """Pallas implementation of ResBlock.forward (NCHW in / NCHW out)."""
    n, cin, h, w = x_nchw.shape
    cmid = params["w1"].shape[-1]
    cout = params["w2"].shape[-1]
    identity_skip = "w3" not in params          # nn.Identity skip branch
    cin_p, cmid_p, cout_p = (_round_up(c, LANE) for c in (cin, cmid, cout))
    m = n * h * w

    # NCHW -> NHWC, channel pad to lane width, bf16 (single fused XLA pass).
    # TODO(synk): for C << 128 a (W*C)-in-lanes packing would avoid the padded
    # zero flops/bytes; not implemented here.
    x_nhwc = jnp.transpose(x_nchw, (0, 2, 3, 1)).astype(jnp.float32)
    x_nhwc = jnp.pad(x_nhwc, ((0, 0), (0, 0), (0, 0), (0, cin_p - cin)))
    x_nhwc = x_nhwc.astype(jnp.bfloat16)

    # Weights packed as (9*Cin_p, Cout_p) bf16; BN params padded.
    w1p = _pack_w(params["w1"], cin_p, cmid_p)
    w2p = _pack_w(params["w2"], cmid_p, cout_p)
    g1, be1 = _pad_vec(params["g1"], cmid_p), _pad_vec(params["be1"], cmid_p)
    g2, be2 = _pad_vec(params["g2"], cout_p), _pad_vec(params["be2"], cout_p)
    # conv1/conv2 biases (params["b1"], params["b2"]) cancel inside BN -> unused.

    if identity_skip:
        w13 = w1p
        b3 = jnp.zeros((1, cout_p), jnp.float32)            # unused dummy
    else:
        w3p = _pack_w(params["w3"], cin_p, cout_p)
        w13 = jnp.concatenate([w1p, w3p], axis=-1)           # one dot = conv1+conv3
        b3 = _pad_vec(params["b3"], cout_p).reshape(1, cout_p)

    # Pass A: conv1 (+ conv3 skip) + BN1 partial stats.
    t1, skip, s1, q1 = _stage1_call(x_nhwc, w13, b3, n=n, h=h, w=w,
                                    cin_p=cin_p, cmid_p=cmid_p, cout_p=cout_p,
                                    identity_skip=identity_skip)
    sc1, sh1 = _bn_scale_shift(s1, q1, float(m), g1, be1)

    # Pass B: BN1 + ELU fused into conv2 input, conv2, BN2 partial stats.
    t2, s2, q2 = _stage2_call(t1, sc1, sh1, w2p, n=n, h=h, w=w,
                              cmid_p=cmid_p, cout_p=cout_p)
    sc2, sh2 = _bn_scale_shift(s2, q2, float(m), g2, be2)

    # Pass C: BN2 + residual add + ELU (elementwise, lane-dense).
    out_flat = _finalize_call(t2.reshape(m, cout_p), skip.reshape(m, cout_p),
                              sc2, sh2)
    out = out_flat.reshape(n, h, w, cout_p)[..., :cout]
    return jnp.transpose(out, (0, 3, 1, 2))


# ----------------------------- pure-JAX reference -----------------------------

def resblock_reference(x_nchw, params):
    x = jnp.transpose(x_nchw, (0, 2, 3, 1)).astype(jnp.float32)

    def conv(t, w_hwio, b):
        y = lax.conv_general_dilated(t, w_hwio.astype(jnp.float32), (1, 1),
                                     ((1, 1), (1, 1)),
                                     dimension_numbers=("NHWC", "HWIO", "NHWC"))
        return y + b

    def bn(t, g, b):
        mean = jnp.mean(t, axis=(0, 1, 2))
        var = jnp.mean((t - mean) ** 2, axis=(0, 1, 2))
        return (t - mean) * lax.rsqrt(var + BN_EPS) * g + b

    if "w3" in params:
        skip = conv(x, params["w3"], params["b3"])
    else:
        skip = x
    hh = _elu(bn(conv(x, params["w1"], params["b1"]), params["g1"], params["be1"]))
    t2 = conv(hh, params["w2"], params["b2"])
    out = _elu(bn(t2, params["g2"], params["be2"]) + skip)
    return jnp.transpose(out, (0, 3, 1, 2))


# ----------------------------- parameter init ---------------------------------

def init_params(key, channel_in, channel_out, kernel_size=3):
    cmid = channel_in // 2
    ks = jax.random.split(key, 10)

    def conv_w(k, cin, cout):
        fan_in = kernel_size * kernel_size * cin
        return (jax.random.normal(k, (kernel_size, kernel_size, cin, cout),
                                  jnp.float32)
                / jnp.sqrt(jnp.float32(fan_in)))

    p = {
        "w1": conv_w(ks[0], channel_in, cmid),
        "b1": 0.1 * jax.random.normal(ks[1], (cmid,), jnp.float32),
        "g1": 1.0 + 0.1 * jax.random.normal(ks[2], (cmid,), jnp.float32),
        "be1": 0.1 * jax.random.normal(ks[3], (cmid,), jnp.float32),
        "w2": conv_w(ks[4], cmid, channel_out),
        "b2": 0.1 * jax.random.normal(ks[5], (channel_out,), jnp.float32),
        "g2": 1.0 + 0.1 * jax.random.normal(ks[6], (channel_out,), jnp.float32),
        "be2": 0.1 * jax.random.normal(ks[7], (channel_out,), jnp.float32),
    }
    if channel_in != channel_out:                 # matches nn.Identity branch
        p["w3"] = conv_w(ks[8], channel_in, channel_out)
        p["b3"] = 0.1 * jax.random.normal(ks[9], (channel_out,), jnp.float32)
    return p


# ----------------------------- main --------------------------------------------

if __name__ == "__main__":
    key = jax.random.PRNGKey(0)
    k_x, k_p, k_x2, k_p2 = jax.random.split(key, 4)

    # --- conv3-projection skip path (channel_in != channel_out) ---
    N, CIN, H, W = 2, 4, 16, 16
    COUT = 8
    x = jax.random.normal(k_x, (N, CIN, H, W), jnp.float32)
    params = init_params(k_p, CIN, COUT)

    fwd = jax.jit(resblock_forward)
    out = jax.block_until_ready(fwd(x, params))
    assert out.shape == (N, COUT, H, W), out.shape
    ref = resblock_reference(x, params)
    assert jnp.all(jnp.isfinite(out))
    max_err = float(jnp.max(jnp.abs(out - ref)))
    assert jnp.allclose(out, ref, atol=3e-2, rtol=3e-2), max_err

    # --- identity skip path (channel_in == channel_out) ---
    x2 = jax.random.normal(k_x2, (N, CIN, H, W), jnp.float32)
    params2 = init_params(k_p2, CIN, CIN)
    out2 = jax.block_until_ready(jax.jit(resblock_forward)(x2, params2))
    assert out2.shape == (N, CIN, H, W), out2.shape
    ref2 = resblock_reference(x2, params2)
    max_err2 = float(jnp.max(jnp.abs(out2 - ref2)))
    assert jnp.allclose(out2, ref2, atol=3e-2, rtol=3e-2), max_err2

    print("KERNEL_OK")
</pallas_src>

<mosaic_0001>
module attributes {stable_mosaic.version = 11 : i64} {
  func.func @_stage1_kernel(%arg0: i32, %arg1: memref<1x16x16x128xbf16, #tpu.memory_space<vmem>>, %arg2: memref<1152x256xbf16, #tpu.memory_space<vmem>>, %arg3: memref<1x128xf32, #tpu.memory_space<vmem>>, %arg4: memref<1x16x16x128xbf16, #tpu.memory_space<vmem>>, %arg5: memref<1x16x16x128xbf16, #tpu.memory_space<vmem>>, %arg6: memref<1x1x128xf32, #tpu.memory_space<vmem>>, %arg7: memref<1x1x128xf32, #tpu.memory_space<vmem>>, %arg8: memref<18x24x128xbf16, #tpu.memory_space<vmem>>, %arg9: memref<256x1152xbf16, #tpu.memory_space<vmem>>) attributes {dimension_semantics = [#tpu.dimension_semantics<parallel>], iteration_bounds = array<i64: 2>, scalar_prefetch = 0 : i64, scratch_operands = 2 : i64, tpu.core_type = #tpu.core_type<tc>, window_params = [{transform_indices = @transform_0, window_bounds = array<i64: 1, 16, 16, 128>}, {pipeline_mode = #tpu.pipeline_mode<synchronous>, transform_indices = @transform_1, window_bounds = array<i64: 1152, 256>}, {pipeline_mode = #tpu.pipeline_mode<synchronous>, transform_indices = @transform_2, window_bounds = array<i64: 1, 128>}, {transform_indices = @transform_3, window_bounds = array<i64: 1, 16, 16, 128>}, {transform_indices = @transform_4, window_bounds = array<i64: 1, 16, 16, 128>}, {transform_indices = @transform_5, window_bounds = array<i64: 1, 1, 128>}, {transform_indices = @transform_6, window_bounds = array<i64: 1, 1, 128>}]} {
    %c0 = arith.constant 0 : index
    %c0_0 = arith.constant 0 : index
    %c0_1 = arith.constant 0 : index
    %c0_2 = arith.constant 0 : index
    %0 = vector.load %arg1[%c0, %c0_0, %c0_1, %c0_2] : memref<1x16x16x128xbf16, #tpu.memory_space<vmem>>, vector<1x16x16x128xbf16>
    %1 = vector.shape_cast %0 : vector<1x16x16x128xbf16> to vector<16x16x128xbf16>
    %cst = arith.constant 0.000000e+00 : bf16
    %2 = vector.broadcast %cst : bf16 to vector<18x24x128xbf16>
    %c0_3 = arith.constant 0 : index
    %c0_4 = arith.constant 0 : index
    %c0_5 = arith.constant 0 : index
    %3 = vector.load %arg8[%c0_3, %c0_4, %c0_5] : memref<18x24x128xbf16, #tpu.memory_space<vmem>>, vector<18x24x128xbf16>
    tpu.vector_store %arg8[%c0_3, %c0_4, %c0_5], %2 {strides = array<i32>} : memref<18x24x128xbf16, #tpu.memory_space<vmem>>, vector<18x24x128xbf16>,
    %c1 = arith.constant 1 : index
    %c1_6 = arith.constant 1 : index
    %c0_7 = arith.constant 0 : index
    %4 = vector.load %arg8[%c1, %c1_6, %c0_7] : memref<18x24x128xbf16, #tpu.memory_space<vmem>>, vector<16x16x128xbf16>
    tpu.vector_store %arg8[%c1, %c1_6, %c0_7], %1 {strides = array<i32>} : memref<18x24x128xbf16, #tpu.memory_space<vmem>>, vector<16x16x128xbf16>,
    %c0_8 = arith.constant 0 : index
    %c0_9 = arith.constant 0 : index
    %c0_10 = arith.constant 0 : index
    %5 = vector.load %arg8[%c0_8, %c0_9, %c0_10] : memref<18x24x128xbf16, #tpu.memory_space<vmem>>, vector<18x24x128xbf16>
    %6 = vector.extract_strided_slice %5 {offsets = [0, 0, 0], sizes = [18, 16, 128], strides = [1, 1, 1]} : vector<18x24x128xbf16> to vector<18x16x128xbf16>
    %7 = vector.extract_strided_slice %6 {offsets = [0, 0, 0], sizes = [16, 16, 128], strides = [1, 1, 1]} : vector<18x16x128xbf16> to vector<16x16x128xbf16>
    %8 = vector.shape_cast %7 : vector<16x16x128xbf16> to vector<256x128xbf16>
    %c0_11 = arith.constant 0 : index
    %c0_12 = arith.constant 0 : index
    %9 = vector.load %arg9[%c0_11, %c0_12] : memref<256x1152xbf16, #tpu.memory_space<vmem>>, vector<256x128xbf16>
    tpu.vector_store %arg9[%c0_11, %c0_12], %8 {strides = array<i32>} : memref<256x1152xbf16, #tpu.memory_space<vmem>>, vector<256x128xbf16>,
    %10 = vector.extract_strided_slice %6 {offsets = [1, 0, 0], sizes = [16, 16, 128], strides = [1, 1, 1]} : vector<18x16x128xbf16> to vector<16x16x128xbf16>
    %11 = vector.shape_cast %10 : vector<16x16x128xbf16> to vector<256x128xbf16>
    %c0_13 = arith.constant 0 : index
    %c384 = arith.constant 384 : index
    %12 = vector.load %arg9[%c0_13, %c384] : memref<256x1152xbf16, #tpu.memory_space<vmem>>, vector<256x128xbf16>
    tpu.vector_store %arg9[%c0_13, %c384], %11 {strides = array<i32>} : memref<256x1152xbf16, #tpu.memory_space<vmem>>, vector<256x128xbf16>,
    %13 = vector.extract_strided_slice %6 {offsets = [2, 0, 0], sizes = [16, 16, 128], strides = [1, 1, 1]} : vector<18x16x128xbf16> to vector<16x16x128xbf16>
    %14 = vector.shape_cast %13 : vector<16x16x128xbf16> to vector<256x128xbf16>
    %c0_14 = arith.constant 0 : index
    %c768 = arith.constant 768 : index
    %15 = vector.load %arg9[%c0_14, %c768] : memref<256x1152xbf16, #tpu.memory_space<vmem>>, vector<256x128xbf16>
    tpu.vector_store %arg9[%c0_14, %c768], %14 {strides = array<i32>} : memref<256x1152xbf16, #tpu.memory_space<vmem>>, vector<256x128xbf16>,
    %16 = vector.extract_strided_slice %5 {offsets = [0, 1, 0], sizes = [18, 16, 128], strides = [1, 1, 1]} : vector<18x24x128xbf16> to vector<18x16x128xbf16>
    %17 = vector.extract_strided_slice %16 {offsets = [0, 0, 0], sizes = [16, 16, 128], strides = [1, 1, 1]} : vector<18x16x128xbf16> to vector<16x16x128xbf16>
    %18 = vector.shape_cast %17 : vector<16x16x128xbf16> to vector<256x128xbf16>
    %c0_15 = arith.constant 0 : index
    %c128 = arith.constant 128 : index
    %19 = vector.load %arg9[%c0_15, %c128] : memref<256x1152xbf16, #tpu.memory_space<vmem>>, vector<256x128xbf16>
    tpu.vector_store %arg9[%c0_15, %c128], %18 {strides = array<i32>} : memref<256x1152xbf16, #tpu.memory_space<vmem>>, vector<256x128xbf16>,
    %20 = vector.extract_strided_slice %16 {offsets = [1, 0, 0], sizes = [16, 16, 128], strides = [1, 1, 1]} : vector<18x16x128xbf16> to vector<16x16x128xbf16>
    %21 = vector.shape_cast %20 : vector<16x16x128xbf16> to vector<256x128xbf16>
    %c0_16 = arith.constant 0 : index
    %c512 = arith.constant 512 : index
    %22 = vector.load %arg9[%c0_16, %c512] : memref<256x1152xbf16, #tpu.memory_space<vmem>>, vector<256x128xbf16>
    tpu.vector_store %arg9[%c0_16, %c512], %21 {strides = array<i32>} : memref<256x1152xbf16, #tpu.memory_space<vmem>>, vector<256x128xbf16>,
    %23 = vector.extract_strided_slice %16 {offsets = [2, 0, 0], sizes = [16, 16, 128], strides = [1, 1, 1]} : vector<18x16x128xbf16> to vector<16x16x128xbf16>
    %24 = vector.shape_cast %23 : vector<16x16x128xbf16> to vector<256x128xbf16>
    %c0_17 = arith.constant 0 : index
    %c896 = arith.constant 896 : index
    %25 = vector.load %arg9[%c0_17, %c896] : memref<256x1152xbf16, #tpu.memory_space<vmem>>, vector<256x128xbf16>
    tpu.vector_store %arg9[%c0_17, %c896], %24 {strides = array<i32>} : memref<256x1152xbf16, #tpu.memory_space<vmem>>, vector<256x128xbf16>,
    %26 = vector.extract_strided_slice %5 {offsets = [0, 2, 0], sizes = [18, 16, 128], strides = [1, 1, 1]} : vector<18x24x128xbf16> to vector<18x16x128xbf16>
    %27 = vector.extract_strided_slice %26 {offsets = [0, 0, 0], sizes = [16, 16, 128], strides = [1, 1, 1]} : vector<18x16x128xbf16> to vector<16x16x128xbf16>
    %28 = vector.shape_cast %27 : vector<16x16x128xbf16> to vector<256x128xbf16>
    %c0_18 = arith.constant 0 : index
    %c256 = arith.constant 256 : index
    %29 = vector.load %arg9[%c0_18, %c256] : memref<256x1152xbf16, #tpu.memory_space<vmem>>, vector<256x128xbf16>
    tpu.vector_store %arg9[%c0_18, %c256], %28 {strides = array<i32>} : memref<256x1152xbf16, #tpu.memory_space<vmem>>, vector<256x128xbf16>,
    %30 = vector.extract_strided_slice %26 {offsets = [1, 0, 0], sizes = [16, 16, 128], strides = [1, 1, 1]} : vector<18x16x128xbf16> to vector<16x16x128xbf16>
    %31 = vector.shape_cast %30 : vector<16x16x128xbf16> to vector<256x128xbf16>
    %c0_19 = arith.constant 0 : index
    %c640 = arith.constant 640 : index
    %32 = vector.load %arg9[%c0_19, %c640] : memref<256x1152xbf16, #tpu.memory_space<vmem>>, vector<256x128xbf16>
    tpu.vector_store %arg9[%c0_19, %c640], %31 {strides = array<i32>} : memref<256x1152xbf16, #tpu.memory_space<vmem>>, vector<256x128xbf16>,
    %33 = vector.extract_strided_slice %26 {offsets = [2, 0, 0], sizes = [16, 16, 128], strides = [1, 1, 1]} : vector<18x16x128xbf16> to vector<16x16x128xbf16>
    %34 = vector.shape_cast %33 : vector<16x16x128xbf16> to vector<256x128xbf16>
    %c0_20 = arith.constant 0 : index
    %c1024 = arith.constant 1024 : index
    %35 = vector.load %arg9[%c0_20, %c1024] : memref<256x1152xbf16, #tpu.memory_space<vmem>>, vector<256x128xbf16>
    tpu.vector_store %arg9[%c0_20, %c1024], %34 {strides = array<i32>} : memref<256x1152xbf16, #tpu.memory_space<vmem>>, vector<256x128xbf16>,
    %c0_21 = arith.constant 0 : index
    %c0_22 = arith.constant 0 : index
    %36 = vector.load %arg9[%c0_21, %c0_22] : memref<256x1152xbf16, #tpu.memory_space<vmem>>, vector<256x1152xbf16>
    %c0_23 = arith.constant 0 : index
    %c0_24 = arith.constant 0 : index
    %37 = vector.load %arg2[%c0_23, %c0_24] : memref<1152x256xbf16, #tpu.memory_space<vmem>>, vector<1152x256xbf16>
    %cst_25 = arith.constant dense<0.000000e+00> : vector<256x256xf32>
    %38 = tpu.matmul %36, %37, %cst_25 {dimension_numbers = #tpu.dot_dimension_numbers<[1], [0], [0], [1], [0, 0, 1, 1], [], []>} : vector<256x1152xbf16>, vector<1152x256xbf16>, vector<256x256xf32> -> vector<256x256xf32>
    %39 = vector.extract_strided_slice %38 {offsets = [0, 0], sizes = [256, 128], strides = [1, 1]} : vector<256x256xf32> to vector<256x128xf32>
    %cst_26 = arith.constant dense<0.000000e+00> : vector<128xf32>
    %40 = vector.multi_reduction <add>, %39, %cst_26 [0] : vector<256x128xf32> to vector<128xf32>
    %41 = vector.shape_cast %40 : vector<128xf32> to vector<1x128xf32>
    %c0_27 = arith.constant 0 : index
    %c0_28 = arith.constant 0 : index
    %c0_29 = arith.constant 0 : index
    %42 = vector.load %arg6[%c0_27, %c0_28, %c0_29] : memref<1x1x128xf32, #tpu.memory_space<vmem>>, vector<1x1x128xf32>
    %43 = vector.shape_cast %42 : vector<1x1x128xf32> to vector<1x128xf32>
    %44 = vector.shape_cast %41 : vector<1x128xf32> to vector<1x1x128xf32>
    tpu.vector_store %arg6[%c0_27, %c0_28, %c0_29], %44 {strides = array<i32>} : memref<1x1x128xf32, #tpu.memory_space<vmem>>, vector<1x1x128xf32>,
    %45 = arith.mulf %39, %39 : vector<256x128xf32>
    %cst_30 = arith.constant dense<0.000000e+00> : vector<128xf32>
    %46 = vector.multi_reduction <add>, %45, %cst_30 [0] : vector<256x128xf32> to vector<128xf32>
    %47 = vector.shape_cast %46 : vector<128xf32> to vector<1x128xf32>
    %c0_31 = arith.constant 0 : index
    %c0_32 = arith.constant 0 : index
    %c0_33 = arith.constant 0 : index
    %48 = vector.load %arg7[%c0_31, %c0_32, %c0_33] : memref<1x1x128xf32, #tpu.memory_space<vmem>>, vector<1x1x128xf32>
    %49 = vector.shape_cast %48 : vector<1x1x128xf32> to vector<1x128xf32>
    %50 = vector.shape_cast %47 : vector<1x128xf32> to vector<1x1x128xf32>
    tpu.vector_store %arg7[%c0_31, %c0_32, %c0_33], %50 {strides = array<i32>} : memref<1x1x128xf32, #tpu.memory_space<vmem>>, vector<1x1x128xf32>,
    %51 = vector.shape_cast %39 : vector<256x128xf32> to vector<16x16x128xf32>
    %52 = arith.truncf %51 : vector<16x16x128xf32> to vector<16x16x128xbf16>
    %c0_34 = arith.constant 0 : index
    %c0_35 = arith.constant 0 : index
    %c0_36 = arith.constant 0 : index
    %c0_37 = arith.constant 0 : index
    %53 = vector.load %arg4[%c0_34, %c0_35, %c0_36, %c0_37] : memref<1x16x16x128xbf16, #tpu.memory_space<vmem>>, vector<1x16x16x128xbf16>
    %54 = vector.shape_cast %53 : vector<1x16x16x128xbf16> to vector<16x16x128xbf16>
    %55 = vector.shape_cast %52 : vector<16x16x128xbf16> to vector<1x16x16x128xbf16>
    tpu.vector_store %arg4[%c0_34, %c0_35, %c0_36, %c0_37], %55 {strides = array<i32>} : memref<1x16x16x128xbf16, #tpu.memory_space<vmem>>, vector<1x16x16x128xbf16>,
    %56 = vector.extract_strided_slice %38 {offsets = [0, 128], sizes = [256, 128], strides = [1, 1]} : vector<256x256xf32> to vector<256x128xf32>
    %c0_38 = arith.constant 0 : index
    %c0_39 = arith.constant 0 : index
    %57 = vector.load %arg3[%c0_38, %c0_39] : memref<1x128xf32, #tpu.memory_space<vmem>>, vector<1x128xf32>
    %58 = vector.broadcast %57 : vector<1x128xf32> to vector<256x128xf32>
    %59 = arith.addf %56, %58 : vector<256x128xf32>
    %60 = vector.shape_cast %59 : vector<256x128xf32> to vector<16x16x128xf32>
    %61 = arith.truncf %60 : vector<16x16x128xf32> to vector<16x16x128xbf16>
    %c0_40 = arith.constant 0 : index
    %c0_41 = arith.constant 0 : index
    %c0_42 = arith.constant 0 : index
    %c0_43 = arith.constant 0 : index
    %62 = vector.load %arg5[%c0_40, %c0_41, %c0_42, %c0_43] : memref<1x16x16x128xbf16, #tpu.memory_space<vmem>>, vector<1x16x16x128xbf16>
    %63 = vector.shape_cast %62 : vector<1x16x16x128xbf16> to vector<16x16x128xbf16>
    %64 = vector.shape_cast %61 : vector<16x16x128xbf16> to vector<1x16x16x128xbf16>
    tpu.vector_store %arg5[%c0_40, %c0_41, %c0_42, %c0_43], %64 {strides = array<i32>} : memref<1x16x16x128xbf16, #tpu.memory_space<vmem>>, vector<1x16x16x128xbf16>,
    return
  }
  func.func @transform_0(%arg0: i32) -> (i32, i32, i32, i32) {
    %c0_i32 = arith.constant 0 : i32
    %c0_i32_0 = arith.constant 0 : i32
    %c0_i32_1 = arith.constant 0 : i32
    %c0_i32_2 = arith.constant 0 : i32
    return %arg0, %c0_i32, %c0_i32_0, %c0_i32_1 : i32, i32, i32, i32
  }
  func.func @transform_1(%arg0: i32) -> (i32, i32) {
    %c0_i32 = arith.constant 0 : i32
    %c0_i32_0 = arith.constant 0 : i32
    %c0_i32_1 = arith.constant 0 : i32
    return %c0_i32, %c0_i32_0 : i32, i32
  }
  func.func @transform_2(%arg0: i32) -> (i32, i32) {
    %c0_i32 = arith.constant 0 : i32
    %c0_i32_0 = arith.constant 0 : i32
    %c0_i32_1 = arith.constant 0 : i32
    return %c0_i32, %c0_i32_0 : i32, i32
  }
  func.func @transform_3(%arg0: i32) -> (i32, i32, i32, i32) {
    %c0_i32 = arith.constant 0 : i32
    %c0_i32_0 = arith.constant 0 : i32
    %c0_i32_1 = arith.constant 0 : i32
    %c0_i32_2 = arith.constant 0 : i32
    return %arg0, %c0_i32, %c0_i32_0, %c0_i32_1 : i32, i32, i32, i32
  }
  func.func @transform_4(%arg0: i32) -> (i32, i32, i32, i32) {
    %c0_i32 = arith.constant 0 : i32
    %c0_i32_0 = arith.constant 0 : i32
    %c0_i32_1 = arith.constant 0 : i32
    %c0_i32_2 = arith.constant 0 : i32
    return %arg0, %c0_i32, %c0_i32_0, %c0_i32_1 : i32, i32, i32, i32
  }
  func.func @transform_5(%arg0: i32) -> (i32, i32, i32) {
    %c0_i32 = arith.constant 0 : i32
    %c0_i32_0 = arith.constant 0 : i32
    %c0_i32_1 = arith.constant 0 : i32
    return %arg0, %c0_i32, %c0_i32_0 : i32, i32, i32
  }
  func.func @transform_6(%arg0: i32) -> (i32, i32, i32) {
    %c0_i32 = arith.constant 0 : i32
    %c0_i32_0 = arith.constant 0 : i32
    %c0_i32_1 = arith.constant 0 : i32
    return %arg0, %c0_i32, %c0_i32_0 : i32, i32, i32
  }
}

module attributes {stable_mosaic.version = 11 : i64} {
  func.func @_stage2_kernel(%arg0: i32, %arg1: memref<1x16x16x128xbf16, #tpu.memory_space<vmem>>, %arg2: memref<1x128xf32, #tpu.memory_space<vmem>>, %arg3: memref<1x128xf32, #tpu.memory_space<vmem>>, %arg4: memref<1152x128xbf16, #tpu.memory_space<vmem>>, %arg5: memref<1x16x16x128xbf16, #tpu.memory_space<vmem>>, %arg6: memref<1x1x128xf32, #tpu.memory_space<vmem>>, %arg7: memref<1x1x128xf32, #tpu.memory_space<vmem>>, %arg8: memref<18x24x128xbf16, #tpu.memory_space<vmem>>, %arg9: memref<256x1152xbf16, #tpu.memory_space<vmem>>) attributes {dimension_semantics = [#tpu.dimension_semantics<parallel>], iteration_bounds = array<i64: 2>, scalar_prefetch = 0 : i64, scratch_operands = 2 : i64, tpu.core_type = #tpu.core_type<tc>, window_params = [{transform_indices = @transform_0, window_bounds = array<i64: 1, 16, 16, 128>}, {pipeline_mode = #tpu.pipeline_mode<synchronous>, transform_indices = @transform_1, window_bounds = array<i64: 1, 128>}, {pipeline_mode = #tpu.pipeline_mode<synchronous>, transform_indices = @transform_2, window_bounds = array<i64: 1, 128>}, {pipeline_mode = #tpu.pipeline_mode<synchronous>, transform_indices = @transform_3, window_bounds = array<i64: 1152, 128>}, {transform_indices = @transform_4, window_bounds = array<i64: 1, 16, 16, 128>}, {transform_indices = @transform_5, window_bounds = array<i64: 1, 1, 128>}, {transform_indices = @transform_6, window_bounds = array<i64: 1, 1, 128>}]} {
    %c0 = arith.constant 0 : index
    %c0_0 = arith.constant 0 : index
    %c0_1 = arith.constant 0 : index
    %c0_2 = arith.constant 0 : index
    %0 = vector.load %arg1[%c0, %c0_0, %c0_1, %c0_2] : memref<1x16x16x128xbf16, #tpu.memory_space<vmem>>, vector<1x16x16x128xbf16>
    %1 = vector.shape_cast %0 : vector<1x16x16x128xbf16> to vector<16x16x128xbf16>
    %2 = arith.extf %1 : vector<16x16x128xbf16> to vector<16x16x128xf32>
    %c0_3 = arith.constant 0 : index
    %c0_4 = arith.constant 0 : index
    %3 = vector.load %arg2[%c0_3, %c0_4] : memref<1x128xf32, #tpu.memory_space<vmem>>, vector<1x128xf32>
    %4 = vector.shape_cast %3 : vector<1x128xf32> to vector<1x1x128xf32>
    %5 = vector.broadcast %4 : vector<1x1x128xf32> to vector<16x16x128xf32>
    %6 = arith.mulf %2, %5 : vector<16x16x128xf32>
    %c0_5 = arith.constant 0 : index
    %c0_6 = arith.constant 0 : index
    %7 = vector.load %arg3[%c0_5, %c0_6] : memref<1x128xf32, #tpu.memory_space<vmem>>, vector<1x128xf32>
    %8 = vector.shape_cast %7 : vector<1x128xf32> to vector<1x1x128xf32>
    %9 = vector.broadcast %8 : vector<1x1x128xf32> to vector<16x16x128xf32>
    %10 = arith.addf %6, %9 : vector<16x16x128xf32>
    %cst = arith.constant 0.000000e+00 : f32
    %11 = vector.broadcast %cst : f32 to vector<16x16x128xf32>
    %12 = arith.cmpf ogt, %10, %11 : vector<16x16x128xf32>
    %cst_7 = arith.constant 0.000000e+00 : f32
    %13 = vector.broadcast %cst_7 : f32 to vector<16x16x128xf32>
    %14 = arith.minimumf %10, %13 : vector<16x16x128xf32>
    %15 = math.exp %14 : vector<16x16x128xf32>
    %cst_8 = arith.constant 1.000000e+00 : f32
    %16 = vector.broadcast %cst_8 : f32 to vector<16x16x128xf32>
    %17 = arith.subf %15, %16 : vector<16x16x128xf32>
    %18 = arith.select %12, %10, %17 : vector<16x16x128xi1>, vector<16x16x128xf32>
    %cst_9 = arith.constant 0.000000e+00 : bf16
    %19 = vector.broadcast %cst_9 : bf16 to vector<18x24x128xbf16>
    %c0_10 = arith.constant 0 : index
    %c0_11 = arith.constant 0 : index
    %c0_12 = arith.constant 0 : index
    %20 = vector.load %arg8[%c0_10, %c0_11, %c0_12] : memref<18x24x128xbf16, #tpu.memory_space<vmem>>, vector<18x24x128xbf16>
    tpu.vector_store %arg8[%c0_10, %c0_11, %c0_12], %19 {strides = array<i32>} : memref<18x24x128xbf16, #tpu.memory_space<vmem>>, vector<18x24x128xbf16>,
    %21 = arith.truncf %18 : vector<16x16x128xf32> to vector<16x16x128xbf16>
    %c1 = arith.constant 1 : index
    %c1_13 = arith.constant 1 : index
    %c0_14 = arith.constant 0 : index
    %22 = vector.load %arg8[%c1, %c1_13, %c0_14] : memref<18x24x128xbf16, #tpu.memory_space<vmem>>, vector<16x16x128xbf16>
    tpu.vector_store %arg8[%c1, %c1_13, %c0_14], %21 {strides = array<i32>} : memref<18x24x128xbf16, #tpu.memory_space<vmem>>, vector<16x16x128xbf16>,
    %c0_15 = arith.constant 0 : index
    %c0_16 = arith.constant 0 : index
    %c0_17 = arith.constant 0 : index
    %23 = vector.load %arg8[%c0_15, %c0_16, %c0_17] : memref<18x24x128xbf16, #tpu.memory_space<vmem>>, vector<18x24x128xbf16>
    %24 = vector.extract_strided_slice %23 {offsets = [0, 0, 0], sizes = [18, 16, 128], strides = [1, 1, 1]} : vector<18x24x128xbf16> to vector<18x16x128xbf16>
    %25 = vector.extract_strided_slice %24 {offsets = [0, 0, 0], sizes = [16, 16, 128], strides = [1, 1, 1]} : vector<18x16x128xbf16> to vector<16x16x128xbf16>
    %26 = vector.shape_cast %25 : vector<16x16x128xbf16> to vector<256x128xbf16>
    %c0_18 = arith.constant 0 : index
    %c0_19 = arith.constant 0 : index
    %27 = vector.load %arg9[%c0_18, %c0_19] : memref<256x1152xbf16, #tpu.memory_space<vmem>>, vector<256x128xbf16>
    tpu.vector_store %arg9[%c0_18, %c0_19], %26 {strides = array<i32>} : memref<256x1152xbf16, #tpu.memory_space<vmem>>, vector<256x128xbf16>,
    %28 = vector.extract_strided_slice %24 {offsets = [1, 0, 0], sizes = [16, 16, 128], strides = [1, 1, 1]} : vector<18x16x128xbf16> to vector<16x16x128xbf16>
    %29 = vector.shape_cast %28 : vector<16x16x128xbf16> to vector<256x128xbf16>
    %c0_20 = arith.constant 0 : index
    %c384 = arith.constant 384 : index
    %30 = vector.load %arg9[%c0_20, %c384] : memref<256x1152xbf16, #tpu.memory_space<vmem>>, vector<256x128xbf16>
    tpu.vector_store %arg9[%c0_20, %c384], %29 {strides = array<i32>} : memref<256x1152xbf16, #tpu.memory_space<vmem>>, vector<256x128xbf16>,
    %31 = vector.extract_strided_slice %24 {offsets = [2, 0, 0], sizes = [16, 16, 128], strides = [1, 1, 1]} : vector<18x16x128xbf16> to vector<16x16x128xbf16>
    %32 = vector.shape_cast %31 : vector<16x16x128xbf16> to vector<256x128xbf16>
    %c0_21 = arith.constant 0 : index
    %c768 = arith.constant 768 : index
    %33 = vector.load %arg9[%c0_21, %c768] : memref<256x1152xbf16, #tpu.memory_space<vmem>>, vector<256x128xbf16>
    tpu.vector_store %arg9[%c0_21, %c768], %32 {strides = array<i32>} : memref<256x1152xbf16, #tpu.memory_space<vmem>>, vector<256x128xbf16>,
    %34 = vector.extract_strided_slice %23 {offsets = [0, 1, 0], sizes = [18, 16, 128], strides = [1, 1, 1]} : vector<18x24x128xbf16> to vector<18x16x128xbf16>
    %35 = vector.extract_strided_slice %34 {offsets = [0, 0, 0], sizes = [16, 16, 128], strides = [1, 1, 1]} : vector<18x16x128xbf16> to vector<16x16x128xbf16>
    %36 = vector.shape_cast %35 : vector<16x16x128xbf16> to vector<256x128xbf16>
    %c0_22 = arith.constant 0 : index
    %c128 = arith.constant 128 : index
    %37 = vector.load %arg9[%c0_22, %c128] : memref<256x1152xbf16, #tpu.memory_space<vmem>>, vector<256x128xbf16>
    tpu.vector_store %arg9[%c0_22, %c128], %36 {strides = array<i32>} : memref<256x1152xbf16, #tpu.memory_space<vmem>>, vector<256x128xbf16>,
    %38 = vector.extract_strided_slice %34 {offsets = [1, 0, 0], sizes = [16, 16, 128], strides = [1, 1, 1]} : vector<18x16x128xbf16> to vector<16x16x128xbf16>
    %39 = vector.shape_cast %38 : vector<16x16x128xbf16> to vector<256x128xbf16>
    %c0_23 = arith.constant 0 : index
    %c512 = arith.constant 512 : index
    %40 = vector.load %arg9[%c0_23, %c512] : memref<256x1152xbf16, #tpu.memory_space<vmem>>, vector<256x128xbf16>
    tpu.vector_store %arg9[%c0_23, %c512], %39 {strides = array<i32>} : memref<256x1152xbf16, #tpu.memory_space<vmem>>, vector<256x128xbf16>,
    %41 = vector.extract_strided_slice %34 {offsets = [2, 0, 0], sizes = [16, 16, 128], strides = [1, 1, 1]} : vector<18x16x128xbf16> to vector<16x16x128xbf16>
    %42 = vector.shape_cast %41 : vector<16x16x128xbf16> to vector<256x128xbf16>
    %c0_24 = arith.constant 0 : index
    %c896 = arith.constant 896 : index
    %43 = vector.load %arg9[%c0_24, %c896] : memref<256x1152xbf16, #tpu.memory_space<vmem>>, vector<256x128xbf16>
    tpu.vector_store %arg9[%c0_24, %c896], %42 {strides = array<i32>} : memref<256x1152xbf16, #tpu.memory_space<vmem>>, vector<256x128xbf16>,
    %44 = vector.extract_strided_slice %23 {offsets = [0, 2, 0], sizes = [18, 16, 128], strides = [1, 1, 1]} : vector<18x24x128xbf16> to vector<18x16x128xbf16>
    %45 = vector.extract_strided_slice %44 {offsets = [0, 0, 0], sizes = [16, 16, 128], strides = [1, 1, 1]} : vector<18x16x128xbf16> to vector<16x16x128xbf16>
    %46 = vector.shape_cast %45 : vector<16x16x128xbf16> to vector<256x128xbf16>
    %c0_25 = arith.constant 0 : index
    %c256 = arith.constant 256 : index
    %47 = vector.load %arg9[%c0_25, %c256] : memref<256x1152xbf16, #tpu.memory_space<vmem>>, vector<256x128xbf16>
    tpu.vector_store %arg9[%c0_25, %c256], %46 {strides = array<i32>} : memref<256x1152xbf16, #tpu.memory_space<vmem>>, vector<256x128xbf16>,
    %48 = vector.extract_strided_slice %44 {offsets = [1, 0, 0], sizes = [16, 16, 128], strides = [1, 1, 1]} : vector<18x16x128xbf16> to vector<16x16x128xbf16>
    %49 = vector.shape_cast %48 : vector<16x16x128xbf16> to vector<256x128xbf16>
    %c0_26 = arith.constant 0 : index
    %c640 = arith.constant 640 : index
    %50 = vector.load %arg9[%c0_26, %c640] : memref<256x1152xbf16, #tpu.memory_space<vmem>>, vector<256x128xbf16>
    tpu.vector_store %arg9[%c0_26, %c640], %49 {strides = array<i32>} : memref<256x1152xbf16, #tpu.memory_space<vmem>>, vector<256x128xbf16>,
    %51 = vector.extract_strided_slice %44 {offsets = [2, 0, 0], sizes = [16, 16, 128], strides = [1, 1, 1]} : vector<18x16x128xbf16> to vector<16x16x128xbf16>
    %52 = vector.shape_cast %51 : vector<16x16x128xbf16> to vector<256x128xbf16>
    %c0_27 = arith.constant 0 : index
    %c1024 = arith.constant 1024 : index
    %53 = vector.load %arg9[%c0_27, %c1024] : memref<256x1152xbf16, #tpu.memory_space<vmem>>, vector<256x128xbf16>
    tpu.vector_store %arg9[%c0_27, %c1024], %52 {strides = array<i32>} : memref<256x1152xbf16, #tpu.memory_space<vmem>>, vector<256x128xbf16>,
    %c0_28 = arith.constant 0 : index
    %c0_29 = arith.constant 0 : index
    %54 = vector.load %arg9[%c0_28, %c0_29] : memref<256x1152xbf16, #tpu.memory_space<vmem>>, vector<256x1152xbf16>
    %c0_30 = arith.constant 0 : index
    %c0_31 = arith.constant 0 : index
    %55 = vector.load %arg4[%c0_30, %c0_31] : memref<1152x128xbf16, #tpu.memory_space<vmem>>, vector<1152x128xbf16>
    %cst_32 = arith.constant dense<0.000000e+00> : vector<256x128xf32>
    %56 = tpu.matmul %54, %55, %cst_32 {dimension_numbers = #tpu.dot_dimension_numbers<[1], [0], [0], [1], [0, 0, 1, 1], [], []>} : vector<256x1152xbf16>, vector<1152x128xbf16>, vector<256x128xf32> -> vector<256x128xf32>
    %cst_33 = arith.constant dense<0.000000e+00> : vector<128xf32>
    %57 = vector.multi_reduction <add>, %56, %cst_33 [0] : vector<256x128xf32> to vector<128xf32>
    %58 = vector.shape_cast %57 : vector<128xf32> to vector<1x128xf32>
    %c0_34 = arith.constant 0 : index
    %c0_35 = arith.constant 0 : index
    %c0_36 = arith.constant 0 : index
    %59 = vector.load %arg6[%c0_34, %c0_35, %c0_36] : memref<1x1x128xf32, #tpu.memory_space<vmem>>, vector<1x1x128xf32>
    %60 = vector.shape_cast %59 : vector<1x1x128xf32> to vector<1x128xf32>
    %61 = vector.shape_cast %58 : vector<1x128xf32> to vector<1x1x128xf32>
    tpu.vector_store %arg6[%c0_34, %c0_35, %c0_36], %61 {strides = array<i32>} : memref<1x1x128xf32, #tpu.memory_space<vmem>>, vector<1x1x128xf32>,
    %62 = arith.mulf %56, %56 : vector<256x128xf32>
    %cst_37 = arith.constant dense<0.000000e+00> : vector<128xf32>
    %63 = vector.multi_reduction <add>, %62, %cst_37 [0] : vector<256x128xf32> to vector<128xf32>
    %64 = vector.shape_cast %63 : vector<128xf32> to vector<1x128xf32>
    %c0_38 = arith.constant 0 : index
    %c0_39 = arith.constant 0 : index
    %c0_40 = arith.constant 0 : index
    %65 = vector.load %arg7[%c0_38, %c0_39, %c0_40] : memref<1x1x128xf32, #tpu.memory_space<vmem>>, vector<1x1x128xf32>
    %66 = vector.shape_cast %65 : vector<1x1x128xf32> to vector<1x128xf32>
    %67 = vector.shape_cast %64 : vector<1x128xf32> to vector<1x1x128xf32>
    tpu.vector_store %arg7[%c0_38, %c0_39, %c0_40], %67 {strides = array<i32>} : memref<1x1x128xf32, #tpu.memory_space<vmem>>, vector<1x1x128xf32>,
    %68 = vector.shape_cast %56 : vector<256x128xf32> to vector<16x16x128xf32>
    %69 = arith.truncf %68 : vector<16x16x128xf32> to vector<16x16x128xbf16>
    %c0_41 = arith.constant 0 : index
    %c0_42 = arith.constant 0 : index
    %c0_43 = arith.constant 0 : index
    %c0_44 = arith.constant 0 : index
    %70 = vector.load %arg5[%c0_41, %c0_42, %c0_43, %c0_44] : memref<1x16x16x128xbf16, #tpu.memory_space<vmem>>, vector<1x16x16x128xbf16>
    %71 = vector.shape_cast %70 : vector<1x16x16x128xbf16> to vector<16x16x128xbf16>
    %72 = vector.shape_cast %69 : vector<16x16x128xbf16> to vector<1x16x16x128xbf16>
    tpu.vector_store %arg5[%c0_41, %c0_42, %c0_43, %c0_44], %72 {strides = array<i32>} : memref<1x16x16x128xbf16, #tpu.memory_space<vmem>>, vector<1x16x16x128xbf16>,
    return
  }
  func.func @transform_0(%arg0: i32) -> (i32, i32, i32, i32) {
    %c0_i32 = arith.constant 0 : i32
    %c0_i32_0 = arith.constant 0 : i32
    %c0_i32_1 = arith.constant 0 : i32
    %c0_i32_2 = arith.constant 0 : i32
    return %arg0, %c0_i32, %c0_i32_0, %c0_i32_1 : i32, i32, i32, i32
  }
  func.func @transform_1(%arg0: i32) -> (i32, i32) {
    %c0_i32 = arith.constant 0 : i32
    %c0_i32_0 = arith.constant 0 : i32
    %c0_i32_1 = arith.constant 0 : i32
    return %c0_i32, %c0_i32_0 : i32, i32
  }
  func.func @transform_2(%arg0: i32) -> (i32, i32) {
    %c0_i32 = arith.constant 0 : i32
    %c0_i32_0 = arith.constant 0 : i32
    %c0_i32_1 = arith.constant 0 : i32
    return %c0_i32, %c0_i32_0 : i32, i32
  }
  func.func @transform_3(%arg0: i32) -> (i32, i32) {
    %c0_i32 = arith.constant 0 : i32
    %c0_i32_0 = arith.constant 0 : i32
    %c0_i32_1 = arith.constant 0 : i32
    return %c0_i32, %c0_i32_0 : i32, i32
  }
  func.func @transform_4(%arg0: i32) -> (i32, i32, i32, i32) {
    %c0_i32 = arith.constant 0 : i32
    %c0_i32_0 = arith.constant 0 : i32
    %c0_i32_1 = arith.constant 0 : i32
    %c0_i32_2 = arith.constant 0 : i32
    return %arg0, %c0_i32, %c0_i32_0, %c0_i32_1 : i32, i32, i32, i32
  }
  func.func @transform_5(%arg0: i32) -> (i32, i32, i32) {
    %c0_i32 = arith.constant 0 : i32
    %c0_i32_0 = arith.constant 0 : i32
    %c0_i32_1 = arith.constant 0 : i32
    return %arg0, %c0_i32, %c0_i32_0 : i32, i32, i32
  }
  func.func @transform_6(%arg0: i32) -> (i32, i32, i32) {
    %c0_i32 = arith.constant 0 : i32
    %c0_i32_0 = arith.constant 0 : i32
    %c0_i32_1 = arith.constant 0 : i32
    return %arg0, %c0_i32, %c0_i32_0 : i32, i32, i32
  }
}

module attributes {stable_mosaic.version = 11 : i64} {
  func.func @_finalize_kernel(%arg0: i32, %arg1: memref<512x128xbf16, #tpu.memory_space<vmem>>, %arg2: memref<512x128xbf16, #tpu.memory_space<vmem>>, %arg3: memref<1x128xf32, #tpu.memory_space<vmem>>, %arg4: memref<1x128xf32, #tpu.memory_space<vmem>>, %arg5: memref<512x128xf32, #tpu.memory_space<vmem>>) attributes {dimension_semantics = [#tpu.dimension_semantics<parallel>], iteration_bounds = array<i64: 1>, scalar_prefetch = 0 : i64, scratch_operands = 0 : i64, tpu.core_type = #tpu.core_type<tc>, window_params = [{transform_indices = @transform_0, window_bounds = array<i64: 512, 128>}, {transform_indices = @transform_1, window_bounds = array<i64: 512, 128>}, {pipeline_mode = #tpu.pipeline_mode<synchronous>, transform_indices = @transform_2, window_bounds = array<i64: 1, 128>}, {pipeline_mode = #tpu.pipeline_mode<synchronous>, transform_indices = @transform_3, window_bounds = array<i64: 1, 128>}, {transform_indices = @transform_4, window_bounds = array<i64: 512, 128>}]} {
    %c0 = arith.constant 0 : index
    %c0_0 = arith.constant 0 : index
    %0 = vector.load %arg1[%c0, %c0_0] : memref<512x128xbf16, #tpu.memory_space<vmem>>, vector<512x128xbf16>
    %1 = arith.extf %0 : vector<512x128xbf16> to vector<512x128xf32>
    %c0_1 = arith.constant 0 : index
    %c0_2 = arith.constant 0 : index
    %2 = vector.load %arg2[%c0_1, %c0_2] : memref<512x128xbf16, #tpu.memory_space<vmem>>, vector<512x128xbf16>
    %3 = arith.extf %2 : vector<512x128xbf16> to vector<512x128xf32>
    %c0_3 = arith.constant 0 : index
    %c0_4 = arith.constant 0 : index
    %4 = vector.load %arg3[%c0_3, %c0_4] : memref<1x128xf32, #tpu.memory_space<vmem>>, vector<1x128xf32>
    %5 = vector.broadcast %4 : vector<1x128xf32> to vector<512x128xf32>
    %6 = arith.mulf %1, %5 : vector<512x128xf32>
    %c0_5 = arith.constant 0 : index
    %c0_6 = arith.constant 0 : index
    %7 = vector.load %arg4[%c0_5, %c0_6] : memref<1x128xf32, #tpu.memory_space<vmem>>, vector<1x128xf32>
    %8 = vector.broadcast %7 : vector<1x128xf32> to vector<512x128xf32>
    %9 = arith.addf %6, %8 : vector<512x128xf32>
    %10 = arith.addf %9, %3 : vector<512x128xf32>
    %cst = arith.constant 0.000000e+00 : f32
    %11 = vector.broadcast %cst : f32 to vector<512x128xf32>
    %12 = arith.cmpf ogt, %10, %11 : vector<512x128xf32>
    %cst_7 = arith.constant 0.000000e+00 : f32
    %13 = vector.broadcast %cst_7 : f32 to vector<512x128xf32>
    %14 = arith.minimumf %10, %13 : vector<512x128xf32>
    %15 = math.exp %14 : vector<512x128xf32>
    %cst_8 = arith.constant 1.000000e+00 : f32
    %16 = vector.broadcast %cst_8 : f32 to vector<512x128xf32>
    %17 = arith.subf %15, %16 : vector<512x128xf32>
    %18 = arith.select %12, %10, %17 : vector<512x128xi1>, vector<512x128xf32>
    %c0_9 = arith.constant 0 : index
    %c0_10 = arith.constant 0 : index
    %19 = vector.load %arg5[%c0_9, %c0_10] : memref<512x128xf32, #tpu.memory_space<vmem>>, vector<512x128xf32>
    tpu.vector_store %arg5[%c0_9, %c0_10], %18 {strides = array<i32>} : memref<512x128xf32, #tpu.memory_space<vmem>>, vector<512x128xf32>,
    return
  }
  func.func @transform_0(%arg0: i32) -> (i32, i32) {
    %c0_i32 = arith.constant 0 : i32
    %c0_i32_0 = arith.constant 0 : i32
    return %arg0, %c0_i32 : i32, i32
  }
  func.func @transform_1(%arg0: i32) -> (i32, i32) {
    %c0_i32 = arith.constant 0 : i32
    %c0_i32_0 = arith.constant 0 : i32
    return %arg0, %c0_i32 : i32, i32
  }
  func.func @transform_2(%arg0: i32) -> (i32, i32) {
    %c0_i32 = arith.constant 0 : i32
    %c0_i32_0 = arith.constant 0 : i32
    %c0_i32_1 = arith.constant 0 : i32
    return %c0_i32, %c0_i32_0 : i32, i32
  }
  func.func @transform_3(%arg0: i32) -> (i32, i32) {
    %c0_i32 = arith.constant 0 : i32
    %c0_i32_0 = arith.constant 0 : i32
    %c0_i32_1 = arith.constant 0 : i32
    return %c0_i32, %c0_i32_0 : i32, i32
  }
  func.func @transform_4(%arg0: i32) -> (i32, i32) {
    %c0_i32 = arith.constant 0 : i32
    %c0_i32_0 = arith.constant 0 : i32
    return %arg0, %c0_i32 : i32, i32
  }
}

</mosaic_0001>

<bundles_post_ra>
// kernel: resblock_forward.5
= control target key start
LH: loop header
LB: loop body
LE: loop exit
PB: predicated region body
PF: predicated region fallthrough
CT: control target
= control target key end

     0   :  { %s2421_s0 = inlined_call_operand.vmem [shape: bf16[512,128], index: 0, kind: input, shape index: {}]   ;;  %s2422_s1 = inlined_call_operand.vmem [shape: bf16[512,128], index: 1, kind: input, shape index: {}]   ;;  %s2423_s2 = inlined_call_operand.vmem [shape: f32[1,128], index: 2, kind: input, shape index: {}]   ;;  %s2424_s3 = inlined_call_operand.vmem [shape: f32[1,128], index: 3, kind: input, shape index: {}]   ;;  %s2425_s4 = inlined_call_operand.vmem [shape: f32[512,128], index: 4, kind: output, shape index: {}]  }
   0x1   :  { %v998_v0 = vld [vmem:[%s2421_s0] sm:$0xff]   ;;  %v1253_v5 = vld [vmem:[%s2421_s0 + $0x8] sm:$0xff]   ;;  %v1254_v12 = vld [vmem:[%s2421_s0 + $0x10] sm:$0xff]  }
   0x2   :  { %v1126_v1 = vld [vmem:[%s2422_s1] sm:$0xff]   ;;  %v999_v3 = vunpack.c.l.bf16 %v998_v0  ;;  %v1000_v4 = vunpack.c.h.bf16 %v998_v0  ;;  %v1284_v6 = vld [vmem:[%s2422_s1 + $0x8] sm:$0xff]   ;;  %v1003_v10 = vunpack.c.l.bf16 %v1253_v5  ;;  %v1004_v11 = vunpack.c.h.bf16 %v1253_v5  ;;  %v1255_v13 = vld [vmem:[%s2421_s0 + $0x18] sm:$0xff]  }
   0x3   :  { %v1479_v2 = vld [vmem:[%s2423_s2] ss:$0 sm:$0xff]  ;;  %v1127_v7 = vunpack.c.l.bf16 %v1126_v1  ;;  %v1128_v9 = vunpack.c.h.bf16 %v1126_v1  ;;  %v1131_v16 = vunpack.c.l.bf16 %v1284_v6  ;;  %v1007_v17 = vunpack.c.l.bf16 %v1254_v12  ;;  %v1285_v18 = vld [vmem:[%s2422_s1 + $0x10] sm:$0xff]   ;;  %v1286_v35 = vld [vmem:[%s2422_s1 + $0x18] sm:$0xff]  }
   0x4   :  { %v1490_v8 = vld [vmem:[%s2424_s3] ss:$0 sm:$0xff]  ;;  %v280_v14 = vmul.f32 %v999_v3, %v1479_v2  ;;  %v281_v15 = vmul.f32 %v1000_v4, %v1479_v2  ;;  %v282_v19 = vmul.f32 %v1003_v10, %v1479_v2  ;;  %v1132_v20 = vunpack.c.h.bf16 %v1284_v6  ;;  %v1257_v62 = vld [vmem:[%s2421_s0 + $0x28] sm:$0xff]  }
   0x5   :  { %v283_v21 = vmul.f32 %v1004_v11, %v1479_v2  ;;  %v1008_v22 = vunpack.c.h.bf16 %v1254_v12  ;;  %v284_v25 = vmul.f32 %v1007_v17, %v1479_v2  ;;  %v1011_v26 = vunpack.c.l.bf16 %v1255_v13  ;;  %v1256_v53 = vld [vmem:[%s2421_s0 + $0x20] sm:$0xff]   ;;  %v1288_v6 = vld [vmem:[%s2422_s1 + $0x28] sm:$0xff]  }
   0x6   :  { %v351_v23 = vadd.f32 %v1490_v8, %v280_v14  ;;  %v352_v24 = vadd.f32 %v1490_v8, %v281_v15  ;;  %v353_v27 = vadd.f32 %v1490_v8, %v282_v19  ;;  %v1135_v29 = vunpack.c.l.bf16 %v1285_v18  ;;  %v1287_v55 = vld [vmem:[%s2422_s1 + $0x20] sm:$0xff]   ;;  %v1564_v14 = vld [vmem:[%s2421_s0 + $0x30] sm:$0xff]  }
   0x7   :  { %v354_v28 = vadd.f32 %v1490_v8, %v283_v21  ;;  %v285_v30 = vmul.f32 %v1008_v22, %v1479_v2  ;;  %v355_v33 = vadd.f32 %v1490_v8, %v284_v25  ;;  %v1136_v34 = vunpack.c.h.bf16 %v1285_v18 }
   0x8   :  { %v1511_v31 = vadd.f32 %v1127_v7, %v351_v23  ;;  %v1513_v32 = vadd.f32 %v1128_v9, %v352_v24  ;;  %v1519_v36 = vadd.f32 %v1131_v16, %v353_v27  ;;  %v286_v39 = vmul.f32 %v1011_v26, %v1479_v2 }
   0x9   :  { %v1521_v37 = vadd.f32 %v1132_v20, %v354_v28  ;;  %v356_v38 = vadd.f32 %v1490_v8, %v285_v30  ;;  %v1139_v44 = vunpack.c.l.bf16 %v1286_v35  ;;  %v1012_v45 = vunpack.c.h.bf16 %v1255_v13  ;;  %v1583_v28 = vld [vmem:[%s2422_s1 + $0x30] sm:$0xff]  }
   0xa   :  { %v543_v40 = vmin.f32 %v1511_v31, 0.0  ;;  %v544_v41 = vmin.f32 %v1513_v32, 0.0  ;;  %v545_v42 = vmin.f32 %v1519_v36, 0.0  ;;  %v1529_v48 = vadd.f32 %v1135_v29, %v355_v33 }
   0xb   :  { %v546_v43 = vmin.f32 %v1521_v37, 0.0  ;;  %v1531_v49 = vadd.f32 %v1136_v34, %v356_v38  ;;  %v357_v52 = vadd.f32 %v1490_v8, %v286_v39  ;;  %v287_v58 = vmul.f32 %v1012_v45, %v1479_v2 }
   0xc   :  { %v607_v46 = vmul.f32 1.442695, %v543_v40  ;;  %v609_v47 = vmul.f32 1.442695, %v544_v41  ;;  %v611_v50 = vmul.f32 1.442695, %v545_v42  ;;  %v1140_v60 = vunpack.c.h.bf16 %v1286_v35 }
   0xd   :  { %v613_v51 = vmul.f32 1.442695, %v546_v43  ;;  %v547_v54 = vmin.f32 %v1529_v48, 0.0  ;;  %v548_v56 = vmin.f32 %v1531_v49, 0.0  ;;  %v1542_v57 = vadd.f32 %v1139_v44, %v357_v52 }
   0xe   :  { %1315 = vpow2.f32 %v607_v46  ;;  %vm479_vm0 = vcmp.gt.f32.partialorder %v1511_v31, 0.0  ;;  %v1015_v61 = vunpack.c.l.bf16 %v1256_v53  ;;  %vm480_vm1 = vcmp.gt.f32.partialorder %v1513_v32, 0.0 }
   0xf   :  { %1317 = vpow2.f32 %v609_v47  ;;  %v615_v59 = vmul.f32 1.442695, %v547_v54  ;;  %v617_v63 = vmul.f32 1.442695, %v548_v56  ;;  %v549_v0 = vmin.f32 %v1542_v57, 0.0 }
  0x10   :  { %1319 = vpow2.f32 %v611_v50  ;;  %v1143_v1 = vunpack.c.l.bf16 %v1287_v55  ;;  %v358_v3 = vadd.f32 %v1490_v8, %v287_v58  ;;  %v288_v4 = vmul.f32 %v1015_v61, %v1479_v2 }
  0x11   :  { %1321 = vpow2.f32 %v613_v51  ;;  %v1016_v5 = vunpack.c.h.bf16 %v1256_v53  ;;  %vm481_vm2 = vcmp.gt.f32.partialorder %v1519_v36, 0.0  ;;  %v619_v7 = vmul.f32 1.442695, %v549_v0 }
  0x12   :  { %1323 = vpow2.f32 %v615_v59  ;;  %v1019_v9 = vunpack.c.l.bf16 %v1257_v62  ;;  %v1557_v10 = vadd.f32 %v1140_v60, %v358_v3  ;;  %v359_v11 = vadd.f32 %v1490_v8, %v288_v4 }
  0x13   :  { %1325 = vpow2.f32 %v617_v63  ;;  %v1144_v12 = vunpack.c.h.bf16 %v1287_v55  ;;  %v289_v13 = vmul.f32 %v1016_v5, %v1479_v2  ;;  %v1147_v15 = vunpack.c.l.bf16 %v1288_v6  ;;  %v1290_v63 = vld [vmem:[%s2422_s1 + $0x38] sm:$0xff]  }
  0x14   :  { %1327 = vpow2.f32 %v619_v7  ;;  %v290_v16 = vmul.f32 %v1019_v9, %v1479_v2  ;;  %v1020_v17 = vunpack.c.h.bf16 %v1257_v62  ;;  %vm482_vm3 = vcmp.gt.f32.partialorder %v1521_v37, 0.0 }
  0x15   :  { %v550_v18 = vmin.f32 %v1557_v10, 0.0  ;;  %v1569_v19 = vadd.f32 %v1143_v1, %v359_v11  ;;  %v360_v20 = vadd.f32 %v1490_v8, %v289_v13  ;;  %vm483_vm4 = vcmp.gt.f32.partialorder %v1529_v48, 0.0 }
  0x16   :  { %v361_v21 = vadd.f32 %v1490_v8, %v290_v16  ;;  %v291_v22 = vmul.f32 %v1020_v17, %v1479_v2  ;;  %v1023_v23 = vunpack.c.l.bf16 %v1564_v14  ;;  %vm484_vm5 = vcmp.gt.f32.partialorder %v1531_v49, 0.0 }
  0x17   :  { %v621_v25 = vmul.f32 1.442695, %v550_v18  ;;  %v551_v26 = vmin.f32 %v1569_v19, 0.0  ;;  %v1578_v27 = vadd.f32 %v1144_v12, %v360_v20  ;;  %v1148_v34 = vunpack.c.h.bf16 %v1288_v6  ;;  %v1260_v6 = vld [vmem:[%s2421_s0 + $0x40] sm:$0xff]  }
  0x18   :  { %v1316_v24 = vpop.eup %1315  ;;  %v1585_v33 = vadd.f32 %v1147_v15, %v361_v21  ;;  %v362_v35 = vadd.f32 %v1490_v8, %v291_v22  ;;  %v292_v41 = vmul.f32 %v1023_v23, %v1479_v2  ;;  %v1151_v46 = vunpack.c.l.bf16 %v1583_v28  ;;  %v1291_v15 = vld [vmem:[%s2422_s1 + $0x40] sm:$0xff]  }
  0x19   :  { %v1318_v29 = vpop.eup %1317  ;;  %v933_v30 = vadd.f32 -1.0, %v1316_v24  ;;  %1329 = vpow2.f32 %v621_v25  ;;  %v623_v40 = vmul.f32 1.442695, %v551_v26  ;;  %v552_v45 = vmin.f32 %v1578_v27, 0.0 }
  0x1a   :  { %v1320_v38 = vpop.eup %1319  ;;  %v934_v39 = vadd.f32 -1.0, %v1318_v29  ;;  %v553_v52 = vmin.f32 %v1585_v33, 0.0  ;;  %v1607_v56 = vadd.f32 %v1148_v34, %v362_v35  ;;  %v363_v60 = vadd.f32 %v1490_v8, %v292_v41 }
  0x1b   :  { %v1322_v42 = vpop.eup %1321  ;;  %v799_v43 = vsel %vm479_vm0, %v1511_v31, %v933_v30  ;;  %v935_v44 = vadd.f32 -1.0, %v1320_v38  ;;  %1331 = vpow2.f32 %v623_v40  ;;  %v625_v55 = vmul.f32 1.442695, %v552_v45 }
  0x1c   :  { %v1324_v47 = vpop.eup %1323  ;;  %863 = vst [vmem:[%s2425_s4] sm:$0xff] %v799_v43  ;;  %v800_v50 = vsel %vm480_vm1, %v1513_v32, %v934_v39  ;;  %v936_v51 = vadd.f32 -1.0, %v1322_v42  ;;  %v627_v59 = vmul.f32 1.442695, %v553_v52  ;;  %vm485_vm6 = vcmp.gt.f32.partialorder %v1542_v57, 0.0 }
  0x1d   :  { %v1326_v53 = vpop.eup %1325  ;;  %864 = vst [vmem:[%s2425_s4 + $0x8] sm:$0xff] %v800_v50  ;;  %v801_v31 = vsel %vm481_vm2, %v1519_v36, %v935_v44  ;;  %v937_v54 = vadd.f32 -1.0, %v1324_v47  ;;  %v1259_v36 = vld [vmem:[%s2421_s0 + $0x38] sm:$0xff]   ;;  %1333 = vpow2.f32 %v625_v55  ;;  %vm486_vm7 = vcmp.gt.f32.partialorder %v1557_v10, 0.0 }
  0x1e   :  { %865 = vst [vmem:[%s2425_s4 + $0x10] sm:$0xff] %v801_v31  ;;  %v802_v32 = vsel %vm482_vm3, %v1521_v37, %v936_v51  ;;  %v938_v58 = vadd.f32 -1.0, %v1326_v53  ;;  %v1328_v61 = vpop.eup %1327  ;;  %v554_v37 = vmin.f32 %v1607_v56, 0.0  ;;  %1335 = vpow2.f32 %v627_v59 }
  0x1f   :  { %866 = vst [vmem:[%s2425_s4 + $0x18] sm:$0xff] %v802_v32  ;;  %v803_v62 = vsel %vm483_vm4, %v1529_v48, %v937_v54  ;;  %v939_v1 = vadd.f32 -1.0, %v1328_v61  ;;  %v1636_v48 = vadd.f32 %v1151_v46, %v363_v60  ;;  %v1024_v4 = vunpack.c.h.bf16 %v1564_v14 }
  0x20   :  { %867 = vst [vmem:[%s2425_s4 + $0x20] sm:$0xff] %v803_v62  ;;  %v804_v0 = vsel %vm484_vm5, %v1531_v49, %v938_v58  ;;  %v629_v3 = vmul.f32 1.442695, %v554_v37  ;;  %v1027_v5 = vunpack.c.l.bf16 %v1259_v36  ;;  %v1152_v9 = vunpack.c.h.bf16 %v1583_v28  ;;  %v1292_v58 = vld [vmem:[%s2422_s1 + $0x48] sm:$0xff]  }
  0x21   :  { %868 = vst [vmem:[%s2425_s4 + $0x28] sm:$0xff] %v804_v0  ;;  %v805_v49 = vsel %vm485_vm6, %v1542_v57, %v939_v1  ;;  %v555_v7 = vmin.f32 %v1636_v48, 0.0  ;;  %v1155_v11 = vunpack.c.l.bf16 %v1290_v63  ;;  %v293_v12 = vmul.f32 %v1024_v4, %v1479_v2  ;;  %v1262_v1 = vld [vmem:[%s2421_s0 + $0x50] sm:$0xff]  }
  0x22   :  { %869 = vst [vmem:[%s2425_s4 + $0x30] sm:$0xff] %v805_v49  ;;  %1337 = vpow2.f32 %v629_v3  ;;  %v294_v13 = vmul.f32 %v1027_v5, %v1479_v2  ;;  %v1028_v14 = vunpack.c.h.bf16 %v1259_v36  ;;  %vm487_vm8 = vcmp.gt.f32.partialorder %v1569_v19, 0.0  ;;  %v1293_v3 = vld [vmem:[%s2422_s1 + $0x50] sm:$0xff]  }
  0x23   :  { %v1330_v57 = vpop.eup %1329  ;;  %v631_v16 = vmul.f32 1.442695, %v555_v7  ;;  %v1156_v17 = vunpack.c.h.bf16 %v1290_v63  ;;  %v1031_v18 = vunpack.c.l.bf16 %v1260_v6  ;;  %v364_v21 = vadd.f32 %v1490_v8, %v293_v12  ;;  %v1263_v12 = vld [vmem:[%s2421_s0 + $0x58] sm:$0xff]  }
  0x24   :  { %v940_v20 = vadd.f32 -1.0, %v1330_v57  ;;  %v365_v22 = vadd.f32 %v1490_v8, %v294_v13  ;;  %v295_v23 = vmul.f32 %v1028_v14, %v1479_v2  ;;  %v1159_v25 = vunpack.c.l.bf16 %v1291_v15 }
  0x25   :  { %v1332_v24 = vpop.eup %1331  ;;  %1339 = vpow2.f32 %v631_v16  ;;  %v296_v26 = vmul.f32 %v1031_v18, %v1479_v2  ;;  %v1032_v28 = vunpack.c.h.bf16 %v1260_v6  ;;  %v1665_v34 = vadd.f32 %v1152_v9, %v364_v21 }
  0x26   :  { %v806_v29 = vsel %vm486_vm7, %v1557_v10, %v940_v20  ;;  %v941_v30 = vadd.f32 -1.0, %v1332_v24  ;;  %v1667_v35 = vadd.f32 %v1155_v11, %v365_v22  ;;  %vm488_vm9 = vcmp.gt.f32.partialorder %v1578_v27, 0.0  ;;  %v1261_v10 = vld [vmem:[%s2421_s0 + $0x48] sm:$0xff]  }
  0x27   :  { %870 = vst [vmem:[%s2425_s4 + $0x38] sm:$0xff] %v806_v29  ;;  %v366_v38 = vadd.f32 %v1490_v8, %v295_v23  ;;  %v367_v39 = vadd.f32 %v1490_v8, %v296_v26  ;;  %v297_v40 = vmul.f32 %v1032_v28, %v1479_v2  ;;  %v1334_v41 = vpop.eup %1333  ;;  %vm489_vm10 = vcmp.gt.f32.partialorder %v1585_v33, 0.0  ;;  %v1294_v23 = vld [vmem:[%s2422_s1 + $0x58] sm:$0xff]  }
  0x28   :  { %v807_v42 = vsel %vm487_vm8, %v1569_v19, %v941_v30  ;;  %v556_v43 = vmin.f32 %v1665_v34, 0.0  ;;  %v1160_v44 = vunpack.c.h.bf16 %v1291_v15  ;;  %v1336_v45 = vpop.eup %1335  ;;  %v942_v46 = vadd.f32 -1.0, %v1334_v41 }
  0x29   :  { %871 = vst [vmem:[%s2425_s4 + $0x40] sm:$0xff] %v807_v42  ;;  %v557_v47 = vmin.f32 %v1667_v35, 0.0  ;;  %v1688_v50 = vadd.f32 %v1156_v17, %v366_v38  ;;  %v1690_v51 = vadd.f32 %v1159_v25, %v367_v39  ;;  %v943_v52 = vadd.f32 -1.0, %v1336_v45 }
  0x2a   :  { %v633_v53 = vmul.f32 1.442695, %v556_v43  ;;  %v368_v19 = vadd.f32 %v1490_v8, %v297_v40  ;;  %v1035_v31 = vunpack.c.l.bf16 %v1261_v10  ;;  %v808_v54 = vsel %vm488_vm9, %v1578_v27, %v942_v46 }
  0x2b   :  { %vm490_vm11 = vcmp.gt.f32.partialorder %v1607_v56, 0.0  ;;  %v635_v55 = vmul.f32 1.442695, %v557_v47  ;;  %v558_v32 = vmin.f32 %v1688_v50, 0.0  ;;  %872 = vst [vmem:[%s2425_s4 + $0x48] sm:$0xff] %v808_v54  ;;  %v809_v60 = vsel %vm489_vm10, %v1585_v33, %v943_v52  ;;  %v1264_v54 = vld [vmem:[%s2421_s0 + $0x60] sm:$0xff]  }
  0x2c   :  { %v1338_v59 = vpop.eup %1337  ;;  %vm491_vm12 = vcmp.gt.f32.partialorder %v1636_v48, 0.0  ;;  %1341 = vpow2.f32 %v633_v53  ;;  %v559_v27 = vmin.f32 %v1690_v51, 0.0  ;;  %873 = vst [vmem:[%s2425_s4 + $0x50] sm:$0xff] %v809_v60  ;;  %v1712_v62 = vadd.f32 %v1160_v44, %v368_v19 }
  0x2d   :  { %v944_v36 = vadd.f32 -1.0, %v1338_v59  ;;  %1343 = vpow2.f32 %v635_v55  ;;  %v637_v61 = vmul.f32 1.442695, %v558_v32  ;;  %vm492_vm13 = vcmp.gt.f32.partialorder %v1665_v34, 0.0  ;;  %v1295_v59 = vld [vmem:[%s2422_s1 + $0x60] sm:$0xff]  }
  0x2e   :  { %v639_v37 = vmul.f32 1.442695, %v559_v27  ;;  %v1163_v63 = vunpack.c.l.bf16 %v1292_v58  ;;  %v298_v33 = vmul.f32 %v1035_v31, %v1479_v2  ;;  %v1036_v0 = vunpack.c.h.bf16 %v1261_v10 }
  0x2f   :  { %v1340_v4 = vpop.eup %1339  ;;  %v810_v5 = vsel %vm490_vm11, %v1607_v56, %v944_v36  ;;  %1345 = vpow2.f32 %v637_v61  ;;  %v560_v6 = vmin.f32 %v1712_v62, 0.0  ;;  %v1164_v49 = vunpack.c.h.bf16 %v1292_v58 }
  0x30   :  { %874 = vst [vmem:[%s2425_s4 + $0x58] sm:$0xff] %v810_v5  ;;  %v945_v7 = vadd.f32 -1.0, %v1340_v4  ;;  %1347 = vpow2.f32 %v639_v37  ;;  %v369_v9 = vadd.f32 %v1490_v8, %v298_v33  ;;  %v299_v11 = vmul.f32 %v1036_v0, %v1479_v2  ;;  %v1265_v33 = vld [vmem:[%s2421_s0 + $0x68] sm:$0xff]  }
  0x31   :  { %v641_v13 = vmul.f32 1.442695, %v560_v6  ;;  %v1039_v56 = vunpack.c.l.bf16 %v1262_v1  ;;  %v1167_v14 = vunpack.c.l.bf16 %v1293_v3  ;;  %v1040_v15 = vunpack.c.h.bf16 %v1262_v1 }
  0x32   :  { %v811_v57 = vsel %vm491_vm12, %v1636_v48, %v945_v7  ;;  %v1737_v16 = vadd.f32 %v1163_v63, %v369_v9  ;;  %v370_v17 = vadd.f32 %v1490_v8, %v299_v11  ;;  %v1168_v18 = vunpack.c.h.bf16 %v1293_v3 }
  0x33   :  { %875 = vst [vmem:[%s2425_s4 + $0x60] sm:$0xff] %v811_v57  ;;  %1349 = vpow2.f32 %v641_v13  ;;  %v300_v20 = vmul.f32 %v1039_v56, %v1479_v2  ;;  %v301_v21 = vmul.f32 %v1040_v15, %v1479_v2  ;;  %v1043_v22 = vunpack.c.l.bf16 %v1263_v12 }
  0x34   :  { %vm493_vm14 = vcmp.gt.f32.partialorder %v1667_v35, 0.0  ;;  %vm494_vm15 = vcmp.gt.f32.partialorder %v1688_v50, 0.0  ;;  %v561_v48 = vmin.f32 %v1737_v16, 0.0  ;;  %v1751_v24 = vadd.f32 %v1164_v49, %v370_v17  ;;  %v1296_v49 = vld [vmem:[%s2422_s1 + $0x68] sm:$0xff]  }
  0x35   :  { %v371_v25 = vadd.f32 %v1490_v8, %v300_v20  ;;  %v372_v26 = vadd.f32 %v1490_v8, %v301_v21  ;;  %v302_v28 = vmul.f32 %v1043_v22, %v1479_v2  ;;  %v1044_v29 = vunpack.c.h.bf16 %v1263_v12 }
  0x36   :  { %v1342_v30 = vpop.eup %1341  ;;  %vm495_vm0 = vcmp.gt.f32.partialorder %v1690_v51, 0.0  ;;  %v643_v38 = vmul.f32 1.442695, %v561_v48  ;;  %v562_v39 = vmin.f32 %v1751_v24, 0.0  ;;  %v1171_v40 = vunpack.c.l.bf16 %v1294_v23 }
  0x37   :  { %v1344_v10 = vpop.eup %1343  ;;  %v946_v41 = vadd.f32 -1.0, %v1342_v30  ;;  %v1758_v42 = vadd.f32 %v1167_v14, %v371_v25  ;;  %v1760_v43 = vadd.f32 %v1168_v18, %v372_v26  ;;  %v373_v44 = vadd.f32 %v1490_v8, %v302_v28  ;;  %v1266_v14 = vld [vmem:[%s2421_s0 + $0x70] sm:$0xff]  }
  0x38   :  { %v947_v45 = vadd.f32 -1.0, %v1344_v10  ;;  %1351 = vpow2.f32 %v643_v38  ;;  %v645_v46 = vmul.f32 1.442695, %v562_v39  ;;  %v303_v47 = vmul.f32 %v1044_v29, %v1479_v2  ;;  %v1297_v38 = vld [vmem:[%s2422_s1 + $0x70] sm:$0xff]  }
  0x39   :  { %v1346_v52 = vpop.eup %1345  ;;  %v812_v53 = vsel %vm492_vm13, %v1665_v34, %v946_v41  ;;  %vm496_vm1 = vcmp.gt.f32.partialorder %v1712_v62, 0.0  ;;  %v563_v19 = vmin.f32 %v1758_v42, 0.0  ;;  %v1172_v31 = vunpack.c.h.bf16 %v1294_v23 }
  0x3a   :  { %v1348_v55 = vpop.eup %1347  ;;  %876 = vst [vmem:[%s2425_s4 + $0x68] sm:$0xff] %v812_v53  ;;  %v813_v32 = vsel %vm493_vm14, %v1667_v35, %v947_v45  ;;  %v948_v58 = vadd.f32 -1.0, %v1346_v52  ;;  %1353 = vpow2.f32 %v645_v46  ;;  %v564_v34 = vmin.f32 %v1760_v43, 0.0 }
  0x3b   :  { %877 = vst [vmem:[%s2425_s4 + $0x70] sm:$0xff] %v813_v32  ;;  %v949_v60 = vadd.f32 -1.0, %v1348_v55  ;;  %v647_v27 = vmul.f32 1.442695, %v563_v19  ;;  %v1785_v36 = vadd.f32 %v1171_v40, %v373_v44  ;;  %v374_v61 = vadd.f32 %v1490_v8, %v303_v47 }
  0x3c   :  { %v814_v35 = vsel %vm494_vm15, %v1688_v50, %v948_v58  ;;  %vm497_vm2 = vcmp.gt.f32.partialorder %v1737_v16, 0.0  ;;  %v649_v37 = vmul.f32 1.442695, %v564_v34  ;;  %v1047_v63 = vunpack.c.l.bf16 %v1264_v54 }
  0x3d   :  { %v1350_v0 = vpop.eup %1349  ;;  %878 = vst [vmem:[%s2425_s4 + $0x78] sm:$0xff] %v814_v35  ;;  %v815_v1 = vsel %vm495_vm0, %v1690_v51, %v949_v60  ;;  %1355 = vpow2.f32 %v647_v27  ;;  %v565_v50 = vmin.f32 %v1785_v36, 0.0  ;;  %v1175_v3 = vunpack.c.l.bf16 %v1295_v59 }
  0x3e   :  { %879 = vst [vmem:[%s2425_s4 + $0x80] sm:$0xff] %v815_v1  ;;  %v950_v4 = vadd.f32 -1.0, %v1350_v0  ;;  %1357 = vpow2.f32 %v649_v37  ;;  %v1805_v5 = vadd.f32 %v1172_v31, %v374_v61  ;;  %v304_v6 = vmul.f32 %v1047_v63, %v1479_v2  ;;  %v1267_v61 = vld [vmem:[%s2421_s0 + $0x78] sm:$0xff]  }
  0x3f   :  { %vm498_vm3 = vcmp.gt.f32.partialorder %v1751_v24, 0.0  ;;  %v651_v51 = vmul.f32 1.442695, %v565_v50  ;;  %v1048_v7 = vunpack.c.h.bf16 %v1264_v54  ;;  %v1051_v9 = vunpack.c.l.bf16 %v1265_v33  ;;  %v1298_v50 = vld [vmem:[%s2422_s1 + $0x78] sm:$0xff]  }
  0x40   :  { %v816_v11 = vsel %vm496_vm1, %v1712_v62, %v950_v4  ;;  %v566_v12 = vmin.f32 %v1805_v5, 0.0  ;;  %v375_v13 = vadd.f32 %v1490_v8, %v304_v6  ;;  %v1176_v56 = vunpack.c.h.bf16 %v1295_v59  ;;  %v1268_v4 = vld [vmem:[%s2421_s0 + $0x80] sm:$0xff]  }
  0x41   :  { %880 = vst [vmem:[%s2425_s4 + $0x88] sm:$0xff] %v816_v11  ;;  %1359 = vpow2.f32 %v651_v51  ;;  %v305_v15 = vmul.f32 %v1048_v7, %v1479_v2  ;;  %v1179_v57 = vunpack.c.l.bf16 %v1296_v49  ;;  %v306_v17 = vmul.f32 %v1051_v9, %v1479_v2 }
  0x42   :  { %v1352_v62 = vpop.eup %1351  ;;  %vm499_vm4 = vcmp.gt.f32.partialorder %v1758_v42, 0.0  ;;  %v653_v18 = vmul.f32 1.442695, %v566_v12  ;;  %v1826_v20 = vadd.f32 %v1175_v3, %v375_v13  ;;  %v1052_v21 = vunpack.c.h.bf16 %v1265_v33 }
  0x43   :  { %v951_v22 = vadd.f32 -1.0, %v1352_v62  ;;  %v376_v23 = vadd.f32 %v1490_v8, %v305_v15  ;;  %v377_v48 = vadd.f32 %v1490_v8, %v306_v17  ;;  %v1055_v25 = vunpack.c.l.bf16 %v1266_v14 }
  0x44   :  { %v1354_v26 = vpop.eup %1353  ;;  %1361 = vpow2.f32 %v653_v18  ;;  %v567_v28 = vmin.f32 %v1826_v20, 0.0  ;;  %v1180_v29 = vunpack.c.h.bf16 %v1296_v49  ;;  %v307_v30 = vmul.f32 %v1052_v21, %v1479_v2  ;;  %v1269_v21 = vld [vmem:[%s2421_s0 + $0x88] sm:$0xff]  }
  0x45   :  { %v817_v39 = vsel %vm497_vm2, %v1737_v16, %v951_v22  ;;  %v952_v40 = vadd.f32 -1.0, %v1354_v26  ;;  %v1838_v10 = vadd.f32 %v1176_v56, %v376_v23  ;;  %v1840_v41 = vadd.f32 %v1179_v57, %v377_v48  ;;  %v1299_v56 = vld [vmem:[%s2422_s1 + $0x80] sm:$0xff]  }
  0x46   :  { %881 = vst [vmem:[%s2425_s4 + $0x90] sm:$0xff] %v817_v39  ;;  %vm500_vm5 = vcmp.gt.f32.partialorder %v1760_v43, 0.0  ;;  %v655_v44 = vmul.f32 1.442695, %v567_v28  ;;  %v378_v45 = vadd.f32 %v1490_v8, %v307_v30  ;;  %v308_v46 = vmul.f32 %v1055_v25, %v1479_v2 }
  0x47   :  { %v1356_v47 = vpop.eup %1355  ;;  %v818_v16 = vsel %vm498_vm3, %v1751_v24, %v952_v40  ;;  %vm501_vm6 = vcmp.gt.f32.partialorder %v1785_v36, 0.0  ;;  %v568_v52 = vmin.f32 %v1838_v10, 0.0  ;;  %v1183_v53 = vunpack.c.l.bf16 %v1297_v38 }
  0x48   :  { %v1358_v19 = vpop.eup %1357  ;;  %882 = vst [vmem:[%s2425_s4 + $0x98] sm:$0xff] %v818_v16  ;;  %v953_v31 = vadd.f32 -1.0, %v1356_v47  ;;  %1363 = vpow2.f32 %v655_v44  ;;  %v569_v54 = vmin.f32 %v1840_v41, 0.0  ;;  %v1857_v55 = vadd.f32 %v1180_v29, %v378_v45 }
  0x49   :  { %v954_v32 = vadd.f32 -1.0, %v1358_v19  ;;  %v657_v58 = vmul.f32 1.442695, %v568_v52  ;;  %v379_v24 = vadd.f32 %v1490_v8, %v308_v46  ;;  %v1056_v34 = vunpack.c.h.bf16 %v1266_v14 }
  0x4a   :  { %v819_v59 = vsel %vm499_vm4, %v1758_v42, %v953_v31  ;;  %vm502_vm7 = vcmp.gt.f32.partialorder %v1805_v5, 0.0  ;;  %v659_v60 = vmul.f32 1.442695, %v569_v54  ;;  %v570_v27 = vmin.f32 %v1857_v55, 0.0 }
  0x4b   :  { %v1360_v35 = vpop.eup %1359  ;;  %883 = vst [vmem:[%s2425_s4 + $0xa0] sm:$0xff] %v819_v59  ;;  %v820_v37 = vsel %vm500_vm5, %v1760_v43, %v954_v32  ;;  %1365 = vpow2.f32 %v657_v58  ;;  %v1874_v42 = vadd.f32 %v1183_v53, %v379_v24  ;;  %v1184_v63 = vunpack.c.h.bf16 %v1297_v38 }
  0x4c   :  { %884 = vst [vmem:[%s2425_s4 + $0xa8] sm:$0xff] %v820_v37  ;;  %v955_v33 = vadd.f32 -1.0, %v1360_v35  ;;  %1367 = vpow2.f32 %v659_v60  ;;  %v661_v0 = vmul.f32 1.442695, %v570_v27  ;;  %v309_v1 = vmul.f32 %v1056_v34, %v1479_v2 }
  0x4d   :  { %vm503_vm8 = vcmp.gt.f32.partialorder %v1826_v20, 0.0  ;;  %vm504_vm9 = vcmp.gt.f32.partialorder %v1838_v10, 0.0  ;;  %v571_v43 = vmin.f32 %v1874_v42, 0.0  ;;  %v1059_v3 = vunpack.c.l.bf16 %v1267_v61 }
  0x4e   :  { %v1362_v6 = vpop.eup %1361  ;;  %v821_v49 = vsel %vm501_vm6, %v1785_v36, %v955_v33  ;;  %1369 = vpow2.f32 %v661_v0  ;;  %v380_v51 = vadd.f32 %v1490_v8, %v309_v1  ;;  %v1060_v7 = vunpack.c.h.bf16 %v1267_v61 }
  0x4f   :  { %885 = vst [vmem:[%s2425_s4 + $0xb0] sm:$0xff] %v821_v49  ;;  %v956_v9 = vadd.f32 -1.0, %v1362_v6  ;;  %v663_v11 = vmul.f32 1.442695, %v571_v43  ;;  %v1187_v12 = vunpack.c.l.bf16 %v1298_v50  ;;  %v310_v13 = vmul.f32 %v1059_v3, %v1479_v2 }
  0x50   :  { %v1900_v14 = vadd.f32 %v1184_v63, %v380_v51  ;;  %v1188_v36 = vunpack.c.h.bf16 %v1298_v50  ;;  %v311_v15 = vmul.f32 %v1060_v7, %v1479_v2  ;;  %v1063_v57 = vunpack.c.l.bf16 %v1268_v4  ;;  %v1301_v50 = vld [vmem:[%s2422_s1 + $0x90] sm:$0xff]  }
  0x51   :  { %v822_v17 = vsel %vm502_vm7, %v1805_v5, %v956_v9  ;;  %1371 = vpow2.f32 %v663_v11  ;;  %v381_v62 = vadd.f32 %v1490_v8, %v310_v13  ;;  %v1064_v18 = vunpack.c.h.bf16 %v1268_v4  ;;  %v1271_v9 = vld [vmem:[%s2421_s0 + $0x98] sm:$0xff]  }
  0x52   :  { %v1364_v22 = vpop.eup %1363  ;;  %886 = vst [vmem:[%s2425_s4 + $0xb8] sm:$0xff] %v822_v17  ;;  %v572_v23 = vmin.f32 %v1900_v14, 0.0  ;;  %v382_v48 = vadd.f32 %v1490_v8, %v311_v15  ;;  %v1191_v25 = vunpack.c.l.bf16 %v1299_v56  ;;  %v312_v5 = vmul.f32 %v1063_v57, %v1479_v2 }
  0x53   :  { %v957_v26 = vadd.f32 -1.0, %v1364_v22  ;;  %v1916_v28 = vadd.f32 %v1187_v12, %v381_v62  ;;  %v1192_v29 = vunpack.c.h.bf16 %v1299_v56  ;;  %v313_v30 = vmul.f32 %v1064_v18, %v1479_v2  ;;  %v1302_v18 = vld [vmem:[%s2422_s1 + $0x98] sm:$0xff]  }
  0x54   :  { %v665_v38 = vmul.f32 1.442695, %v572_v23  ;;  %v1919_v39 = vadd.f32 %v1188_v36, %v382_v48  ;;  %v383_v40 = vadd.f32 %v1490_v8, %v312_v5  ;;  %v1067_v44 = vunpack.c.l.bf16 %v1269_v21 }
  0x55   :  { %v1366_v45 = vpop.eup %1365  ;;  %v823_v46 = vsel %vm503_vm8, %v1826_v20, %v957_v26  ;;  %vm505_vm10 = vcmp.gt.f32.partialorder %v1840_v41, 0.0  ;;  %v573_v47 = vmin.f32 %v1916_v28, 0.0  ;;  %v384_v16 = vadd.f32 %v1490_v8, %v313_v30  ;;  %v1300_v20 = vld [vmem:[%s2422_s1 + $0x88] sm:$0xff]  }
  0x56   :  { %v1368_v52 = vpop.eup %1367  ;;  %887 = vst [vmem:[%s2425_s4 + $0xc0] sm:$0xff] %v823_v46  ;;  %v958_v53 = vadd.f32 -1.0, %v1366_v45  ;;  %vm506_vm11 = vcmp.gt.f32.partialorder %v1857_v55, 0.0  ;;  %1373 = vpow2.f32 %v665_v38  ;;  %v574_v19 = vmin.f32 %v1919_v39, 0.0 }
  0x57   :  { %v959_v31 = vadd.f32 -1.0, %v1368_v52  ;;  %v667_v54 = vmul.f32 1.442695, %v573_v47  ;;  %v1936_v32 = vadd.f32 %v1191_v25, %v383_v40  ;;  %v1938_v58 = vadd.f32 %v1192_v29, %v384_v16 }
  0x58   :  { %v1370_v24 = vpop.eup %1369  ;;  %v824_v34 = vsel %vm504_vm9, %v1838_v10, %v958_v53  ;;  %vm507_vm12 = vcmp.gt.f32.partialorder %v1874_v42, 0.0  ;;  %v669_v59 = vmul.f32 1.442695, %v574_v19  ;;  %v314_v60 = vmul.f32 %v1067_v44, %v1479_v2  ;;  %v1270_v10 = vld [vmem:[%s2421_s0 + $0x90] sm:$0xff]  }
  0x59   :  { %888 = vst [vmem:[%s2425_s4 + $0xc8] sm:$0xff] %v824_v34  ;;  %v825_v27 = vsel %vm505_vm10, %v1840_v41, %v959_v31  ;;  %v960_v61 = vadd.f32 -1.0, %v1370_v24  ;;  %1375 = vpow2.f32 %v667_v54  ;;  %v1195_v35 = vunpack.c.l.bf16 %v1300_v20  ;;  %v1303_v34 = vld [vmem:[%s2422_s1 + $0xa0] sm:$0xff]  }
  0x5a   :  { %889 = vst [vmem:[%s2425_s4 + $0xd0] sm:$0xff] %v825_v27  ;;  %vm508_vm13 = vcmp.gt.f32.partialorder %v1900_v14, 0.0  ;;  %1377 = vpow2.f32 %v669_v59  ;;  %v575_v37 = vmin.f32 %v1936_v32, 0.0  ;;  %v576_v63 = vmin.f32 %v1938_v58, 0.0 }
  0x5b   :  { %v1372_v33 = vpop.eup %1371  ;;  %v826_v41 = vsel %vm506_vm11, %v1857_v55, %v960_v61  ;;  %vm509_vm14 = vcmp.gt.f32.partialorder %v1916_v28, 0.0  ;;  %v385_v0 = vadd.f32 %v1490_v8, %v314_v60  ;;  %v1068_v1 = vunpack.c.h.bf16 %v1269_v21 }
  0x5c   :  { %890 = vst [vmem:[%s2425_s4 + $0xd8] sm:$0xff] %v826_v41  ;;  %v961_v43 = vadd.f32 -1.0, %v1372_v33  ;;  %v671_v3 = vmul.f32 1.442695, %v575_v37  ;;  %v673_v4 = vmul.f32 1.442695, %v576_v63  ;;  %v1071_v6 = vunpack.c.l.bf16 %v1270_v10 }
  0x5d   :  { %v1971_v49 = vadd.f32 %v1195_v35, %v385_v0  ;;  %v1196_v55 = vunpack.c.h.bf16 %v1300_v20  ;;  %v315_v51 = vmul.f32 %v1068_v1, %v1479_v2  ;;  %v1072_v7 = vunpack.c.h.bf16 %v1270_v10  ;;  %v1272_v20 = vld [vmem:[%s2421_s0 + $0xa0] sm:$0xff]   ;;  %v1273_v1 = vld [vmem:[%s2421_s0 + $0xa8] sm:$0xff]  }
  0x5e   :  { %v827_v11 = vsel %vm507_vm12, %v1874_v42, %v961_v43  ;;  %1379 = vpow2.f32 %v671_v3  ;;  %v1199_v12 = vunpack.c.l.bf16 %v1301_v50  ;;  %v316_v13 = vmul.f32 %v1071_v6, %v1479_v2  ;;  %v2061_v6 = vld [vmem:[%s2424_s3] ss:$0 sm:$0xff] }
  0x5f   :  { %891 = vst [vmem:[%s2425_s4 + $0xe0] sm:$0xff] %v827_v11  ;;  %vm510_vm15 = vcmp.gt.f32.partialorder %v1919_v39, 0.0  ;;  %1381 = vpow2.f32 %v673_v4  ;;  %v577_v56 = vmin.f32 %v1971_v49, 0.0  ;;  %v386_v36 = vadd.f32 %v1490_v8, %v315_v51 }
  0x60   :  { %v1374_v15 = vpop.eup %1373  ;;  %v387_v57 = vadd.f32 %v1490_v8, %v316_v13  ;;  %v1200_v17 = vunpack.c.h.bf16 %v1301_v50  ;;  %v317_v42 = vmul.f32 %v1072_v7, %v1479_v2  ;;  %v1075_v62 = vunpack.c.l.bf16 %v1271_v9  ;;  %v1304_v7 = vld [vmem:[%s2422_s1 + $0xa8] sm:$0xff]  }
  0x61   :  { %v962_v21 = vadd.f32 -1.0, %v1374_v15  ;;  %v675_v22 = vmul.f32 1.442695, %v577_v56  ;;  %v1992_v23 = vadd.f32 %v1196_v55, %v386_v36  ;;  %v1076_v48 = vunpack.c.h.bf16 %v1271_v9  ;;  %v1274_v9 = vld [vmem:[%s2421_s0 + $0xb0] sm:$0xff]  }
  0x62   :  { %vm511_vm0 = vcmp.gt.f32.partialorder %v1936_v32, 0.0  ;;  %v1995_v25 = vadd.f32 %v1199_v12, %v387_v57  ;;  %v388_v5 = vadd.f32 %v1490_v8, %v317_v42  ;;  %v318_v26 = vmul.f32 %v1075_v62, %v1479_v2  ;;  %v1305_v62 = vld [vmem:[%s2422_s1 + $0xb0] sm:$0xff]  }
  0x63   :  { %v1376_v29 = vpop.eup %1375  ;;  %v828_v30 = vsel %vm508_vm13, %v1900_v14, %v962_v21  ;;  %1383 = vpow2.f32 %v675_v22  ;;  %v578_v38 = vmin.f32 %v1992_v23, 0.0  ;;  %v1203_v40 = vunpack.c.l.bf16 %v1302_v18 }
  0x64   :  { %v1378_v44 = vpop.eup %1377  ;;  %892 = vst [vmem:[%s2425_s4 + $0xe8] sm:$0xff] %v828_v30  ;;  %v963_v45 = vadd.f32 -1.0, %v1376_v29  ;;  %v579_v46 = vmin.f32 %v1995_v25, 0.0  ;;  %v2007_v47 = vadd.f32 %v1200_v17, %v388_v5  ;;  %v1204_v16 = vunpack.c.h.bf16 %v1302_v18 }
  0x65   :  { %v964_v52 = vadd.f32 -1.0, %v1378_v44  ;;  %v677_v53 = vmul.f32 1.442695, %v578_v38  ;;  %v389_v19 = vadd.f32 %v1490_v8, %v318_v26  ;;  %v319_v14 = vmul.f32 %v1076_v48, %v1479_v2 }
  0x66   :  { %v829_v31 = vsel %vm509_vm14, %v1916_v28, %v963_v45  ;;  %vm512_vm1 = vcmp.gt.f32.partialorder %v1938_v58, 0.0  ;;  %v679_v54 = vmul.f32 1.442695, %v579_v46  ;;  %v580_v24 = vmin.f32 %v2007_v47, 0.0 }
  0x67   :  { %893 = vst [vmem:[%s2425_s4 + $0xf0] sm:$0xff] %v829_v31  ;;  %v830_v2 = vsel %vm510_vm15, %v1919_v39, %v964_v52  ;;  %1385 = vpow2.f32 %v677_v53  ;;  %v2028_v59 = vadd.f32 %v1203_v40, %v389_v19  ;;  %v390_v28 = vadd.f32 %v1490_v8, %v319_v14  ;;  %v2041_v8 = vld [vmem:[%s2423_s2] ss:$0 sm:$0xff] }
  0x68   :  { %v1380_v60 = vpop.eup %1379  ;;  %894 = vst [vmem:[%s2425_s4 + $0xf8] sm:$0xff] %v830_v2  ;;  %vm513_vm2 = vcmp.gt.f32.partialorder %v1971_v49, 0.0  ;;  %1387 = vpow2.f32 %v679_v54  ;;  %v681_v27 = vmul.f32 1.442695, %v580_v24  ;;  %v1079_v61 = vunpack.c.l.bf16 %v1272_v20  ;;  %v1275_v54 = vld [vmem:[%s2421_s0 + $0xb8] sm:$0xff]  }
  0x69   :  { %v1382_v35 = vpop.eup %1381  ;;  %v965_v10 = vadd.f32 -1.0, %v1380_v60  ;;  %v581_v37 = vmin.f32 %v2028_v59, 0.0  ;;  %v2036_v39 = vadd.f32 %v1204_v16, %v390_v28  ;;  %v1207_v63 = vunpack.c.l.bf16 %v1303_v34 }
  0x6a   :  { %v966_v33 = vadd.f32 -1.0, %v1382_v35  ;;  %1389 = vpow2.f32 %v681_v27  ;;  %v320_v41 = vmul.f32 %v2041_v8, %v1079_v61  ;;  %v1080_v0 = vunpack.c.h.bf16 %v1272_v20  ;;  %v1306_v27 = vld [vmem:[%s2422_s1 + $0xb8] sm:$0xff]  }
  0x6b   :  { %v831_v50 = vsel %vm511_vm0, %v1936_v32, %v965_v10  ;;  %vm514_vm3 = vcmp.gt.f32.partialorder %v1992_v23, 0.0  ;;  %v683_v43 = vmul.f32 1.442695, %v581_v37  ;;  %v582_v3 = vmin.f32 %v2036_v39, 0.0 }
  0x6c   :  { %895 = vst [vmem:[%s2425_s4 + $0x100] sm:$0xff] %v831_v50  ;;  %v832_v4 = vsel %vm512_vm1, %v1938_v58, %v966_v33  ;;  %v391_v32 = vadd.f32 %v2061_v6, %v320_v41  ;;  %v1208_v55 = vunpack.c.h.bf16 %v1303_v34  ;;  %v321_v51 = vmul.f32 %v2041_v8, %v1080_v0  ;;  %v1276_v50 = vld [vmem:[%s2421_s0 + $0xc0] sm:$0xff]  }
  0x6d   :  { %v1384_v11 = vpop.eup %1383  ;;  %896 = vst [vmem:[%s2425_s4 + $0x108] sm:$0xff] %v832_v4  ;;  %vm515_vm4 = vcmp.gt.f32.partialorder %v1995_v25, 0.0  ;;  %1391 = vpow2.f32 %v683_v43  ;;  %v685_v58 = vmul.f32 1.442695, %v582_v3  ;;  %v1083_v12 = vunpack.c.l.bf16 %v1273_v1 }
  0x6e   :  { %v967_v13 = vadd.f32 -1.0, %v1384_v11  ;;  %v2075_v56 = vadd.f32 %v1207_v63, %v391_v32  ;;  %v392_v36 = vadd.f32 %v2061_v6, %v321_v51  ;;  %v1084_v15 = vunpack.c.h.bf16 %v1273_v1 }
  0x6f   :  { %1393 = vpow2.f32 %v685_v58  ;;  %v1211_v57 = vunpack.c.l.bf16 %v1304_v7  ;;  %v322_v17 = vmul.f32 %v2041_v8, %v1083_v12  ;;  %v1087_v42 = vunpack.c.l.bf16 %v1274_v9 }
  0x70   :  { %v833_v18 = vsel %vm513_vm2, %v1971_v49, %v967_v13  ;;  %vm516_vm5 = vcmp.gt.f32.partialorder %v2007_v47, 0.0  ;;  %v583_v21 = vmin.f32 %v2075_v56, 0.0  ;;  %v2087_v22 = vadd.f32 %v1208_v55, %v392_v36 }
  0x71   :  { %v1386_v48 = vpop.eup %1385  ;;  %897 = vst [vmem:[%s2425_s4 + $0x110] sm:$0xff] %v833_v18  ;;  %v393_v5 = vadd.f32 %v2061_v6, %v322_v17  ;;  %v1212_v26 = vunpack.c.h.bf16 %v1304_v7  ;;  %v323_v29 = vmul.f32 %v2041_v8, %v1084_v15  ;;  %v324_v30 = vmul.f32 %v2041_v8, %v1087_v42 }
  0x72   :  { %v1388_v38 = vpop.eup %1387  ;;  %v968_v49 = vadd.f32 -1.0, %v1386_v48  ;;  %v687_v40 = vmul.f32 1.442695, %v583_v21  ;;  %v584_v44 = vmin.f32 %v2087_v22, 0.0  ;;  %v1215_v45 = vunpack.c.l.bf16 %v1305_v62  ;;  %v1277_v48 = vld [vmem:[%s2421_s0 + $0xc8] sm:$0xff]  }
  0x73   :  { %v969_v46 = vadd.f32 -1.0, %v1388_v38  ;;  %v2096_v16 = vadd.f32 %v1211_v57, %v393_v5  ;;  %v394_v52 = vadd.f32 %v2061_v6, %v323_v29  ;;  %v395_v53 = vadd.f32 %v2061_v6, %v324_v30 }
  0x74   :  { %v1390_v19 = vpop.eup %1389  ;;  %v834_v14 = vsel %vm514_vm3, %v1992_v23, %v968_v49  ;;  %1395 = vpow2.f32 %v687_v40  ;;  %v689_v20 = vmul.f32 1.442695, %v584_v44  ;;  %v1088_v31 = vunpack.c.h.bf16 %v1274_v9  ;;  %v1307_v9 = vld [vmem:[%s2422_s1 + $0xc0] sm:$0xff]  }
  0x75   :  { %898 = vst [vmem:[%s2425_s4 + $0x118] sm:$0xff] %v834_v14  ;;  %v835_v24 = vsel %vm515_vm4, %v1995_v25, %v969_v46  ;;  %v970_v34 = vadd.f32 -1.0, %v1390_v19  ;;  %vm517_vm6 = vcmp.gt.f32.partialorder %v2028_v59, 0.0  ;;  %v585_v23 = vmin.f32 %v2096_v16, 0.0 }
  0x76   :  { %899 = vst [vmem:[%s2425_s4 + $0x120] sm:$0xff] %v835_v24  ;;  %1397 = vpow2.f32 %v689_v20  ;;  %v2117_v2 = vadd.f32 %v1212_v26, %v394_v52  ;;  %v2119_v28 = vadd.f32 %v1215_v45, %v395_v53  ;;  %v1216_v60 = vunpack.c.h.bf16 %v1305_v62  ;;  %v1308_v20 = vld [vmem:[%s2422_s1 + $0xc8] sm:$0xff]  }
  0x77   :  { %v1392_v25 = vpop.eup %1391  ;;  %v836_v61 = vsel %vm516_vm5, %v2007_v47, %v970_v34  ;;  %v691_v35 = vmul.f32 1.442695, %v585_v23  ;;  %v325_v10 = vmul.f32 %v2041_v8, %v1088_v31  ;;  %v1091_v37 = vunpack.c.l.bf16 %v1275_v54  ;;  %v1278_v31 = vld [vmem:[%s2421_s0 + $0xd0] sm:$0xff]  }
  0x78   :  { %900 = vst [vmem:[%s2425_s4 + $0x128] sm:$0xff] %v836_v61  ;;  %v971_v63 = vadd.f32 -1.0, %v1392_v25  ;;  %vm518_vm7 = vcmp.gt.f32.partialorder %v2036_v39, 0.0  ;;  %vm519_vm8 = vcmp.gt.f32.partialorder %v2075_v56, 0.0  ;;  %v586_v33 = vmin.f32 %v2117_v2, 0.0 }
  0x79   :  { %v1394_v41 = vpop.eup %1393  ;;  %1399 = vpow2.f32 %v691_v35  ;;  %v587_v0 = vmin.f32 %v2119_v28, 0.0  ;;  %v396_v47 = vadd.f32 %v2061_v6, %v325_v10  ;;  %v1219_v1 = vunpack.c.l.bf16 %v1306_v27 }
  0x7a   :  { %v837_v43 = vsel %vm517_vm6, %v2028_v59, %v971_v63  ;;  %v972_v3 = vadd.f32 -1.0, %v1394_v41  ;;  %v693_v4 = vmul.f32 1.442695, %v586_v33  ;;  %v326_v32 = vmul.f32 %v2041_v8, %v1091_v37  ;;  %v1309_v37 = vld [vmem:[%s2422_s1 + $0xd0] sm:$0xff]  }
  0x7b   :  { %901 = vst [vmem:[%s2425_s4 + $0x130] sm:$0xff] %v837_v43  ;;  %vm520_vm9 = vcmp.gt.f32.partialorder %v2087_v22, 0.0  ;;  %v695_v55 = vmul.f32 1.442695, %v587_v0  ;;  %v2147_v51 = vadd.f32 %v1216_v60, %v396_v47  ;;  %v1092_v7 = vunpack.c.h.bf16 %v1275_v54 }
  0x7c   :  { %v838_v59 = vsel %vm518_vm7, %v2036_v39, %v972_v3  ;;  %1401 = vpow2.f32 %v693_v4  ;;  %v397_v11 = vadd.f32 %v2061_v6, %v326_v32  ;;  %v1095_v58 = vunpack.c.l.bf16 %v1276_v50 }
  0x7d   :  { %902 = vst [vmem:[%s2425_s4 + $0x138] sm:$0xff] %v838_v59  ;;  %1403 = vpow2.f32 %v695_v55  ;;  %v588_v12 = vmin.f32 %v2147_v51, 0.0  ;;  %v1220_v13 = vunpack.c.h.bf16 %v1306_v27  ;;  %v327_v36 = vmul.f32 %v2041_v8, %v1092_v7 }
  0x7e   :  { %v1396_v15 = vpop.eup %1395  ;;  %v2161_v57 = vadd.f32 %v1219_v1, %v397_v11  ;;  %v1223_v17 = vunpack.c.l.bf16 %v1307_v9  ;;  %v328_v39 = vmul.f32 %v2041_v8, %v1095_v58  ;;  %v1096_v42 = vunpack.c.h.bf16 %v1276_v50  ;;  %v1279_v50 = vld [vmem:[%s2421_s0 + $0xd8] sm:$0xff]  }
  0x7f   :  { %v973_v62 = vadd.f32 -1.0, %v1396_v15  ;;  %vm521_vm10 = vcmp.gt.f32.partialorder %v2096_v16, 0.0  ;;  %v697_v18 = vmul.f32 1.442695, %v588_v12  ;;  %v398_v21 = vadd.f32 %v2061_v6, %v327_v36 }
  0x80   :  { %v1398_v5 = vpop.eup %1397  ;;  %v589_v26 = vmin.f32 %v2161_v57, 0.0  ;;  %v399_v29 = vadd.f32 %v2061_v6, %v328_v39  ;;  %v1224_v30 = vunpack.c.h.bf16 %v1307_v9  ;;  %v329_v38 = vmul.f32 %v2041_v8, %v1096_v42 }
  0x81   :  { %v839_v49 = vsel %vm519_vm8, %v2075_v56, %v973_v62  ;;  %v974_v40 = vadd.f32 -1.0, %v1398_v5  ;;  %1405 = vpow2.f32 %v697_v18  ;;  %v2175_v44 = vadd.f32 %v1220_v13, %v398_v21 }
  0x82   :  { %903 = vst [vmem:[%s2425_s4 + $0x140] sm:$0xff] %v839_v49  ;;  %v699_v45 = vmul.f32 1.442695, %v589_v26  ;;  %v2180_v46 = vadd.f32 %v1223_v17, %v399_v29  ;;  %v400_v52 = vadd.f32 %v2061_v6, %v329_v38  ;;  %v1099_v53 = vunpack.c.l.bf16 %v1277_v48 }
  0x83   :  { %v1400_v19 = vpop.eup %1399  ;;  %v840_v14 = vsel %vm520_vm9, %v2087_v22, %v974_v40  ;;  %vm522_vm11 = vcmp.gt.f32.partialorder %v2117_v2, 0.0  ;;  %vm523_vm12 = vcmp.gt.f32.partialorder %v2119_v28, 0.0  ;;  %v590_v56 = vmin.f32 %v2175_v44, 0.0 }
  0x84   :  { %904 = vst [vmem:[%s2425_s4 + $0x148] sm:$0xff] %v840_v14  ;;  %v975_v54 = vadd.f32 -1.0, %v1400_v19  ;;  %vm524_vm13 = vcmp.gt.f32.partialorder %v2147_v51, 0.0  ;;  %1407 = vpow2.f32 %v699_v45  ;;  %v591_v22 = vmin.f32 %v2180_v46, 0.0 }
  0x85   :  { %v701_v24 = vmul.f32 1.442695, %v590_v56  ;;  %v2200_v34 = vadd.f32 %v1224_v30, %v400_v52  ;;  %v330_v23 = vmul.f32 %v2041_v8, %v1099_v53  ;;  %v1100_v60 = vunpack.c.h.bf16 %v1277_v48 }
  0x86   :  { %v1402_v27 = vpop.eup %1401  ;;  %v841_v25 = vsel %vm521_vm10, %v2096_v16, %v975_v54  ;;  %v703_v61 = vmul.f32 1.442695, %v591_v22  ;;  %v1227_v35 = vunpack.c.l.bf16 %v1308_v20  ;;  %v1103_v10 = vunpack.c.l.bf16 %v1278_v31  ;;  %v1280_v54 = vld [vmem:[%s2421_s0 + $0xe0] sm:$0xff]  }
  0x87   :  { %v1404_v63 = vpop.eup %1403  ;;  %905 = vst [vmem:[%s2425_s4 + $0x150] sm:$0xff] %v841_v25  ;;  %v976_v33 = vadd.f32 -1.0, %v1402_v27  ;;  %1409 = vpow2.f32 %v701_v24  ;;  %v592_v41 = vmin.f32 %v2200_v34, 0.0  ;;  %v1228_v0 = vunpack.c.h.bf16 %v1308_v20  ;;  %v1311_v27 = vld [vmem:[%s2422_s1 + $0xe0] sm:$0xff]   ;;  %v1281_v25 = vld [vmem:[%s2421_s0 + $0xe8] sm:$0xff]  }
  0x88   :  { %v977_v47 = vadd.f32 -1.0, %v1404_v63  ;;  %1411 = vpow2.f32 %v703_v61  ;;  %v401_v16 = vadd.f32 %v2061_v6, %v330_v23  ;;  %v331_v1 = vmul.f32 %v2041_v8, %v1100_v60 }
  0x89   :  { %v842_v43 = vsel %vm522_vm11, %v2117_v2, %v976_v33  ;;  %v705_v3 = vmul.f32 1.442695, %v592_v41  ;;  %v1231_v4 = vunpack.c.l.bf16 %v1309_v37  ;;  %v332_v32 = vmul.f32 %v2041_v8, %v1103_v10 }
  0x8a   :  { %906 = vst [vmem:[%s2425_s4 + $0x158] sm:$0xff] %v842_v43  ;;  %v843_v55 = vsel %vm523_vm12, %v2119_v28, %v977_v47  ;;  %v2228_v7 = vadd.f32 %v1227_v35, %v401_v16  ;;  %v402_v9 = vadd.f32 %v2061_v6, %v331_v1  ;;  %v1104_v59 = vunpack.c.h.bf16 %v1278_v31  ;;  %v1310_v28 = vld [vmem:[%s2422_s1 + $0xd8] sm:$0xff]   ;;  %v1282_v1 = vld [vmem:[%s2421_s0 + $0xf0] sm:$0xff]  }
  0x8b   :  { %v1406_v11 = vpop.eup %1405  ;;  %907 = vst [vmem:[%s2425_s4 + $0x160] sm:$0xff] %v843_v55  ;;  %vm525_vm14 = vcmp.gt.f32.partialorder %v2161_v57, 0.0  ;;  %1413 = vpow2.f32 %v705_v3  ;;  %v403_v2 = vadd.f32 %v2061_v6, %v332_v32  ;;  %v1107_v58 = vunpack.c.l.bf16 %v1279_v50 }
  0x8c   :  { %v978_v12 = vadd.f32 -1.0, %v1406_v11  ;;  %vm526_vm15 = vcmp.gt.f32.partialorder %v2175_v44, 0.0  ;;  %v593_v13 = vmin.f32 %v2228_v7, 0.0  ;;  %v2241_v36 = vadd.f32 %v1228_v0, %v402_v9 }
  0x8d   :  { %v2243_v15 = vadd.f32 %v1231_v4, %v403_v2  ;;  %v1232_v17 = vunpack.c.h.bf16 %v1309_v37  ;;  %v333_v39 = vmul.f32 %v2041_v8, %v1104_v59  ;;  %v334_v42 = vmul.f32 %v2041_v8, %v1107_v58  ;;  %v1313_v58 = vld [vmem:[%s2422_s1 + $0xf0] sm:$0xff]  }
  0x8e   :  { %v1408_v62 = vpop.eup %1407  ;;  %v844_v18 = vsel %vm524_vm13, %v2147_v51, %v978_v12  ;;  %v707_v21 = vmul.f32 1.442695, %v593_v13  ;;  %v594_v48 = vmin.f32 %v2241_v36, 0.0  ;;  %v1235_v5 = vunpack.c.l.bf16 %v1310_v28 }
  0x8f   :  { %908 = vst [vmem:[%s2425_s4 + $0x168] sm:$0xff] %v844_v18  ;;  %v979_v26 = vadd.f32 -1.0, %v1408_v62  ;;  %vm527_vm0 = vcmp.gt.f32.partialorder %v2180_v46, 0.0  ;;  %v595_v29 = vmin.f32 %v2243_v15, 0.0  ;;  %v404_v30 = vadd.f32 %v2061_v6, %v333_v39 }
  0x90   :  { %1415 = vpow2.f32 %v707_v21  ;;  %v709_v38 = vmul.f32 1.442695, %v594_v48  ;;  %v405_v49 = vadd.f32 %v2061_v6, %v334_v42  ;;  %v1108_v51 = vunpack.c.h.bf16 %v1279_v50 }
  0x91   :  { %v1410_v40 = vpop.eup %1409  ;;  %v845_v45 = vsel %vm525_vm14, %v2161_v57, %v979_v26  ;;  %v711_v52 = vmul.f32 1.442695, %v595_v29  ;;  %v2261_v53 = vadd.f32 %v1232_v17, %v404_v30  ;;  %v1236_v19 = vunpack.c.h.bf16 %v1310_v28 }
  0x92   :  { %v1412_v14 = vpop.eup %1411  ;;  %909 = vst [vmem:[%s2425_s4 + $0x170] sm:$0xff] %v845_v45  ;;  %v980_v56 = vadd.f32 -1.0, %v1410_v40  ;;  %1417 = vpow2.f32 %v709_v38  ;;  %v2266_v20 = vadd.f32 %v1235_v5, %v405_v49  ;;  %v335_v31 = vmul.f32 %v2041_v8, %v1108_v51 }
  0x93   :  { %v981_v57 = vadd.f32 -1.0, %v1412_v14  ;;  %vm528_vm1 = vcmp.gt.f32.partialorder %v2200_v34, 0.0  ;;  %1419 = vpow2.f32 %v711_v52  ;;  %v596_v22 = vmin.f32 %v2261_v53, 0.0 }
  0x94   :  { %v846_v24 = vsel %vm526_vm15, %v2175_v44, %v980_v56  ;;  %vm529_vm2 = vcmp.gt.f32.partialorder %v2228_v7, 0.0  ;;  %v597_v23 = vmin.f32 %v2266_v20, 0.0  ;;  %v406_v60 = vadd.f32 %v2061_v6, %v335_v31 }
  0x95   :  { %v1414_v61 = vpop.eup %1413  ;;  %910 = vst [vmem:[%s2425_s4 + $0x178] sm:$0xff] %v846_v24  ;;  %v847_v44 = vsel %vm527_vm0, %v2180_v46, %v981_v57  ;;  %vm530_vm3 = vcmp.gt.f32.partialorder %v2241_v36, 0.0  ;;  %v713_v35 = vmul.f32 1.442695, %v596_v22  ;;  %v1111_v10 = vunpack.c.l.bf16 %v1280_v54  ;;  %v1312_v46 = vld [vmem:[%s2422_s1 + $0xe8] sm:$0xff]  }
  0x96   :  { %911 = vst [vmem:[%s2425_s4 + $0x180] sm:$0xff] %v847_v44  ;;  %v982_v37 = vadd.f32 -1.0, %v1414_v61  ;;  %v715_v63 = vmul.f32 1.442695, %v597_v23  ;;  %v2296_v33 = vadd.f32 %v1236_v19, %v406_v60  ;;  %v1112_v41 = vunpack.c.h.bf16 %v1280_v54  ;;  %v1283_v61 = vld [vmem:[%s2421_s0 + $0xf8] sm:$0xff]  }
  0x97   :  { %1421 = vpow2.f32 %v713_v35  ;;  %v1239_v0 = vunpack.c.l.bf16 %v1311_v27  ;;  %v336_v47 = vmul.f32 %v2041_v8, %v1111_v10  ;;  %v1115_v16 = vunpack.c.l.bf16 %v1281_v25  ;;  %v1314_v10 = vld [vmem:[%s2422_s1 + $0xf8] sm:$0xff]  }
  0x98   :  { %v848_v50 = vsel %vm528_vm1, %v2200_v34, %v982_v37  ;;  %vm531_vm4 = vcmp.gt.f32.partialorder %v2243_v15, 0.0  ;;  %1423 = vpow2.f32 %v715_v63  ;;  %v598_v43 = vmin.f32 %v2296_v33, 0.0 }
  0x99   :  { %912 = vst [vmem:[%s2425_s4 + $0x188] sm:$0xff] %v848_v50  ;;  %v407_v3 = vadd.f32 %v2061_v6, %v336_v47  ;;  %v1240_v4 = vunpack.c.h.bf16 %v1311_v27  ;;  %v337_v32 = vmul.f32 %v2041_v8, %v1112_v41  ;;  %v338_v55 = vmul.f32 %v2041_v8, %v1115_v16 }
  0x9a   :  { %v1416_v9 = vpop.eup %1415  ;;  %v717_v59 = vmul.f32 1.442695, %v598_v43  ;;  %v1243_v11 = vunpack.c.l.bf16 %v1312_v46  ;;  %v1116_v34 = vunpack.c.h.bf16 %v1281_v25  ;;  %v1119_v2 = vunpack.c.l.bf16 %v1282_v1 }
  0x9b   :  { %v983_v28 = vadd.f32 -1.0, %v1416_v9  ;;  %v2319_v12 = vadd.f32 %v1239_v0, %v407_v3  ;;  %v408_v13 = vadd.f32 %v2061_v6, %v337_v32  ;;  %v409_v17 = vadd.f32 %v2061_v6, %v338_v55 }
  0x9c   :  { %v1418_v39 = vpop.eup %1417  ;;  %1425 = vpow2.f32 %v717_v59  ;;  %v1244_v42 = vunpack.c.h.bf16 %v1312_v46  ;;  %v339_v62 = vmul.f32 %v2041_v8, %v1116_v34  ;;  %v340_v18 = vmul.f32 %v2041_v8, %v1119_v2 }
  0x9d   :  { %v1420_v21 = vpop.eup %1419  ;;  %v849_v48 = vsel %vm529_vm2, %v2228_v7, %v983_v28  ;;  %v984_v5 = vadd.f32 -1.0, %v1418_v39  ;;  %v599_v26 = vmin.f32 %v2319_v12, 0.0  ;;  %v1247_v29 = vunpack.c.l.bf16 %v1313_v58 }
  0x9e   :  { %913 = vst [vmem:[%s2425_s4 + $0x190] sm:$0xff] %v849_v48  ;;  %v985_v30 = vadd.f32 -1.0, %v1420_v21  ;;  %v2332_v38 = vadd.f32 %v1240_v4, %v408_v13  ;;  %v2334_v49 = vadd.f32 %v1243_v11, %v409_v17  ;;  %v410_v51 = vadd.f32 %v2061_v6, %v339_v62 }
  0x9f   :  { %v850_v40 = vsel %vm530_vm3, %v2241_v36, %v984_v5  ;;  %v719_v7 = vmul.f32 1.442695, %v599_v26  ;;  %v411_v45 = vadd.f32 %v2061_v6, %v340_v18  ;;  %v1120_v52 = vunpack.c.h.bf16 %v1282_v1 }
  0xa0   :  { %914 = vst [vmem:[%s2425_s4 + $0x198] sm:$0xff] %v850_v40  ;;  %v851_v19 = vsel %vm531_vm4, %v2243_v15, %v985_v30  ;;  %vm532_vm5 = vcmp.gt.f32.partialorder %v2261_v53, 0.0  ;;  %v600_v14 = vmin.f32 %v2332_v38, 0.0  ;;  %v601_v36 = vmin.f32 %v2334_v49, 0.0 }
  0xa1   :  { %v1422_v56 = vpop.eup %1421  ;;  %915 = vst [vmem:[%s2425_s4 + $0x1a0] sm:$0xff] %v851_v19  ;;  %1427 = vpow2.f32 %v719_v7  ;;  %v2353_v31 = vadd.f32 %v1244_v42, %v410_v51  ;;  %v2355_v54 = vadd.f32 %v1247_v29, %v411_v45  ;;  %vm533_vm6 = vcmp.gt.f32.partialorder %v2266_v20, 0.0 }
  0xa2   :  { %v1424_v57 = vpop.eup %1423  ;;  %v986_v22 = vadd.f32 -1.0, %v1422_v56  ;;  %v721_v15 = vmul.f32 1.442695, %v600_v14  ;;  %v341_v24 = vmul.f32 %v2041_v8, %v1120_v52  ;;  %v723_v60 = vmul.f32 1.442695, %v601_v36 }
  0xa3   :  { %v987_v23 = vadd.f32 -1.0, %v1424_v57  ;;  %v602_v27 = vmin.f32 %v2353_v31, 0.0  ;;  %v1248_v25 = vunpack.c.h.bf16 %v1313_v58  ;;  %v603_v35 = vmin.f32 %v2355_v54, 0.0 }
  0xa4   :  { %v852_v44 = vsel %vm532_vm5, %v2261_v53, %v986_v22  ;;  %1429 = vpow2.f32 %v721_v15  ;;  %v412_v41 = vadd.f32 %v2061_v6, %v341_v24  ;;  %vm534_vm7 = vcmp.gt.f32.partialorder %v2296_v33, 0.0 }
  0xa5   :  { %916 = vst [vmem:[%s2425_s4 + $0x1a8] sm:$0xff] %v852_v44  ;;  %v853_v37 = vsel %vm533_vm6, %v2266_v20, %v987_v23  ;;  %1431 = vpow2.f32 %v723_v60  ;;  %v725_v63 = vmul.f32 1.442695, %v602_v27  ;;  %v727_v53 = vmul.f32 1.442695, %v603_v35 }
  0xa6   :  { %v1426_v0 = vpop.eup %1425  ;;  %917 = vst [vmem:[%s2425_s4 + $0x1b0] sm:$0xff] %v853_v37  ;;  %v1123_v47 = vunpack.c.l.bf16 %v1283_v61  ;;  %v1124_v16 = vunpack.c.h.bf16 %v1283_v61  ;;  %v476_v1 = vadd.f32 %v1248_v25, %v412_v41  ;;  %v1251_v50 = vunpack.c.l.bf16 %v1314_v10 }
  0xa7   :  { %v988_v46 = vadd.f32 -1.0, %v1426_v0  ;;  %1433 = vpow2.f32 %v725_v63  ;;  %v1252_v43 = vunpack.c.h.bf16 %v1314_v10  ;;  %vm535_vm8 = vcmp.gt.f32.partialorder %v2319_v12, 0.0 }
  0xa8   :  { %1435 = vpow2.f32 %v727_v53  ;;  %v342_v20 = vmul.f32 %v2041_v8, %v1123_v47  ;;  %v343_v3 = vmul.f32 %v2041_v8, %v1124_v16  ;;  %v604_v32 = vmin.f32 %v476_v1, 0.0 }
  0xa9   :  { %v854_v4 = vsel %vm534_vm7, %v2296_v33, %v988_v46  ;;  %vm536_vm9 = vcmp.gt.f32.partialorder %v2332_v38, 0.0  ;;  %vm537_vm10 = vcmp.gt.f32.partialorder %v2334_v49, 0.0  ;;  %vm538_vm11 = vcmp.gt.f32.partialorder %v2353_v31, 0.0 }
  0xaa   :  { %918 = vst [vmem:[%s2425_s4 + $0x1b8] sm:$0xff] %v854_v4  ;;  %v413_v55 = vadd.f32 %v2061_v6, %v342_v20  ;;  %v414_v9 = vadd.f32 %v2061_v6, %v343_v3  ;;  %v729_v11 = vmul.f32 1.442695, %v604_v32  ;;  %vm539_vm12 = vcmp.gt.f32.partialorder %v2355_v54, 0.0 }
  0xab   :  { %v1428_v59 = vpop.eup %1427  ;;  %vm540_vm13 = vcmp.gt.f32.partialorder %v476_v1, 0.0 }
  0xac   :  { %v989_v34 = vadd.f32 -1.0, %v1428_v59  ;;  %v477_v2 = vadd.f32 %v1251_v50, %v413_v55  ;;  %v478_v58 = vadd.f32 %v1252_v43, %v414_v9  ;;  %1437 = vpow2.f32 %v729_v11 }
  0xae   :  { %v1430_v8 = vpop.eup %1429  ;;  %v855_v33 = vsel %vm535_vm8, %v2319_v12, %v989_v34  ;;  %v605_v28 = vmin.f32 %v477_v2, 0.0  ;;  %v606_v17 = vmin.f32 %v478_v58, 0.0  ;;  %vm541_vm14 = vcmp.gt.f32.partialorder %v477_v2, 0.0 }
  0xaf   :  { %v1432_v13 = vpop.eup %1431  ;;  %919 = vst [vmem:[%s2425_s4 + $0x1c0] sm:$0xff] %v855_v33  ;;  %v990_v6 = vadd.f32 -1.0, %v1430_v8  ;;  %vm542_vm15 = vcmp.gt.f32.partialorder %v478_v58, 0.0 }
  0xb0   :  { %v991_v39 = vadd.f32 -1.0, %v1432_v13  ;;  %v731_v42 = vmul.f32 1.442695, %v605_v28  ;;  %v733_v12 = vmul.f32 1.442695, %v606_v17 }
  0xb1   :  { %v1434_v62 = vpop.eup %1433  ;;  %v856_v18 = vsel %vm536_vm9, %v2332_v38, %v990_v6 }
  0xb2   :  { %v1436_v21 = vpop.eup %1435  ;;  %920 = vst [vmem:[%s2425_s4 + $0x1c8] sm:$0xff] %v856_v18  ;;  %v857_v48 = vsel %vm537_vm10, %v2334_v49, %v991_v39  ;;  %v992_v5 = vadd.f32 -1.0, %v1434_v62  ;;  %1439 = vpow2.f32 %v731_v42 }
  0xb3   :  { %921 = vst [vmem:[%s2425_s4 + $0x1d0] sm:$0xff] %v857_v48  ;;  %v993_v26 = vadd.f32 -1.0, %v1436_v21  ;;  %1441 = vpow2.f32 %v733_v12 }
  0xb4   :  { %v858_v29 = vsel %vm538_vm11, %v2353_v31, %v992_v5 }
  0xb5   :  { %922 = vst [vmem:[%s2425_s4 + $0x1d8] sm:$0xff] %v858_v29  ;;  %v859_v30 = vsel %vm539_vm12, %v2355_v54, %v993_v26 }
  0xb6   :  { %923 = vst [vmem:[%s2425_s4 + $0x1e0] sm:$0xff] %v859_v30  ;;  %v1438_v38 = vpop.eup %1437 }
  0xb7   :  { %v994_v49 = vadd.f32 -1.0, %v1438_v38 }
  0xb9   :  { %v860_v51 = vsel %vm540_vm13, %v476_v1, %v994_v49 }
  0xba   :  { %924 = vst [vmem:[%s2425_s4 + $0x1e8] sm:$0xff] %v860_v51 }
  0xbc   :  { %v1440_v40 = vpop.eup %1439 }
  0xbd   :  { %v1442_v7 = vpop.eup %1441  ;;  %v995_v45 = vadd.f32 -1.0, %v1440_v40 }
  0xbe   :  { %v996_v52 = vadd.f32 -1.0, %v1442_v7 }
  0xbf   :  { %v861_v19 = vsel %vm541_vm14, %v477_v2, %v995_v45 }
  0xc0   :  { %925 = vst [vmem:[%s2425_s4 + $0x1f0] sm:$0xff] %v861_v19  ;;  %v862_v14 = vsel %vm542_vm15, %v478_v58, %v996_v52 }
  0xc1   :  { %926 = vst [vmem:[%s2425_s4 + $0x1f8] sm:$0xff] %v862_v14 }

// kernel: resblock_forward.4
= control target key start
LH: loop header
LB: loop body
LE: loop exit
PB: predicated region body
PF: predicated region fallthrough
CT: control target
= control target key end

     0   :  { %s5378_s21 = smov 0   ;;  %s7088_s0 = inlined_call_operand.vmem [shape: bf16[2,16,16,128], index: 0, kind: input, shape index: {}]   ;;  %s7089_s1 = inlined_call_operand.vmem [shape: f32[1,128], index: 1, kind: input, shape index: {}]   ;;  %s7090_s2 = inlined_call_operand.vmem [shape: f32[1,128], index: 2, kind: input, shape index: {}]   ;;  %s7091_s3 = inlined_call_operand.vmem [shape: bf16[1152,128], index: 3, kind: input, shape index: {}]   ;;  %s7092_s4 = inlined_call_operand.vmem [shape: bf16[2,16,16,128], index: 4, kind: output, shape index: {0}]   ;;  %s7093_s5 = inlined_call_operand.vmem [shape: f32[2,1,128], index: 5, kind: output, shape index: {1}]   ;;  %s7094_s6 = inlined_call_operand.vmem [shape: f32[2,1,128], index: 6, kind: output, shape index: {2}]  }
   0x1 LB: > { %s4125_s22 = sadd.s32 4294967295, %s5340_s21   ;;  %p4129_p0 = scmp.ge.s32.totalorder %s5340_s21, 1  ;;  %s5340_s21 = sphi %s5378_s21, %s17_s21  }
   0x2   : > { %p217_p1 = scmp.lt.s32.totalorder %s5340_s21, 3 }
   0x4   : > { %p218_p2 = pnand %p4129_p0, %p217_p1 }
   0x6   : > { %221 = sbr.rel (%p218_p2) target bundleno = 694 (0x2b6), region = 36 }
   0xd   : > { %v5163_v0 = vld [vmem:[%s7091_s3 + $0x40] sm:$0xff]   ;;  %v5342_v2 = vmov 0   ;;  %v5165_v3 = vld [vmem:[%s7091_s3 + $0x48] sm:$0xff]   ;;  %v5167_v5 = vld [vmem:[%s7091_s3 + $0x50] sm:$0xff]   ;;  %p253_p3 = scmp.lt.s32.totalorder %s4125_s22, 1  ;;  %vm1976_vm0 = vcmask 1042432  }
   0xe   : > { %v5164_v1 = vld [vmem:[%s7091_s3] sm:$0xff]   ;;  %604 = vst [vmem:[#allocation2] sm:$0xf] %v5342_v2  ;;  %605 = vst [vmem:[#allocation2 + $0x4] sm:$0xf] %v5342_v2  ;;  %4618 = vmatprep.subr.bf16.mxu0 %v5163_v0  ;;  %5138 = vmatprep.subr.bf16.mxu1 %v5163_v0  ;;  %v5166_v4 = vld [vmem:[%s7091_s3 + $0x8] sm:$0xff]  }
   0xf   : > { %606 = vst [vmem:[#allocation2 + $0x8] sm:$0xf] %v5342_v2  ;;  %607 = vst [vmem:[#allocation2 + $0xc] sm:$0xf] %v5342_v2  ;;  %4619 = vmatpush3.bf16.msra.mxu0 %v5164_v1  ;;  %5146 = vmatpush3.bf16.msra.mxu1 %v5164_v1  ;;  %v5168_v6 = vld [vmem:[%s7091_s3 + $0x10] sm:$0xff]   ;;  %v5169_v7 = vld [vmem:[%s7091_s3 + $0x58] sm:$0xff]  }
  0x10   : > { %608 = vst [vmem:[#allocation2 + $0x10] sm:$0xf] %v5342_v2  ;;  %609 = vst [vmem:[#allocation2 + $0x14] sm:$0xf] %v5342_v2  ;;  %4620 = vmatprep.subr.bf16.mxu0 %v5165_v3  ;;  %5139 = vmatprep.subr.bf16.mxu1 %v5165_v3  ;;  %s7132_s22 = smov (!%p253_p3, %s4125_s22), 1  ;;  %v5170_v8 = vld [vmem:[%s7091_s3 + $0x18] sm:$0xff]  }
  0x11   : > { %610 = vst [vmem:[#allocation2 + $0x18] sm:$0xf] %v5342_v2  ;;  %611 = vst [vmem:[#allocation2 + $0x1c] sm:$0xf] %v5342_v2  ;;  %v5171_v9 = vld [vmem:[%s7091_s3 + $0x60] sm:$0xff]   ;;  %s4378_s17 = sshll.u32 %s7132_s22, 7  ;;  %s265_s25 = scalar_lea.vmem %s7093_s5, %s7132_s22 }
  0x12   : > { %612 = vst [vmem:[#allocation2 + $0x20] sm:$0xf] %v5342_v2  ;;  %613 = vst [vmem:[#allocation2 + $0x24] sm:$0xf] %v5342_v2  ;;  %v5172_v10 = vld [vmem:[%s7091_s3 + $0x20] sm:$0xff]   ;;  %v5173_v11 = vld [vmem:[%s7091_s3 + $0x68] sm:$0xff]   ;;  %s5431_s26 = scalar_lea.vmem %s7088_s0, %s4378_s17  ;;  %s7003_s23 = scalar_lea.vmem %s7092_s4, %s4378_s17 }
  0x13   : > { %614 = vst [vmem:[#allocation2 + $0x28] sm:$0xf] %v5342_v2  ;;  %615 = vst [vmem:[#allocation2 + $0x2c] sm:$0xf] %v5342_v2  ;;  %4621 = vmatpush3.bf16.msra.mxu0 %v5166_v4  ;;  %5147 = vmatpush3.bf16.msra.mxu1 %v5166_v4  ;;  %vm1405_vm1 = vsmask.f32 3328  ;;  %s268_s28 = scalar_lea.vmem %s7094_s6, %s7132_s22 }
  0x14   : > { %616 = vst [vmem:[#allocation2 + $0x30] sm:$0xf] %v5342_v2  ;;  %617 = vst [vmem:[#allocation2 + $0x34] sm:$0xf] %v5342_v2  ;;  %4622 = vmatprep.subr.bf16.mxu0 %v5167_v5  ;;  %5140 = vmatprep.subr.bf16.mxu1 %v5167_v5  ;;  %vm1977_vm2 = vcmask 1046532   ;;  %v4445_v20 = vld [vmem:[%s5431_s26] sm:$0xff]  }
  0x15   : > { %618 = vst [vmem:[#allocation2 + $0x38] sm:$0xf] %v5342_v2  ;;  %619 = vst [vmem:[#allocation2 + $0x3c] sm:$0xf] %v5342_v2  ;;  %v5433_v12 = vld [vmem:[#allocation2] sm:$0xf]  ;;  %v4446_v33 = vunpack.c.l.bf16 %v4445_v20  ;;  %v4447_v34 = vunpack.c.h.bf16 %v4445_v20 }
  0x16   : > { %620 = vst [vmem:[#allocation2 + $0x40] sm:$0xf] %v5342_v2  ;;  %621 = vst [vmem:[#allocation2 + $0x44] sm:$0xf] %v5342_v2  ;;  %v5435_v13 = vld [vmem:[#allocation2 + $0x4] sm:$0xf] }
  0x17   : > { %622 = vst [vmem:[#allocation2 + $0x48] sm:$0xf] %v5342_v2  ;;  %623 = vst [vmem:[#allocation2 + $0x4c] sm:$0xf] %v5342_v2  ;;  %4623 = vmatpush3.bf16.msra.mxu0 %v5168_v6  ;;  %5148 = vmatpush3.bf16.msra.mxu1 %v5168_v6  ;;  %v1197_v14 = vld [vmem:[#allocation2 + $0x8] sm:$0xf]  ;;  %v4200_v1 = vcombine.low %v5433_v12, %v5435_v13 }
  0x18   : > { %624 = vst [vmem:[#allocation2 + $0x50] sm:$0xf] %v5342_v2  ;;  %625 = vst [vmem:[#allocation2 + $0x54] sm:$0xf] %v5342_v2  ;;  %4624 = vmatprep.subr.bf16.mxu0 %v5169_v7  ;;  %5141 = vmatprep.subr.bf16.mxu1 %v5169_v7  ;;  %v1409_v15 = vshrl.u32 %v5433_v12, 16  ;;  %v1412_v16 = vshll.u32 %v5433_v12, 16 }
  0x19   : > { %626 = vst [vmem:[#allocation2 + $0x58] sm:$0xf] %v5342_v2  ;;  %627 = vst [vmem:[#allocation2 + $0x5c] sm:$0xf] %v5342_v2  ;;  %vm1406_vm3 = vsmask.f32 7440 }
  0x1a   : > { %628 = vst [vmem:[#allocation2 + $0x60] sm:$0xf] %v5342_v2  ;;  %629 = vst [vmem:[#allocation2 + $0x64] sm:$0xf] %v5342_v2  ;;  %v1418_v17 = vshll.u32 %v5435_v13, 16  ;;  %v1422_v18 = vshrl.u32 %v5435_v13, 16 }
  0x1b   : > { %630 = vst [vmem:[#allocation2 + $0x68] sm:$0xf] %v5342_v2  ;;  %631 = vst [vmem:[#allocation2 + $0x6c] sm:$0xf] %v5342_v2  ;;  %4625 = vmatpush3.bf16.msra.mxu0 %v5170_v8  ;;  %5149 = vmatpush3.bf16.msra.mxu1 %v5170_v8  ;;  %v1428_v19 = vshll.u32 %v1197_v14, 16  ;;  %v5174_v21 = vld [vmem:[%s7091_s3 + $0x28] sm:$0xff]  }
  0x1c   : > { %632 = vst [vmem:[#allocation2 + $0x70] sm:$0xf] %v5342_v2  ;;  %633 = vst [vmem:[#allocation2 + $0x74] sm:$0xf] %v5342_v2  ;;  %4626 = vmatprep.subr.bf16.mxu0 %v5171_v9  ;;  %5142 = vmatprep.subr.bf16.mxu1 %v5171_v9  ;;  %v1411_v22 = vrot.slane %v1409_v15, 4  ;;  %v1414_v23 = vrot.slane %v1412_v16, 5 }
  0x1d   : > { %634 = vst [vmem:[#allocation2 + $0x78] sm:$0xf] %v5342_v2  ;;  %635 = vst [vmem:[#allocation2 + $0x7c] sm:$0xf] %v5342_v2  ;;  %v1981_v24 = vrot.slane %v5435_v13, 5  ;;  %v1984_v25 = vrot.slane %v1197_v14, 5 }
  0x1e   : > { %636 = vst [vmem:[#allocation2 + $0x80] sm:$0xf] %v5342_v2  ;;  %637 = vst [vmem:[#allocation2 + $0x84] sm:$0xf] %v5342_v2  ;;  %v5175_v26 = vld [vmem:[%s7091_s3 + $0x70] sm:$0xff]   ;;  %v1420_v27 = vrot.slane %v1418_v17, 5  ;;  %v1415_v31 = vor.u32 %v1414_v23, %v1411_v22 }
  0x1f   : > { %638 = vst [vmem:[#allocation2 + $0x88] sm:$0xf] %v5342_v2  ;;  %639 = vst [vmem:[#allocation2 + $0x8c] sm:$0xf] %v5342_v2  ;;  %4627 = vmatpush3.bf16.msra.mxu0 %v5172_v10  ;;  %5150 = vmatpush3.bf16.msra.mxu1 %v5172_v10  ;;  %v1424_v28 = vrot.slane %v1422_v18, 4  ;;  %v1983_v32 = vrot.slane %v1981_v24, 4 }
  0x20   : > { %640 = vst [vmem:[#allocation2 + $0x90] sm:$0xf] %v5342_v2  ;;  %641 = vst [vmem:[#allocation2 + $0x94] sm:$0xf] %v5342_v2  ;;  %4628 = vmatprep.subr.bf16.mxu0 %v5173_v11  ;;  %5143 = vmatprep.subr.bf16.mxu1 %v5173_v11  ;;  %v5458_v30 = vld [vmem:[%s7089_s1] ss:$0 sm:$0xff] }
  0x21   : > { %642 = vst [vmem:[#allocation2 + $0x98] sm:$0xf] %v5342_v2  ;;  %643 = vst [vmem:[#allocation2 + $0x9c] sm:$0xf] %v5342_v2  ;;  %v4598_v35 = vld [vmem:[%s5431_s26 + $0x58] sm:$0xff]   ;;  %v1425_v37 = vor.u32 %v1424_v28, %v1420_v27  ;;  %v1430_v38 = vrot.slane %v1428_v19, 5  ;;  %v341_v43 = vmul.f32 %v4446_v33, %v5458_v30  ;;  %v342_v44 = vmul.f32 %v4447_v34, %v5458_v30 }
  0x22   : > { %644 = vst [vmem:[#allocation2 + $0xa0] sm:$0xf] %v5342_v2  ;;  %645 = vst [vmem:[#allocation2 + $0xa4] sm:$0xf] %v5342_v2  ;;  %v5472_v39 = vld [vmem:[%s7090_s2] ss:$0 sm:$0xff]  ;;  %v4490_v47 = vunpack.c.l.bf16 %v4598_v35  ;;  %v4491_v48 = vunpack.c.h.bf16 %v4598_v35 }
  0x23   : > { %646 = vst [vmem:[#allocation2 + $0xa8] sm:$0xf] %v5342_v2  ;;  %647 = vst [vmem:[#allocation2 + $0xac] sm:$0xf] %v5342_v2  ;;  %4629 = vmatpush3.bf16.msra.mxu0 %v5174_v21  ;;  %v5176_v40 = vld [vmem:[%s7091_s3 + $0x30] sm:$0xff]   ;;  %5151 = vmatpush3.bf16.msra.mxu1 %v5174_v21  ;;  %v1416_v41 = vrot.slane %v1415_v31, 4  ;;  %v5489_v50 = vadd.f32 %v5472_v39, %v341_v43  ;;  %v5492_v51 = vadd.f32 %v5472_v39, %v342_v44 }
  0x24   : > { %648 = vst [vmem:[#allocation2 + $0xb0] sm:$0xf] %v5342_v2  ;;  %649 = vst [vmem:[#allocation2 + $0xb4] sm:$0xf] %v5342_v2  ;;  %4630 = vmatprep.subr.bf16.mxu0 %v5175_v26  ;;  %v5177_v45 = vld [vmem:[%s7091_s3 + $0x78] sm:$0xff]   ;;  %5144 = vmatprep.subr.bf16.mxu1 %v5175_v26  ;;  %v1426_v46 = vrot.slane %v1425_v37, 4  ;;  %v363_v53 = vmul.f32 %v4490_v47, %v5458_v30  ;;  %v364_v54 = vmul.f32 %v4491_v48, %v5458_v30 }
  0x25   : > { %650 = vst [vmem:[#allocation2 + $0xb8] sm:$0xf] %v5342_v2  ;;  %651 = vst [vmem:[#allocation2 + $0xbc] sm:$0xf] %v5342_v2  ;;  %v5178_v55 = vld [vmem:[%s7091_s3 + $0x38] sm:$0xff]   ;;  %v4236_v57 = vrot.slane %v5433_v12, 9 }
  0x26   : > { %652 = vst [vmem:[#allocation2 + $0xc0] sm:$0xf] %v5342_v2  ;;  %653 = vst [vmem:[#allocation2 + $0xc4] sm:$0xf] %v5342_v2  ;;  %v444_v58 = vmin.f32 %v5489_v50, 0.0  ;;  %v5180_v59 = vld [vmem:[%s7091_s3 + $0xc0] sm:$0xff]   ;;  %v5508_v61 = vadd.f32 %v5472_v39, %v363_v53  ;;  %v5511_v62 = vadd.f32 %v5472_v39, %v364_v54 }
  0x27   : > { %654 = vst [vmem:[#allocation2 + $0xc8] sm:$0xf] %v5342_v2  ;;  %655 = vst [vmem:[#allocation2 + $0xcc] sm:$0xf] %v5342_v2  ;;  %4631 = vmatpush3.bf16.msra.mxu0 %v5176_v40  ;;  %5152 = vmatpush3.bf16.msra.mxu1 %v5176_v40  ;;  %v445_v60 = vmin.f32 %v5492_v51, 0.0  ;;  %v5181_v63 = vld [vmem:[%s7091_s3 + $0x140] sm:$0xff]  }
  0x28   : > { %656 = vst [vmem:[#allocation2 + $0xd0] sm:$0xf] %v5342_v2  ;;  %657 = vst [vmem:[#allocation2 + $0xd4] sm:$0xf] %v5342_v2  ;;  %4632 = vmatprep.subr.bf16.mxu0 %v5177_v45  ;;  %5145 = vmatprep.subr.bf16.mxu1 %v5177_v45  ;;  %v476_v0 = vmul.f32 1.442695, %v444_v58 }
  0x29   : > { %vm5451_vm4 = vmor %vm1976_vm0, %vm1977_vm2  ;;  %v478_v2 = vmul.f32 1.442695, %v445_v60  ;;  %v466_v3 = vmin.f32 %v5508_v61, 0.0  ;;  %v467_v4 = vmin.f32 %v5511_v62, 0.0  ;;  %v5185_v5 = vld [vmem:[%s7091_s3 + $0x100] sm:$0xff]   ;;  %v4588_v6 = vld [vmem:[%s5431_s26 + $0x8] sm:$0xff]  }
  0x2a   : > { %vm5465_vm5 = vmor %vm1405_vm1, %vm1406_vm3  ;;  %v5479_v42 = vsel %vm5451_vm4, %v1983_v32, %v1984_v25  ;;  %5253 = vpow2.f32 %v476_v0  ;;  %v4450_v8 = vunpack.c.l.bf16 %v4588_v6  ;;  %v4451_v9 = vunpack.c.h.bf16 %v4588_v6  ;;  %v4599_v10 = vld [vmem:[%s5431_s26 + $0x60] sm:$0xff]   ;;  %v5195_v31 = vld [vmem:[%s7091_s3 + $0x108] sm:$0xff]  }
  0x2b   : > { %v1421_v49 = vsel %vm5465_vm5, %v1416_v41, %v1420_v27  ;;  %v1431_v52 = vsel %vm5465_vm5, %v1426_v46, %v1430_v38  ;;  %4633 = vmatpush3.bf16.msra.mxu0 %v5178_v55  ;;  %5153 = vmatpush3.bf16.msra.mxu1 %v5178_v55  ;;  %5255 = vpow2.f32 %v478_v2  ;;  %v520_v7 = vmul.f32 1.442695, %v466_v3  ;;  %v4589_v41 = vld [vmem:[%s5431_s26 + $0x10] sm:$0xff]   ;;  %v4600_v46 = vld [vmem:[%s5431_s26 + $0x68] sm:$0xff]  }
  0x2c   : > { %v4218_v56 = vcombine.low %v1421_v49, %v1431_v52  ;;  %4730 = vmatprep.subr.bf16.mxu1 %v5180_v59  ;;  %4842 = vmatprep.subr.bf16.mxu0 %v5181_v63  ;;  %v522_v11 = vmul.f32 1.442695, %v467_v4  ;;  %v4494_v12 = vunpack.c.l.bf16 %v4599_v10  ;;  %v4495_v14 = vunpack.c.h.bf16 %v4599_v10  ;;  %v1081_v4 = vld [vmem:[#allocation2 + $0xc] sm:$0xf] }
  0x2d   : > { %v5529_v15 = vsel %vm5451_vm4, %v4236_v57, %v1981_v24  ;;  %5257 = vpow2.f32 %v520_v7  ;;  %v343_v16 = vmul.f32 %v4450_v8, %v5458_v30  ;;  %v344_v17 = vmul.f32 %v4451_v9, %v5458_v30  ;;  %v5193_v24 = vld [vmem:[%s7091_s3 + $0x148] sm:$0xff]   ;;  %v1087_v9 = vld [vmem:[#allocation2 + $0x14] sm:$0x1] }
  0x2e   : > { %2979 = vmatprep.mubr.bf16.mxu0 %v4218_v56  ;;  %5259 = vpow2.f32 %v522_v11  ;;  %v365_v19 = vmul.f32 %v4494_v12, %v5458_v30  ;;  %v366_v20 = vmul.f32 %v4495_v14, %v5458_v30  ;;  %vm754_vm6 = vsmask.f32 256 }
  0x2f   : > { %2980 = vmatmul.mubr.bf16.vlgmr.msra.gmra.mrb[0].mxu0 %v4200_v1  ;;  %v5538_v13 = vadd.f32 %v5472_v39, %v343_v16  ;;  %v5541_v21 = vadd.f32 %v5472_v39, %v344_v17  ;;  %vm755_vm7 = vsmask.f32 4368  ;;  %vm412_vm8 = vcmp.gt.f32.partialorder %v5489_v50, 0.0 }
  0x30   : > { %4843 = vmatpush3.bf16.msra.mxu0 %v5185_v5  ;;  %v5544_v22 = vadd.f32 %v5472_v39, %v365_v19  ;;  %v5547_v23 = vadd.f32 %v5472_v39, %v366_v20  ;;  %vm413_vm9 = vcmp.gt.f32.partialorder %v5492_v51, 0.0  ;;  %vm1078_vm10 = vcmask 1043456   ;;  %vm5585_vm3 = vmor %vm754_vm6, %vm755_vm7 }
  0x31   : > { %v446_v25 = vmin.f32 %v5538_v13, 0.0  ;;  %v447_v26 = vmin.f32 %v5541_v21, 0.0  ;;  %vm1079_vm11 = vsmask.f32 7938  ;;  %4844 = vmatprep.subr.bf16.mxu0 %v5193_v24  ;;  %vm1085_vm12 = vcmask 1040384  }
  0x32   : > { %v468_v27 = vmin.f32 %v5544_v22, 0.0  ;;  %v469_v28 = vmin.f32 %v5547_v23, 0.0  ;;  %vm434_vm13 = vcmp.gt.f32.partialorder %v5508_v61, 0.0  ;;  %vm435_vm14 = vcmp.gt.f32.partialorder %v5511_v62, 0.0  ;;  %vm5603_vm7 = vmand %vm1085_vm12, %vm754_vm6  ;;  %v1160_v24 = vld [vmem:[#allocation2 + $0x90] sm:$0xf] }
  0x33   : > { %v480_v32 = vmul.f32 1.442695, %v446_v25  ;;  %v482_v33 = vmul.f32 1.442695, %v447_v26  ;;  %v4454_v44 = vunpack.c.l.bf16 %v4589_v41  ;;  %v4455_v45 = vunpack.c.h.bf16 %v4589_v41  ;;  %v5203_v25 = vld [vmem:[%s7091_s3 + $0x150] sm:$0xff]  }
  0x34   : > { %v5254_v34 = vpop.eup %5253  ;;  %v524_v35 = vmul.f32 1.442695, %v468_v27  ;;  %v526_v37 = vmul.f32 1.442695, %v469_v28  ;;  %4845 = vmatpush3.bf16.msra.mxu0 %v5195_v31  ;;  %vm414_vm15 = vcmp.gt.f32.partialorder %v5538_v13, 0.0  ;;  %v4498_v49 = vunpack.c.l.bf16 %v4600_v46  ;;  %v5207_v41 = vld [vmem:[%s7091_s3 + $0x110] sm:$0xff]  }
  0x35   : > { %v5256_v38 = vpop.eup %5255  ;;  %v4136_v40 = vadd.f32 -1.0, %v5254_v34  ;;  %5261 = vpow2.f32 %v480_v32  ;;  %vm415_vm0 = vcmp.gt.f32.partialorder %v5541_v21, 0.0  ;;  %v345_v58 = vmul.f32 %v4454_v44, %v5458_v30  ;;  %v1164_v32 = vld [vmem:[#allocation2 + $0x98] sm:$0x1]  ;;  %4846 = vmatprep.subr.bf16.mxu0 %v5203_v25 }
  0x36   : > { %v4137_v43 = vadd.f32 -1.0, %v5256_v38  ;;  %5263 = vpow2.f32 %v482_v33  ;;  %vm436_vm1 = vcmp.gt.f32.partialorder %v5544_v22, 0.0  ;;  %v346_v63 = vmul.f32 %v4455_v45, %v5458_v30 }
  0x37   : > { %v5258_v47 = vpop.eup %5257  ;;  %v572_v48 = vsel %vm412_vm8, %v5489_v50, %v4136_v40  ;;  %5265 = vpow2.f32 %v524_v35  ;;  %vm437_vm2 = vcmp.gt.f32.partialorder %v5547_v23, 0.0  ;;  %v4499_v6 = vunpack.c.h.bf16 %v4600_v46  ;;  %vm5594_vm8 = vmand %vm1078_vm10, %vm1079_vm11 }
  0x38   : > { %v5260_v52 = vpop.eup %5259  ;;  %v573_v53 = vsel %vm413_vm9, %v5492_v51, %v4137_v43  ;;  %v4380_v54 = vpack.c.bf16 %v572_v48, %v572_v48  ;;  %v4158_v55 = vadd.f32 -1.0, %v5258_v47  ;;  %5267 = vpow2.f32 %v526_v37  ;;  %4847 = vmatpush3.bf16.msra.mxu0 %v5207_v41 }
  0x39   : > { %v4381_v56 = vpack.c.bf16 %v573_v53, %v573_v53  ;;  %v4159_v57 = vadd.f32 -1.0, %v5260_v52  ;;  %v5590_v7 = vmul.f32 %v4498_v49, %v5458_v30  ;;  %v5599_v12 = vadd.f32 %v5472_v39, %v345_v58 }
  0x3a   : > { %v758_v59 = vshrl.u32 %v4380_v54, 16  ;;  %v761_v50 = vshll.u32 %v4380_v54, 16  ;;  %v594_v60 = vsel %vm434_vm13, %v5508_v61, %v4158_v55  ;;  %v5611_v33 = vadd.f32 %v5472_v39, %v346_v63 }
  0x3b   : > { %v766_v51 = vshrl.u32 %v4381_v56, 16  ;;  %v769_v0 = vshll.u32 %v4381_v56, 16  ;;  %v595_v1 = vsel %vm435_vm14, %v5511_v62, %v4159_v57  ;;  %v4402_v2 = vpack.c.bf16 %v594_v60, %v594_v60  ;;  %v5249_v62 = vld [vmem:[%s7091_s3 + $0x228] sm:$0xff]  }
  0x3c   : > { %v760_v61 = vrot.slane %v758_v59, 7  ;;  %v4403_v5 = vpack.c.bf16 %v595_v1, %v595_v1  ;;  %v5616_v40 = vmul.f32 %v4499_v6, %v5458_v30  ;;  %vm416_vm6 = vcmp.gt.f32.partialorder %v5599_v12, 0.0 }
  0x3d   : > { %v768_v8 = vrot.slane %v766_v51, 7  ;;  %v945_v10 = vshrl.u32 %v4402_v2, 16  ;;  %v948_v11 = vshll.u32 %v4402_v2, 16  ;;  %vm417_vm9 = vcmp.gt.f32.partialorder %v5611_v33, 0.0 }
  0x3e   : > { %v763_v14 = vor.u32 %v761_v50, %v760_v61  ;;  %v764_v16 = vrot.slane %v760_v61, 4  ;;  %v953_v19 = vshrl.u32 %v4403_v5, 16  ;;  %v956_v20 = vshll.u32 %v4403_v5, 16 }
  0x3f   : > { %v5262_v26 = vpop.eup %5261  ;;  %v771_v27 = vor.u32 %v769_v0, %v768_v8  ;;  %v773_v28 = vrot.slane %v768_v8, 4  ;;  %v947_v31 = vrot.slane %v945_v10, 7  ;;  %v5213_v10 = vld [vmem:[%s7091_s3 + $0x158] sm:$0xff]  }
  0x40   : > { %v5264_v34 = vpop.eup %5263  ;;  %v1082_v35 = vsel %vm5594_vm8, %v763_v14, %v1081_v4  ;;  %v955_v37 = vrot.slane %v953_v19, 7  ;;  %v4138_v38 = vadd.f32 -1.0, %v5262_v26  ;;  %v449_v4 = vmin.f32 %v5611_v33, 0.0  ;;  %4848 = vmatprep.subr.bf16.mxu0 %v5213_v10 }
  0x41   : > { %v5266_v43 = vpop.eup %5265  ;;  %v772_v44 = vsel %vm5585_vm3, %v764_v16, %v771_v27  ;;  %1083 = vst [vmem:[#allocation2 + $0xc] sm:$0xf] %v1082_v35  ;;  %v1088_v45 = vsel %vm5603_vm7, %v773_v28, %v1087_v9  ;;  %v950_v46 = vor.u32 %v948_v11, %v947_v31  ;;  %v951_v47 = vrot.slane %v947_v31, 4 }
  0x42   : > { %v5268_v48 = vpop.eup %5267  ;;  %1084 = vst [vmem:[#allocation2 + $0x10] sm:$0xf] %v772_v44  ;;  %1089 = vst [vmem:[#allocation2 + $0x14] sm:$0x1] %v1088_v45  ;;  %v958_v49 = vor.u32 %v956_v20, %v955_v37  ;;  %v960_v52 = vrot.slane %v955_v37, 4  ;;  %v4139_v53 = vadd.f32 -1.0, %v5264_v34  ;;  %v574_v54 = vsel %vm414_vm15, %v5538_v13, %v4138_v38 }
  0x43   : > { %v1161_v55 = vsel %vm5594_vm8, %v950_v46, %v1160_v24  ;;  %v4382_v56 = vpack.c.bf16 %v574_v54, %v574_v54  ;;  %v4160_v57 = vadd.f32 -1.0, %v5266_v43  ;;  %v4161_v58 = vadd.f32 -1.0, %v5268_v48  ;;  %v5214_v34 = vld [vmem:[%s7091_s3 + $0x118] sm:$0xff]  }
  0x44   : > { %v959_v59 = vsel %vm5585_vm3, %v951_v47, %v958_v49  ;;  %1162 = vst [vmem:[#allocation2 + $0x90] sm:$0xf] %v1161_v55  ;;  %v1165_v50 = vsel %vm5603_vm7, %v960_v52, %v1164_v32  ;;  %v575_v60 = vsel %vm415_vm0, %v5541_v21, %v4139_v53  ;;  %v448_v13 = vmin.f32 %v5599_v12, 0.0  ;;  %v1090_v48 = vld [vmem:[#allocation2 + $0x18] sm:$0xf]  ;;  %4849 = vmatpush3.bf16.msra.mxu0 %v5214_v34 }
  0x45   : > { %1163 = vst [vmem:[#allocation2 + $0x94] sm:$0xf] %v959_v59  ;;  %1166 = vst [vmem:[#allocation2 + $0x98] sm:$0x1] %v1165_v50  ;;  %v4383_v63 = vpack.c.bf16 %v575_v60, %v575_v60  ;;  %v775_v51 = vshrl.u32 %v4382_v56, 16  ;;  %v778_v0 = vshll.u32 %v4382_v56, 16  ;;  %v596_v1 = vsel %vm436_vm1, %v5544_v22, %v4160_v57 }
  0x46   : > { %v597_v2 = vsel %vm437_vm2, %v5547_v23, %v4161_v58  ;;  %v5644_v61 = vpack.c.bf16 %v596_v1, %v596_v1  ;;  %v484_v21 = vmul.f32 1.442695, %v448_v13  ;;  %v5656_v14 = vmul.f32 1.442695, %v449_v4  ;;  %v1094_v56 = vld [vmem:[#allocation2 + $0x20] sm:$0x1] }
  0x47   : > { %v777_v5 = vrot.slane %v775_v51, 7  ;;  %v783_v6 = vshrl.u32 %v4383_v63, 16  ;;  %v786_v8 = vshll.u32 %v4383_v63, 16  ;;  %v5647_v9 = vpack.c.bf16 %v597_v2, %v597_v2 }
  0x48   : > { %v5652_v11 = vld [vmem:[#allocation2 + $0xc] sm:$0xf]  ;;  %v962_v22 = vshrl.u32 %v5644_v61, 16  ;;  %v965_v23 = vshll.u32 %v5644_v61, 16  ;;  %5269 = vpow2.f32 %v484_v21  ;;  %v5666_v26 = vadd.f32 %v5472_v39, %v5590_v7 }
  0x49   : > { %v5658_v16 = vld [vmem:[#allocation2 + $0x10] sm:$0xf]  ;;  %v5660_v19 = vld [vmem:[#allocation2 + $0x14] sm:$0xf]  ;;  %v1433_v20 = vshrl.u32 %v5652_v11, 16  ;;  %v1436_v24 = vshll.u32 %v5652_v11, 16  ;;  %v780_v25 = vor.u32 %v778_v0, %v777_v5  ;;  %5271 = vpow2.f32 %v5656_v14 }
  0x4a   : > { %v1442_v27 = vshll.u32 %v5658_v16, 16  ;;  %v1446_v28 = vshrl.u32 %v5658_v16, 16  ;;  %v1452_v31 = vshll.u32 %v5660_v19, 16  ;;  %v5673_v32 = vcombine.low %v5652_v11, %v5658_v16 }
  0x4b   : > { %v1435_v35 = vrot.slane %v1433_v20, 4  ;;  %v1438_v37 = vrot.slane %v1436_v24, 5  ;;  %v1231_v38 = vld [vmem:[#allocation2 + $0x90] sm:$0xf]  ;;  %v781_v7 = vrot.slane %v777_v5, 4  ;;  %v785_v41 = vrot.slane %v783_v6, 7 }
  0x4c   : > { %v1444_v43 = vrot.slane %v1442_v27, 5  ;;  %v1448_v44 = vrot.slane %v1446_v28, 4  ;;  %v1454_v45 = vrot.slane %v1452_v31, 5  ;;  %v1232_v46 = vld [vmem:[#allocation2 + $0x94] sm:$0xf]  ;;  %v1697_v47 = vshrl.u32 %v1231_v38, 16 }
  0x4d   : > { %v1439_v49 = vor.u32 %v1438_v37, %v1435_v35  ;;  %v1233_v52 = vld [vmem:[#allocation2 + $0x98] sm:$0xf]  ;;  %v1700_v53 = vshll.u32 %v1231_v38, 16  ;;  %v1706_v54 = vshll.u32 %v1232_v46, 16  ;;  %v1710_v55 = vshrl.u32 %v1232_v46, 16 }
  0x4e   : > { %v1449_v57 = vor.u32 %v1448_v44, %v1444_v43  ;;  %v1699_v58 = vrot.slane %v1697_v47, 4  ;;  %v1716_v59 = vshll.u32 %v1233_v52, 16  ;;  %v5679_v50 = vcombine.low %v1231_v38, %v1232_v46  ;;  %v1167_v37 = vld [vmem:[#allocation2 + $0x9c] sm:$0xf]  ;;  %v5216_v38 = vld [vmem:[%s7091_s3 + $0x160] sm:$0xff]  }
  0x4f   : > { %v1440_v60 = vrot.slane %v1439_v49, 4  ;;  %v1702_v13 = vrot.slane %v1700_v53, 5  ;;  %v1708_v63 = vrot.slane %v1706_v54, 5  ;;  %v1712_v51 = vrot.slane %v1710_v55, 4  ;;  %v5705_v44 = vld [vmem:[%s5431_s26 + $0x18] sm:$0xff]   ;;  %4850 = vmatprep.subr.bf16.mxu0 %v5216_v38  ;;  %v5186_v49 = vld [vmem:[%s7091_s3 + $0xc8] sm:$0xff]  }
  0x50   : > { %v1450_v0 = vrot.slane %v1449_v57, 4  ;;  %v1718_v1 = vrot.slane %v1716_v59, 5  ;;  %v788_v2 = vor.u32 %v786_v8, %v785_v41  ;;  %v790_v4 = vrot.slane %v785_v41, 4 }
  0x51   : > { %v1445_v21 = vsel %vm5465_vm5, %v1440_v60, %v1444_v43  ;;  %v1703_v5 = vor.u32 %v1702_v13, %v1699_v58  ;;  %v1713_v6 = vor.u32 %v1712_v51, %v1708_v63  ;;  %v1091_v10 = vsel %vm5594_vm8, %v780_v25, %v1090_v48  ;;  %v5746_v51 = vld [vmem:[%s5431_s26 + $0x70] sm:$0xff]  }
  0x52   : > { %v5270_v20 = vpop.eup %5269  ;;  %v1455_v24 = vsel %vm5465_vm5, %v1450_v0, %v1454_v45  ;;  %v789_v27 = vsel %vm5585_vm3, %v781_v7, %v788_v2  ;;  %1092 = vst [vmem:[#allocation2 + $0x18] sm:$0xf] %v1091_v10  ;;  %v1095_v8 = vsel %vm5603_vm7, %v790_v4, %v1094_v56  ;;  %v964_v28 = vrot.slane %v962_v22, 7  ;;  %v5184_v7 = vld [vmem:[%s7091_s3 + $0x80] sm:$0xff]  }
  0x53   : > { %v5691_v31 = vcombine.low %v1445_v21, %v1455_v24  ;;  %v1704_v34 = vrot.slane %v1703_v5, 4  ;;  %v1714_v35 = vrot.slane %v1713_v6, 4  ;;  %1093 = vst [vmem:[#allocation2 + $0x1c] sm:$0xf] %v789_v27  ;;  %1096 = vst [vmem:[#allocation2 + $0x20] sm:$0x1] %v1095_v8  ;;  %v5719_v14 = vadd.f32 %v5472_v39, %v5616_v40 }
  0x54   : > { %v970_v25 = vshrl.u32 %v5647_v9, 16  ;;  %v967_v22 = vor.u32 %v965_v23, %v964_v28  ;;  %v968_v41 = vrot.slane %v964_v28, 4  ;;  %v973_v43 = vshll.u32 %v5647_v9, 16  ;;  %v1171_v23 = vld [vmem:[#allocation2 + $0xa4] sm:$0x1]  ;;  %v5187_v40 = vld [vmem:[%s7091_s3 + $0x88] sm:$0xff]  }
  0x55   : > { %2987 = vmatprep.mubr.bf16.mxu0 %v5691_v31  ;;  %v1709_v45 = vsel %vm5465_vm5, %v1704_v34, %v1708_v63  ;;  %v1719_v46 = vsel %vm5465_vm5, %v1714_v35, %v1718_v1  ;;  %v4140_v48 = vadd.f32 -1.0, %v5270_v20  ;;  %v470_v55 = vmin.f32 %v5666_v26, 0.0  ;;  %v5219_v56 = vld [vmem:[%s7091_s3 + $0x120] sm:$0xff]   ;;  %v5188_v20 = vld [vmem:[%s7091_s3 + $0xd0] sm:$0xff]  }
  0x56   : > { %v972_v47 = vrot.slane %v970_v25, 7  ;;  %v5712_v61 = vcombine.low %v1709_v45, %v1719_v46  ;;  %2988 = vmatmul.mubr.bf16.gmra.mrb[4].mxu0 %v5673_v32  ;;  %v1168_v9 = vsel %vm5594_vm8, %v967_v22, %v1167_v37  ;;  %v4458_v58 = vunpack.c.l.bf16 %v5705_v44  ;;  %v5191_v37 = vld [vmem:[%s7091_s3 + $0x90] sm:$0xff]  }
  0x57   : > { %1169 = vst [vmem:[#allocation2 + $0x9c] sm:$0xf] %v1168_v9  ;;  %v576_v54 = vsel %vm416_vm6, %v5599_v12, %v4140_v48  ;;  %v471_v13 = vmin.f32 %v5719_v14, 0.0  ;;  %v528_v63 = vmul.f32 1.442695, %v470_v55  ;;  %4851 = vmatpush3.bf16.msra.mxu0 %v5219_v56  ;;  %v4459_v21 = vunpack.c.h.bf16 %v5705_v44  ;;  %v5192_v9 = vld [vmem:[%s7091_s3 + $0xd8] sm:$0xff]  }
  0x58   : > { %7116 = vst [vmem:[#allocation4_spill] sm:$0xff] %v5712_v61  ;;  %v975_v52 = vor.u32 %v973_v43, %v972_v47  ;;  %v977_v53 = vrot.slane %v972_v47, 4  ;;  %3075 = vmatprep.mubr.bf16.mxu1 %v5712_v61  ;;  %v4384_v57 = vpack.c.bf16 %v576_v54, %v576_v54  ;;  %v347_v24 = vmul.f32 %v4458_v58, %v5458_v30  ;;  %v5222_v54 = vld [vmem:[%s7091_s3 + $0x168] sm:$0xff]  }
  0x59   : > { %3076 = vmatmul.mubr.bf16.vlgmr.msra.gmra.mrb[0].mxu1 %v5679_v50  ;;  %v5738_v12 = vld [vmem:[#allocation2 + $0x18] sm:$0xf]  ;;  %v4502_v34 = vunpack.c.l.bf16 %v5746_v51  ;;  %5273 = vpow2.f32 %v528_v63  ;;  %v530_v45 = vmul.f32 1.442695, %v471_v13  ;;  %vm438_vm10 = vcmp.gt.f32.partialorder %v5666_v26, 0.0  ;;  %v5223_v55 = vld [vmem:[%s7091_s3 + $0x128] sm:$0xff]   ;;  %4852 = vmatprep.subr.bf16.mxu0 %v5222_v54 }
  0x5a   : > { %v976_v59 = vsel %vm5585_vm3, %v968_v41, %v975_v52  ;;  %v1172_v60 = vsel %vm5603_vm7, %v977_v53, %v1171_v23  ;;  %4731 = vmatpush3.bf16.msra.mxu1 %v5184_v7  ;;  %v5748_v0 = vld [vmem:[#allocation2 + $0x1c] sm:$0xf]  ;;  %v5750_v1 = vld [vmem:[#allocation2 + $0x20] sm:$0xf]  ;;  %v1457_v2 = vshrl.u32 %v5738_v12, 16  ;;  %v1460_v4 = vshll.u32 %v5738_v12, 16  ;;  %v5272_v7 = vpop.eup %5271 }
  0x5b   : > { %1170 = vst [vmem:[#allocation2 + $0xa0] sm:$0xf] %v976_v59  ;;  %1173 = vst [vmem:[#allocation2 + $0xa4] sm:$0x1] %v1172_v60  ;;  %4732 = vmatprep.subr.bf16.mxu1 %v5186_v49  ;;  %v1466_v5 = vshll.u32 %v5748_v0, 16  ;;  %v1470_v6 = vshrl.u32 %v5748_v0, 16  ;;  %v5778_v52 = vcombine.low %v5738_v12, %v5748_v0  ;;  %5275 = vpow2.f32 %v530_v45  ;;  %4853 = vmatpush3.bf16.msra.mxu0 %v5223_v55 }
  0x5c   : > { %v1476_v10 = vshll.u32 %v5750_v1, 16  ;;  %v1459_v27 = vrot.slane %v1457_v2, 4  ;;  %v1462_v8 = vrot.slane %v1460_v4, 5  ;;  %v792_v28 = vshrl.u32 %v4384_v57, 16 }
  0x5d   : > { %v1468_v35 = vrot.slane %v1466_v5, 5  ;;  %v1472_v25 = vrot.slane %v1470_v6, 4  ;;  %v795_v38 = vshll.u32 %v4384_v57, 16  ;;  %v4141_v23 = vadd.f32 -1.0, %v5272_v7  ;;  %v1097_v5 = vld [vmem:[#allocation2 + $0x24] sm:$0xf] }
  0x5e   : > { %4733 = vmatpush3.bf16.msra.mxu1 %v5187_v40  ;;  %v1463_v22 = vor.u32 %v1462_v8, %v1459_v27  ;;  %v1478_v41 = vrot.slane %v1476_v10, 5  ;;  %v5766_v43 = vld [vmem:[#allocation2 + $0x9c] sm:$0xf]  ;;  %v5768_v44 = vrot.slane %v792_v28, 7  ;;  %v348_v53 = vmul.f32 %v4459_v21, %v5458_v30 }
  0x5f   : > { %v1473_v46 = vor.u32 %v1472_v25, %v1468_v35  ;;  %v1721_v47 = vshrl.u32 %v5766_v43, 16  ;;  %v1724_v48 = vshll.u32 %v5766_v43, 16  ;;  %4734 = vmatprep.subr.bf16.mxu1 %v5188_v20  ;;  %v577_v59 = vsel %vm417_vm9, %v5611_v33, %v4141_v23  ;;  %v5194_v21 = vld [vmem:[%s7091_s3 + $0x98] sm:$0xff]   ;;  %v5196_v20 = vld [vmem:[%s7091_s3 + $0xe0] sm:$0xff]  }
  0x60   : > { %v1464_v49 = vrot.slane %v1463_v22, 4  ;;  %v797_v60 = vor.u32 %v795_v38, %v5768_v44  ;;  %vm439_vm11 = vcmp.gt.f32.partialorder %v5719_v14, 0.0  ;;  %v4385_v10 = vpack.c.bf16 %v577_v59, %v577_v59 }
  0x61   : > { %v1474_v56 = vrot.slane %v1473_v46, 4  ;;  %v1723_v58 = vrot.slane %v1721_v47, 4  ;;  %v1726_v63 = vrot.slane %v1724_v48, 5  ;;  %v5803_v27 = vadd.f32 %v5472_v39, %v347_v24  ;;  %v5199_v24 = vld [vmem:[%s7091_s3 + $0xa0] sm:$0xff]  }
  0x62   : > { %v1235_v40 = vld [vmem:[#allocation2 + $0xa0] sm:$0xf]  ;;  %v1236_v57 = vld [vmem:[#allocation2 + $0xa4] sm:$0xf]  ;;  %v1469_v13 = vsel %vm5465_vm5, %v1464_v49, %v1468_v35  ;;  %4735 = vmatpush3.bf16.msra.mxu1 %v5191_v37  ;;  %v798_v37 = vrot.slane %v5768_v44, 4  ;;  %v800_v38 = vshrl.u32 %v4385_v10, 16  ;;  %v1098_v22 = vsel %vm5594_vm8, %v797_v60, %v1097_v5 }
  0x63   : > { %v1730_v2 = vshll.u32 %v1235_v40, 16  ;;  %v1734_v4 = vshrl.u32 %v1235_v40, 16  ;;  %v1479_v33 = vsel %vm5465_vm5, %v1474_v56, %v1478_v41  ;;  %v1740_v6 = vshll.u32 %v1236_v57, 16  ;;  %4736 = vmatprep.subr.bf16.mxu1 %v5192_v9  ;;  %1099 = vst [vmem:[#allocation2 + $0x24] sm:$0xf] %v1098_v22  ;;  %v5200_v44 = vld [vmem:[%s7091_s3 + $0xe8] sm:$0xff]   ;;  %v5274_v48 = vpop.eup %5273 }
  0x64   : > { %v5805_v8 = vcombine.low %v1469_v13, %v1479_v33  ;;  %v1727_v28 = vor.u32 %v1726_v63, %v1723_v58  ;;  %v803_v7 = vshll.u32 %v4385_v10, 16  ;;  %v5818_v47 = vadd.f32 %v5472_v39, %v348_v53  ;;  %v1101_v57 = vld [vmem:[#allocation2 + $0x2c] sm:$0x1] }
  0x65   : > { %v1732_v35 = vrot.slane %v1730_v2, 5  ;;  %v1736_v25 = vrot.slane %v1734_v4, 4  ;;  %v1742_v46 = vrot.slane %v1740_v6, 5  ;;  %v802_v9 = vrot.slane %v800_v38, 7  ;;  %v5276_v2 = vpop.eup %5275 }
  0x66   : > { %2995 = vmatprep.mubr.bf16.mxu0 %v5805_v8  ;;  %v1728_v41 = vrot.slane %v1727_v28, 4  ;;  %4737 = vmatpush3.bf16.msra.mxu1 %v5194_v21  ;;  %v450_v23 = vmin.f32 %v5803_v27, 0.0  ;;  %v4503_v49 = vunpack.c.h.bf16 %v5746_v51  ;;  %v369_v54 = vmul.f32 %v4502_v34, %v5458_v30  ;;  %v4591_v28 = vld [vmem:[%s5431_s26 + $0x20] sm:$0xff]  }
  0x67   : > { %v1737_v45 = vor.u32 %v1736_v25, %v1732_v35  ;;  %2996 = vmatmul.mubr.bf16.gmra.mrb[8].mxu0 %v5778_v52  ;;  %4738 = vmatprep.subr.bf16.mxu1 %v5196_v20  ;;  %v5829_v53 = vcombine.low %v5766_v43, %v1235_v40  ;;  %v4162_v58 = vadd.f32 -1.0, %v5274_v48  ;;  %v805_v59 = vor.u32 %v803_v7, %v802_v9  ;;  %v5202_v20 = vld [vmem:[%s7091_s3 + $0xf0] sm:$0xff]  }
  0x68   : > { %v1733_v55 = vsel %vm5465_vm5, %v1728_v41, %v1732_v35  ;;  %v807_v60 = vrot.slane %v802_v9, 4  ;;  %v451_v13 = vmin.f32 %v5818_v47, 0.0  ;;  %v488_v63 = vmul.f32 1.442695, %v450_v23 }
  0x69   : > { %v1738_v56 = vrot.slane %v1737_v45, 4  ;;  %v598_v51 = vsel %vm438_vm10, %v5666_v26, %v4162_v58  ;;  %v370_v34 = vmul.f32 %v4503_v49, %v5458_v30  ;;  %v5839_v43 = vadd.f32 %v5472_v39, %v369_v54  ;;  %v5201_v26 = vld [vmem:[%s7091_s3 + $0xa8] sm:$0xff]  }
  0x6a   : > { %4739 = vmatpush3.bf16.msra.mxu1 %v5199_v24  ;;  %v806_v21 = vsel %vm5585_vm3, %v798_v37, %v805_v59  ;;  %v1102_v5 = vsel %vm5603_vm7, %v807_v60, %v1101_v57  ;;  %v4163_v33 = vadd.f32 -1.0, %v5276_v2  ;;  %v4406_v30 = vpack.c.bf16 %v598_v51, %v598_v51  ;;  %v5858_v35 = vld [vmem:[#allocation2 + $0x24] sm:$0xf]  ;;  %v1174_v49 = vld [vmem:[#allocation2 + $0xa8] sm:$0xf]  ;;  %v5209_v57 = vld [vmem:[%s7091_s3 + $0xb8] sm:$0xff]  }
  0x6b   : > { %v1743_v4 = vsel %vm5465_vm5, %v1738_v56, %v1742_v46  ;;  %4740 = vmatprep.subr.bf16.mxu1 %v5200_v44  ;;  %1100 = vst [vmem:[#allocation2 + $0x28] sm:$0xf] %v806_v21  ;;  %1103 = vst [vmem:[#allocation2 + $0x2c] sm:$0x1] %v1102_v5  ;;  %5277 = vpow2.f32 %v488_v63  ;;  %v490_v6 = vmul.f32 1.442695, %v451_v13  ;;  %v5851_v10 = vadd.f32 %v5472_v39, %v370_v34 }
  0x6c   : > { %v5841_v40 = vcombine.low %v1733_v55, %v1743_v4  ;;  %v599_v25 = vsel %vm439_vm11, %v5719_v14, %v4163_v33  ;;  %v472_v37 = vmin.f32 %v5839_v43, 0.0  ;;  %v1481_v39 = vshrl.u32 %v5858_v35, 16  ;;  %v5206_v14 = vld [vmem:[%s7091_s3 + $0xb0] sm:$0xff]   ;;  %v5208_v46 = vld [vmem:[%s7091_s3 + $0xf8] sm:$0xff]   ;;  %v5210_v4 = vld [vmem:[%s7091_s3 + $0x1c0] sm:$0xff]  }
  0x6d   : > { %v1484_v38 = vshll.u32 %v5858_v35, 16  ;;  %v4407_v7 = vpack.c.bf16 %v599_v25, %v599_v25  ;;  %v979_v22 = vshrl.u32 %v4406_v30, 16  ;;  %vm418_vm12 = vcmp.gt.f32.partialorder %v5803_v27, 0.0  ;;  %v1178_v2 = vld [vmem:[#allocation2 + $0xb0] sm:$0x1]  ;;  %v4592_v51 = vld [vmem:[%s5431_s26 + $0x28] sm:$0xff]  }
  0x6e   : > { %7117 = vst [vmem:[#allocation5_spill] sm:$0xff] %v5841_v40  ;;  %3083 = vmatprep.mubr.bf16.mxu1 %v5841_v40  ;;  %v982_v41 = vshll.u32 %v4406_v30, 16  ;;  %4741 = vmatpush3.bf16.msra.mxu1 %v5201_v26  ;;  %5279 = vpow2.f32 %v490_v6  ;;  %v473_v45 = vmin.f32 %v5851_v10, 0.0  ;;  %v4462_v24 = vunpack.c.l.bf16 %v4591_v28  ;;  %v5890_v5 = vld [vmem:[%s7089_s1] ss:$0 sm:$0xff] }
  0x6f   : > { %3084 = vmatmul.mubr.bf16.gmra.mrb[4].mxu1 %v5829_v53  ;;  %v1483_v44 = vrot.slane %v1481_v39, 4  ;;  %v1486_v48 = vrot.slane %v1484_v38, 5  ;;  %v981_v9 = vrot.slane %v979_v22, 7  ;;  %v987_v23 = vshrl.u32 %v4407_v7, 16  ;;  %4742 = vmatprep.subr.bf16.mxu1 %v5202_v20 }
  0x70   : > { %v990_v54 = vshll.u32 %v4407_v7, 16  ;;  %vm419_vm13 = vcmp.gt.f32.partialorder %v5818_v47, 0.0  ;;  %v532_v55 = vmul.f32 1.442695, %v472_v37  ;;  %v534_v56 = vmul.f32 1.442695, %v473_v45 }
  0x71   : > { %v4463_v58 = vunpack.c.h.bf16 %v4591_v28  ;;  %v1487_v59 = vor.u32 %v1486_v48, %v1483_v44  ;;  %v984_v60 = vor.u32 %v982_v41, %v981_v9  ;;  %v985_v13 = vrot.slane %v981_v9, 4  ;;  %v5227_v7 = vld [vmem:[%s7091_s3 + $0x170] sm:$0xff]   ;;  %v5912_v9 = vld [vmem:[%s7090_s2] ss:$0 sm:$0xff] }
  0x72   : > { %v989_v63 = vrot.slane %v987_v23, 7  ;;  %v5883_v34 = vld [vmem:[#allocation2 + $0x28] sm:$0xf]  ;;  %v5885_v21 = vld [vmem:[#allocation2 + $0x2c] sm:$0xf]  ;;  %5281 = vpow2.f32 %v532_v55  ;;  %4743 = vmatpush3.bf16.msra.mxu1 %v5206_v14  ;;  %v349_v33 = vmul.f32 %v5890_v5, %v4462_v24  ;;  %v4466_v38 = vunpack.c.l.bf16 %v4592_v51  ;;  %4854 = vmatprep.subr.bf16.mxu0 %v5227_v7 }
  0x73   : > { %v350_v26 = vmul.f32 %v5890_v5, %v4463_v58  ;;  %v1488_v30 = vrot.slane %v1487_v59, 4  ;;  %v1490_v6 = vshll.u32 %v5883_v34, 16  ;;  %v1494_v20 = vshrl.u32 %v5883_v34, 16  ;;  %4744 = vmatprep.subr.bf16.mxu1 %v5208_v46  ;;  %v5229_v46 = vld [vmem:[%s7091_s3 + $0x130] sm:$0xff]  }
  0x74   : > { %v1500_v28 = vshll.u32 %v5885_v21, 16  ;;  %v992_v25 = vor.u32 %v990_v54, %v989_v63  ;;  %v994_v37 = vrot.slane %v989_v63, 4  ;;  %v1175_v39 = vsel %vm5594_vm8, %v984_v60, %v1174_v49  ;;  %4855 = vmatpush3.bf16.msra.mxu0 %v5229_v46 }
  0x75   : > { %v5278_v22 = vpop.eup %5277  ;;  %v1492_v41 = vrot.slane %v1490_v6, 5  ;;  %v1496_v45 = vrot.slane %v1494_v20, 4  ;;  %1176 = vst [vmem:[#allocation2 + $0xa8] sm:$0xf] %v1175_v39  ;;  %5283 = vpow2.f32 %v534_v56  ;;  %v5915_v23 = vadd.f32 %v5912_v9, %v349_v33 }
  0x76   : > { %v1502_v14 = vrot.slane %v1500_v28, 5  ;;  %v993_v24 = vsel %vm5585_vm3, %v985_v13, %v992_v25  ;;  %v1179_v44 = vsel %vm5603_vm7, %v994_v37, %v1178_v2  ;;  %v4142_v48 = vadd.f32 -1.0, %v5278_v22  ;;  %4745 = vmatpush3.bf16.msra.mxu1 %v5209_v57 }
  0x77   : > { %v1497_v49 = vor.u32 %v1496_v45, %v1492_v41  ;;  %1177 = vst [vmem:[#allocation2 + $0xac] sm:$0xf] %v993_v24  ;;  %1180 = vst [vmem:[#allocation2 + $0xb0] sm:$0x1] %v1179_v44  ;;  %v5918_v54 = vadd.f32 %v5912_v9, %v350_v26  ;;  %4954 = vmatprep.subr.bf16.mxu1 %v5210_v4  ;;  %v4467_v55 = vunpack.c.h.bf16 %v4592_v51  ;;  %vm440_vm14 = vcmp.gt.f32.partialorder %v5839_v43, 0.0 }
  0x78   : > { %v5280_v56 = vpop.eup %5279  ;;  %v5922_v57 = vcombine.low %v5858_v35, %v5883_v34  ;;  %v578_v58 = vsel %vm418_vm12, %v5803_v27, %v4142_v48  ;;  %v452_v59 = vmin.f32 %v5915_v23, 0.0  ;;  %v1493_v60 = vsel %vm5465_vm5, %v1488_v30, %v1492_v41  ;;  %v1104_v45 = vld [vmem:[#allocation2 + $0x30] sm:$0xf] }
  0x79   : > { %v1498_v13 = vrot.slane %v1497_v49, 4  ;;  %v4143_v63 = vadd.f32 -1.0, %v5280_v56  ;;  %v4386_v2 = vpack.c.bf16 %v578_v58, %v578_v58  ;;  %vm441_vm15 = vcmp.gt.f32.partialorder %v5851_v10, 0.0 }
  0x7a   : > { %v453_v4 = vmin.f32 %v5918_v54, 0.0  ;;  %v492_v51 = vmul.f32 1.442695, %v452_v59  ;;  %v351_v33 = vmul.f32 %v5890_v5, %v4466_v38  ;;  %v352_v26 = vmul.f32 %v5890_v5, %v4467_v55 }
  0x7b   : > { %v1503_v27 = vsel %vm5465_vm5, %v1498_v13, %v1502_v14  ;;  %v579_v6 = vsel %vm419_vm13, %v5818_v47, %v4143_v63  ;;  %v809_v30 = vshrl.u32 %v4386_v2, 16  ;;  %v812_v20 = vshll.u32 %v4386_v2, 16  ;;  %v1108_v2 = vld [vmem:[#allocation2 + $0x38] sm:$0x1] }
  0x7c   : > { %v5282_v28 = vpop.eup %5281  ;;  %v5940_v25 = vcombine.low %v1493_v60, %v1503_v27  ;;  %v1237_v37 = vld [vmem:[#allocation2 + $0xa8] sm:$0xf]  ;;  %v4387_v39 = vpack.c.bf16 %v579_v6, %v579_v6  ;;  %5285 = vpow2.f32 %v492_v51  ;;  %v494_v7 = vmul.f32 1.442695, %v453_v4 }
  0x7d   : > { %v1745_v22 = vshrl.u32 %v1237_v37, 16  ;;  %v1748_v38 = vshll.u32 %v1237_v37, 16  ;;  %v811_v41 = vrot.slane %v809_v30, 7  ;;  %v4164_v46 = vadd.f32 -1.0, %v5282_v28 }
  0x7e   : > { %3003 = vmatprep.mubr.bf16.mxu0 %v5940_v25  ;;  %v1238_v14 = vld [vmem:[#allocation2 + $0xac] sm:$0xf]  ;;  %v1239_v24 = vld [vmem:[#allocation2 + $0xb0] sm:$0xf]  ;;  %v817_v44 = vshrl.u32 %v4387_v39, 16  ;;  %v820_v47 = vshll.u32 %v4387_v39, 16  ;;  %5287 = vpow2.f32 %v494_v7  ;;  %v5944_v48 = vadd.f32 %v5912_v9, %v351_v33 }
  0x7f   : > { %v5284_v49 = vpop.eup %5283  ;;  %v1747_v55 = vrot.slane %v1745_v22, 4  ;;  %v1750_v56 = vrot.slane %v1748_v38, 5  ;;  %v1754_v58 = vshll.u32 %v1238_v14, 16  ;;  %v1758_v59 = vshrl.u32 %v1238_v14, 16  ;;  %3004 = vmatmul.mubr.bf16.gmra.mrb[12].mxu0 %v5922_v57 }
  0x80   : > { %v1764_v60 = vshll.u32 %v1239_v24, 16  ;;  %v814_v13 = vor.u32 %v812_v20, %v811_v41  ;;  %v815_v63 = vrot.slane %v811_v41, 4  ;;  %v5948_v4 = vadd.f32 %v5912_v9, %v352_v26 }
  0x81   : > { %v1751_v51 = vor.u32 %v1750_v56, %v1747_v55  ;;  %v1756_v27 = vrot.slane %v1754_v58, 5  ;;  %v1760_v6 = vrot.slane %v1758_v59, 4  ;;  %v819_v30 = vrot.slane %v817_v44, 7 }
  0x82   : > { %v1766_v33 = vrot.slane %v1764_v60, 5  ;;  %v1105_v28 = vsel %vm5594_vm8, %v814_v13, %v1104_v45  ;;  %v4165_v39 = vadd.f32 -1.0, %v5284_v49  ;;  %v600_v7 = vsel %vm440_vm14, %v5839_v43, %v4164_v46 }
  0x83   : > { %v1752_v22 = vrot.slane %v1751_v51, 4  ;;  %v1761_v20 = vor.u32 %v1760_v6, %v1756_v27  ;;  %v822_v38 = vor.u32 %v820_v47, %v819_v30  ;;  %v824_v41 = vrot.slane %v819_v30, 4  ;;  %1106 = vst [vmem:[#allocation2 + $0x30] sm:$0xf] %v1105_v28 }
  0x84   : > { %v601_v26 = vsel %vm441_vm15, %v5851_v10, %v4165_v39  ;;  %v4408_v24 = vpack.c.bf16 %v600_v7, %v600_v7  ;;  %vm420_vm0 = vcmp.gt.f32.partialorder %v5915_v23, 0.0  ;;  %vm421_vm1 = vcmp.gt.f32.partialorder %v5918_v54, 0.0 }
  0x85   : > { %v1757_v45 = vsel %vm5465_vm5, %v1752_v22, %v1756_v27  ;;  %v1762_v44 = vrot.slane %v1761_v20, 4  ;;  %v823_v43 = vsel %vm5585_vm3, %v815_v63, %v822_v38  ;;  %v1109_v46 = vsel %vm5603_vm7, %v824_v41, %v1108_v2  ;;  %v5233_v63 = vld [vmem:[%s7091_s3 + $0x178] sm:$0xff]  }
  0x86   : > { %v5286_v47 = vpop.eup %5285  ;;  %1107 = vst [vmem:[#allocation2 + $0x34] sm:$0xf] %v823_v43  ;;  %1110 = vst [vmem:[#allocation2 + $0x38] sm:$0x1] %v1109_v46  ;;  %v4409_v49 = vpack.c.bf16 %v601_v26, %v601_v26  ;;  %v996_v10 = vshrl.u32 %v4408_v24, 16  ;;  %v999_v55 = vshll.u32 %v4408_v24, 16  ;;  %v5969_v59 = vcombine.low %v1237_v37, %v1238_v14  ;;  %4856 = vmatprep.subr.bf16.mxu0 %v5233_v63 }
  0x87   : > { %v454_v56 = vmin.f32 %v5944_v48, 0.0  ;;  %v1767_v58 = vsel %vm5465_vm5, %v1762_v44, %v1766_v33  ;;  %v4144_v60 = vadd.f32 -1.0, %v5286_v47  ;;  %v455_v13 = vmin.f32 %v5948_v4, 0.0  ;;  %v5234_v2 = vld [vmem:[%s7091_s3 + $0x138] sm:$0xff]   ;;  %v1181_v33 = vld [vmem:[#allocation2 + $0xb4] sm:$0xf] }
  0x88   : > { %v5288_v51 = vpop.eup %5287  ;;  %v5978_v27 = vcombine.low %v1757_v45, %v1767_v58  ;;  %v998_v6 = vrot.slane %v996_v10, 7  ;;  %v1004_v30 = vshrl.u32 %v4409_v49, 16  ;;  %v1007_v28 = vshll.u32 %v4409_v49, 16  ;;  %4857 = vmatpush3.bf16.msra.mxu0 %v5234_v2  ;;  %v1185_v47 = vld [vmem:[#allocation2 + $0xbc] sm:$0x1] }
  0x89   : > { %v4145_v37 = vadd.f32 -1.0, %v5288_v51  ;;  %v580_v14 = vsel %vm420_vm0, %v5915_v23, %v4144_v60  ;;  %v496_v39 = vmul.f32 1.442695, %v454_v56  ;;  %v498_v7 = vmul.f32 1.442695, %v455_v13 }
  0x8a   : > { %7118 = vst [vmem:[#allocation6_spill] sm:$0xff] %v5978_v27  ;;  %3091 = vmatprep.mubr.bf16.mxu1 %v5978_v27  ;;  %v5984_v22 = vld [vmem:[#allocation2 + $0x30] sm:$0xf]  ;;  %v1001_v20 = vor.u32 %v999_v55, %v998_v6  ;;  %v1002_v38 = vrot.slane %v998_v6, 4  ;;  %v1006_v41 = vrot.slane %v1004_v30, 7  ;;  %v4388_v26 = vpack.c.bf16 %v580_v14, %v580_v14 }
  0x8b   : > { %3092 = vmatmul.mubr.bf16.gmra.mrb[8].mxu1 %v5969_v59  ;;  %v1505_v24 = vshrl.u32 %v5984_v22, 16  ;;  %v1508_v45 = vshll.u32 %v5984_v22, 16  ;;  %v581_v23 = vsel %vm421_vm1, %v5918_v54, %v4145_v37  ;;  %5289 = vpow2.f32 %v496_v39  ;;  %v6007_v30 = vld [vmem:[%s5431_s26 + $0x30] sm:$0xff]   ;;  %v5236_v39 = vld [vmem:[%s7091_s3 + $0x200] sm:$0xff]  }
  0x8c   : > { %v1009_v44 = vor.u32 %v1007_v28, %v1006_v41  ;;  %v1011_v43 = vrot.slane %v1006_v41, 4  ;;  %v1182_v46 = vsel %vm5594_vm8, %v1001_v20, %v1181_v33  ;;  %v4389_v58 = vpack.c.bf16 %v581_v23, %v581_v23  ;;  %5090 = vmatprep.subr.bf16.mxu0 %v5236_v39 }
  0x8d   : > { %v5994_v49 = vld [vmem:[#allocation2 + $0x34] sm:$0xf]  ;;  %v5996_v10 = vld [vmem:[#allocation2 + $0x38] sm:$0xf]  ;;  %v1507_v55 = vrot.slane %v1505_v24, 4  ;;  %v1510_v56 = vrot.slane %v1508_v45, 5  ;;  %5291 = vpow2.f32 %v498_v7 }
  0x8e   : > { %1183 = vst [vmem:[#allocation2 + $0xb4] sm:$0xf] %v1182_v46  ;;  %v1514_v60 = vshll.u32 %v5994_v49, 16  ;;  %v1518_v54 = vshrl.u32 %v5994_v49, 16  ;;  %v1524_v13 = vshll.u32 %v5996_v10, 16  ;;  %v1010_v63 = vsel %vm5585_vm3, %v1002_v38, %v1009_v44 }
  0x8f   : > { %v1511_v2 = vor.u32 %v1510_v56, %v1507_v55  ;;  %1184 = vst [vmem:[#allocation2 + $0xb8] sm:$0xf] %v1010_v63  ;;  %v1186_v51 = vsel %vm5603_vm7, %v1011_v43, %v1185_v47  ;;  %v826_v6 = vshrl.u32 %v4388_v26, 16  ;;  %vm422_vm2 = vcmp.gt.f32.partialorder %v5944_v48, 0.0  ;;  %v1111_v46 = vld [vmem:[#allocation2 + $0x3c] sm:$0xf] }
  0x90   : > { %v1516_v28 = vrot.slane %v1514_v60, 5  ;;  %v1520_v33 = vrot.slane %v1518_v54, 4  ;;  %1187 = vst [vmem:[#allocation2 + $0xbc] sm:$0x1] %v1186_v51  ;;  %v829_v37 = vshll.u32 %v4388_v26, 16  ;;  %vm423_vm6 = vcmp.gt.f32.partialorder %v5948_v4, 0.0 }
  0x91   : > { %v4237_v14 = vrot.slane %v5652_v11, 9  ;;  %v1512_v7 = vrot.slane %v1511_v2, 4  ;;  %v828_v20 = vrot.slane %v826_v6, 7  ;;  %v834_v38 = vshrl.u32 %v4389_v58, 16 }
  0x92   : > { %v837_v41 = vshll.u32 %v4389_v58, 16  ;;  %v1521_v24 = vor.u32 %v1520_v33, %v1516_v28  ;;  %v1526_v45 = vrot.slane %v1524_v13, 5  ;;  %v1988_v23 = vrot.slane %v5658_v16, 5 }
  0x93   : > { %v4470_v44 = vunpack.c.l.bf16 %v6007_v30  ;;  %v6018_v26 = vcombine.low %v5984_v22, %v5994_v49  ;;  %v831_v11 = vor.u32 %v829_v37, %v828_v20  ;;  %v836_v43 = vrot.slane %v834_v38, 7  ;;  %v1115_v37 = vld [vmem:[#allocation2 + $0x44] sm:$0x1] }
  0x94   : > { %v1991_v47 = vrot.slane %v5660_v19, 5  ;;  %v1517_v55 = vsel %vm5465_vm5, %v1512_v7, %v1516_v28  ;;  %v1522_v56 = vrot.slane %v1521_v24, 4  ;;  %v832_v60 = vrot.slane %v828_v20, 4 }
  0x95   : > { %7119 = vst [vmem:[#allocation7_spill] sm:$0xff] %v6018_v26  ;;  %v1240_v58 = vld [vmem:[#allocation2 + $0xb4] sm:$0xf]  ;;  %v4471_v16 = vunpack.c.h.bf16 %v6007_v30  ;;  %v5290_v54 = vpop.eup %5289  ;;  %v839_v2 = vor.u32 %v837_v41, %v836_v43  ;;  %v841_v51 = vrot.slane %v836_v43, 4  ;;  %v1112_v19 = vsel %vm5594_vm8, %v831_v11, %v1111_v46 }
  0x96   : > { %v1769_v13 = vshrl.u32 %v1240_v58, 16  ;;  %v1772_v63 = vshll.u32 %v1240_v58, 16  ;;  %v1527_v6 = vsel %vm5465_vm5, %v1522_v56, %v1526_v45  ;;  %v1241_v33 = vld [vmem:[#allocation2 + $0xb8] sm:$0xf]  ;;  %v4146_v39 = vadd.f32 -1.0, %v5290_v54 }
  0x97   : > { %v1990_v28 = vrot.slane %v1988_v23, 4  ;;  %v5292_v7 = vpop.eup %5291  ;;  %v6028_v38 = vcombine.low %v1517_v55, %v1527_v6  ;;  %v1242_v20 = vld [vmem:[#allocation2 + $0xbc] sm:$0xf]  ;;  %v1778_v18 = vshll.u32 %v1241_v33, 16  ;;  %1113 = vst [vmem:[#allocation2 + $0x3c] sm:$0xf] %v1112_v19  ;;  %v840_v45 = vsel %vm5585_vm3, %v832_v60, %v839_v2 }
  0x98   : > { %v1771_v30 = vrot.slane %v1769_v13, 4  ;;  %v1774_v24 = vrot.slane %v1772_v63, 5  ;;  %v1782_v41 = vshrl.u32 %v1241_v33, 16  ;;  %v1788_v43 = vshll.u32 %v1242_v20, 16  ;;  %1114 = vst [vmem:[#allocation2 + $0x40] sm:$0xf] %v840_v45 }
  0x99   : > { %v353_v56 = vmul.f32 %v5890_v5, %v4470_v44  ;;  %3011 = vmatprep.mubr.bf16.mxu0 %v6028_v38  ;;  %v1780_v46 = vrot.slane %v1778_v18, 5  ;;  %v1116_v55 = vsel %vm5603_vm7, %v841_v51, %v1115_v37  ;;  %v4147_v54 = vadd.f32 -1.0, %v5292_v7  ;;  %v5332_v17 = vld [vmem:[#allocation2 + $0xb4] sm:$0xf] }
  0x9a   : > { %v1775_v11 = vor.u32 %v1774_v24, %v1771_v30  ;;  %v1784_v13 = vrot.slane %v1782_v41, 4  ;;  %3012 = vmatmul.mubr.bf16.gmra.mrb[16].mxu0 %v6018_v26  ;;  %1117 = vst [vmem:[#allocation2 + $0x44] sm:$0x1] %v1116_v55  ;;  %v582_v63 = vsel %vm422_vm2, %v5944_v48, %v4146_v39  ;;  %v1989_v44 = vsel %vm5451_vm4, %v4237_v14, %v1988_v23 }
  0x9b   : > { %v1992_v60 = vsel %vm5451_vm4, %v1990_v28, %v1991_v47  ;;  %v583_v2 = vsel %vm423_vm6, %v5948_v4, %v4147_v54  ;;  %v4390_v51 = vpack.c.bf16 %v582_v63, %v582_v63  ;;  %v354_v6 = vmul.f32 %v5890_v5, %v4471_v16 }
  0x9c   : > { %v1776_v18 = vrot.slane %v1775_v11, 4  ;;  %v1785_v19 = vor.u32 %v1784_v13, %v1780_v46  ;;  %v1790_v37 = vrot.slane %v1788_v43, 5  ;;  %v4391_v7 = vpack.c.bf16 %v583_v2, %v583_v2  ;;  %v1118_v43 = vld [vmem:[#allocation2 + $0x48] sm:$0xf] }
  0x9d   : > { %v6049_v20 = vadd.f32 %v5912_v9, %v353_v56  ;;  %v6051_v48 = vcombine.low %v1240_v58, %v1241_v33  ;;  %v843_v14 = vshrl.u32 %v4390_v51, 16  ;;  %v6053_v23 = vcombine.low %v1989_v44, %v1992_v60 }
  0x9e   : > { %v6056_v47 = vadd.f32 %v5912_v9, %v354_v6  ;;  %v1781_v4 = vsel %vm5465_vm5, %v1776_v18, %v1780_v46  ;;  %v1786_v39 = vrot.slane %v1785_v19, 4  ;;  %v6060_v28 = vld [vmem:[#allocation2 + $0x3c] sm:$0xf]  ;;  %v846_v16 = vshll.u32 %v4390_v51, 16 }
  0x9f   : > { %v851_v30 = vshrl.u32 %v4391_v7, 16  ;;  %v1529_v24 = vshrl.u32 %v6060_v28, 16  ;;  %v1532_v41 = vshll.u32 %v6060_v28, 16  ;;  %v845_v58 = vrot.slane %v843_v14, 7  ;;  %v6066_v56 = vld [vmem:[#allocation2 + $0x40] sm:$0xf] }
  0xa0   : > { %v854_v33 = vshll.u32 %v4391_v7, 16  ;;  %v1791_v45 = vsel %vm5465_vm5, %v1786_v39, %v1790_v37  ;;  %v456_v46 = vmin.f32 %v6049_v20, 0.0  ;;  %v457_v55 = vmin.f32 %v6056_v47, 0.0 }
  0xa1   : > { %v853_v11 = vrot.slane %v851_v30, 7  ;;  %v6070_v54 = vcombine.low %v1781_v4, %v1791_v45  ;;  %v6072_v13 = vld [vmem:[#allocation2 + $0x44] sm:$0xf]  ;;  %v1531_v63 = vrot.slane %v1529_v24, 4  ;;  %v1534_v44 = vrot.slane %v1532_v41, 5  ;;  %v4594_v45 = vld [vmem:[%s5431_s26 + $0x38] sm:$0xff]  }
  0xa2   : > { %v1538_v60 = vshll.u32 %v6066_v56, 16  ;;  %v1542_v18 = vshrl.u32 %v6066_v56, 16  ;;  %v1548_v2 = vshll.u32 %v6072_v13, 16  ;;  %v848_v51 = vor.u32 %v846_v16, %v845_v58  ;;  %v1122_v4 = vld [vmem:[#allocation2 + $0x50] sm:$0x1] }
  0xa3   : > { %7120 = vst [vmem:[#allocation8_spill] sm:$0xff] %v6070_v54  ;;  %v4238_v6 = vrot.slane %v5738_v12, 9  ;;  %3099 = vmatprep.mubr.bf16.mxu1 %v6070_v54  ;;  %v1535_v19 = vor.u32 %v1534_v44, %v1531_v63  ;;  %v849_v7 = vrot.slane %v845_v58, 4  ;;  %v856_v14 = vor.u32 %v854_v33, %v853_v11 }
  0xa4   : > { %v1540_v37 = vrot.slane %v1538_v60, 5  ;;  %3100 = vmatmul.mubr.bf16.gmra.mrb[12].mxu1 %v6051_v48  ;;  %v1544_v39 = vrot.slane %v1542_v18, 4  ;;  %v1550_v30 = vrot.slane %v1548_v2, 5  ;;  %v858_v24 = vrot.slane %v853_v11, 4  ;;  %v4595_v18 = vld [vmem:[%s5431_s26 + $0x40] sm:$0xff]  }
  0xa5   : > { %v1119_v41 = vsel %vm5594_vm8, %v848_v51, %v1118_v43  ;;  %v1536_v27 = vrot.slane %v1535_v19, 4  ;;  %3140 = vmatprep.mubr.bf16.mxu1 %v5673_v32  ;;  %v857_v12 = vsel %vm5585_vm3, %v849_v7, %v856_v14  ;;  %v500_v16 = vmul.f32 1.442695, %v456_v46 }
  0xa6   : > { %1120 = vst [vmem:[#allocation2 + $0x48] sm:$0xf] %v1119_v41  ;;  %v502_v58 = vmul.f32 1.442695, %v457_v55  ;;  %v1545_v33 = vor.u32 %v1544_v39, %v1540_v37  ;;  %1121 = vst [vmem:[#allocation2 + $0x4c] sm:$0xf] %v857_v12  ;;  %v1123_v63 = vsel %vm5603_vm7, %v858_v24, %v1122_v4  ;;  %v6092_v44 = vcombine.low %v6060_v28, %v6066_v56 }
  0xa7   : > { %v1995_v11 = vrot.slane %v5748_v0, 5  ;;  %v1998_v43 = vrot.slane %v5750_v1, 5  ;;  %1124 = vst [vmem:[#allocation2 + $0x50] sm:$0x1] %v1123_v63  ;;  %5293 = vpow2.f32 %v500_v16  ;;  %v4474_v32 = vunpack.c.l.bf16 %v4594_v45  ;;  %v5212_v0 = vld [vmem:[%s7091_s3 + $0x180] sm:$0xff]  }
  0xa8   : > { %7121 = vst [vmem:[#allocation9_spill] sm:$0xff] %v6092_v44  ;;  %v4475_v60 = vunpack.c.h.bf16 %v4594_v45  ;;  %v1541_v46 = vsel %vm5465_vm5, %v1536_v27, %v1540_v37  ;;  %v1546_v55 = vrot.slane %v1545_v33, 4  ;;  %5295 = vpow2.f32 %v502_v58  ;;  %v5220_v33 = vld [vmem:[%s7091_s3 + $0x188] sm:$0xff]  }
  0xa9   : > { %v1997_v2 = vrot.slane %v1995_v11, 4  ;;  %v355_v1 = vmul.f32 %v5890_v5, %v4474_v32  ;;  %v4239_v19 = vrot.slane %v5858_v35, 9  ;;  %v2002_v7 = vrot.slane %v5883_v34, 5  ;;  %v5217_v35 = vld [vmem:[%s7091_s3 + $0x1c8] sm:$0xff]  }
  0xaa   : > { %v356_v51 = vmul.f32 %v5890_v5, %v4475_v60  ;;  %v1551_v14 = vsel %vm5465_vm5, %v1546_v55, %v1550_v30  ;;  %v1996_v27 = vsel %vm5451_vm4, %v4238_v6, %v1995_v11  ;;  %v4478_v4 = vunpack.c.l.bf16 %v4595_v18 }
  0xab   : > { %v1999_v37 = vsel %vm5451_vm4, %v1997_v2, %v1998_v43  ;;  %v6110_v39 = vcombine.low %v1541_v46, %v1551_v14  ;;  %vm424_vm9 = vcmp.gt.f32.partialorder %v6049_v20, 0.0  ;;  %v6117_v34 = vadd.f32 %v5912_v9, %v355_v1  ;;  %v5224_v46 = vld [vmem:[%s7091_s3 + $0x1d0] sm:$0xff]  }
  0xac   : > { %v6120_v30 = vadd.f32 %v5912_v9, %v356_v51  ;;  %v7122_v6 = vcombine.low %v5529_v15, %v5479_v42  ;;  %vm425_vm10 = vcmp.gt.f32.partialorder %v6056_v47, 0.0  ;;  %v2003_v41 = vsel %vm5451_vm4, %v4239_v19, %v2002_v7 }
  0xad   : > { %v6125_v24 = vld [vmem:[#allocation2 + $0x48] sm:$0xf]  ;;  %v2004_v45 = vrot.slane %v2002_v7, 4  ;;  %v2005_v12 = vrot.slane %v5885_v21, 5  ;;  %3019 = vmatprep.mubr.bf16.mxu0 %v6110_v39  ;;  %v6132_v16 = vld [vmem:[#allocation2 + $0x4c] sm:$0xf]  ;;  %v6136_v15 = vcombine.low %v1996_v27, %v1999_v37  ;;  %v4479_v63 = vunpack.c.h.bf16 %v4595_v18 }
  0xae   : > { %3141 = vmatmul.mubr.bf16.vlgmr.msra.gmra.mrb[16].mxu1 %v7122_v6  ;;  %v1553_v58 = vshrl.u32 %v6125_v24, 16  ;;  %v1556_v42 = vshll.u32 %v6125_v24, 16  ;;  %3020 = vmatmul.mubr.bf16.gmra.mrb[20].mxu0 %v6092_v44  ;;  %v6142_v11 = vld [vmem:[#allocation2 + $0x50] sm:$0xf]  ;;  %v1562_v21 = vshll.u32 %v6132_v16, 16  ;;  %v1566_v43 = vshrl.u32 %v6132_v16, 16 }
  0xaf   : > { %4955 = vmatpush3.bf16.msra.mxu1 %v5212_v0  ;;  %3148 = vmatprep.mubr.bf16.mxu1 %v5778_v52  ;;  %v458_v32 = vmin.f32 %v6117_v34, 0.0  ;;  %v357_v60 = vmul.f32 %v5890_v5, %v4478_v4  ;;  %v1572_v2 = vshll.u32 %v6142_v11, 16  ;;  %v459_v0 = vmin.f32 %v6120_v30, 0.0 }
  0xb0   : > { %v1555_v55 = vrot.slane %v1553_v58, 4  ;;  %v1558_v18 = vrot.slane %v1556_v42, 5  ;;  %4956 = vmatprep.subr.bf16.mxu1 %v5217_v35  ;;  %v1564_v1 = vrot.slane %v1562_v21, 5  ;;  %v1568_v51 = vrot.slane %v1566_v43, 4  ;;  %v5226_v58 = vld [vmem:[%s7091_s3 + $0x190] sm:$0xff]  }
  0xb1   : > { %v504_v19 = vmul.f32 1.442695, %v458_v32  ;;  %v2006_v7 = vsel %vm5451_vm4, %v2004_v45, %v2005_v12  ;;  %v5294_v14 = vpop.eup %5293  ;;  %v1574_v37 = vrot.slane %v1572_v2, 5  ;;  %v506_v4 = vmul.f32 1.442695, %v459_v0  ;;  %v5230_v45 = vld [vmem:[%s7091_s3 + $0x1d8] sm:$0xff]  }
  0xb2   : > { %v1559_v27 = vor.u32 %v1558_v18, %v1555_v55  ;;  %v6156_v6 = vcombine.low %v2003_v41, %v2006_v7  ;;  %v5296_v35 = vpop.eup %5295  ;;  %v1569_v42 = vor.u32 %v1568_v51, %v1564_v1  ;;  %v4148_v54 = vadd.f32 -1.0, %v5294_v14  ;;  %v5232_v2 = vld [vmem:[%s7091_s3 + $0x198] sm:$0xff]   ;;  %v4596_v51 = vld [vmem:[%s5431_s26 + $0x48] sm:$0xff]  }
  0xb3   : > { %4957 = vmatpush3.bf16.msra.mxu1 %v5220_v33  ;;  %5297 = vpow2.f32 %v504_v19  ;;  %v358_v21 = vmul.f32 %v5890_v5, %v4479_v63  ;;  %v4149_v33 = vadd.f32 -1.0, %v5296_v35  ;;  %v6166_v41 = vadd.f32 %v5912_v9, %v357_v60 }
  0xb4   : > { %4958 = vmatprep.subr.bf16.mxu1 %v5224_v46  ;;  %v1560_v12 = vrot.slane %v1559_v27, 4  ;;  %5299 = vpow2.f32 %v506_v4  ;;  %v1570_v43 = vrot.slane %v1569_v42, 4  ;;  %v6170_v32 = vcombine.low %v6125_v24, %v6132_v16 }
  0xb5   : > { %v584_v63 = vsel %vm424_vm9, %v6049_v20, %v4148_v54  ;;  %v6177_v46 = vadd.f32 %v5912_v9, %v358_v21  ;;  %v585_v60 = vsel %vm425_vm10, %v6056_v47, %v4149_v33  ;;  %v460_v0 = vmin.f32 %v6166_v41, 0.0  ;;  %v5235_v47 = vld [vmem:[%s7091_s3 + $0x1e0] sm:$0xff]   ;;  %v1125_v33 = vld [vmem:[#allocation2 + $0x54] sm:$0xf] }
  0xb6   : > { %3149 = vmatmul.mubr.bf16.gmra.mrb[20].mxu1 %v6053_v23  ;;  %v1565_v55 = vsel %vm5465_vm5, %v1560_v12, %v1564_v1  ;;  %v4392_v18 = vpack.c.bf16 %v584_v63, %v584_v63  ;;  %v1575_v20 = vsel %vm5465_vm5, %v1570_v43, %v1574_v37  ;;  %v4393_v54 = vpack.c.bf16 %v585_v60, %v585_v60  ;;  %v5238_v43 = vld [vmem:[%s7091_s3 + $0x1e8] sm:$0xff]   ;;  %v1129_v60 = vld [vmem:[#allocation2 + $0x5c] sm:$0x1] }
  0xb7   : > { %3156 = vmatprep.mubr.bf16.mxu1 %v5922_v57  ;;  %4959 = vmatpush3.bf16.msra.mxu1 %v5226_v58  ;;  %v4240_v1 = vrot.slane %v5984_v22, 9  ;;  %v6196_v19 = vcombine.low %v1565_v55, %v1575_v20  ;;  %v461_v27 = vmin.f32 %v6177_v46, 0.0  ;;  %v508_v37 = vmul.f32 1.442695, %v460_v0 }
  0xb8   : > { %4960 = vmatprep.subr.bf16.mxu1 %v5230_v45  ;;  %v860_v7 = vshrl.u32 %v4392_v18, 16  ;;  %v863_v14 = vshll.u32 %v4392_v18, 16  ;;  %v868_v4 = vshrl.u32 %v4393_v54, 16  ;;  %v871_v58 = vshll.u32 %v4393_v54, 16  ;;  %v5237_v45 = vld [vmem:[%s7091_s3 + $0x1a0] sm:$0xff]  }
  0xb9   : > { %v2009_v35 = vrot.slane %v5994_v49, 5  ;;  %3027 = vmatprep.mubr.bf16.mxu0 %v6196_v19  ;;  %vm426_vm11 = vcmp.gt.f32.partialorder %v6117_v34, 0.0  ;;  %v510_v42 = vmul.f32 1.442695, %v461_v27  ;;  %v4482_v21 = vunpack.c.l.bf16 %v4596_v51 }
  0xba   : > { %v862_v22 = vrot.slane %v860_v7, 7  ;;  %3028 = vmatmul.mubr.bf16.gmra.mrb[24].mxu0 %v6170_v32  ;;  %v870_v12 = vrot.slane %v868_v4, 7  ;;  %vm427_vm12 = vcmp.gt.f32.partialorder %v6120_v30, 0.0  ;;  %5301 = vpow2.f32 %v508_v37 }
  0xbb   : > { %4961 = vmatpush3.bf16.msra.mxu1 %v5232_v2  ;;  %v2012_v49 = vrot.slane %v5996_v10, 5  ;;  %v2011_v18 = vrot.slane %v2009_v35, 4  ;;  %v4483_v2 = vunpack.c.h.bf16 %v4596_v51  ;;  %v2010_v7 = vsel %vm5451_vm4, %v4240_v1, %v2009_v35 }
  0xbc   : > { %4962 = vmatprep.subr.bf16.mxu1 %v5235_v47  ;;  %v865_v63 = vor.u32 %v863_v14, %v862_v22  ;;  %v866_v55 = vrot.slane %v862_v22, 4  ;;  %v873_v54 = vor.u32 %v871_v58, %v870_v12  ;;  %v875_v0 = vrot.slane %v870_v12, 4  ;;  %v5240_v14 = vld [vmem:[%s7091_s3 + $0x1a8] sm:$0xff]  }
  0xbd   : > { %v5298_v20 = vpop.eup %5297  ;;  %v359_v10 = vmul.f32 %v5890_v5, %v4482_v21  ;;  %5303 = vpow2.f32 %v510_v42  ;;  %v360_v51 = vmul.f32 %v5890_v5, %v4483_v2  ;;  %v5241_v5 = vld [vmem:[%s7091_s3 + $0x1f0] sm:$0xff]   ;;  %v2013_v42 = vsel %vm5451_vm4, %v2011_v18, %v2012_v49 }
  0xbe   : > { %3157 = vmatmul.mubr.bf16.gmra.mrb[24].mxu1 %v6136_v15  ;;  %v5300_v47 = vpop.eup %5299  ;;  %v1126_v27 = vsel %vm5594_vm8, %v865_v63, %v1125_v33  ;;  %v4150_v4 = vadd.f32 -1.0, %v5298_v20  ;;  %v874_v1 = vsel %vm5585_vm3, %v866_v55, %v873_v54  ;;  %v1130_v58 = vsel %vm5603_vm7, %v875_v0, %v1129_v60  ;;  %v6255_v2 = vld [vmem:[%s5431_s26 + $0x50] sm:$0xff]  }
  0xbf   : > { %3164 = vmatprep.mubr.bf16.mxu1 %v6018_v26  ;;  %4963 = vmatpush3.bf16.msra.mxu1 %v5237_v45  ;;  %1127 = vst [vmem:[#allocation2 + $0x54] sm:$0xf] %v1126_v27  ;;  %v4151_v37 = vadd.f32 -1.0, %v5300_v47  ;;  %v6227_v35 = vadd.f32 %v5912_v9, %v359_v10  ;;  %1128 = vst [vmem:[#allocation2 + $0x58] sm:$0xf] %v874_v1  ;;  %v6238_v21 = vadd.f32 %v5912_v9, %v360_v51 }
  0xc0   : > { %4964 = vmatprep.subr.bf16.mxu1 %v5238_v43  ;;  %1131 = vst [vmem:[#allocation2 + $0x5c] sm:$0x1] %v1130_v58  ;;  %v586_v22 = vsel %vm426_vm11, %v6117_v34, %v4150_v4  ;;  %v2016_v45 = vrot.slane %v6066_v56, 5  ;;  %v4241_v63 = vrot.slane %v6060_v28, 9  ;;  %vm428_vm13 = vcmp.gt.f32.partialorder %v6166_v41, 0.0  ;;  %v5243_v56 = vld [vmem:[%s7091_s3 + $0x1b0] sm:$0xff]  }
  0xc1   : > { %v587_v12 = vsel %vm427_vm12, %v6120_v30, %v4151_v37  ;;  %v4394_v33 = vpack.c.bf16 %v586_v22, %v586_v22  ;;  %v462_v43 = vmin.f32 %v6227_v35, 0.0  ;;  %vm429_vm14 = vcmp.gt.f32.partialorder %v6177_v46, 0.0  ;;  %v5244_v28 = vld [vmem:[%s7091_s3 + $0x1f8] sm:$0xff]  }
  0xc2   : > { %v4395_v55 = vpack.c.bf16 %v587_v12, %v587_v12  ;;  %v463_v34 = vmin.f32 %v6238_v21, 0.0  ;;  %v6252_v30 = vcombine.low %v2010_v7, %v2013_v42  ;;  %v2018_v0 = vrot.slane %v2016_v45, 4 }
  0xc3   : > { %4965 = vmatpush3.bf16.msra.mxu1 %v5240_v14  ;;  %v877_v49 = vshrl.u32 %v4394_v33, 16  ;;  %v880_v60 = vshll.u32 %v4394_v33, 16  ;;  %v512_v18 = vmul.f32 1.442695, %v462_v43  ;;  %v2019_v10 = vrot.slane %v6072_v13, 5 }
  0xc4   : > { %4966 = vmatprep.subr.bf16.mxu1 %v5241_v5  ;;  %v885_v20 = vshrl.u32 %v4395_v55, 16  ;;  %v514_v54 = vmul.f32 1.442695, %v463_v34  ;;  %v5302_v47 = vpop.eup %5301  ;;  %v888_v4 = vshll.u32 %v4395_v55, 16  ;;  %v2017_v7 = vsel %vm5451_vm4, %v4241_v63, %v2016_v45  ;;  %v1132_v55 = vld [vmem:[#allocation2 + $0x60] sm:$0xf] }
  0xc5   : > { %v879_v27 = vrot.slane %v877_v49, 7  ;;  %5305 = vpow2.f32 %v512_v18  ;;  %v4152_v1 = vadd.f32 -1.0, %v5302_v47  ;;  %v4486_v58 = vunpack.c.l.bf16 %v6255_v2 }
  0xc6   : > { %3165 = vmatmul.mubr.bf16.gmra.mrb[28].mxu1 %v6156_v6  ;;  %v6264_v51 = vld [vmem:[#allocation2 + $0x54] sm:$0xf]  ;;  %v887_v14 = vrot.slane %v885_v20, 7  ;;  %5307 = vpow2.f32 %v514_v54  ;;  %v6268_v13 = vld [vmem:[#allocation2 + $0x58] sm:$0xf]  ;;  %v4487_v45 = vunpack.c.h.bf16 %v6255_v2  ;;  %v2020_v34 = vsel %vm5451_vm4, %v2018_v0, %v2019_v10 }
  0xc7   : > { %3172 = vmatprep.mubr.bf16.mxu1 %v6092_v44  ;;  %4967 = vmatpush3.bf16.msra.mxu1 %v5243_v56  ;;  %v6270_v37 = vld [vmem:[#allocation2 + $0x5c] sm:$0xf]  ;;  %v1577_v5 = vshrl.u32 %v6264_v51, 16  ;;  %v1580_v22 = vshll.u32 %v6264_v51, 16  ;;  %v882_v42 = vor.u32 %v880_v60, %v879_v27  ;;  %v5304_v12 = vpop.eup %5303  ;;  %v1586_v33 = vshll.u32 %v6268_v13, 16 }
  0xc8   : > { %4968 = vmatprep.subr.bf16.mxu1 %v5244_v28  ;;  %v1590_v43 = vshrl.u32 %v6268_v13, 16  ;;  %v1596_v63 = vshll.u32 %v6270_v37, 16  ;;  %v5246_v56 = vld [vmem:[%s7091_s3 + $0x1b8] sm:$0xff]   ;;  %v883_v18 = vrot.slane %v879_v27, 4  ;;  %v890_v2 = vor.u32 %v888_v4, %v887_v14  ;;  %v1136_v28 = vld [vmem:[#allocation2 + $0x68] sm:$0x1] }
  0xc9   : > { %v1579_v49 = vrot.slane %v1577_v5, 4  ;;  %v1582_v60 = vrot.slane %v1580_v22, 5  ;;  %v1588_v20 = vrot.slane %v1586_v33, 5  ;;  %v892_v40 = vrot.slane %v887_v14, 4  ;;  %v6295_v14 = vld [vmem:[%s7089_s1] ss:$0 sm:$0xff] }
  0xca   : > { %v1592_v54 = vrot.slane %v1590_v43, 4  ;;  %v1598_v47 = vrot.slane %v1596_v63, 5  ;;  %v891_v44 = vsel %vm5585_vm3, %v883_v18, %v890_v2  ;;  %v1133_v0 = vsel %vm5594_vm8, %v882_v42, %v1132_v55  ;;  %v1139_v2 = vld [vmem:[#allocation2 + $0x6c] sm:$0xf] }
  0xcb   : > { %4969 = vmatpush3.bf16.msra.mxu1 %v5246_v56  ;;  %v1583_v61 = vor.u32 %v1582_v60, %v1579_v49  ;;  %v4153_v10 = vadd.f32 -1.0, %v5304_v12  ;;  %1134 = vst [vmem:[#allocation2 + $0x60] sm:$0xf] %v1133_v0  ;;  %1135 = vst [vmem:[#allocation2 + $0x64] sm:$0xf] %v891_v44  ;;  %v1137_v27 = vsel %vm5603_vm7, %v892_v40, %v1136_v28  ;;  %vm430_vm15 = vcmp.gt.f32.partialorder %v6227_v35, 0.0 }
  0xcc   : > { %v1593_v26 = vor.u32 %v1592_v54, %v1588_v20  ;;  %v588_v4 = vsel %vm428_vm13, %v6166_v41, %v4152_v1  ;;  %v361_v5 = vmul.f32 %v6295_v14, %v4486_v58  ;;  %1138 = vst [vmem:[#allocation2 + $0x68] sm:$0x1] %v1137_v27  ;;  %v6304_v1 = vcombine.low %v2017_v7, %v2020_v34  ;;  %v1143_v28 = vld [vmem:[#allocation2 + $0x74] sm:$0x1] }
  0xcd   : > { %v1584_v22 = vrot.slane %v1583_v61, 4  ;;  %v589_v44 = vsel %vm429_vm14, %v6177_v46, %v4153_v10  ;;  %v4396_v42 = vpack.c.bf16 %v588_v4, %v588_v4  ;;  %v362_v12 = vmul.f32 %v6295_v14, %v4487_v45 }
  0xce   : > { %3173 = vmatmul.mubr.bf16.gmra.mrb[32].mxu1 %v6252_v30  ;;  %v1594_v40 = vrot.slane %v1593_v26, 4  ;;  %v4397_v41 = vpack.c.bf16 %v589_v44, %v589_v44  ;;  %v6310_v46 = vadd.f32 %v5912_v9, %v361_v5  ;;  %v6316_v55 = vcombine.low %v6264_v51, %v6268_v13 }
  0xcf   : > { %3180 = vmatprep.mubr.bf16.mxu1 %v6170_v32  ;;  %v5306_v58 = vpop.eup %5305  ;;  %v1589_v61 = vsel %vm5465_vm5, %v1584_v22, %v1588_v20  ;;  %v894_v33 = vshrl.u32 %v4396_v42, 16  ;;  %v897_v43 = vshll.u32 %v4396_v42, 16  ;;  %vm431_vm0 = vcmp.gt.f32.partialorder %v6238_v21, 0.0  ;;  %v6327_v20 = vld [vmem:[%s7090_s2] ss:$0 sm:$0xff] }
  0xd0   : > { %v5308_v63 = vpop.eup %5307  ;;  %v1599_v26 = vsel %vm5465_vm5, %v1594_v40, %v1598_v47  ;;  %7123 = vst [vmem:[#allocation10_spill] sm:$0xff] %v6316_v55  ;;  %v902_v7 = vshrl.u32 %v4397_v41, 16  ;;  %v4154_v34 = vadd.f32 -1.0, %v5306_v58  ;;  %v905_v49 = vshll.u32 %v4397_v41, 16 }
  0xd1   : > { %v6318_v45 = vcombine.low %v1589_v61, %v1599_v26  ;;  %v896_v56 = vrot.slane %v894_v33, 7  ;;  %v4155_v60 = vadd.f32 -1.0, %v5308_v63  ;;  %v6330_v54 = vadd.f32 %v6327_v20, %v362_v12 }
  0xd2   : > { %v904_v18 = vrot.slane %v902_v7, 7  ;;  %v590_v9 = vsel %vm430_vm15, %v6227_v35, %v4154_v34  ;;  %v6333_v47 = vld [vmem:[#allocation2 + $0x60] sm:$0xf]  ;;  %v6335_v0 = vld [vmem:[#allocation2 + $0x64] sm:$0xf]  ;;  %v464_v5 = vmin.f32 %v6310_v46, 0.0 }
  0xd3   : > { %3035 = vmatprep.mubr.bf16.mxu0 %v6318_v45  ;;  %v899_v10 = vor.u32 %v897_v43, %v896_v56  ;;  %v900_v27 = vrot.slane %v896_v56, 4  ;;  %v4398_v4 = vpack.c.bf16 %v590_v9, %v590_v9  ;;  %v6339_v35 = vld [vmem:[#allocation2 + $0x68] sm:$0xf]  ;;  %v1601_v22 = vshrl.u32 %v6333_v47, 16 }
  0xd4   : > { %3036 = vmatmul.mubr.bf16.gmra.mrb[28].mxu0 %v6316_v55  ;;  %v1604_v44 = vshll.u32 %v6333_v47, 16  ;;  %v1610_v42 = vshll.u32 %v6335_v0, 16  ;;  %v1614_v40 = vshrl.u32 %v6335_v0, 16  ;;  %v1620_v41 = vshll.u32 %v6339_v35, 16 }
  0xd5   : > { %v907_v12 = vor.u32 %v905_v49, %v904_v18  ;;  %v909_v58 = vrot.slane %v904_v18, 4  ;;  %v591_v61 = vsel %vm431_vm0, %v6238_v21, %v4155_v60  ;;  %v1603_v33 = vrot.slane %v1601_v22, 4 }
  0xd6   : > { %3181 = vmatmul.mubr.bf16.gmra.mrb[36].mxu1 %v6304_v1  ;;  %v1606_v43 = vrot.slane %v1604_v44, 5  ;;  %v1612_v63 = vrot.slane %v1610_v42, 5  ;;  %v1616_v26 = vrot.slane %v1614_v40, 4  ;;  %v1622_v7 = vrot.slane %v1620_v41, 5 }
  0xd7   : > { %3188 = vmatprep.mubr.bf16.mxu1 %v6316_v55  ;;  %v908_v34 = vsel %vm5585_vm3, %v900_v27, %v907_v12  ;;  %v1140_v56 = vsel %vm5594_vm8, %v899_v10, %v1139_v2  ;;  %v1144_v49 = vsel %vm5603_vm7, %v909_v58, %v1143_v28  ;;  %v4399_v60 = vpack.c.bf16 %v591_v61, %v591_v61  ;;  %v1146_v55 = vld [vmem:[#allocation2 + $0x78] sm:$0xf] }
  0xd8   : > { %v1607_v18 = vor.u32 %v1606_v43, %v1603_v33  ;;  %v1617_v21 = vor.u32 %v1616_v26, %v1612_v63  ;;  %1141 = vst [vmem:[#allocation2 + $0x6c] sm:$0xf] %v1140_v56  ;;  %1142 = vst [vmem:[#allocation2 + $0x70] sm:$0xf] %v908_v34  ;;  %v911_v9 = vshrl.u32 %v4398_v4, 16  ;;  %v914_v22 = vshll.u32 %v4398_v4, 16 }
  0xd9   : > { %1145 = vst [vmem:[#allocation2 + $0x74] sm:$0x1] %v1144_v49  ;;  %v465_v44 = vmin.f32 %v6330_v54, 0.0  ;;  %v516_v42 = vmul.f32 1.442695, %v464_v5  ;;  %v2023_v40 = vrot.slane %v6132_v16, 5  ;;  %v6366_v5 = vcombine.low %v6333_v47, %v6335_v0 }
  0xda   : > { %v1608_v27 = vrot.slane %v1607_v18, 4  ;;  %v1618_v41 = vrot.slane %v1617_v21, 4  ;;  %v913_v12 = vrot.slane %v911_v9, 7  ;;  %v919_v2 = vshrl.u32 %v4399_v60, 16 }
  0xdb   : > { %v922_v10 = vshll.u32 %v4399_v60, 16  ;;  %5309 = vpow2.f32 %v516_v42  ;;  %v518_v28 = vmul.f32 1.442695, %v465_v44  ;;  %v4242_v58 = vrot.slane %v6125_v24, 9 }
  0xdc   : > { %v1613_v61 = vsel %vm5465_vm5, %v1608_v27, %v1612_v63  ;;  %v1623_v4 = vsel %vm5465_vm5, %v1618_v41, %v1622_v7  ;;  %v916_v16 = vor.u32 %v914_v22, %v913_v12  ;;  %v917_v43 = vrot.slane %v913_v12, 4  ;;  %v1150_v22 = vld [vmem:[#allocation2 + $0x80] sm:$0x1] }
  0xdd   : > { %v6368_v33 = vcombine.low %v1613_v61, %v1623_v4  ;;  %v921_v26 = vrot.slane %v919_v2, 7  ;;  %5311 = vpow2.f32 %v518_v28  ;;  %v2025_v24 = vrot.slane %v2023_v40, 4 }
  0xde   : > { %v1147_v34 = vsel %vm5594_vm8, %v916_v16, %v1146_v55  ;;  %v2026_v56 = vrot.slane %v6142_v11, 5  ;;  %v2030_v63 = vrot.slane %v6268_v13, 5  ;;  %v2024_v60 = vsel %vm5451_vm4, %v4242_v58, %v2023_v40 }
  0xdf   : > { %3043 = vmatprep.mubr.bf16.mxu0 %v6368_v33  ;;  %v6375_v7 = vld [vmem:[#allocation2 + $0x6c] sm:$0xf]  ;;  %v6377_v49 = vld [vmem:[#allocation2 + $0x70] sm:$0xf]  ;;  %v924_v21 = vor.u32 %v922_v10, %v921_v26  ;;  %1148 = vst [vmem:[#allocation2 + $0x78] sm:$0xf] %v1147_v34 }
  0xe0   : > { %v6379_v18 = vld [vmem:[#allocation2 + $0x74] sm:$0xf]  ;;  %3044 = vmatmul.mubr.bf16.gmra.mrb[32].mxu0 %v6366_v5  ;;  %v1625_v55 = vshrl.u32 %v6375_v7, 16  ;;  %v1628_v11 = vshll.u32 %v6375_v7, 16  ;;  %v1634_v13 = vshll.u32 %v6377_v49, 16  ;;  %v1638_v9 = vshrl.u32 %v6377_v49, 16 }
  0xe1   : > { %v1644_v44 = vshll.u32 %v6379_v18, 16  ;;  %v925_v42 = vsel %vm5585_vm3, %v917_v43, %v924_v21  ;;  %v926_v27 = vrot.slane %v921_v26, 4  ;;  %v4243_v41 = vrot.slane %v6264_v51, 9 }
  0xe2   : > { %v1627_v40 = vrot.slane %v1625_v55, 4  ;;  %v1630_v12 = vrot.slane %v1628_v11, 5  ;;  %v1636_v2 = vrot.slane %v1634_v13, 5  ;;  %v1640_v10 = vrot.slane %v1638_v9, 4  ;;  %1149 = vst [vmem:[#allocation2 + $0x7c] sm:$0xf] %v925_v42 }
  0xe3   : > { %v1646_v28 = vrot.slane %v1644_v44, 5  ;;  %v1151_v58 = vsel %vm5603_vm7, %v926_v27, %v1150_v22  ;;  %vm432_vm1 = vcmp.gt.f32.partialorder %v6310_v46, 0.0  ;;  %v2027_v61 = vsel %vm5451_vm4, %v2025_v24, %v2026_v56 }
  0xe4   : > { %v1631_v4 = vor.u32 %v1630_v12, %v1627_v40  ;;  %v1641_v16 = vor.u32 %v1640_v10, %v1636_v2  ;;  %1152 = vst [vmem:[#allocation2 + $0x80] sm:$0x1] %v1151_v58  ;;  %v6397_v43 = vcombine.low %v2024_v60, %v2027_v61  ;;  %v2032_v51 = vrot.slane %v2030_v63, 4 }
  0xe5   : > { %v5310_v26 = vpop.eup %5309  ;;  %v6401_v34 = vcombine.low %v6375_v7, %v6377_v49  ;;  %vm433_vm2 = vcmp.gt.f32.partialorder %v6330_v54, 0.0  ;;  %v2031_v21 = vsel %vm5451_vm4, %v4243_v41, %v2030_v63  ;;  %v2033_v55 = vrot.slane %v6270_v37, 5 }
  0xe6   : > { %v1632_v11 = vrot.slane %v1631_v4, 4  ;;  %v1642_v24 = vrot.slane %v1641_v16, 4  ;;  %v6407_v56 = vld [vmem:[#allocation2 + $0x78] sm:$0xf]  ;;  %v4156_v13 = vadd.f32 -1.0, %v5310_v26  ;;  %3189 = vmatmul.mubr.bf16.gmra.mrb[40].mxu1 %v6397_v43  ;;  %v4244_v60 = vrot.slane %v6333_v47, 9 }
  0xe7   : > { %v5312_v9 = vpop.eup %5311  ;;  %v1649_v22 = vshrl.u32 %v6407_v56, 16  ;;  %v1652_v44 = vshll.u32 %v6407_v56, 16  ;;  %3196 = vmatprep.mubr.bf16.mxu1 %v6366_v5  ;;  %v2034_v63 = vsel %vm5451_vm4, %v2032_v51, %v2033_v55  ;;  %v2037_v37 = vrot.slane %v6335_v0, 5 }
  0xe8   : > { %v1637_v42 = vsel %vm5465_vm5, %v1632_v11, %v1636_v2  ;;  %v1647_v27 = vsel %vm5465_vm5, %v1642_v24, %v1646_v28  ;;  %v4157_v41 = vadd.f32 -1.0, %v5312_v9  ;;  %v592_v47 = vsel %vm432_vm1, %v6310_v46, %v4156_v13 }
  0xe9   : > { %v6424_v40 = vcombine.low %v1637_v42, %v1647_v27  ;;  %v6426_v12 = vld [vmem:[#allocation2 + $0x7c] sm:$0xf]  ;;  %v1651_v10 = vrot.slane %v1649_v22, 4  ;;  %v1654_v58 = vrot.slane %v1652_v44, 5  ;;  %v4400_v61 = vpack.c.bf16 %v592_v47, %v592_v47 }
  0xea   : > { %v1658_v0 = vshll.u32 %v6426_v12, 16  ;;  %v1662_v4 = vshrl.u32 %v6426_v12, 16  ;;  %v593_v2 = vsel %vm433_vm2, %v6330_v54, %v4157_v41  ;;  %v2040_v28 = vrot.slane %v6339_v35, 5  ;;  %v1153_v41 = vld [vmem:[#allocation2 + $0x84] sm:$0xf] }
  0xeb   : > { %3051 = vmatprep.mubr.bf16.mxu0 %v6424_v40  ;;  %v6435_v46 = vld [vmem:[#allocation2 + $0x80] sm:$0xf]  ;;  %v1655_v16 = vor.u32 %v1654_v58, %v1651_v10  ;;  %v4401_v51 = vpack.c.bf16 %v593_v2, %v593_v2  ;;  %v928_v26 = vshrl.u32 %v4400_v61, 16  ;;  %v931_v55 = vshll.u32 %v4400_v61, 16  ;;  %v1157_v2 = vld [vmem:[#allocation2 + $0x8c] sm:$0x1] }
  0xec   : > { %3052 = vmatmul.mubr.bf16.gmra.mrb[36].mxu0 %v6401_v34  ;;  %v1660_v11 = vrot.slane %v1658_v0, 5  ;;  %v1664_v24 = vrot.slane %v1662_v4, 4  ;;  %v1668_v13 = vshll.u32 %v6435_v46, 16  ;;  %v6439_v9 = vcombine.low %v2031_v21, %v2034_v63 }
  0xed   : > { %v1656_v22 = vrot.slane %v1655_v16, 4  ;;  %v930_v54 = vrot.slane %v928_v26, 7  ;;  %v936_v44 = vshrl.u32 %v4401_v51, 16  ;;  %v939_v35 = vshll.u32 %v4401_v51, 16 }
  0xee   : > { %v1665_v42 = vor.u32 %v1664_v24, %v1660_v11  ;;  %v1670_v27 = vrot.slane %v1668_v13, 5  ;;  %3197 = vmatmul.mubr.bf16.gmra.mrb[44].mxu1 %v6439_v9  ;;  %v2039_v47 = vrot.slane %v2037_v37, 4  ;;  %v2044_v10 = vrot.slane %v6377_v49, 5  ;;  %v4602_v13 = vld [vmem:[%s5431_s26 + $0x78] sm:$0xff]  }
  0xef   : > { %v933_v58 = vor.u32 %v931_v55, %v930_v54  ;;  %v934_v61 = vrot.slane %v930_v54, 4  ;;  %v938_v0 = vrot.slane %v936_v44, 7  ;;  %3204 = vmatprep.mubr.bf16.mxu1 %v6401_v34  ;;  %v2038_v21 = vsel %vm5451_vm4, %v4244_v60, %v2037_v37 }
  0xf0   : > { %v1661_v63 = vsel %vm5465_vm5, %v1656_v22, %v1660_v11  ;;  %v1666_v4 = vrot.slane %v1665_v42, 4  ;;  %v2041_v16 = vsel %vm5451_vm4, %v2039_v47, %v2040_v28  ;;  %v4245_v55 = vrot.slane %v6375_v7, 9 }
  0xf1   : > { %v941_v51 = vor.u32 %v939_v35, %v938_v0  ;;  %v943_v26 = vrot.slane %v938_v0, 4  ;;  %v1154_v49 = vsel %vm5594_vm8, %v933_v58, %v1153_v41  ;;  %v6457_v60 = vcombine.low %v6407_v56, %v6426_v12 }
  0xf2   : > { %v1671_v24 = vsel %vm5465_vm5, %v1666_v4, %v1670_v27  ;;  %1155 = vst [vmem:[#allocation2 + $0x84] sm:$0xf] %v1154_v49  ;;  %v6459_v37 = vcombine.low %v2038_v21, %v2041_v16  ;;  %v2046_v11 = vrot.slane %v2044_v10, 4  ;;  %v2047_v54 = vrot.slane %v6379_v18, 5 }
  0xf3   : > { %v6462_v28 = vcombine.low %v1661_v63, %v1671_v24  ;;  %v942_v22 = vsel %vm5585_vm3, %v934_v61, %v941_v51  ;;  %v1158_v7 = vsel %vm5603_vm7, %v943_v26, %v1157_v2  ;;  %v4506_v44 = vunpack.c.l.bf16 %v4602_v13 }
  0xf4   : > { %1156 = vst [vmem:[#allocation2 + $0x88] sm:$0xf] %v942_v22  ;;  %1159 = vst [vmem:[#allocation2 + $0x8c] sm:$0x1] %v1158_v7  ;;  %v4507_v35 = vunpack.c.h.bf16 %v4602_v13  ;;  %v2045_v42 = vsel %vm5451_vm4, %v4245_v55, %v2044_v10  ;;  %v2048_v27 = vsel %vm5451_vm4, %v2046_v11, %v2047_v54  ;;  %v2051_v18 = vrot.slane %v6426_v12, 5 }
  0xf5   : > { %3059 = vmatprep.mubr.bf16.mxu0 %v6462_v28  ;;  %v371_v47 = vmul.f32 %v6295_v14, %v4506_v44  ;;  %v6480_v21 = vcombine.low %v2045_v42, %v2048_v27  ;;  %v4246_v63 = vrot.slane %v6407_v56, 9  ;;  %v2054_v10 = vrot.slane %v6435_v46, 5 }
  0xf6   : > { %3060 = vmatmul.mubr.bf16.gmra.mrb[40].mxu0 %v6457_v60  ;;  %3205 = vmatmul.mubr.bf16.gmra.mrb[48].mxu1 %v6459_v37  ;;  %v372_v58 = vmul.f32 %v6295_v14, %v4507_v35  ;;  %v2053_v16 = vrot.slane %v2051_v18, 4 }
  0xf7   : > { %3212 = vmatprep.mubr.bf16.mxu1 %v6457_v60  ;;  %v6487_v14 = vadd.f32 %v6327_v20, %v371_v47  ;;  %v2052_v46 = vsel %vm5451_vm4, %v4246_v63, %v2051_v18 }
  0xf8   : > { %v6490_v11 = vadd.f32 %v6327_v20, %v372_v58  ;;  %v2055_v7 = vsel %vm5451_vm4, %v2053_v16, %v2054_v10 }
  0xf9   : > { %v1228_v41 = vld [vmem:[#allocation2 + $0x84] sm:$0xf]  ;;  %v474_v20 = vmin.f32 %v6487_v14, 0.0  ;;  %vm442_vm6 = vcmp.gt.f32.partialorder %v6487_v14, 0.0 }
  0xfa   : > { %v1673_v61 = vshrl.u32 %v1228_v41, 16  ;;  %v1676_v0 = vshll.u32 %v1228_v41, 16  ;;  %v475_v27 = vmin.f32 %v6490_v11, 0.0  ;;  %vm443_vm9 = vcmp.gt.f32.partialorder %v6490_v11, 0.0 }
  0xfb   : > { %v1229_v4 = vld [vmem:[#allocation2 + $0x88] sm:$0xf]  ;;  %v1230_v2 = vld [vmem:[#allocation2 + $0x8c] sm:$0xf] }
  0xfc   : > { %v1675_v51 = vrot.slane %v1673_v61, 4  ;;  %v1678_v26 = vrot.slane %v1676_v0, 5  ;;  %v1682_v49 = vshll.u32 %v1229_v4, 16  ;;  %v1686_v12 = vshrl.u32 %v1229_v4, 16 }
  0xfd   : > { %v1692_v55 = vshll.u32 %v1230_v2, 16  ;;  %v6484_v24 = vcombine.low %v1228_v41, %v1229_v4  ;;  %v2058_v54 = vrot.slane %v1229_v4, 5  ;;  %v6502_v0 = vcombine.low %v2052_v46, %v2055_v7  ;;  %v5322_v7 = vld [vmem:[#allocation2 + $0x90] sm:$0xf] }
  0xfe   : > { %v1679_v13 = vor.u32 %v1678_v26, %v1675_v51  ;;  %v1684_v56 = vrot.slane %v1682_v49, 5  ;;  %v1688_v22 = vrot.slane %v1686_v12, 4  ;;  %3213 = vmatmul.mubr.bf16.gmra.mrb[52].mxu1 %v6480_v21  ;;  %v4247_v51 = vrot.slane %v1228_v41, 9  ;;  %v5321_v49 = vld [vmem:[#allocation2 + $0x94] sm:$0xf] }
  0xff   : > { %3220 = vmatprep.mubr.bf16.mxu1 %v6484_v24  ;;  %v1694_v42 = vrot.slane %v1692_v55, 5  ;;  %v2060_v18 = vrot.slane %v2058_v54, 4  ;;  %v2061_v63 = vrot.slane %v1230_v2, 5  ;;  %v536_v26 = vmul.f32 1.442695, %v474_v20 }
 0x100   : > { %v1680_v44 = vrot.slane %v1679_v13, 4  ;;  %v1689_v35 = vor.u32 %v1688_v22, %v1684_v56  ;;  %v538_v16 = vmul.f32 1.442695, %v475_v27  ;;  %v2059_v41 = vsel %vm5451_vm4, %v4247_v51, %v2058_v54  ;;  %v5323_v54 = vld [vmem:[#allocation2 + $0x98] sm:$0xf]  ;;  %v5239_v27 = vld [vmem:[%s7091_s3 + $0x208] sm:$0xff]  }
 0x101   : > { %5313 = vpow2.f32 %v536_v26  ;;  %v2062_v2 = vsel %vm5451_vm4, %v2060_v18, %v2061_v63  ;;  %v2065_v12 = vrot.slane %v5321_v49, 5  ;;  %v5325_v26 = vld [vmem:[%s7091_s3 + $0x200] sm:$0xff]  }
 0x102   : > { %v4634_v47 = vpop.f32.mrb[0].mxu0  ;;  %v1685_v58 = vsel %vm5465_vm5, %v1680_v44, %v1684_v56  ;;  %v1690_v61 = vrot.slane %v1689_v35, 4  ;;  %5315 = vpow2.f32 %v538_v16  ;;  %v6519_v22 = vcombine.low %v2059_v41, %v2062_v2  ;;  %v5326_v2 = vld [vmem:[#allocation2 + $0x9c] sm:$0xf] }
 0x103   : > { %v4635_v55 = vpop.f32.mrb[1].mxu0  ;;  %v4248_v44 = vrot.slane %v5322_v7, 9  ;;  %v2067_v35 = vrot.slane %v2065_v12, 4 }
 0x104   : > { %v1695_v4 = vsel %vm5465_vm5, %v1690_v61, %v1694_v42  ;;  %v6517_v13 = vadd.f32 %v4635_v55, %v4634_v47  ;;  %v4637_v56 = vpop.f32.mrb[2].mxu0  ;;  %v2068_v42 = vrot.slane %v5323_v54, 5  ;;  %v5324_v61 = vld [vmem:[#allocation2 + $0xa0] sm:$0xf]  ;;  %v5327_v55 = vld [vmem:[#allocation2 + $0xa4] sm:$0xf] }
 0x105   : > { %v6506_v10 = vcombine.low %v1685_v58, %v1695_v4  ;;  %v4638_v46 = vpop.f32.mrb[3].mxu0  ;;  %v2066_v47 = vsel %vm5451_vm4, %v4248_v44, %v2065_v12  ;;  %v2072_v51 = vrot.slane %v5324_v61, 5  ;;  %v5242_v4 = vld [vmem:[%s7091_s3 + $0x210] sm:$0xff]  }
 0x106   : > { %3221 = vmatmul.mubr.bf16.gmra.mrb[56].mxu1 %v6502_v0  ;;  %v6521_v20 = vadd.f32 %v4638_v46, %v4637_v56  ;;  %v2069_v58 = vsel %vm5451_vm4, %v2067_v35, %v2068_v42  ;;  %v2075_v56 = vrot.slane %v5327_v55, 5  ;;  %v5245_v42 = vld [vmem:[%s7091_s3 + $0x218] sm:$0xff]   ;;  %v5329_v55 = vld [vmem:[#allocation2 + $0xa8] sm:$0xf] }
 0x107   : > { %3067 = vmatprep.mubr.bf16.mxu0 %v6506_v10  ;;  %3228 = vmatprep.mubr.bf16.mxu1 %v5679_v50  ;;  %v6542_v41 = vcombine.low %v2066_v47, %v2069_v58  ;;  %v2074_v12 = vrot.slane %v2072_v51, 4 }
 0x108   : > { %3068 = vmatmul.mubr.bf16.gmra.mrb[44].mxu0 %v6484_v24 }
 0x109   : > { %3301 = vmatprep.mubr.bf16.mxu0 %v6053_v23 }
 0x10b   : > { %v5314_v23 = vpop.eup %5313 }
 0x10c   : > { %v5316_v18 = vpop.eup %5315  ;;  %v4166_v63 = vadd.f32 -1.0, %v5314_v23 }
 0x10d   : > { %v4167_v16 = vadd.f32 -1.0, %v5316_v18 }
 0x10e   : > { %3229 = vmatmul.mubr.bf16.gmra.mrb[60].mxu1 %v6519_v22  ;;  %v602_v49 = vsel %vm442_vm6, %v6487_v14, %v4166_v63  ;;  %v1188_v63 = vld [vmem:[#allocation2 + $0xc0] sm:$0xf] }
 0x10f   : > { %3236 = vmatprep.mubr.bf16.mxu1 %v5829_v53  ;;  %v603_v46 = vsel %vm443_vm9, %v6490_v11, %v4167_v16  ;;  %v4410_v7 = vpack.c.bf16 %v602_v49, %v602_v49  ;;  %v2076_v11 = vsel %vm5451_vm4, %v2074_v12, %v2075_v56  ;;  %v4250_v56 = vrot.slane %v5329_v55, 9 }
 0x110   : > { %3302 = vmatmul.mubr.bf16.vlgmr.msra.gmra.mrb[48].mxu0 %v5691_v31  ;;  %v4249_v31 = vrot.slane %v5326_v2, 9  ;;  %v4411_v44 = vpack.c.bf16 %v603_v46, %v603_v46  ;;  %v1192_v2 = vld [vmem:[#allocation2 + $0xc8] sm:$0x1] }
 0x111   : > { %3309 = vmatprep.mubr.bf16.mxu0 %v6136_v15  ;;  %5091 = vmatpush3.bf16.msra.mxu0 %v5325_v26  ;;  %v1013_v35 = vshrl.u32 %v4410_v7, 16  ;;  %v1016_v54 = vshll.u32 %v4410_v7, 16  ;;  %v5330_v7 = vld [vmem:[#allocation2 + $0xb0] sm:$0xf] }
 0x112   : > { %5092 = vmatprep.subr.bf16.mxu0 %v5239_v27  ;;  %v1021_v23 = vshrl.u32 %v4411_v44, 16  ;;  %v1024_v47 = vshll.u32 %v4411_v44, 16  ;;  %v2073_v14 = vsel %vm5451_vm4, %v4249_v31, %v2072_v51  ;;  %v5248_v31 = vld [vmem:[%s7091_s3 + $0x220] sm:$0xff]   ;;  %v2082_v44 = vrot.slane %v5330_v7, 5 }
 0x113   : > { %v1015_v61 = vrot.slane %v1013_v35, 7  ;;  %v6557_v49 = vcombine.low %v2073_v14, %v2076_v11 }
 0x114   : > { %v1023_v18 = vrot.slane %v1021_v23, 7 }
 0x115   : > { %5093 = vmatpush3.bf16.msra.mxu0 %v5239_v27  ;;  %v5328_v27 = vld [vmem:[#allocation2 + $0xac] sm:$0xf]  ;;  %v1018_v26 = vor.u32 %v1016_v54, %v1015_v61  ;;  %v1019_v16 = vrot.slane %v1015_v61, 4  ;;  %v5331_v54 = vld [vmem:[#allocation2 + $0xb8] sm:$0xf] }
 0x116   : > { %5094 = vmatprep.subr.bf16.mxu0 %v5242_v4  ;;  %3237 = vmatmul.mubr.bf16.gmra.mrb[64].mxu1 %v6542_v41  ;;  %v2079_v58 = vrot.slane %v5328_v27, 5  ;;  %v1026_v51 = vor.u32 %v1024_v47, %v1023_v18  ;;  %v1028_v12 = vrot.slane %v1023_v18, 4  ;;  %v2086_v23 = vrot.slane %v5331_v54, 5  ;;  %v5333_v27 = vld [vmem:[#allocation2 + $0xbc] sm:$0xf] }
 0x117   : > { %3244 = vmatprep.mubr.bf16.mxu1 %v5969_v59  ;;  %v2089_v61 = vrot.slane %v5333_v27, 5 }
 0x118   : > { %3310 = vmatmul.mubr.bf16.gmra.mrb[52].mxu0 %v5805_v8  ;;  %v2081_v46 = vrot.slane %v2079_v58, 4  ;;  %v1027_v35 = vsel %vm5585_vm3, %v1019_v16, %v1026_v51  ;;  %v1193_v47 = vsel %vm5603_vm7, %v1028_v12, %v1192_v2  ;;  %v2080_v3 = vsel %vm5451_vm4, %v4250_v56, %v2079_v58  ;;  %v5250_v58 = vld [vmem:[%s7091_s3 + $0x230] sm:$0xff]  }
 0x119   : > { %3317 = vmatprep.mubr.bf16.mxu0 %v6156_v6  ;;  %5095 = vmatpush3.bf16.msra.mxu0 %v5242_v4  ;;  %v1189_v4 = vsel %vm5594_vm8, %v1018_v26, %v1188_v63  ;;  %1191 = vst [vmem:[#allocation2 + $0xc4] sm:$0xf] %v1027_v35  ;;  %1194 = vst [vmem:[#allocation2 + $0xc8] sm:$0x1] %v1193_v47  ;;  %v2088_v11 = vrot.slane %v2086_v23, 4 }
 0x11a   : > { %5096 = vmatprep.subr.bf16.mxu0 %v5245_v42  ;;  %1190 = vst [vmem:[#allocation2 + $0xc0] sm:$0xf] %v1189_v4  ;;  %v2083_v14 = vsel %vm5451_vm4, %v2081_v46, %v2082_v44  ;;  %v5251_v4 = vld [vmem:[%s7091_s3 + $0x238] sm:$0xff]  }
 0x11b   : > { %v6579_v18 = vcombine.low %v2080_v3, %v2083_v14  ;;  %v2090_v12 = vsel %vm5451_vm4, %v2088_v11, %v2089_v61 }
 0x11d   : > { %5097 = vmatpush3.bf16.msra.mxu0 %v5245_v42  ;;  %v4251_v42 = vrot.slane %v5332_v17, 9 }
 0x11e   : > { %3245 = vmatmul.mubr.bf16.gmra.mrb[68].mxu1 %v6557_v49  ;;  %5098 = vmatprep.subr.bf16.mxu0 %v5248_v31 }
 0x11f   : > { %3252 = vmatprep.mubr.bf16.mxu1 %v6051_v48  ;;  %v2087_v51 = vsel %vm5451_vm4, %v4251_v42, %v2086_v23 }
 0x120   : > { %3318 = vmatmul.mubr.bf16.gmra.mrb[56].mxu0 %v5940_v25  ;;  %v1244_v26 = vld [vmem:[#allocation2 + $0xc4] sm:$0xf]  ;;  %v1245_v55 = vld [vmem:[#allocation2 + $0xc8] sm:$0xf]  ;;  %v6599_v11 = vcombine.low %v2087_v51, %v2090_v12 }
 0x121   : > { %3325 = vmatprep.mubr.bf16.mxu0 %v6252_v30  ;;  %5099 = vmatpush3.bf16.msra.mxu0 %v5248_v31  ;;  %v1243_v63 = vld [vmem:[#allocation2 + $0xc0] sm:$0xf]  ;;  %v1886_v31 = vshrl.u32 %v1244_v26, 16  ;;  %v2174_v7 = vrot.slane %v1244_v26, 5  ;;  %v2177_v44 = vrot.slane %v1245_v55, 5  ;;  %v1882_v23 = vshll.u32 %v1244_v26, 16 }
 0x122   : > { %5100 = vmatprep.subr.bf16.mxu0 %v5249_v62  ;;  %v1873_v16 = vshrl.u32 %v1243_v63, 16  ;;  %v1876_v2 = vshll.u32 %v1243_v63, 16  ;;  %v6588_v56 = vcombine.low %v1243_v63, %v1244_v26  ;;  %v4268_v46 = vrot.slane %v1243_v63, 9 }
 0x123   : > { %v2176_v3 = vrot.slane %v2174_v7, 4  ;;  %v1892_v14 = vshll.u32 %v1245_v55, 16  ;;  %v1884_v42 = vrot.slane %v1882_v23, 5 }
 0x124   : > { %v1875_v35 = vrot.slane %v1873_v16, 4  ;;  %v1878_v54 = vrot.slane %v1876_v2, 5  ;;  %v2175_v47 = vsel %vm5451_vm4, %v4268_v46, %v2174_v7 }
 0x125   : > { %5101 = vmatpush3.bf16.msra.mxu0 %v5249_v62  ;;  %v1888_v62 = vrot.slane %v1886_v31, 4  ;;  %v2178_v27 = vsel %vm5451_vm4, %v2176_v3, %v2177_v44  ;;  %v1894_v2 = vrot.slane %v1892_v14, 5 }
 0x126   : > { %3253 = vmatmul.mubr.bf16.gmra.mrb[72].mxu1 %v6579_v18  ;;  %5102 = vmatprep.subr.bf16.mxu0 %v5250_v58  ;;  %v1879_v17 = vor.u32 %v1878_v54, %v1875_v35  ;;  %v6603_v63 = vcombine.low %v2175_v47, %v2178_v27 }
 0x127   : > { %3260 = vmatprep.mubr.bf16.mxu1 %v6588_v56  ;;  %v1889_v16 = vor.u32 %v1888_v62, %v1884_v42 }
 0x128   : > { %3326 = vmatmul.mubr.bf16.gmra.mrb[60].mxu0 %v6028_v38  ;;  %v1880_v26 = vrot.slane %v1879_v17, 4 }
 0x129   : > { %3333 = vmatprep.mubr.bf16.mxu0 %v6304_v1  ;;  %5103 = vmatpush3.bf16.msra.mxu0 %v5250_v58  ;;  %v4640_v61 = vpop.f32.mrb[4].mxu0  ;;  %v1890_v51 = vrot.slane %v1889_v16, 4 }
 0x12a   : > { %5104 = vmatprep.subr.bf16.mxu0 %v5251_v4  ;;  %v4641_v55 = vpop.f32.mrb[5].mxu0  ;;  %v1885_v7 = vsel %vm5465_vm5, %v1880_v26, %v1884_v42 }
 0x12b   : > { %v6605_v31 = vadd.f32 %v4641_v55, %v4640_v61  ;;  %v4643_v46 = vpop.f32.mrb[6].mxu0  ;;  %v1895_v54 = vsel %vm5465_vm5, %v1890_v51, %v1894_v2 }
 0x12c   : > { %v4706_v12 = vpop.f32.mrb[0].mxu1  ;;  %v4644_v58 = vpop.f32.mrb[7].mxu0  ;;  %v6617_v3 = vcombine.low %v1885_v7, %v1895_v54 }
 0x12d   : > { %5105 = vmatpush3.bf16.msra.mxu0 %v5251_v4  ;;  %v4707_v35 = vpop.f32.mrb[1].mxu1  ;;  %v6609_v44 = vadd.f32 %v4644_v58, %v4643_v46  ;;  %v7124_v46 = vld [vmem:[#allocation7_spill] sm:$0xff] }
 0x12e   : > { %3261 = vmatmul.mubr.bf16.gmra.mrb[76].mxu1 %v6599_v11  ;;  %v6614_v23 = vadd.f32 %v4707_v35, %v4706_v12  ;;  %v4709_v47 = vpop.f32.mrb[2].mxu1 }
 0x12f   : > { %3462 = vmatprep.mubr.bf16.mxu1 %v5805_v8  ;;  %v4710_v62 = vpop.f32.mrb[3].mxu1 }
 0x130   : > { %3334 = vmatmul.mubr.bf16.gmra.mrb[64].mxu0 %v6110_v39  ;;  %v6620_v14 = vadd.f32 %v4710_v62, %v4709_v47 }
 0x131   : > { %3341 = vmatprep.mubr.bf16.mxu0 %v6397_v43 }
 0x136   : > { %3463 = vmatmul.mubr.bf16.vlgmr.msra.gmra.mrb[80].mxu1 %v5778_v52 }
 0x137   : > { %3470 = vmatprep.mubr.bf16.mxu1 %v5940_v25 }
 0x138   : > { %3342 = vmatmul.mubr.bf16.gmra.mrb[68].mxu0 %v6196_v19 }
 0x139   : > { %3349 = vmatprep.mubr.bf16.mxu0 %v6439_v9 }
 0x13a   : > { %v4646_v4 = vpop.f32.mrb[8].mxu0 }
 0x13b   : > { %v4647_v17 = vpop.f32.mrb[9].mxu0 }
 0x13c   : > { %v6627_v8 = vadd.f32 %v4647_v17, %v4646_v4  ;;  %v4649_v42 = vpop.f32.mrb[10].mxu0  ;;  %v7127_v4 = vld [vmem:[#allocation4_spill] sm:$0xff] }
 0x13d   : > { %v4650_v27 = vpop.f32.mrb[11].mxu0 }
 0x13e   : > { %3471 = vmatmul.mubr.bf16.gmra.mrb[84].mxu1 %v5922_v57  ;;  %v6630_v61 = vadd.f32 %v4650_v27, %v4649_v42  ;;  %v7125_v57 = vld [vmem:[#allocation9_spill] sm:$0xff] }
 0x13f   : > { %3478 = vmatprep.mubr.bf16.mxu1 %v6028_v38  ;;  %v7128_v42 = vld [vmem:[#allocation5_spill] sm:$0xff] }
 0x140   : > { %3350 = vmatmul.mubr.bf16.gmra.mrb[72].mxu0 %v6318_v45 }
 0x141   : > { %3357 = vmatprep.mubr.bf16.mxu0 %v6459_v37 }
 0x142   : > { %v4712_v52 = vpop.f32.mrb[4].mxu1 }
 0x143   : > { %v4713_v25 = vpop.f32.mrb[5].mxu1 }
 0x144   : > { %v6635_v26 = vadd.f32 %v4713_v25, %v4712_v52  ;;  %v4715_v16 = vpop.f32.mrb[6].mxu1 }
 0x145   : > { %v4716_v2 = vpop.f32.mrb[7].mxu1 }
 0x146   : > { %v6637_v55 = vadd.f32 %v4716_v2, %v4715_v16  ;;  %3479 = vmatmul.mubr.bf16.gmra.mrb[88].mxu1 %v7124_v46 }
 0x147   : > { %3486 = vmatprep.mubr.bf16.mxu1 %v6110_v39 }
 0x148   : > { %3358 = vmatmul.mubr.bf16.gmra.mrb[76].mxu0 %v6368_v33 }
 0x149   : > { %3365 = vmatprep.mubr.bf16.mxu0 %v6480_v21 }
 0x14e   : > { %3487 = vmatmul.mubr.bf16.gmra.mrb[92].mxu1 %v7125_v57 }
 0x14f   : > { %3494 = vmatprep.mubr.bf16.mxu1 %v6196_v19  ;;  %v7126_v19 = vld [vmem:[#allocation10_spill] sm:$0xff] }
 0x150   : > { %3366 = vmatmul.mubr.bf16.gmra.mrb[80].mxu0 %v6424_v40 }
 0x151   : > { %3373 = vmatprep.mubr.bf16.mxu0 %v6502_v0 }
 0x152   : > { %v4652_v38 = vpop.f32.mrb[12].mxu0 }
 0x153   : > { %v4653_v7 = vpop.f32.mrb[13].mxu0 }
 0x154   : > { %v6647_v51 = vadd.f32 %v4653_v7, %v4652_v38  ;;  %v4655_v12 = vpop.f32.mrb[14].mxu0  ;;  %v7130_v38 = vld [vmem:[#allocation8_spill] sm:$0xff] }
 0x155   : > { %v4656_v39 = vpop.f32.mrb[15].mxu0 }
 0x156   : > { %3495 = vmatmul.mubr.bf16.gmra.mrb[96].mxu1 %v6170_v32  ;;  %v6651_v58 = vadd.f32 %v4656_v39, %v4655_v12 }
 0x157   : > { %3502 = vmatprep.mubr.bf16.mxu1 %v6318_v45 }
 0x158   : > { %3374 = vmatmul.mubr.bf16.gmra.mrb[84].mxu0 %v6462_v28 }
 0x159   : > { %3381 = vmatprep.mubr.bf16.mxu0 %v6519_v22 }
 0x15e   : > { %3503 = vmatmul.mubr.bf16.gmra.mrb[100].mxu1 %v7126_v19  ;;  %v4718_v35 = vpop.f32.mrb[8].mxu1 }
 0x15f   : > { %3510 = vmatprep.mubr.bf16.mxu1 %v6368_v33  ;;  %v4719_v54 = vpop.f32.mrb[9].mxu1 }
 0x160   : > { %3382 = vmatmul.mubr.bf16.gmra.mrb[88].mxu0 %v6506_v10  ;;  %v6659_v32 = vadd.f32 %v4719_v54, %v4718_v35  ;;  %v4721_v47 = vpop.f32.mrb[10].mxu1 }
 0x161   : > { %3389 = vmatprep.mubr.bf16.mxu0 %v6542_v41  ;;  %v4722_v45 = vpop.f32.mrb[11].mxu1 }
 0x162   : > { %v6661_v62 = vadd.f32 %v4722_v45, %v4721_v47 }
 0x166   : > { %3511 = vmatmul.mubr.bf16.gmra.mrb[104].mxu1 %v6366_v5 }
 0x167   : > { %3518 = vmatprep.mubr.bf16.mxu1 %v6424_v40  ;;  %v7129_v40 = vld [vmem:[#allocation6_spill] sm:$0xff] }
 0x168   : > { %3390 = vmatmul.mubr.bf16.gmra.mrb[92].mxu0 %v7127_v4 }
 0x169   : > { %3397 = vmatprep.mubr.bf16.mxu0 %v6557_v49 }
 0x16d   : > { %v4658_v33 = vpop.f32.mrb[16].mxu0 }
 0x16e   : > { %3519 = vmatmul.mubr.bf16.gmra.mrb[108].mxu1 %v6401_v34  ;;  %v4659_v17 = vpop.f32.mrb[17].mxu0 }
 0x16f   : > { %3526 = vmatprep.mubr.bf16.mxu1 %v6462_v28  ;;  %v6670_v27 = vadd.f32 %v4659_v17, %v4658_v33  ;;  %v4661_v52 = vpop.f32.mrb[18].mxu0 }
 0x170   : > { %3398 = vmatmul.mubr.bf16.gmra.mrb[96].mxu0 %v7128_v42  ;;  %v4662_v5 = vpop.f32.mrb[19].mxu0 }
 0x171   : > { %3405 = vmatprep.mubr.bf16.mxu0 %v6579_v18  ;;  %v6673_v25 = vadd.f32 %v4662_v5, %v4661_v52 }
 0x176   : > { %3527 = vmatmul.mubr.bf16.gmra.mrb[112].mxu1 %v6457_v60 }
 0x177   : > { %3534 = vmatprep.mubr.bf16.mxu1 %v6506_v10  ;;  %v4724_v34 = vpop.f32.mrb[12].mxu1 }
 0x178   : > { %3406 = vmatmul.mubr.bf16.gmra.mrb[100].mxu0 %v7129_v40  ;;  %v4725_v28 = vpop.f32.mrb[13].mxu1 }
 0x179   : > { %3413 = vmatprep.mubr.bf16.mxu0 %v6599_v11  ;;  %v6679_v16 = vadd.f32 %v4725_v28, %v4724_v34  ;;  %v4727_v2 = vpop.f32.mrb[14].mxu1 }
 0x17a   : > { %v4728_v46 = vpop.f32.mrb[15].mxu1 }
 0x17b   : > { %v6681_v57 = vadd.f32 %v4728_v46, %v4727_v2  ;;  %v6704_v46 = vld [vmem:[#allocation2 + $0xcc] sm:$0xf] }
 0x17e   : > { %3535 = vmatmul.mubr.bf16.gmra.mrb[116].mxu1 %v6484_v24 }
 0x17f   : > { %3542 = vmatprep.mubr.bf16.mxu1 %v7127_v4 }
 0x180   : > { %3414 = vmatmul.mubr.bf16.gmra.mrb[104].mxu0 %v7130_v38 }
 0x181   : > { %v4746_v60 = vpop.f32.mrb[16].mxu1  ;;  %3421 = vmatprep.mubr.bf16.mxu0 %v6603_v63  ;;  %v4664_v39 = vpop.f32.mrb[20].mxu0 }
 0x182   : > { %v4747_v10 = vpop.f32.mrb[17].mxu1  ;;  %v4665_v35 = vpop.f32.mrb[21].mxu0 }
 0x183   : > { %v4748_v7 = vadd.f32 %v4747_v10, %v4746_v60  ;;  %v4749_v12 = vpop.f32.mrb[18].mxu1  ;;  %v6690_v45 = vadd.f32 %v4665_v35, %v4664_v39  ;;  %v4667_v24 = vpop.f32.mrb[22].mxu0  ;;  %v1917_v10 = vshrl.u32 %v6704_v46, 16 }
 0x184   : > { %v4750_v19 = vpop.f32.mrb[19].mxu1  ;;  %v4668_v33 = vpop.f32.mrb[23].mxu0 }
 0x185   : > { %v6688_v54 = vadd.f32 %v4748_v7, %v6517_v13  ;;  %v4751_v47 = vadd.f32 %v4750_v19, %v4749_v12  ;;  %v6696_v17 = vadd.f32 %v4668_v33, %v4667_v24  ;;  %v1920_v7 = vshll.u32 %v6704_v46, 16 }
 0x186   : > { %3543 = vmatmul.mubr.bf16.gmra.mrb[120].mxu1 %v5679_v50 }
 0x187   : > { %v6694_v4 = vadd.f32 %v4751_v47, %v6521_v20  ;;  %3550 = vmatprep.mubr.bf16.mxu1 %v7128_v42  ;;  %v6706_v20 = vld [vmem:[#allocation2 + $0xd0] sm:$0xf] }
 0x188   : > { %3422 = vmatmul.mubr.bf16.gmra.mrb[108].mxu0 %v6617_v3  ;;  %v1926_v19 = vshll.u32 %v6706_v20, 16 }
 0x189   : > { %v4752_v52 = vpop.f32.mrb[20].mxu1  ;;  %5106 = vmatprep.mubr.bf16.mxu0 %v6136_v15 }
 0x18a   : > { %v4753_v13 = vpop.f32.mrb[21].mxu1 }
 0x18b   : > { %v4754_v5 = vadd.f32 %v4753_v13, %v4752_v52  ;;  %v4755_v34 = vpop.f32.mrb[22].mxu1  ;;  %v1919_v52 = vrot.slane %v1917_v10, 4  ;;  %v1922_v13 = vrot.slane %v1920_v7, 5 }
 0x18c   : > { %v4756_v28 = vpop.f32.mrb[23].mxu1 }
 0x18d   : > { %v6702_v2 = vadd.f32 %v4754_v5, %v6605_v31  ;;  %v4757_v50 = vadd.f32 %v4756_v28, %v4755_v34  ;;  %v4670_v60 = vpop.f32.mrb[24].mxu0  ;;  %v1928_v34 = vrot.slane %v1926_v19, 5 }
 0x18e   : > { %3551 = vmatmul.mubr.bf16.gmra.mrb[124].mxu1 %v5829_v53  ;;  %v4671_v15 = vpop.f32.mrb[25].mxu0  ;;  %v1930_v53 = vshrl.u32 %v6706_v20, 16 }
 0x18f   : > { %v6710_v42 = vadd.f32 %v4757_v50, %v6609_v44  ;;  %3558 = vmatprep.mubr.bf16.mxu1 %v7129_v40  ;;  %v6716_v31 = vadd.f32 %v4671_v15, %v4670_v60  ;;  %v4673_v12 = vpop.f32.mrb[26].mxu0  ;;  %v6726_v50 = vld [vmem:[#allocation2 + $0xd4] sm:$0xf]  ;;  %v1923_v60 = vor.u32 %v1922_v13, %v1919_v52 }
 0x190   : > { %5107 = vmatmul.mubr.bf16.vlgmr.msra.gmra.mrb[112].mxu0 %v6156_v6  ;;  %v4674_v44 = vpop.f32.mrb[27].mxu0  ;;  %v1932_v28 = vrot.slane %v1930_v53, 4 }
 0x191   : > { %v4758_v39 = vpop.f32.mrb[24].mxu1  ;;  %5110 = vmatprep.mubr.bf16.mxu0 %v6252_v30  ;;  %v6721_v40 = vadd.f32 %v4674_v44, %v4673_v12  ;;  %v1924_v53 = vrot.slane %v1923_v60, 4 }
 0x192   : > { %v4759_v35 = vpop.f32.mrb[25].mxu1  ;;  %v1933_v10 = vor.u32 %v1932_v28, %v1928_v34 }
 0x193   : > { %v4760_v47 = vadd.f32 %v4759_v35, %v4758_v39  ;;  %v4761_v24 = vpop.f32.mrb[26].mxu1  ;;  %v1929_v35 = vsel %vm5465_vm5, %v1924_v53, %v1928_v34 }
 0x194   : > { %v4762_v33 = vpop.f32.mrb[27].mxu1  ;;  %v1934_v44 = vrot.slane %v1933_v10, 4 }
 0x195   : > { %v6724_v6 = vadd.f32 %v4760_v47, %v6627_v8  ;;  %v4763_v5 = vadd.f32 %v4762_v33, %v4761_v24  ;;  %v1936_v8 = vshll.u32 %v6726_v50, 16 }
 0x196   : > { %3559 = vmatmul.mubr.bf16.gmra.mrb[128].mxu1 %v5969_v59 }
 0x197   : > { %v6730_v30 = vadd.f32 %v4763_v5, %v6630_v61  ;;  %3566 = vmatprep.mubr.bf16.mxu1 %v7130_v38  ;;  %v1938_v38 = vrot.slane %v1936_v8, 5 }
 0x198   : > { %5111 = vmatmul.mubr.bf16.gmra.mrb[116].mxu0 %v6304_v1 }
 0x199   : > { %v4764_v15 = vpop.f32.mrb[28].mxu1  ;;  %5114 = vmatprep.mubr.bf16.mxu0 %v6397_v43 }
 0x19a   : > { %v4765_v7 = vpop.f32.mrb[29].mxu1 }
 0x19b   : > { %v4766_v12 = vadd.f32 %v4765_v7, %v4764_v15  ;;  %v4767_v39 = vpop.f32.mrb[30].mxu1 }
 0x19c   : > { %v4768_v19 = vpop.f32.mrb[31].mxu1 }
 0x19d   : > { %v6737_v59 = vadd.f32 %v4766_v12, %v6647_v51  ;;  %v4769_v61 = vadd.f32 %v4768_v19, %v4767_v39  ;;  %v1939_v51 = vsel %vm5465_vm5, %v1934_v44, %v1938_v38 }
 0x19e   : > { %3567 = vmatmul.mubr.bf16.gmra.mrb[132].mxu1 %v6051_v48  ;;  %v4235_v52 = vcombine.low %v1929_v35, %v1939_v51  ;;  %v2205_v51 = vrot.slane %v6726_v50, 5 }
 0x19f   : > { %v6741_v1 = vadd.f32 %v4769_v61, %v6651_v58  ;;  %3574 = vmatprep.mubr.bf16.mxu1 %v6617_v3 }
 0x1a0   : > { %5115 = vmatmul.mubr.bf16.gmra.mrb[120].mxu0 %v6439_v9 }
 0x1a1   : > { %v4770_v43 = vpop.f32.mrb[32].mxu1  ;;  %5118 = vmatprep.mubr.bf16.mxu0 %v6459_v37 }
 0x1a2   : > { %v4771_v47 = vpop.f32.mrb[33].mxu1 }
 0x1a3   : > { %v4772_v24 = vadd.f32 %v4771_v47, %v4770_v43  ;;  %v4773_v33 = vpop.f32.mrb[34].mxu1 }
 0x1a4   : > { %v4774_v48 = vpop.f32.mrb[35].mxu1 }
 0x1a5   : > { %v6751_v58 = vadd.f32 %v4772_v24, %v6670_v27  ;;  %v4775_v3 = vadd.f32 %v4774_v48, %v4773_v33  ;;  %v4217_v27 = vcombine.low %v6704_v46, %v6706_v20 }
 0x1a6   : > { %3575 = vmatmul.mubr.bf16.gmra.mrb[136].mxu1 %v6588_v56 }
 0x1a7   : > { %v6755_v9 = vadd.f32 %v4775_v3, %v6673_v25  ;;  %v4676_v13 = vpop.f32.mrb[28].mxu0  ;;  %3582 = vmatprep.mubr.bf16.mxu1 %v4235_v52 }
 0x1a8   : > { %5119 = vmatmul.mubr.bf16.gmra.mrb[124].mxu0 %v6480_v21  ;;  %v4677_v36 = vpop.f32.mrb[29].mxu0 }
 0x1a9   : > { %v4776_v37 = vpop.f32.mrb[36].mxu1  ;;  %5122 = vmatprep.mubr.bf16.mxu0 %v6502_v0  ;;  %v4678_v5 = vadd.f32 %v4677_v36, %v4676_v13  ;;  %v4679_v34 = vpop.f32.mrb[30].mxu0 }
 0x1aa   : > { %v4777_v28 = vpop.f32.mrb[37].mxu1  ;;  %v4680_v60 = vpop.f32.mrb[31].mxu0 }
 0x1ab   : > { %v4778_v15 = vadd.f32 %v4777_v28, %v4776_v37  ;;  %v4779_v56 = vpop.f32.mrb[38].mxu1  ;;  %v4681_v10 = vadd.f32 %v4680_v60, %v4679_v34 }
 0x1ac   : > { %v4780_v25 = vpop.f32.mrb[39].mxu1 }
 0x1ad   : > { %v6762_v8 = vadd.f32 %v4778_v15, %v6690_v45  ;;  %v4781_v7 = vadd.f32 %v4780_v25, %v4779_v56  ;;  %v2202_v45 = vrot.slane %v6706_v20, 5 }
 0x1ae   : > { %3583 = vmatmul.mubr.bf16.gmra.mrb[140].mxu1 %v4217_v27 }
 0x1af   : > { %v6765_v21 = vadd.f32 %v4781_v7, %v6696_v17 }
 0x1b0   : > { %5123 = vmatmul.mubr.bf16.gmra.mrb[128].mxu0 %v6519_v22  ;;  %v4270_v22 = vrot.slane %v6704_v46, 9 }
 0x1b1   : > { %5126 = vmatprep.mubr.bf16.mxu0 %v6542_v41  ;;  %v2204_v41 = vrot.slane %v2202_v45, 4 }
 0x1b2   : > { %v2203_v46 = vsel %vm5451_vm4, %v4270_v22, %v2202_v45 }
 0x1b3   : > { %v4682_v0 = vpop.f32.mrb[32].mxu0  ;;  %v2206_v20 = vsel %vm5451_vm4, %v2204_v41, %v2205_v51 }
 0x1b4   : > { %v4683_v12 = vpop.f32.mrb[33].mxu0  ;;  %v4271_v37 = vcombine.low %v2203_v46, %v2206_v20 }
 0x1b5   : > { %v4684_v39 = vadd.f32 %v4683_v12, %v4682_v0  ;;  %v4685_v19 = vpop.f32.mrb[34].mxu0 }
 0x1b6   : > { %v4686_v53 = vpop.f32.mrb[35].mxu0 }
 0x1b7   : > { %v4687_v61 = vadd.f32 %v4686_v53, %v4685_v19 }
 0x1b8   : > { %5127 = vmatmul.mubr.bf16.gmra.mrb[132].mxu0 %v6557_v49 }
 0x1b9   : > { %5130 = vmatprep.mubr.bf16.mxu0 %v6579_v18  ;;  %v4782_v44 = vpop.f32.mrb[40].mxu1 }
 0x1ba   : > { %v4783_v38 = vpop.f32.mrb[41].mxu1 }
 0x1bb   : > { %v4784_v17 = vadd.f32 %v4783_v38, %v4782_v44  ;;  %v4785_v43 = vpop.f32.mrb[42].mxu1 }
 0x1bc   : > { %v4786_v35 = vpop.f32.mrb[43].mxu1 }
 0x1bd   : > { %v6775_v47 = vadd.f32 %v4784_v17, %v6716_v31  ;;  %v4787_v24 = vadd.f32 %v4786_v35, %v4785_v43 }
 0x1bf   : > { %v4688_v33 = vpop.f32.mrb[36].mxu0  ;;  %v6778_v49 = vadd.f32 %v4787_v24, %v6721_v40 }
 0x1c0   : > { %5131 = vmatmul.mubr.bf16.gmra.mrb[136].mxu0 %v6599_v11  ;;  %v4689_v18 = vpop.f32.mrb[37].mxu0 }
 0x1c1   : > { %5134 = vmatprep.mubr.bf16.mxu0 %v6603_v63  ;;  %v4690_v50 = vadd.f32 %v4689_v18, %v4688_v33  ;;  %v4691_v48 = vpop.f32.mrb[38].mxu0  ;;  %v4788_v31 = vpop.f32.mrb[44].mxu1 }
 0x1c2   : > { %v4692_v52 = vpop.f32.mrb[39].mxu0  ;;  %v4789_v3 = vpop.f32.mrb[45].mxu1 }
 0x1c3   : > { %v4693_v13 = vadd.f32 %v4692_v52, %v4691_v48  ;;  %v4790_v36 = vadd.f32 %v4789_v3, %v4788_v31  ;;  %v4791_v40 = vpop.f32.mrb[46].mxu1 }
 0x1c4   : > { %v4792_v34 = vpop.f32.mrb[47].mxu1 }
 0x1c5   : > { %v6786_v11 = vadd.f32 %v4790_v36, %v4678_v5  ;;  %v4793_v28 = vadd.f32 %v4792_v34, %v4791_v40 }
 0x1c7   : > { %v6788_v63 = vadd.f32 %v4793_v28, %v4681_v10 }
 0x1c8   : > { %5135 = vmatmul.mubr.bf16.gmra.mrb[140].mxu0 %v4271_v37 }
 0x1c9   : > { %v4694_v60 = vpop.f32.mrb[40].mxu0  ;;  %v4794_v27 = vpop.f32.mrb[48].mxu1 }
 0x1ca   : > { %v4695_v29 = vpop.f32.mrb[41].mxu0  ;;  %v4795_v15 = vpop.f32.mrb[49].mxu1 }
 0x1cb   : > { %v4696_v56 = vadd.f32 %v4695_v29, %v4694_v60  ;;  %v4697_v25 = vpop.f32.mrb[42].mxu0  ;;  %v4796_v7 = vadd.f32 %v4795_v15, %v4794_v27  ;;  %v4797_v0 = vpop.f32.mrb[50].mxu1 }
 0x1cc   : > { %v4698_v12 = vpop.f32.mrb[43].mxu0  ;;  %v4798_v19 = vpop.f32.mrb[51].mxu1 }
 0x1cd   : > { %v4699_v53 = vadd.f32 %v4698_v12, %v4697_v25  ;;  %v6790_v45 = vadd.f32 %v4796_v7, %v4684_v39  ;;  %v4799_v44 = vadd.f32 %v4798_v19, %v4797_v0 }
 0x1cf   : > { %v6792_v5 = vadd.f32 %v4799_v44, %v4687_v61 }
 0x1d1   : > { %v4800_v38 = vpop.f32.mrb[52].mxu1 }
 0x1d2   : > { %v4801_v10 = vpop.f32.mrb[53].mxu1 }
 0x1d3   : > { %v4802_v17 = vadd.f32 %v4801_v10, %v4800_v38  ;;  %v4803_v43 = vpop.f32.mrb[54].mxu1 }
 0x1d4   : > { %v4804_v22 = vpop.f32.mrb[55].mxu1 }
 0x1d5   : > { %v6794_v35 = vadd.f32 %v4802_v17, %v4690_v50  ;;  %v4805_v41 = vadd.f32 %v4804_v22, %v4803_v43 }
 0x1d7   : > { %v6796_v51 = vadd.f32 %v4805_v41, %v4693_v13 }
 0x1d9   : > { %v4806_v24 = vpop.f32.mrb[56].mxu1 }
 0x1da   : > { %v4807_v33 = vpop.f32.mrb[57].mxu1 }
 0x1db   : > { %v4700_v18 = vpop.f32.mrb[44].mxu0  ;;  %v4808_v46 = vadd.f32 %v4807_v33, %v4806_v24  ;;  %v4809_v20 = vpop.f32.mrb[58].mxu1 }
 0x1dc   : > { %v4701_v39 = vpop.f32.mrb[45].mxu0  ;;  %v4810_v48 = vpop.f32.mrb[59].mxu1 }
 0x1dd   : > { %v4702_v31 = vadd.f32 %v4701_v39, %v4700_v18  ;;  %v4703_v61 = vpop.f32.mrb[46].mxu0  ;;  %v6798_v52 = vadd.f32 %v4808_v46, %v4696_v56  ;;  %v4811_v3 = vadd.f32 %v4810_v48, %v4809_v20 }
 0x1de   : > { %v4704_v36 = vpop.f32.mrb[47].mxu0 }
 0x1df   : > { %v4705_v40 = vadd.f32 %v4704_v36, %v4703_v61  ;;  %v6800_v37 = vadd.f32 %v4811_v3, %v4699_v53 }
 0x1e1   : > { %v4812_v50 = vpop.f32.mrb[60].mxu1 }
 0x1e2   : > { %v4813_v34 = vpop.f32.mrb[61].mxu1 }
 0x1e3   : > { %v4858_v13 = vpop.f32.mrb[48].mxu0  ;;  %v4814_v28 = vadd.f32 %v4813_v34, %v4812_v50  ;;  %v4815_v60 = vpop.f32.mrb[62].mxu1 }
 0x1e4   : > { %v4859_v27 = vpop.f32.mrb[49].mxu0  ;;  %v4816_v29 = vpop.f32.mrb[63].mxu1 }
 0x1e5   : > { %v4860_v15 = vadd.f32 %v4859_v27, %v4858_v13  ;;  %v4861_v25 = vpop.f32.mrb[50].mxu0  ;;  %v6802_v7 = vadd.f32 %v4814_v28, %v4702_v31  ;;  %v4817_v0 = vadd.f32 %v4816_v29, %v4815_v60 }
 0x1e6   : > { %v4862_v12 = vpop.f32.mrb[51].mxu0 }
 0x1e7   : > { %v6805_v56 = vadd.f32 %v4860_v15, %v6688_v54  ;;  %v4863_v19 = vadd.f32 %v4862_v12, %v4861_v25  ;;  %v6807_v44 = vadd.f32 %v4817_v0, %v4705_v40 }
 0x1e9   : > { %v6810_v53 = vadd.f32 %v4863_v19, %v6694_v4  ;;  %v4818_v38 = vpop.f32.mrb[64].mxu1 }
 0x1ea   : > { %v4819_v10 = vpop.f32.mrb[65].mxu1 }
 0x1eb   : > { %v4864_v17 = vpop.f32.mrb[52].mxu0  ;;  %v4820_v43 = vadd.f32 %v4819_v10, %v4818_v38  ;;  %v4821_v22 = vpop.f32.mrb[66].mxu1 }
 0x1ec   : > { %v4865_v41 = vpop.f32.mrb[53].mxu0  ;;  %v4822_v24 = vpop.f32.mrb[67].mxu1 }
 0x1ed   : > { %v4866_v33 = vadd.f32 %v4865_v41, %v4864_v17  ;;  %v4867_v18 = vpop.f32.mrb[54].mxu0  ;;  %v6813_v46 = vadd.f32 %v4820_v43, %v6614_v23  ;;  %v4823_v54 = vadd.f32 %v4822_v24, %v4821_v22 }
 0x1ee   : > { %v4868_v20 = vpop.f32.mrb[55].mxu0 }
 0x1ef   : > { %v6816_v39 = vadd.f32 %v4866_v33, %v6702_v2  ;;  %v4869_v48 = vadd.f32 %v4868_v20, %v4867_v18  ;;  %v6819_v4 = vadd.f32 %v4823_v54, %v6620_v14 }
 0x1f1   : > { %v6822_v31 = vadd.f32 %v4869_v48, %v6710_v42  ;;  %v4824_v61 = vpop.f32.mrb[68].mxu1 }
 0x1f2   : > { %v4825_v3 = vpop.f32.mrb[69].mxu1 }
 0x1f3   : > { %v4870_v36 = vpop.f32.mrb[56].mxu0  ;;  %v4826_v40 = vadd.f32 %v4825_v3, %v4824_v61  ;;  %v4827_v50 = vpop.f32.mrb[70].mxu1 }
 0x1f4   : > { %v4871_v34 = vpop.f32.mrb[57].mxu0  ;;  %v4828_v23 = vpop.f32.mrb[71].mxu1 }
 0x1f5   : > { %v4872_v13 = vadd.f32 %v4871_v34, %v4870_v36  ;;  %v4873_v28 = vpop.f32.mrb[58].mxu0  ;;  %v6825_v60 = vadd.f32 %v4826_v40, %v6635_v26  ;;  %v4829_v2 = vadd.f32 %v4828_v23, %v4827_v50 }
 0x1f6   : > { %v4874_v27 = vpop.f32.mrb[59].mxu0 }
 0x1f7   : > { %v6828_v14 = vadd.f32 %v4872_v13, %v6724_v6  ;;  %v4875_v29 = vadd.f32 %v4874_v27, %v4873_v28  ;;  %v6831_v42 = vadd.f32 %v4829_v2, %v6637_v55 }
 0x1f9   : > { %v6834_v15 = vadd.f32 %v4875_v29, %v6730_v30  ;;  %v4830_v25 = vpop.f32.mrb[72].mxu1 }
 0x1fa   : > { %v4831_v0 = vpop.f32.mrb[73].mxu1 }
 0x1fb   : > { %v4876_v12 = vpop.f32.mrb[60].mxu0  ;;  %v4832_v19 = vadd.f32 %v4831_v0, %v4830_v25  ;;  %v4833_v38 = vpop.f32.mrb[74].mxu1 }
 0x1fc   : > { %v4877_v10 = vpop.f32.mrb[61].mxu0  ;;  %v4834_v26 = vpop.f32.mrb[75].mxu1 }
 0x1fd   : > { %v4878_v17 = vadd.f32 %v4877_v10, %v4876_v12  ;;  %v4879_v43 = vpop.f32.mrb[62].mxu0  ;;  %v6837_v22 = vadd.f32 %v4832_v19, %v6659_v32  ;;  %v4835_v6 = vadd.f32 %v4834_v26, %v4833_v38 }
 0x1fe   : > { %v4880_v41 = vpop.f32.mrb[63].mxu0 }
 0x1ff   : > { %v6840_v55 = vadd.f32 %v4878_v17, %v6737_v59  ;;  %v4881_v24 = vadd.f32 %v4880_v41, %v4879_v43  ;;  %v6843_v30 = vadd.f32 %v4835_v6, %v6661_v62 }
 0x201   : > { %v6846_v33 = vadd.f32 %v4881_v24, %v6741_v1  ;;  %v4836_v18 = vpop.f32.mrb[76].mxu1 }
 0x202   : > { %v4837_v54 = vpop.f32.mrb[77].mxu1 }
 0x203   : > { %v4882_v20 = vpop.f32.mrb[64].mxu0  ;;  %v4838_v48 = vadd.f32 %v4837_v54, %v4836_v18  ;;  %v4839_v61 = vpop.f32.mrb[78].mxu1 }
 0x204   : > { %v4883_v3 = vpop.f32.mrb[65].mxu0  ;;  %v4840_v32 = vpop.f32.mrb[79].mxu1 }
 0x205   : > { %v4884_v36 = vadd.f32 %v4883_v3, %v4882_v20  ;;  %v4885_v40 = vpop.f32.mrb[66].mxu0  ;;  %v6849_v50 = vadd.f32 %v4838_v48, %v6679_v16  ;;  %v4841_v59 = vadd.f32 %v4840_v32, %v4839_v61 }
 0x206   : > { %v4886_v34 = vpop.f32.mrb[67].mxu0 }
 0x207   : > { %v6852_v62 = vadd.f32 %v4884_v36, %v6751_v58  ;;  %v4887_v23 = vadd.f32 %v4886_v34, %v4885_v40  ;;  %v6855_v1 = vadd.f32 %v4841_v59, %v6681_v57 }
 0x209   : > { %v6858_v13 = vadd.f32 %v4887_v23, %v6755_v9  ;;  %v4970_v28 = vpop.f32.mrb[80].mxu1 }
 0x20a   : > { %v4971_v2 = vpop.f32.mrb[81].mxu1 }
 0x20b   : > { %v4888_v27 = vpop.f32.mrb[68].mxu0  ;;  %v4972_v29 = vadd.f32 %v4971_v2, %v4970_v28  ;;  %v4973_v25 = vpop.f32.mrb[82].mxu1 }
 0x20c   : > { %v4889_v0 = vpop.f32.mrb[69].mxu0  ;;  %v4974_v16 = vpop.f32.mrb[83].mxu1 }
 0x20d   : > { %v4890_v12 = vadd.f32 %v4889_v0, %v4888_v27  ;;  %v4891_v19 = vpop.f32.mrb[70].mxu0  ;;  %v4975_v38 = vadd.f32 %v4974_v16, %v4973_v25  ;;  %v6861_v58 = vadd.f32 %v4972_v29, %v6805_v56 }
 0x20e   : > { %v4892_v10 = vpop.f32.mrb[71].mxu0 }
 0x20f   : > { %v6864_v57 = vadd.f32 %v4890_v12, %v6762_v8  ;;  %v4893_v26 = vadd.f32 %v4892_v10, %v4891_v19  ;;  %v6867_v9 = vadd.f32 %v4975_v38, %v6810_v53 }
 0x211   : > { %v6870_v17 = vadd.f32 %v4893_v26, %v6765_v21  ;;  %v4976_v43 = vpop.f32.mrb[84].mxu1 }
 0x212   : > { %v4977_v6 = vpop.f32.mrb[85].mxu1 }
 0x213   : > { %v4894_v41 = vpop.f32.mrb[72].mxu0  ;;  %v4978_v24 = vadd.f32 %v4977_v6, %v4976_v43  ;;  %v4979_v18 = vpop.f32.mrb[86].mxu1 }
 0x214   : > { %v4895_v54 = vpop.f32.mrb[73].mxu0  ;;  %v4980_v20 = vpop.f32.mrb[87].mxu1 }
 0x215   : > { %v4896_v56 = vadd.f32 %v4895_v54, %v4894_v41  ;;  %v4897_v48 = vpop.f32.mrb[74].mxu0  ;;  %v4981_v61 = vadd.f32 %v4980_v20, %v4979_v18  ;;  %v6873_v8 = vadd.f32 %v4978_v24, %v6816_v39 }
 0x216   : > { %v4898_v3 = vpop.f32.mrb[75].mxu0 }
 0x217   : > { %v6876_v53 = vadd.f32 %v4896_v56, %v6775_v47  ;;  %v4899_v32 = vadd.f32 %v4898_v3, %v4897_v48  ;;  %v6879_v21 = vadd.f32 %v4981_v61, %v6822_v31 }
 0x219   : > { %v6882_v36 = vadd.f32 %v4899_v32, %v6778_v49  ;;  %v4982_v40 = vpop.f32.mrb[88].mxu1 }
 0x21a   : > { %v4983_v59 = vpop.f32.mrb[89].mxu1 }
 0x21b   : > { %v4900_v34 = vpop.f32.mrb[76].mxu0  ;;  %v4984_v23 = vadd.f32 %v4983_v59, %v4982_v40  ;;  %v4985_v28 = vpop.f32.mrb[90].mxu1 }
 0x21c   : > { %v4901_v2 = vpop.f32.mrb[77].mxu0  ;;  %v4986_v27 = vpop.f32.mrb[91].mxu1 }
 0x21d   : > { %v4902_v39 = vadd.f32 %v4901_v2, %v4900_v34  ;;  %v4903_v29 = vpop.f32.mrb[78].mxu0  ;;  %v4987_v25 = vadd.f32 %v4986_v27, %v4985_v28  ;;  %v6885_v47 = vadd.f32 %v4984_v23, %v6828_v14 }
 0x21e   : > { %v4904_v0 = vpop.f32.mrb[79].mxu0 }
 0x21f   : > { %v6888_v31 = vadd.f32 %v4902_v39, %v6786_v11  ;;  %v4905_v16 = vadd.f32 %v4904_v0, %v4903_v29  ;;  %v6891_v49 = vadd.f32 %v4987_v25, %v6834_v15 }
 0x221   : > { %v6894_v12 = vadd.f32 %v4905_v16, %v6788_v63  ;;  %v4988_v19 = vpop.f32.mrb[92].mxu1 }
 0x222   : > { %v4989_v38 = vpop.f32.mrb[93].mxu1 }
 0x223   : > { %v4906_v10 = vpop.f32.mrb[80].mxu0  ;;  %v4990_v26 = vadd.f32 %v4989_v38, %v4988_v19  ;;  %v4991_v43 = vpop.f32.mrb[94].mxu1 }
 0x224   : > { %v4907_v6 = vpop.f32.mrb[81].mxu0  ;;  %v4992_v41 = vpop.f32.mrb[95].mxu1 }
 0x225   : > { %v4908_v14 = vadd.f32 %v4907_v6, %v4906_v10  ;;  %v4909_v24 = vpop.f32.mrb[82].mxu0  ;;  %v4993_v18 = vadd.f32 %v4992_v41, %v4991_v43  ;;  %v6897_v11 = vadd.f32 %v4990_v26, %v6840_v55 }
 0x226   : > { %v4910_v54 = vpop.f32.mrb[83].mxu0 }
 0x227   : > { %v6900_v15 = vadd.f32 %v4908_v14, %v6790_v45  ;;  %v4911_v20 = vadd.f32 %v4910_v54, %v4909_v24  ;;  %v6903_v63 = vadd.f32 %v4993_v18, %v6846_v33 }
 0x229   : > { %v6906_v56 = vadd.f32 %v4911_v20, %v6792_v5  ;;  %v4994_v48 = vpop.f32.mrb[96].mxu1 }
 0x22a   : > { %v4995_v61 = vpop.f32.mrb[97].mxu1 }
 0x22b   : > { %v4912_v3 = vpop.f32.mrb[84].mxu0  ;;  %v4996_v32 = vadd.f32 %v4995_v61, %v4994_v48  ;;  %v4997_v40 = vpop.f32.mrb[98].mxu1 }
 0x22c   : > { %v4913_v59 = vpop.f32.mrb[85].mxu0  ;;  %v4998_v34 = vpop.f32.mrb[99].mxu1 }
 0x22d   : > { %v4914_v55 = vadd.f32 %v4913_v59, %v4912_v3  ;;  %v4915_v23 = vpop.f32.mrb[86].mxu0  ;;  %v4999_v28 = vadd.f32 %v4998_v34, %v4997_v40  ;;  %v6909_v45 = vadd.f32 %v4996_v32, %v6852_v62 }
 0x22e   : > { %v4916_v2 = vpop.f32.mrb[87].mxu0 }
 0x22f   : > { %v6912_v33 = vadd.f32 %v4914_v55, %v6794_v35  ;;  %v4917_v27 = vadd.f32 %v4916_v2, %v4915_v23  ;;  %v6915_v5 = vadd.f32 %v4999_v28, %v6858_v13 }
 0x231   : > { %v6918_v39 = vadd.f32 %v4917_v27, %v6796_v51  ;;  %v5000_v29 = vpop.f32.mrb[100].mxu1 }
 0x232   : > { %v5001_v25 = vpop.f32.mrb[101].mxu1 }
 0x233   : > { %v4918_v0 = vpop.f32.mrb[88].mxu0  ;;  %v5002_v16 = vadd.f32 %v5001_v25, %v5000_v29  ;;  %v5003_v19 = vpop.f32.mrb[102].mxu1 }
 0x234   : > { %v4919_v38 = vpop.f32.mrb[89].mxu0  ;;  %v5004_v10 = vpop.f32.mrb[103].mxu1 }
 0x235   : > { %v4920_v62 = vadd.f32 %v4919_v38, %v4918_v0  ;;  %v4921_v26 = vpop.f32.mrb[90].mxu0  ;;  %v5005_v43 = vadd.f32 %v5004_v10, %v5003_v19  ;;  %v6921_v35 = vadd.f32 %v5002_v16, %v6864_v57 }
 0x236   : > { %v4922_v6 = vpop.f32.mrb[91].mxu0 }
 0x237   : > { %v6924_v13 = vadd.f32 %v4920_v62, %v6798_v52  ;;  %v4923_v41 = vadd.f32 %v4922_v6, %v4921_v26  ;;  %v6927_v51 = vadd.f32 %v5005_v43, %v6870_v17 }
 0x239   : > { %v6930_v14 = vadd.f32 %v4923_v41, %v6800_v37  ;;  %v5006_v24 = vpop.f32.mrb[104].mxu1 }
 0x23a   : > { %v5007_v18 = vpop.f32.mrb[105].mxu1 }
 0x23b   : > { %v4924_v54 = vpop.f32.mrb[92].mxu0  ;;  %v5008_v20 = vadd.f32 %v5007_v18, %v5006_v24  ;;  %v5009_v48 = vpop.f32.mrb[106].mxu1 }
 0x23c   : > { %v4925_v61 = vpop.f32.mrb[93].mxu0  ;;  %v5010_v3 = vpop.f32.mrb[107].mxu1 }
 0x23d   : > { %v4926_v57 = vadd.f32 %v4925_v61, %v4924_v54  ;;  %v4927_v32 = vpop.f32.mrb[94].mxu0  ;;  %v5011_v40 = vadd.f32 %v5010_v3, %v5009_v48  ;;  %v6933_v52 = vadd.f32 %v5008_v20, %v6876_v53 }
 0x23e   : > { %v4928_v59 = vpop.f32.mrb[95].mxu0 }
 0x23f   : > { %v6936_v17 = vadd.f32 %v4926_v57, %v6802_v7  ;;  %v4929_v34 = vadd.f32 %v4928_v59, %v4927_v32  ;;  %v6939_v37 = vadd.f32 %v5011_v40, %v6882_v36 }
 0x241   : > { %v6942_v55 = vadd.f32 %v4929_v34, %v6807_v44  ;;  %v5012_v23 = vpop.f32.mrb[108].mxu1 }
 0x242   : > { %v5013_v28 = vpop.f32.mrb[109].mxu1 }
 0x243   : > { %v4930_v2 = vpop.f32.mrb[96].mxu0  ;;  %v5014_v27 = vadd.f32 %v5013_v28, %v5012_v23  ;;  %v5015_v29 = vpop.f32.mrb[110].mxu1 }
 0x244   : > { %v4931_v25 = vpop.f32.mrb[97].mxu0  ;;  %v5016_v0 = vpop.f32.mrb[111].mxu1 }
 0x245   : > { %v4932_v53 = vadd.f32 %v4931_v25, %v4930_v2  ;;  %v4933_v16 = vpop.f32.mrb[98].mxu0  ;;  %v5017_v19 = vadd.f32 %v5016_v0, %v5015_v29  ;;  %v6945_v7 = vadd.f32 %v5014_v27, %v6888_v31 }
 0x246   : > { %v4934_v38 = vpop.f32.mrb[99].mxu0 }
 0x247   : > { %v6948_v36 = vadd.f32 %v4932_v53, %v6813_v46  ;;  %v4935_v10 = vadd.f32 %v4934_v38, %v4933_v16  ;;  %v6951_v44 = vadd.f32 %v5017_v19, %v6894_v12 }
 0x249   : > { %v6954_v62 = vadd.f32 %v4935_v10, %v6819_v4  ;;  %v5018_v26 = vpop.f32.mrb[112].mxu1 }
 0x24a   : > { %v5019_v43 = vpop.f32.mrb[113].mxu1 }
 0x24b   : > { %v4936_v6 = vpop.f32.mrb[100].mxu0  ;;  %v5020_v41 = vadd.f32 %v5019_v43, %v5018_v26  ;;  %v5021_v24 = vpop.f32.mrb[114].mxu1 }
 0x24c   : > { %v4937_v18 = vpop.f32.mrb[101].mxu0  ;;  %v5022_v54 = vpop.f32.mrb[115].mxu1 }
 0x24d   : > { %v4938_v31 = vadd.f32 %v4937_v18, %v4936_v6  ;;  %v4939_v20 = vpop.f32.mrb[102].mxu0  ;;  %v5023_v48 = vadd.f32 %v5022_v54, %v5021_v24  ;;  %v6957_v46 = vadd.f32 %v5020_v41, %v6900_v15 }
 0x24e   : > { %v4940_v61 = vpop.f32.mrb[103].mxu0 }
 0x24f   : > { %v6960_v12 = vadd.f32 %v4938_v31, %v6825_v60  ;;  %v4941_v3 = vadd.f32 %v4940_v61, %v4939_v20  ;;  %v6963_v4 = vadd.f32 %v5023_v48, %v6906_v56 }
 0x251   : > { %v6966_v57 = vadd.f32 %v4941_v3, %v6831_v42  ;;  %v5024_v32 = vpop.f32.mrb[116].mxu1 }
 0x252   : > { %v5025_v40 = vpop.f32.mrb[117].mxu1 }
 0x253   : > { %v4942_v59 = vpop.f32.mrb[104].mxu0  ;;  %v5026_v34 = vadd.f32 %v5025_v40, %v5024_v32  ;;  %v5027_v23 = vpop.f32.mrb[118].mxu1 }
 0x254   : > { %v4943_v28 = vpop.f32.mrb[105].mxu0  ;;  %v5028_v2 = vpop.f32.mrb[119].mxu1 }
 0x255   : > { %v4944_v15 = vadd.f32 %v4943_v28, %v4942_v59  ;;  %v4945_v27 = vpop.f32.mrb[106].mxu0  ;;  %v5029_v29 = vadd.f32 %v5028_v2, %v5027_v23  ;;  %v6969_v60 = vadd.f32 %v5026_v34, %v6912_v33 }
 0x256   : > { %v4946_v25 = vpop.f32.mrb[107].mxu0 }
 0x257   : > { %v6972_v56 = vadd.f32 %v4944_v15, %v6837_v22  ;;  %v4947_v0 = vadd.f32 %v4946_v25, %v4945_v27  ;;  %v6975_v42 = vadd.f32 %v5029_v29, %v6918_v39 }
 0x259   : > { %v6978_v53 = vadd.f32 %v4947_v0, %v6843_v30  ;;  %v5030_v16 = vpop.f32.mrb[120].mxu1 }
 0x25a   : > { %v5031_v19 = vpop.f32.mrb[121].mxu1 }
 0x25b   : > { %v4948_v38 = vpop.f32.mrb[108].mxu0  ;;  %v5032_v10 = vadd.f32 %v5031_v19, %v5030_v16  ;;  %v5033_v26 = vpop.f32.mrb[122].mxu1 }
 0x25c   : > { %v4949_v43 = vpop.f32.mrb[109].mxu0  ;;  %v5034_v6 = vpop.f32.mrb[123].mxu1 }
 0x25d   : > { %v4950_v33 = vadd.f32 %v4949_v43, %v4948_v38  ;;  %v4951_v41 = vpop.f32.mrb[110].mxu0  ;;  %v5035_v24 = vadd.f32 %v5034_v6, %v5033_v26  ;;  %v6981_v22 = vadd.f32 %v5032_v10, %v6924_v13 }
 0x25e   : > { %v4952_v18 = vpop.f32.mrb[111].mxu0 }
 0x25f   : > { %v6984_v39 = vadd.f32 %v4950_v33, %v6849_v50  ;;  %v4953_v54 = vadd.f32 %v4952_v18, %v4951_v41  ;;  %v6987_v30 = vadd.f32 %v5035_v24, %v6930_v14 }
 0x261   : > { %v6990_v31 = vadd.f32 %v4953_v54, %v6855_v1  ;;  %v5036_v20 = vpop.f32.mrb[124].mxu1 }
 0x262   : > { %v5037_v48 = vpop.f32.mrb[125].mxu1 }
 0x263   : > { %v5108_v61 = vpop.f32.mrb[112].mxu0  ;;  %v5038_v3 = vadd.f32 %v5037_v48, %v5036_v20  ;;  %v5039_v32 = vpop.f32.mrb[126].mxu1 }
 0x264   : > { %v3634_v13 = vadd.f32 %v5108_v61, %v6873_v8  ;;  %v3625_v40 = vpop.f32.mrb[113].mxu0  ;;  %v5040_v59 = vpop.f32.mrb[127].mxu1 }
 0x265   : > { %v3626_v50 = vadd.f32 %v3625_v40, %v6861_v58  ;;  %v5109_v34 = vpop.f32.mrb[114].mxu0  ;;  %v5041_v23 = vadd.f32 %v5040_v59, %v5039_v32  ;;  %v6995_v14 = vadd.f32 %v5038_v3, %v6936_v17 }
 0x266   : > { %v3637_v28 = vadd.f32 %v5109_v34, %v6879_v21  ;;  %v3628_v1 = vpop.f32.mrb[115].mxu0  ;;  %v3792_v0 = vmul.f32 %v3634_v13, %v3634_v13 }
 0x267   : > { %v3629_v8 = vadd.f32 %v3628_v1, %v6867_v9  ;;  %v7007_v58 = vadd.f32 %v5041_v23, %v6942_v55  ;;  %v3790_v15 = vmul.f32 %v3626_v50, %v3626_v50 }
 0x268   : > { %v4516_v2 = vpack.c.bf16 %v3637_v28, %v3634_v13  ;;  %v3793_v43 = vmul.f32 %v3637_v28, %v3637_v28 }
 0x269   : > { %v3752_v17 = vadd.f32 %v3629_v8, %v3626_v50  ;;  %v3791_v27 = vmul.f32 %v3629_v8, %v3629_v8  ;;  %v4511_v29 = vpack.c.bf16 %v3629_v8, %v3626_v50  ;;  %v5042_v21 = vpop.f32.mrb[128].mxu1 }
 0x26a   : > { %4603 = vst [vmem:[%s7003_s23 + $0x8] sm:$0xff] %v4516_v2   ;;  %v5043_v25 = vpop.f32.mrb[129].mxu1 }
 0x26b   : > { %v3753_v16 = vadd.f32 %v3752_v17, %v3634_v13  ;;  %v3822_v19 = vadd.f32 %v3791_v27, %v3790_v15  ;;  %4512 = vst [vmem:[%s7003_s23] sm:$0xff] %v4511_v29   ;;  %v5112_v38 = vpop.f32.mrb[116].mxu0  ;;  %v5044_v10 = vadd.f32 %v5043_v25, %v5042_v21  ;;  %v5045_v26 = vpop.f32.mrb[130].mxu1 }
 0x26c   : > { %v3650_v9 = vadd.f32 %v5112_v38, %v6897_v11  ;;  %v3641_v55 = vpop.f32.mrb[117].mxu0  ;;  %v5046_v6 = vpop.f32.mrb[131].mxu1 }
 0x26d   : > { %v3823_v33 = vadd.f32 %v3822_v19, %v3792_v0  ;;  %v3642_v41 = vadd.f32 %v3641_v55, %v6885_v47  ;;  %v3754_v24 = vadd.f32 %v3753_v16, %v3637_v28  ;;  %v5113_v18 = vpop.f32.mrb[118].mxu0  ;;  %v5047_v54 = vadd.f32 %v5046_v6, %v5045_v26 }
 0x26e   : > { %v3653_v20 = vadd.f32 %v5113_v18, %v6903_v63  ;;  %v3644_v48 = vpop.f32.mrb[119].mxu0  ;;  %v7015_v61 = vadd.f32 %v5044_v10, %v6948_v36  ;;  %v3796_v1 = vmul.f32 %v3650_v9, %v3650_v9 }
 0x26f   : > { %v3755_v3 = vadd.f32 %v3754_v24, %v3642_v41  ;;  %v3794_v32 = vmul.f32 %v3642_v41, %v3642_v41  ;;  %v3824_v13 = vadd.f32 %v3823_v33, %v3793_v43  ;;  %v3645_v11 = vadd.f32 %v3644_v48, %v6891_v49 }
 0x270   : > { %v4526_v40 = vpack.c.bf16 %v3653_v20, %v3650_v9  ;;  %v7019_v59 = vadd.f32 %v5047_v54, %v6954_v62  ;;  %v3797_v27 = vmul.f32 %v3653_v20, %v3653_v20 }
 0x271   : > { %v3825_v47 = vadd.f32 %v3824_v13, %v3794_v32  ;;  %v3756_v50 = vadd.f32 %v3755_v3, %v3645_v11  ;;  %v3795_v34 = vmul.f32 %v3645_v11, %v3645_v11  ;;  %v4521_v23 = vpack.c.bf16 %v3645_v11, %v3642_v41  ;;  %v5048_v28 = vpop.f32.mrb[132].mxu1 }
 0x272   : > { %4605 = vst [vmem:[%s7003_s23 + $0x18] sm:$0xff] %v4526_v40   ;;  %v5049_v63 = vpop.f32.mrb[133].mxu1 }
 0x273   : > { %v3757_v36 = vadd.f32 %v3756_v50, %v3650_v9  ;;  %v3826_v8 = vadd.f32 %v3825_v47, %v3795_v34  ;;  %4604 = vst [vmem:[%s7003_s23 + $0x10] sm:$0xff] %v4521_v23   ;;  %v5116_v2 = vpop.f32.mrb[120].mxu0  ;;  %v5050_v15 = vadd.f32 %v5049_v63, %v5048_v28  ;;  %v5051_v17 = vpop.f32.mrb[134].mxu1 }
 0x274   : > { %v3666_v49 = vadd.f32 %v5116_v2, %v6921_v35  ;;  %v3657_v29 = vpop.f32.mrb[121].mxu0  ;;  %v5052_v62 = vpop.f32.mrb[135].mxu1 }
 0x275   : > { %v3827_v21 = vadd.f32 %v3826_v8, %v3796_v1  ;;  %v3658_v25 = vadd.f32 %v3657_v29, %v6909_v45  ;;  %v3758_v0 = vadd.f32 %v3757_v36, %v3653_v20  ;;  %v5117_v16 = vpop.f32.mrb[122].mxu0  ;;  %v7026_v19 = vadd.f32 %v5050_v15, %v6960_v12 }
 0x276   : > { %v3669_v38 = vadd.f32 %v5117_v16, %v6927_v51  ;;  %v3660_v10 = vpop.f32.mrb[123].mxu0  ;;  %v5053_v26 = vadd.f32 %v5052_v62, %v5051_v17  ;;  %v3800_v51 = vmul.f32 %v3666_v49, %v3666_v49 }
 0x277   : > { %v3759_v43 = vadd.f32 %v3758_v0, %v3658_v25  ;;  %v3798_v9 = vmul.f32 %v3658_v25, %v3658_v25  ;;  %v3828_v55 = vadd.f32 %v3827_v21, %v3797_v27  ;;  %v3661_v35 = vadd.f32 %v3660_v10, %v6915_v5 }
 0x278   : > { %v4536_v6 = vpack.c.bf16 %v3669_v38, %v3666_v49  ;;  %v7031_v33 = vadd.f32 %v5053_v26, %v6966_v57  ;;  %v3801_v11 = vmul.f32 %v3669_v38, %v3669_v38 }
 0x279   : > { %v3829_v45 = vadd.f32 %v3828_v55, %v3798_v9  ;;  %v3760_v41 = vadd.f32 %v3759_v43, %v3661_v35  ;;  %v3799_v24 = vmul.f32 %v3661_v35, %v3661_v35  ;;  %v4531_v18 = vpack.c.bf16 %v3661_v35, %v3658_v25  ;;  %v5054_v12 = vpop.f32.mrb[136].mxu1 }
 0x27a   : > { %4607 = vst [vmem:[%s7003_s23 + $0x28] sm:$0xff] %v4536_v6   ;;  %v5055_v54 = vpop.f32.mrb[137].mxu1 }
 0x27b   : > { %v3761_v20 = vadd.f32 %v3760_v41, %v3666_v49  ;;  %v3830_v48 = vadd.f32 %v3829_v45, %v3799_v24  ;;  %4606 = vst [vmem:[%s7003_s23 + $0x20] sm:$0xff] %v4531_v18   ;;  %v5120_v3 = vpop.f32.mrb[124].mxu0  ;;  %v5056_v32 = vadd.f32 %v5055_v54, %v5054_v12  ;;  %v5057_v13 = vpop.f32.mrb[138].mxu1 }
 0x27c   : > { %v3682_v5 = vadd.f32 %v5120_v3, %v6945_v7  ;;  %v3673_v40 = vpop.f32.mrb[125].mxu0  ;;  %v5058_v57 = vpop.f32.mrb[139].mxu1 }
 0x27d   : > { %v3831_v47 = vadd.f32 %v3830_v48, %v3800_v51  ;;  %v3674_v50 = vadd.f32 %v3673_v40, %v6933_v52  ;;  %v3762_v34 = vadd.f32 %v3761_v20, %v3669_v38  ;;  %v5121_v23 = vpop.f32.mrb[126].mxu0  ;;  %v5059_v28 = vadd.f32 %v5058_v57, %v5057_v13 }
 0x27e   : > { %v3685_v63 = vadd.f32 %v5121_v23, %v6951_v44  ;;  %v3676_v1 = vpop.f32.mrb[127].mxu0  ;;  %v7039_v36 = vadd.f32 %v5056_v32, %v6972_v56  ;;  %v3804_v25 = vmul.f32 %v3682_v5, %v3682_v5 }
 0x27f   : > { %v3763_v8 = vadd.f32 %v3762_v34, %v3674_v50  ;;  %v3802_v2 = vmul.f32 %v3674_v50, %v3674_v50  ;;  %v3832_v15 = vadd.f32 %v3831_v47, %v3801_v11  ;;  %v3677_v7 = vadd.f32 %v3676_v1, %v6939_v37 }
 0x280   : > { %v4546_v17 = vpack.c.bf16 %v3685_v63, %v3682_v5  ;;  %v7043_v27 = vadd.f32 %v5059_v28, %v6978_v53  ;;  %v3805_v26 = vmul.f32 %v3685_v63, %v3685_v63 }
 0x281   : > { %v3833_v52 = vadd.f32 %v3832_v15, %v3802_v2  ;;  %v3764_v49 = vadd.f32 %v3763_v8, %v3677_v7  ;;  %v3803_v29 = vmul.f32 %v3677_v7, %v3677_v7  ;;  %v4541_v62 = vpack.c.bf16 %v3677_v7, %v3674_v50  ;;  %v5060_v21 = vpop.f32.mrb[140].mxu1 }
 0x282   : > { %4609 = vst [vmem:[%s7003_s23 + $0x38] sm:$0xff] %v4546_v17   ;;  %v5061_v44 = vpop.f32.mrb[141].mxu1 }
 0x283   : > { %v3765_v56 = vadd.f32 %v3764_v49, %v3682_v5  ;;  %v3834_v0 = vadd.f32 %v3833_v52, %v3803_v29  ;;  %4608 = vst [vmem:[%s7003_s23 + $0x30] sm:$0xff] %v4541_v62   ;;  %v5124_v16 = vpop.f32.mrb[128].mxu0  ;;  %v5062_v38 = vadd.f32 %v5061_v44, %v5060_v21  ;;  %v5063_v10 = vpop.f32.mrb[142].mxu1 }
 0x284   : > { %v3698_v37 = vadd.f32 %v5124_v16, %v6969_v60  ;;  %v3689_v43 = vpop.f32.mrb[129].mxu0  ;;  %v5064_v53 = vpop.f32.mrb[143].mxu1 }
 0x285   : > { %v3835_v9 = vadd.f32 %v3834_v0, %v3804_v25  ;;  %v3690_v55 = vadd.f32 %v3689_v43, %v6957_v46  ;;  %v3766_v35 = vadd.f32 %v3765_v56, %v3685_v63  ;;  %v5125_v6 = vpop.f32.mrb[130].mxu0  ;;  %v7050_v45 = vadd.f32 %v5062_v38, %v6984_v39 }
 0x286   : > { %v3701_v41 = vadd.f32 %v5125_v6, %v6975_v42  ;;  %v3692_v24 = vpop.f32.mrb[131].mxu0  ;;  %v5065_v18 = vadd.f32 %v5064_v53, %v5063_v10  ;;  %v3808_v39 = vmul.f32 %v3698_v37, %v3698_v37 }
 0x287   : > { %v3767_v12 = vadd.f32 %v3766_v35, %v3690_v55  ;;  %v3806_v54 = vmul.f32 %v3690_v55, %v3690_v55  ;;  %v3836_v51 = vadd.f32 %v3835_v9, %v3805_v26  ;;  %v3693_v60 = vadd.f32 %v3692_v24, %v6963_v4 }
 0x288   : > { %v4556_v20 = vpack.c.bf16 %v3701_v41, %v3698_v37  ;;  %v7055_v48 = vadd.f32 %v5065_v18, %v6990_v31  ;;  %v3809_v47 = vmul.f32 %v3701_v41, %v3701_v41 }
 0x289   : > { %v3837_v46 = vadd.f32 %v3836_v51, %v3806_v54  ;;  %v3768_v3 = vadd.f32 %v3767_v12, %v3693_v60  ;;  %v3807_v32 = vmul.f32 %v3693_v60, %v3693_v60  ;;  %v4551_v13 = vpack.c.bf16 %v3693_v60, %v3690_v55 }
 0x28a   : > { %4611 = vst [vmem:[%s7003_s23 + $0x48] sm:$0xff] %v4556_v20  }
 0x28b   : > { %v3769_v11 = vadd.f32 %v3768_v3, %v3698_v37  ;;  %v3838_v42 = vadd.f32 %v3837_v46, %v3807_v32  ;;  %4610 = vst [vmem:[%s7003_s23 + $0x40] sm:$0xff] %v4551_v13   ;;  %v5128_v5 = vpop.f32.mrb[132].mxu0 }
 0x28c   : > { %v3714_v40 = vadd.f32 %v5128_v5, %v6995_v14  ;;  %v3705_v57 = vpop.f32.mrb[133].mxu0 }
 0x28d   : > { %v3839_v4 = vadd.f32 %v3838_v42, %v3808_v39  ;;  %v3706_v50 = vadd.f32 %v3705_v57, %v6981_v22  ;;  %v3770_v31 = vadd.f32 %v3769_v11, %v3701_v41  ;;  %v5129_v34 = vpop.f32.mrb[134].mxu0 }
 0x28e   : > { %v3717_v23 = vadd.f32 %v5129_v34, %v7007_v58  ;;  %v3708_v28 = vpop.f32.mrb[135].mxu0  ;;  %v3812_v49 = vmul.f32 %v3714_v40, %v3714_v40 }
 0x28f   : > { %v3771_v63 = vadd.f32 %v3770_v31, %v3706_v50  ;;  %v3810_v1 = vmul.f32 %v3706_v50, %v3706_v50  ;;  %v3840_v8 = vadd.f32 %v3839_v4, %v3809_v47  ;;  %v3709_v2 = vadd.f32 %v3708_v28, %v6987_v30 }
 0x290   : > { %v4566_v15 = vpack.c.bf16 %v3717_v23, %v3714_v40  ;;  %v3813_v44 = vmul.f32 %v3717_v23, %v3717_v23 }
 0x291   : > { %v3841_v7 = vadd.f32 %v3840_v8, %v3810_v1  ;;  %v3772_v14 = vadd.f32 %v3771_v63, %v3709_v2  ;;  %v3811_v17 = vmul.f32 %v3709_v2, %v3709_v2  ;;  %v4561_v52 = vpack.c.bf16 %v3709_v2, %v3706_v50 }
 0x292   : > { %4613 = vst [vmem:[%s7003_s23 + $0x58] sm:$0xff] %v4566_v15  }
 0x293   : > { %v3773_v29 = vadd.f32 %v3772_v14, %v3714_v40  ;;  %v3842_v22 = vadd.f32 %v3841_v7, %v3811_v17  ;;  %4612 = vst [vmem:[%s7003_s23 + $0x50] sm:$0xff] %v4561_v52   ;;  %v5132_v62 = vpop.f32.mrb[136].mxu0 }
 0x294   : > { %v3730_v21 = vadd.f32 %v5132_v62, %v7026_v19  ;;  %v3721_v58 = vpop.f32.mrb[137].mxu0 }
 0x295   : > { %v3843_v25 = vadd.f32 %v3842_v22, %v3812_v49  ;;  %v3722_v56 = vadd.f32 %v3721_v58, %v7015_v61  ;;  %v3774_v30 = vadd.f32 %v3773_v29, %v3717_v23  ;;  %v5133_v0 = vpop.f32.mrb[138].mxu0 }
 0x296   : > { %v3733_v16 = vadd.f32 %v5133_v0, %v7031_v33  ;;  %v3724_v38 = vpop.f32.mrb[139].mxu0  ;;  %v3816_v53 = vmul.f32 %v3730_v21, %v3730_v21 }
 0x297   : > { %v3775_v10 = vadd.f32 %v3774_v30, %v3722_v56  ;;  %v3814_v26 = vmul.f32 %v3722_v56, %v3722_v56  ;;  %v3844_v37 = vadd.f32 %v3843_v25, %v3813_v44  ;;  %v3725_v43 = vadd.f32 %v3724_v38, %v7019_v59 }
 0x298   : > { %v4576_v9 = vpack.c.bf16 %v3733_v16, %v3730_v21  ;;  %v3817_v41 = vmul.f32 %v3733_v16, %v3733_v16 }
 0x299   : > { %v3845_v19 = vadd.f32 %v3844_v37, %v3814_v26  ;;  %v3776_v55 = vadd.f32 %v3775_v10, %v3725_v43  ;;  %v3815_v35 = vmul.f32 %v3725_v43, %v3725_v43  ;;  %v4571_v6 = vpack.c.bf16 %v3725_v43, %v3722_v56 }
 0x29a   : > { %4615 = vst [vmem:[%s7003_s23 + $0x68] sm:$0xff] %v4576_v9  }
 0x29b   : > { %v3777_v61 = vadd.f32 %v3776_v55, %v3730_v21  ;;  %v3846_v24 = vadd.f32 %v3845_v19, %v3815_v35  ;;  %4614 = vst [vmem:[%s7003_s23 + $0x60] sm:$0xff] %v4571_v6   ;;  %v5136_v18 = vpop.f32.mrb[140].mxu0 }
 0x29c   : > { %v3737_v33 = vpop.f32.mrb[141].mxu0  ;;  %v3746_v12 = vadd.f32 %v5136_v18, %v7050_v45 }
 0x29d   : > { %v3847_v54 = vadd.f32 %v3846_v24, %v3816_v53  ;;  %v3738_v51 = vadd.f32 %v3737_v33, %v7039_v36  ;;  %v3778_v59 = vadd.f32 %v3777_v61, %v3733_v16  ;;  %v5137_v60 = vpop.f32.mrb[142].mxu0 }
 0x29e   : > { %v3740_v20 = vpop.f32.mrb[143].mxu0  ;;  %v3749_v46 = vadd.f32 %v5137_v60, %v7055_v48  ;;  %v3820_v11 = vmul.f32 %v3746_v12, %v3746_v12 }
 0x29f   : > { %v3779_v3 = vadd.f32 %v3778_v59, %v3738_v51  ;;  %v3818_v32 = vmul.f32 %v3738_v51, %v3738_v51  ;;  %v3848_v13 = vadd.f32 %v3847_v54, %v3817_v41  ;;  %v3741_v39 = vadd.f32 %v3740_v20, %v7043_v27 }
 0x2a0   : > { %v4586_v42 = vpack.c.bf16 %v3749_v46, %v3746_v12  ;;  %v3821_v4 = vmul.f32 %v3749_v46, %v3749_v46 }
 0x2a1   : > { %v3849_v5 = vadd.f32 %v3848_v13, %v3818_v32  ;;  %v3780_v40 = vadd.f32 %v3779_v3, %v3741_v39  ;;  %v3819_v45 = vmul.f32 %v3741_v39, %v3741_v39  ;;  %v4581_v57 = vpack.c.bf16 %v3741_v39, %v3738_v51 }
 0x2a2   : > { %4617 = vst [vmem:[%s7003_s23 + $0x78] sm:$0xff] %v4586_v42  }
 0x2a3   : > { %v3850_v47 = vadd.f32 %v3849_v5, %v3819_v45  ;;  %4616 = vst [vmem:[%s7003_s23 + $0x70] sm:$0xff] %v4581_v57   ;;  %v3781_v36 = vadd.f32 %v3780_v40, %v3746_v12 }
 0x2a5   : > { %v3851_v50 = vadd.f32 %v3850_v47, %v3820_v11  ;;  %v3782_v48 = vadd.f32 %v3781_v36, %v3749_v46 }
 0x2a7   : > { %v3783_v31 = vrot.slane %v3782_v48, 4  ;;  %v3852_v34 = vadd.f32 %v3851_v50, %v3821_v4 }
 0x2a9   : > { %v3784_v23 = vadd.f32 %v3783_v31, %v3782_v48  ;;  %v3853_v28 = vrot.slane %v3852_v34, 4 }
 0x2ab   : > { %v3785_v27 = vrot.slane %v3784_v23, 2  ;;  %v3854_v63 = vadd.f32 %v3853_v28, %v3852_v34 }
 0x2ad   : > { %v3786_v1 = vadd.f32 %v3785_v27, %v3784_v23  ;;  %v3855_v8 = vrot.slane %v3854_v63, 2 }
 0x2af   : > { %v3787_v2 = vrot.slane %v3786_v1, 1  ;;  %v3856_v15 = vadd.f32 %v3855_v8, %v3854_v63 }
 0x2b1   : > { %v3788_v7 = vadd.f32 %v3787_v2, %v3786_v1  ;;  %v3857_v14 = vrot.slane %v3856_v15, 1 }
 0x2b3   : > { %3789 = vst [vmem:[%s265_s25] sm:$0x1] %v3788_v7  ;;  %v3858_v17 = vadd.f32 %v3857_v14, %v3856_v15 }
 0x2b5   : > { %3859 = vst [vmem:[%s268_s28] sm:$0x1] %v3858_v17 }
 0x2b6 PF: > { %s17_s21 = sadd.s32 1, %s5340_s21  }
 0x2b7   : > { %p14_p4 = scmp.ge.s32.totalorder %s17_s21, 4  }
 0x2b9   :  { %16 = sbr.rel (!%p14_p4) target bundleno = 1 (0x1), region = 91 }

// kernel: resblock_forward.3
= control target key start
LH: loop header
LB: loop body
LE: loop exit
PB: predicated region body
PF: predicated region fallthrough
CT: control target
= control target key end

     0   :  { %s5577_s21 = smov 0   ;;  %s7171_s0 = inlined_call_operand.vmem [shape: bf16[2,16,16,128], index: 0, kind: input, shape index: {}]   ;;  %s7172_s1 = inlined_call_operand.vmem [shape: bf16[1152,256], index: 1, kind: input, shape index: {}]   ;;  %s7173_s2 = inlined_call_operand.vmem [shape: f32[1,128], index: 2, kind: input, shape index: {}]   ;;  %s7174_s3 = inlined_call_operand.vmem [shape: bf16[2,16,16,128], index: 3, kind: output, shape index: {0}]   ;;  %s7175_s4 = inlined_call_operand.vmem [shape: bf16[2,16,16,128], index: 4, kind: output, shape index: {1}]   ;;  %s7176_s5 = inlined_call_operand.vmem [shape: f32[2,1,128], index: 5, kind: output, shape index: {2}]   ;;  %s7177_s6 = inlined_call_operand.vmem [shape: f32[2,1,128], index: 6, kind: output, shape index: {3}]  }
   0x1 LB: > { %s4419_s22 = sadd.s32 4294967295, %s5539_s21   ;;  %p4423_p0 = scmp.ge.s32.totalorder %s5539_s21, 1  ;;  %s5539_s21 = sphi %s5577_s21, %s17_s21  }
   0x2   : > { %p219_p1 = scmp.lt.s32.totalorder %s5539_s21, 3 }
   0x4   : > { %p220_p2 = pnand %p4423_p0, %p219_p1 }
   0x6   : > { %223 = sbr.rel (%p220_p2) target bundleno = 647 (0x287), region = 32 }
   0xd   : > { %v5267_v0 = vld [vmem:[%s7172_s1 + $0x4] ss:$8 sps:$4 sm:$0xff]   ;;  %v7178_v2 = vmov 0   ;;  %v5271_v3 = vld [vmem:[%s7172_s1] ss:$8 sps:$4 sm:$0xff]   ;;  %p260_p3 = scmp.lt.s32.totalorder %s4419_s22, 1 }
   0xe   : > { %v5269_v1 = vld [vmem:[%s7172_s1 + $0x204] ss:$8 sps:$4 sm:$0xff]   ;;  %314 = vst [vmem:[#allocation2] sm:$0xf] %v7178_v2  ;;  %315 = vst [vmem:[#allocation2 + $0x4] sm:$0xf] %v7178_v2  ;;  %2849 = vmatprep.subr.bf16.mxu1 %v5267_v0 }
   0xf   : > { %316 = vst [vmem:[#allocation2 + $0x8] sm:$0xf] %v7178_v2  ;;  %317 = vst [vmem:[#allocation2 + $0xc] sm:$0xf] %v7178_v2  ;;  %v5272_v4 = vld [vmem:[%s7172_s1 + $0x200] ss:$8 sps:$4 sm:$0xff]   ;;  %3235 = vmatprep.subr.bf16.mxu0 %v5269_v1  ;;  %2850 = vmatpush1.bf16.msra.mxu1 %v5271_v3 }
  0x10   : > { %318 = vst [vmem:[#allocation2 + $0x10] sm:$0xf] %v7178_v2  ;;  %319 = vst [vmem:[#allocation2 + $0x14] sm:$0xf] %v7178_v2  ;;  %v5273_v5 = vld [vmem:[%s7172_s1 + $0x14] ss:$8 sps:$4 sm:$0xff]   ;;  %3236 = vmatpush1.bf16.msra.mxu0 %v5272_v4 }
  0x11   : > { %320 = vst [vmem:[#allocation2 + $0x18] sm:$0xf] %v7178_v2  ;;  %321 = vst [vmem:[#allocation2 + $0x1c] sm:$0xf] %v7178_v2  ;;  %v5275_v6 = vld [vmem:[%s7172_s1 + $0x214] ss:$8 sps:$4 sm:$0xff]   ;;  %2851 = vmatprep.subr.bf16.mxu1 %v5273_v5 }
  0x12   : > { %322 = vst [vmem:[#allocation2 + $0x20] sm:$0xf] %v7178_v2  ;;  %323 = vst [vmem:[#allocation2 + $0x24] sm:$0xf] %v7178_v2  ;;  %v5277_v7 = vld [vmem:[%s7172_s1 + $0x10] ss:$8 sps:$4 sm:$0xff]   ;;  %3237 = vmatprep.subr.bf16.mxu0 %v5275_v6 }
  0x13   : > { %324 = vst [vmem:[#allocation2 + $0x28] sm:$0xf] %v7178_v2  ;;  %325 = vst [vmem:[#allocation2 + $0x2c] sm:$0xf] %v7178_v2  ;;  %v5278_v8 = vld [vmem:[%s7172_s1 + $0x210] ss:$8 sps:$4 sm:$0xff]   ;;  %2852 = vmatpush1.bf16.msra.mxu1 %v5277_v7 }
  0x14   : > { %326 = vst [vmem:[#allocation2 + $0x30] sm:$0xf] %v7178_v2  ;;  %327 = vst [vmem:[#allocation2 + $0x34] sm:$0xf] %v7178_v2  ;;  %v5279_v9 = vld [vmem:[%s7172_s1 + $0x24] ss:$8 sps:$4 sm:$0xff]   ;;  %3238 = vmatpush1.bf16.msra.mxu0 %v5278_v8 }
  0x15   : > { %328 = vst [vmem:[#allocation2 + $0x38] sm:$0xf] %v7178_v2  ;;  %329 = vst [vmem:[#allocation2 + $0x3c] sm:$0xf] %v7178_v2  ;;  %v5281_v10 = vld [vmem:[%s7172_s1 + $0x224] ss:$8 sps:$4 sm:$0xff]   ;;  %2853 = vmatprep.subr.bf16.mxu1 %v5279_v9 }
  0x16   : > { %330 = vst [vmem:[#allocation2 + $0x40] sm:$0xf] %v7178_v2  ;;  %331 = vst [vmem:[#allocation2 + $0x44] sm:$0xf] %v7178_v2  ;;  %v5283_v11 = vld [vmem:[%s7172_s1 + $0x20] ss:$8 sps:$4 sm:$0xff]   ;;  %3239 = vmatprep.subr.bf16.mxu0 %v5281_v10 }
  0x17   : > { %332 = vst [vmem:[#allocation2 + $0x48] sm:$0xf] %v7178_v2  ;;  %333 = vst [vmem:[#allocation2 + $0x4c] sm:$0xf] %v7178_v2  ;;  %v5284_v12 = vld [vmem:[%s7172_s1 + $0x220] ss:$8 sps:$4 sm:$0xff]   ;;  %2854 = vmatpush1.bf16.msra.mxu1 %v5283_v11 }
  0x18   : > { %334 = vst [vmem:[#allocation2 + $0x50] sm:$0xf] %v7178_v2  ;;  %335 = vst [vmem:[#allocation2 + $0x54] sm:$0xf] %v7178_v2  ;;  %v5285_v13 = vld [vmem:[%s7172_s1 + $0x34] ss:$8 sps:$4 sm:$0xff]   ;;  %3240 = vmatpush1.bf16.msra.mxu0 %v5284_v12 }
  0x19   : > { %336 = vst [vmem:[#allocation2 + $0x58] sm:$0xf] %v7178_v2  ;;  %337 = vst [vmem:[#allocation2 + $0x5c] sm:$0xf] %v7178_v2  ;;  %v5287_v14 = vld [vmem:[%s7172_s1 + $0x234] ss:$8 sps:$4 sm:$0xff]   ;;  %2855 = vmatprep.subr.bf16.mxu1 %v5285_v13 }
  0x1a   : > { %338 = vst [vmem:[#allocation2 + $0x60] sm:$0xf] %v7178_v2  ;;  %339 = vst [vmem:[#allocation2 + $0x64] sm:$0xf] %v7178_v2  ;;  %v5289_v15 = vld [vmem:[%s7172_s1 + $0x30] ss:$8 sps:$4 sm:$0xff]   ;;  %3241 = vmatprep.subr.bf16.mxu0 %v5287_v14 }
  0x1b   : > { %340 = vst [vmem:[#allocation2 + $0x68] sm:$0xf] %v7178_v2  ;;  %341 = vst [vmem:[#allocation2 + $0x6c] sm:$0xf] %v7178_v2  ;;  %v5290_v16 = vld [vmem:[%s7172_s1 + $0x230] ss:$8 sps:$4 sm:$0xff]   ;;  %2856 = vmatpush1.bf16.msra.mxu1 %v5289_v15 }
  0x1c   : > { %342 = vst [vmem:[#allocation2 + $0x70] sm:$0xf] %v7178_v2  ;;  %343 = vst [vmem:[#allocation2 + $0x74] sm:$0xf] %v7178_v2  ;;  %v5291_v17 = vld [vmem:[%s7172_s1 + $0x44] ss:$8 sps:$4 sm:$0xff]   ;;  %3242 = vmatpush1.bf16.msra.mxu0 %v5290_v16 }
  0x1d   : > { %344 = vst [vmem:[#allocation2 + $0x78] sm:$0xf] %v7178_v2  ;;  %345 = vst [vmem:[#allocation2 + $0x7c] sm:$0xf] %v7178_v2  ;;  %v5293_v18 = vld [vmem:[%s7172_s1 + $0x244] ss:$8 sps:$4 sm:$0xff]   ;;  %2857 = vmatprep.subr.bf16.mxu1 %v5291_v17 }
  0x1e   : > { %346 = vst [vmem:[#allocation2 + $0x80] sm:$0xf] %v7178_v2  ;;  %347 = vst [vmem:[#allocation2 + $0x84] sm:$0xf] %v7178_v2  ;;  %v5295_v19 = vld [vmem:[%s7172_s1 + $0x40] ss:$8 sps:$4 sm:$0xff]   ;;  %3243 = vmatprep.subr.bf16.mxu0 %v5293_v18 }
  0x1f   : > { %348 = vst [vmem:[#allocation2 + $0x88] sm:$0xf] %v7178_v2  ;;  %349 = vst [vmem:[#allocation2 + $0x8c] sm:$0xf] %v7178_v2  ;;  %v5296_v20 = vld [vmem:[%s7172_s1 + $0x240] ss:$8 sps:$4 sm:$0xff]   ;;  %2858 = vmatpush1.bf16.msra.mxu1 %v5295_v19 }
  0x20   : > { %350 = vst [vmem:[#allocation2 + $0x90] sm:$0xf] %v7178_v2  ;;  %351 = vst [vmem:[#allocation2 + $0x94] sm:$0xf] %v7178_v2  ;;  %v5297_v21 = vld [vmem:[%s7172_s1 + $0x54] ss:$8 sps:$4 sm:$0xff]   ;;  %3244 = vmatpush1.bf16.msra.mxu0 %v5296_v20 }
  0x21   : > { %352 = vst [vmem:[#allocation2 + $0x98] sm:$0xf] %v7178_v2  ;;  %353 = vst [vmem:[#allocation2 + $0x9c] sm:$0xf] %v7178_v2  ;;  %v5299_v22 = vld [vmem:[%s7172_s1 + $0x254] ss:$8 sps:$4 sm:$0xff]   ;;  %2859 = vmatprep.subr.bf16.mxu1 %v5297_v21 }
  0x22   : > { %354 = vst [vmem:[#allocation2 + $0xa0] sm:$0xf] %v7178_v2  ;;  %355 = vst [vmem:[#allocation2 + $0xa4] sm:$0xf] %v7178_v2  ;;  %v5301_v23 = vld [vmem:[%s7172_s1 + $0x50] ss:$8 sps:$4 sm:$0xff]   ;;  %3245 = vmatprep.subr.bf16.mxu0 %v5299_v22 }
  0x23   : > { %356 = vst [vmem:[#allocation2 + $0xa8] sm:$0xf] %v7178_v2  ;;  %357 = vst [vmem:[#allocation2 + $0xac] sm:$0xf] %v7178_v2  ;;  %v5302_v24 = vld [vmem:[%s7172_s1 + $0x250] ss:$8 sps:$4 sm:$0xff]   ;;  %2860 = vmatpush1.bf16.msra.mxu1 %v5301_v23 }
  0x24   : > { %358 = vst [vmem:[#allocation2 + $0xb0] sm:$0xf] %v7178_v2  ;;  %359 = vst [vmem:[#allocation2 + $0xb4] sm:$0xf] %v7178_v2  ;;  %v5303_v25 = vld [vmem:[%s7172_s1 + $0x64] ss:$8 sps:$4 sm:$0xff]   ;;  %3246 = vmatpush1.bf16.msra.mxu0 %v5302_v24 }
  0x25   : > { %360 = vst [vmem:[#allocation2 + $0xb8] sm:$0xf] %v7178_v2  ;;  %361 = vst [vmem:[#allocation2 + $0xbc] sm:$0xf] %v7178_v2  ;;  %v5305_v26 = vld [vmem:[%s7172_s1 + $0x264] ss:$8 sps:$4 sm:$0xff]   ;;  %2861 = vmatprep.subr.bf16.mxu1 %v5303_v25 }
  0x26   : > { %362 = vst [vmem:[#allocation2 + $0xc0] sm:$0xf] %v7178_v2  ;;  %363 = vst [vmem:[#allocation2 + $0xc4] sm:$0xf] %v7178_v2  ;;  %v5307_v27 = vld [vmem:[%s7172_s1 + $0x60] ss:$8 sps:$4 sm:$0xff]   ;;  %3247 = vmatprep.subr.bf16.mxu0 %v5305_v26 }
  0x27   : > { %364 = vst [vmem:[#allocation2 + $0xc8] sm:$0xf] %v7178_v2  ;;  %365 = vst [vmem:[#allocation2 + $0xcc] sm:$0xf] %v7178_v2  ;;  %v5308_v28 = vld [vmem:[%s7172_s1 + $0x260] ss:$8 sps:$4 sm:$0xff]   ;;  %2862 = vmatpush1.bf16.msra.mxu1 %v5307_v27 }
  0x28   : > { %366 = vst [vmem:[#allocation2 + $0xd0] sm:$0xf] %v7178_v2  ;;  %367 = vst [vmem:[#allocation2 + $0xd4] sm:$0xf] %v7178_v2  ;;  %v5309_v29 = vld [vmem:[%s7172_s1 + $0x74] ss:$8 sps:$4 sm:$0xff]   ;;  %3248 = vmatpush1.bf16.msra.mxu0 %v5308_v28 }
  0x29   : > { %v5311_v30 = vld [vmem:[%s7172_s1 + $0x274] ss:$8 sps:$4 sm:$0xff]   ;;  %v5313_v31 = vld [vmem:[%s7172_s1 + $0x70] ss:$8 sps:$4 sm:$0xff]   ;;  %v5315_v33 = vld [vmem:[%s7172_s1 + $0x84] ss:$8 sps:$4 sm:$0xff]   ;;  %2863 = vmatprep.subr.bf16.mxu1 %v5309_v29 }
  0x2a   : > { %v5314_v32 = vld [vmem:[%s7172_s1 + $0x270] ss:$8 sps:$4 sm:$0xff]   ;;  %3249 = vmatprep.subr.bf16.mxu0 %v5311_v30  ;;  %v5317_v34 = vld [vmem:[%s7172_s1 + $0x284] ss:$8 sps:$4 sm:$0xff]   ;;  %v5319_v35 = vld [vmem:[%s7172_s1 + $0x80] ss:$8 sps:$4 sm:$0xff]  }
  0x2b   : > { %v5320_v36 = vld [vmem:[%s7172_s1 + $0x280] ss:$8 sps:$4 sm:$0xff]   ;;  %2864 = vmatpush1.bf16.msra.mxu1 %v5313_v31  ;;  %v5321_v37 = vld [vmem:[%s7172_s1 + $0x94] ss:$8 sps:$4 sm:$0xff]   ;;  %s7253_s22 = smov (!%p260_p3, %s4419_s22), 1  ;;  %vm1590_vm0 = vcmask 1042432  }
  0x2c   : > { %3250 = vmatpush1.bf16.msra.mxu0 %v5314_v32  ;;  %2865 = vmatprep.subr.bf16.mxu1 %v5315_v33  ;;  %v5323_v38 = vld [vmem:[%s7172_s1 + $0x294] ss:$8 sps:$4 sm:$0xff]   ;;  %v5325_v39 = vld [vmem:[%s7172_s1 + $0x90] ss:$8 sps:$4 sm:$0xff]   ;;  %v5327_v41 = vld [vmem:[%s7172_s1 + $0xa4] ss:$8 sps:$4 sm:$0xff]   ;;  %s277_s12 = scalar_lea.vmem %s7176_s5, %s7253_s22  ;;  %s280_s15 = scalar_lea.vmem %s7177_s6, %s7253_s22 }
  0x2d   : > { %3251 = vmatprep.subr.bf16.mxu0 %v5317_v34  ;;  %v5326_v40 = vld [vmem:[%s7172_s1 + $0x290] ss:$8 sps:$4 sm:$0xff]   ;;  %v5329_v42 = vld [vmem:[%s7172_s1 + $0x2a4] ss:$8 sps:$4 sm:$0xff]   ;;  %vm1019_vm1 = vsmask.f32 3328 }
  0x2e   : > { %vm1020_vm2 = vsmask.f32 7440  ;;  %vm1591_vm3 = vcmask 1046532   ;;  %s5772_s17 = sshll.u32 %s7253_s22, 7  ;;  %v5331_v43 = vld [vmem:[%s7172_s1 + $0xa0] ss:$8 sps:$4 sm:$0xff]  }
  0x2f   : > { %2866 = vmatpush1.bf16.msra.mxu1 %v5319_v35  ;;  %v5332_v44 = vld [vmem:[%s7172_s1 + $0x2a0] ss:$8 sps:$4 sm:$0xff]   ;;  %vm368_vm4 = vsmask.f32 256  ;;  %v5333_v45 = vld [vmem:[%s7172_s1 + $0xb4] ss:$8 sps:$4 sm:$0xff]   ;;  %s5790_s30 = scalar_lea.vmem %s7171_s0, %s5772_s17  ;;  %vm5815_vm8 = vmor %vm1019_vm1, %vm1020_vm2  ;;  %s7064_s7 = scalar_lea.vmem %s7174_s3, %s5772_s17 }
  0x30   : > { %3252 = vmatpush1.bf16.msra.mxu0 %v5320_v36  ;;  %2867 = vmatprep.subr.bf16.mxu1 %v5321_v37  ;;  %vm369_vm5 = vsmask.f32 4368  ;;  %v5335_v46 = vld [vmem:[%s7172_s1 + $0x2b4] ss:$8 sps:$4 sm:$0xff]   ;;  %vm693_vm6 = vsmask.f32 7938  ;;  %vm5829_vm9 = vmor %vm1590_vm0, %vm1591_vm3  ;;  %s7073_s10 = scalar_lea.vmem %s7175_s4, %s5772_s17 }
  0x31   : > { %3253 = vmatprep.subr.bf16.mxu0 %v5323_v38  ;;  %v5337_v47 = vld [vmem:[%s7172_s1 + $0xb0] ss:$8 sps:$4 sm:$0xff]   ;;  %v5798_v49 = vld [vmem:[#allocation2] sm:$0xf]  ;;  %v5339_v50 = vld [vmem:[%s7172_s1 + $0xc4] ss:$8 sps:$4 sm:$0xff]  }
  0x32   : > { %v5338_v48 = vld [vmem:[%s7172_s1 + $0x2b0] ss:$8 sps:$4 sm:$0xff]   ;;  %v5341_v51 = vld [vmem:[%s7172_s1 + $0x2c4] ss:$8 sps:$4 sm:$0xff]   ;;  %v811_v53 = vld [vmem:[#allocation2 + $0x8] sm:$0xf] }
  0x33   : > { %2868 = vmatpush1.bf16.msra.mxu1 %v5325_v39  ;;  %v5806_v52 = vld [vmem:[#allocation2 + $0x4] sm:$0xf]  ;;  %v1023_v54 = vshrl.u32 %v5798_v49, 16  ;;  %v1026_v55 = vshll.u32 %v5798_v49, 16  ;;  %v1042_v58 = vshll.u32 %v811_v53, 16  ;;  %vm692_vm7 = vcmask 1043456   ;;  %vm5843_vm11 = vmor %vm368_vm4, %vm369_vm5 }
  0x34   : > { %3254 = vmatpush1.bf16.msra.mxu0 %v5326_v40  ;;  %2869 = vmatprep.subr.bf16.mxu1 %v5327_v41  ;;  %v1032_v56 = vshll.u32 %v5806_v52, 16  ;;  %v1036_v57 = vshrl.u32 %v5806_v52, 16  ;;  %v282_v59 = vld [vmem:[%s5790_s30] sm:$0xf]  ;;  %v1595_v63 = vrot.slane %v5806_v52, 5  ;;  %v1598_v0 = vrot.slane %v811_v53, 5  ;;  %vm5849_vm12 = vmand %vm692_vm7, %vm693_vm6 }
  0x35   : > { %3255 = vmatprep.subr.bf16.mxu0 %v5329_v42  ;;  %v1025_v61 = vrot.slane %v1023_v54, 4  ;;  %v1028_v62 = vrot.slane %v1026_v55, 5  ;;  %v283_v1 = vld [vmem:[%s5790_s30 + $0x4] sm:$0xf]  ;;  %v5343_v3 = vld [vmem:[%s7172_s1 + $0xc0] ss:$8 sps:$4 sm:$0xff]  }
  0x36   : > { %v5344_v4 = vld [vmem:[%s7172_s1 + $0x2c0] ss:$8 sps:$4 sm:$0xff]   ;;  %v1034_v5 = vrot.slane %v1032_v56, 5  ;;  %v1038_v6 = vrot.slane %v1036_v57, 4  ;;  %v372_v8 = vshrl.u32 %v282_v59, 16  ;;  %vm699_vm10 = vcmask 1040384  }
  0x37   : > { %2870 = vmatpush1.bf16.msra.mxu1 %v5331_v43  ;;  %v5345_v9 = vld [vmem:[%s7172_s1 + $0xd4] ss:$8 sps:$4 sm:$0xff]   ;;  %v1029_v11 = vor.u32 %v1028_v62, %v1025_v61  ;;  %v1597_v12 = vrot.slane %v1595_v63, 4  ;;  %v375_v14 = vshll.u32 %v282_v59, 16  ;;  %v380_v15 = vshrl.u32 %v283_v1, 16  ;;  %vm5859_vm13 = vmand %vm699_vm10, %vm368_vm4 }
  0x38   : > { %3256 = vmatpush1.bf16.msra.mxu0 %v5332_v44  ;;  %2871 = vmatprep.subr.bf16.mxu1 %v5333_v45  ;;  %v5347_v10 = vld [vmem:[%s7172_s1 + $0x2d4] ss:$8 sps:$4 sm:$0xff]   ;;  %v1039_v16 = vor.u32 %v1038_v6, %v1034_v5  ;;  %v1044_v17 = vrot.slane %v1042_v58, 5  ;;  %v374_v18 = vrot.slane %v372_v8, 7  ;;  %v383_v19 = vshll.u32 %v283_v1, 16 }
  0x39   : > { %3257 = vmatprep.subr.bf16.mxu0 %v5335_v46  ;;  %v1030_v21 = vrot.slane %v1029_v11, 4  ;;  %v5855_v22 = vsel %vm5829_vm9, %v1597_v12, %v1598_v0  ;;  %v382_v23 = vrot.slane %v380_v15, 7  ;;  %v695_v24 = vld [vmem:[#allocation2 + $0xc] sm:$0xf]  ;;  %v701_v29 = vld [vmem:[#allocation2 + $0x14] sm:$0x1] }
  0x3a   : > { %v1040_v25 = vrot.slane %v1039_v16, 4  ;;  %v377_v26 = vor.u32 %v375_v14, %v374_v18  ;;  %v378_v27 = vrot.slane %v374_v18, 4  ;;  %v5349_v30 = vld [vmem:[%s7172_s1 + $0xd0] ss:$8 sps:$4 sm:$0xff]   ;;  %v5351_v35 = vld [vmem:[%s7172_s1 + $0xe4] ss:$8 sps:$4 sm:$0xff]   ;;  %v4430_v18 = vcombine.low %v5798_v49, %v5806_v52 }
  0x3b   : > { %2872 = vmatpush1.bf16.msra.mxu1 %v5337_v47  ;;  %v5350_v31 = vld [vmem:[%s7172_s1 + $0x2d0] ss:$8 sps:$4 sm:$0xff]   ;;  %v1035_v32 = vsel %vm5815_vm8, %v1030_v21, %v1034_v5  ;;  %v385_v33 = vor.u32 %v383_v19, %v382_v23  ;;  %v387_v34 = vrot.slane %v382_v23, 4  ;;  %v284_v38 = vld [vmem:[%s5790_s30 + $0x8] sm:$0xf] }
  0x3c   : > { %3258 = vmatpush1.bf16.msra.mxu0 %v5338_v48  ;;  %2873 = vmatprep.subr.bf16.mxu1 %v5339_v50  ;;  %v1045_v36 = vsel %vm5815_vm8, %v1040_v25, %v1044_v17  ;;  %v696_v37 = vsel %vm5849_vm12, %v377_v26, %v695_v24  ;;  %v285_v39 = vld [vmem:[%s5790_s30 + $0xc] sm:$0xf]  ;;  %v389_v44 = vshrl.u32 %v284_v38, 16  ;;  %v5355_v45 = vld [vmem:[%s7172_s1 + $0xe0] ss:$8 sps:$4 sm:$0xff]   ;;  %v392_v46 = vshll.u32 %v284_v38, 16 }
  0x3d   : > { %3259 = vmatprep.subr.bf16.mxu0 %v5341_v51  ;;  %v5353_v40 = vld [vmem:[%s7172_s1 + $0x2e4] ss:$8 sps:$4 sm:$0xff]   ;;  %v4448_v41 = vcombine.low %v1035_v32, %v1045_v36  ;;  %v386_v42 = vsel %vm5843_vm11, %v378_v27, %v385_v33  ;;  %697 = vst [vmem:[#allocation2 + $0xc] sm:$0xf] %v696_v37  ;;  %v702_v43 = vsel %vm5859_vm13, %v387_v34, %v701_v29  ;;  %v397_v47 = vshrl.u32 %v285_v39, 16 }
  0x3e   : > { %698 = vst [vmem:[#allocation2 + $0x10] sm:$0xf] %v386_v42  ;;  %703 = vst [vmem:[#allocation2 + $0x14] sm:$0x1] %v702_v43  ;;  %v400_v48 = vshll.u32 %v285_v39, 16  ;;  %v391_v53 = vrot.slane %v389_v44, 7 }
  0x3f   : > { %2874 = vmatpush1.bf16.msra.mxu1 %v5343_v3  ;;  %v5356_v50 = vld [vmem:[%s7172_s1 + $0x2e0] ss:$8 sps:$4 sm:$0xff]   ;;  %v5357_v51 = vld [vmem:[%s7172_s1 + $0xf4] ss:$8 sps:$4 sm:$0xff]   ;;  %2881 = vmatprep.mubr.bf16.mxu1 %v4448_v41  ;;  %v399_v54 = vrot.slane %v397_v47, 7 }
  0x40   : > { %3260 = vmatpush1.bf16.msra.mxu0 %v5344_v4  ;;  %2875 = vmatprep.subr.bf16.mxu1 %v5345_v9  ;;  %v704_v55 = vld [vmem:[#allocation2 + $0x18] sm:$0xf]  ;;  %v5359_v56 = vld [vmem:[%s7172_s1 + $0x2f4] ss:$8 sps:$4 sm:$0xff]   ;;  %v394_v57 = vor.u32 %v392_v46, %v391_v53  ;;  %v395_v58 = vrot.slane %v391_v53, 4 }
  0x41   : > { %3261 = vmatprep.subr.bf16.mxu0 %v5347_v10  ;;  %v708_v59 = vld [vmem:[#allocation2 + $0x20] sm:$0x1]  ;;  %v5361_v61 = vld [vmem:[%s7172_s1 + $0xf0] ss:$8 sps:$4 sm:$0xff]   ;;  %v402_v0 = vor.u32 %v400_v48, %v399_v54  ;;  %v404_v1 = vrot.slane %v399_v54, 4 }
  0x42   : > { %v5362_v62 = vld [vmem:[%s7172_s1 + $0x2f0] ss:$8 sps:$4 sm:$0xff]   ;;  %v287_v4 = vld [vmem:[%s5790_s30 + $0x14] sm:$0xf]  ;;  %v5366_v5 = vld [vmem:[%s7172_s1 + $0x104] ss:$8 sps:$4 sm:$0xff]   ;;  %v705_v8 = vsel %vm5849_vm12, %v394_v57, %v704_v55 }
  0x43   : > { %2876 = vmatpush1.bf16.msra.mxu1 %v5349_v30  ;;  %v286_v3 = vld [vmem:[%s5790_s30 + $0x10] sm:$0xf]  ;;  %v5369_v6 = vld [vmem:[%s7172_s1 + $0x304] ss:$8 sps:$4 sm:$0xff]   ;;  %v403_v10 = vsel %vm5843_vm11, %v395_v58, %v402_v0  ;;  %706 = vst [vmem:[#allocation2 + $0x18] sm:$0xf] %v705_v8  ;;  %v709_v11 = vsel %vm5859_vm13, %v404_v1, %v708_v59 }
  0x44   : > { %3262 = vmatpush1.bf16.msra.mxu0 %v5350_v31  ;;  %2877 = vmatprep.subr.bf16.mxu1 %v5351_v35  ;;  %v812_v9 = vld [vmem:[#allocation2 + $0xc] sm:$0xf]  ;;  %v406_v12 = vshrl.u32 %v286_v3, 16  ;;  %v414_v14 = vshrl.u32 %v287_v4, 16  ;;  %707 = vst [vmem:[#allocation2 + $0x1c] sm:$0xf] %v403_v10 }
  0x45   : > { %3263 = vmatprep.subr.bf16.mxu0 %v5353_v40  ;;  %v813_v15 = vld [vmem:[#allocation2 + $0x10] sm:$0xf]  ;;  %v814_v16 = vld [vmem:[#allocation2 + $0x14] sm:$0xf]  ;;  %v4467_v17 = vrot.slane %v812_v9, 9  ;;  %v1047_v19 = vshrl.u32 %v812_v9, 16 }
  0x46   : > { %710 = vst [vmem:[#allocation2 + $0x20] sm:$0x1] %v709_v11  ;;  %v1602_v21 = vrot.slane %v813_v15, 5  ;;  %v1605_v23 = vrot.slane %v814_v16, 5  ;;  %v1050_v24 = vshll.u32 %v812_v9, 16  ;;  %v409_v25 = vshll.u32 %v286_v3, 16 }
  0x47   : > { %2878 = vmatpush1.bf16.msra.mxu1 %v5355_v45  ;;  %v1066_v26 = vshll.u32 %v814_v16, 16  ;;  %v1049_v27 = vrot.slane %v1047_v19, 4  ;;  %v1056_v29 = vshll.u32 %v813_v15, 16  ;;  %v1060_v30 = vshrl.u32 %v813_v15, 16  ;;  %v5364_v33 = vld [vmem:[%s7172_s1 + $0x100] ss:$8 sps:$4 sm:$0xff]  }
  0x48   : > { %3264 = vmatpush1.bf16.msra.mxu0 %v5356_v50  ;;  %2879 = vmatprep.subr.bf16.mxu1 %v5357_v51  ;;  %v1603_v31 = vsel %vm5829_vm9, %v4467_v17, %v1602_v21  ;;  %v1604_v32 = vrot.slane %v1602_v21, 4  ;;  %v1052_v34 = vrot.slane %v1050_v24, 5  ;;  %v417_v35 = vshll.u32 %v287_v4, 16  ;;  %v5376_v38 = vld [vmem:[%s7172_s1 + $0x114] ss:$8 sps:$4 sm:$0xff]  }
  0x49   : > { %3265 = vmatprep.subr.bf16.mxu0 %v5359_v56  ;;  %v1058_v36 = vrot.slane %v1056_v29, 5  ;;  %v1062_v37 = vrot.slane %v1060_v30, 4  ;;  %v408_v39 = vrot.slane %v406_v12, 7  ;;  %v5929_v40 = vrot.slane %v414_v14, 7  ;;  %v5374_v44 = vld [vmem:[%s7172_s1 + $0x110] ss:$8 sps:$4 sm:$0xff]  }
  0x4a   : > { %v1606_v41 = vsel %vm5829_vm9, %v1604_v32, %v1605_v23  ;;  %v1053_v42 = vor.u32 %v1052_v34, %v1049_v27  ;;  %v5933_v43 = vcombine.low %v812_v9, %v813_v15  ;;  %v1068_v47 = vrot.slane %v1066_v26, 5  ;;  %v815_v48 = vld [vmem:[#allocation2 + $0x18] sm:$0xf]  ;;  %v5367_v59 = vld [vmem:[%s7172_s1 + $0x300] ss:$8 sps:$4 sm:$0xff]  }
  0x4b   : > { %2880 = vmatpush1.bf16.msra.mxu1 %v5361_v61  ;;  %v5938_v45 = vcombine.low %v1603_v31, %v1606_v41  ;;  %v1063_v46 = vor.u32 %v1062_v37, %v1058_v36  ;;  %v412_v50 = vrot.slane %v408_v39, 4  ;;  %v816_v53 = vld [vmem:[#allocation2 + $0x1c] sm:$0xf]  ;;  %v4468_v55 = vrot.slane %v815_v48, 9  ;;  %v5386_v1 = vld [vmem:[%s7172_s1 + $0x124] ss:$8 sps:$4 sm:$0xff]  }
  0x4c   : > { %3266 = vmatpush1.bf16.msra.mxu0 %v5362_v62  ;;  %3042 = vmatprep.subr.bf16.mxu1 %v5366_v5  ;;  %v1054_v51 = vrot.slane %v1053_v42, 4  ;;  %v411_v56 = vor.u32 %v409_v25, %v408_v39  ;;  %v419_v57 = vor.u32 %v417_v35, %v5929_v40  ;;  %v1609_v61 = vrot.slane %v816_v53, 5  ;;  %v5372_v4 = vld [vmem:[%s7172_s1 + $0x314] ss:$8 sps:$4 sm:$0xff]   ;;  %v711_v9 = vld [vmem:[#allocation2 + $0x24] sm:$0xf] }
  0x4d   : > { %3428 = vmatprep.subr.bf16.mxu0 %v5369_v6  ;;  %7217 = vst [vmem:[#allocation4_spill] sm:$0xff] %v5938_v45  ;;  %v817_v54 = vld [vmem:[#allocation2 + $0x20] sm:$0xf]  ;;  %3267 = vmatprep.mubr.bf16.mxu0 %v5938_v45  ;;  %v1064_v58 = vrot.slane %v1063_v46, 4  ;;  %v1071_v0 = vshrl.u32 %v815_v48, 16  ;;  %v1074_v5 = vshll.u32 %v815_v48, 16 }
  0x4e   : > { %2882 = vmatmul.mubr.bf16.vlgmr.msra.gmra.mrb[0].mxu1 %v4430_v18  ;;  %v1612_v62 = vrot.slane %v817_v54, 5  ;;  %v1059_v3 = vsel %vm5815_vm8, %v1054_v51, %v1058_v36  ;;  %v1080_v6 = vshll.u32 %v816_v53, 16  ;;  %v1084_v8 = vshrl.u32 %v816_v53, 16  ;;  %v715_v15 = vld [vmem:[#allocation2 + $0x2c] sm:$0x1] }
  0x4f   : > { %3043 = vmatpush1.bf16.msra.mxu1 %v5364_v33  ;;  %v1069_v10 = vsel %vm5815_vm8, %v1064_v58, %v1068_v47  ;;  %v1610_v11 = vsel %vm5829_vm9, %v4468_v55, %v1609_v61  ;;  %v1611_v12 = vrot.slane %v1609_v61, 4  ;;  %v1073_v14 = vrot.slane %v1071_v0, 4  ;;  %v288_v16 = vld [vmem:[%s5790_s30 + $0x18] sm:$0xf]  ;;  %v5384_v29 = vld [vmem:[%s7172_s1 + $0x120] ss:$8 sps:$4 sm:$0xff]  }
  0x50   : > { %3044 = vmatprep.subr.bf16.mxu1 %v5376_v38  ;;  %v4449_v17 = vcombine.low %v1059_v3, %v1069_v10  ;;  %v1076_v18 = vrot.slane %v1074_v5, 5  ;;  %v1082_v19 = vrot.slane %v1080_v6, 5  ;;  %v1086_v21 = vrot.slane %v1084_v8, 4  ;;  %v5370_v23 = vld [vmem:[%s7172_s1 + $0x310] ss:$8 sps:$4 sm:$0xff]  }
  0x51   : > { %v1613_v24 = vsel %vm5829_vm9, %v1611_v12, %v1612_v62  ;;  %v1090_v25 = vshll.u32 %v817_v54, 16  ;;  %v420_v26 = vsel %vm5843_vm11, %v412_v50, %v419_v57  ;;  %v421_v27 = vrot.slane %v5929_v40, 4  ;;  %v5379_v33 = vld [vmem:[%s7172_s1 + $0x324] ss:$8 sps:$4 sm:$0xff]   ;;  %v289_v34 = vld [vmem:[%s5790_s30 + $0x1c] sm:$0xf] }
  0x52   : > { %3268 = vmatmul.mubr.bf16.vlgmr.msra.gmra.mrb[0].mxu0 %v4449_v17  ;;  %2891 = vmatprep.mubr.bf16.mxu1 %v4449_v17  ;;  %v5969_v30 = vcombine.low %v1610_v11, %v1613_v24  ;;  %v1077_v31 = vor.u32 %v1076_v18, %v1073_v14  ;;  %v1087_v32 = vor.u32 %v1086_v21, %v1082_v19  ;;  %v423_v35 = vshrl.u32 %v288_v16, 16  ;;  %v5396_v36 = vld [vmem:[%s7172_s1 + $0x134] ss:$8 sps:$4 sm:$0xff]   ;;  %v718_v41 = vld [vmem:[#allocation2 + $0x30] sm:$0xf] }
  0x53   : > { %3045 = vmatpush1.bf16.msra.mxu1 %v5374_v44  ;;  %714 = vst [vmem:[#allocation2 + $0x28] sm:$0xf] %v420_v26  ;;  %3429 = vmatpush1.bf16.msra.mxu0 %v5367_v59  ;;  %v1092_v37 = vrot.slane %v1090_v25, 5  ;;  %v712_v38 = vsel %vm5849_vm12, %v411_v56, %v711_v9  ;;  %v716_v39 = vsel %vm5859_vm13, %v421_v27, %v715_v15  ;;  %v290_v42 = vld [vmem:[%s5790_s30 + $0x20] sm:$0xf]  ;;  %v426_v50 = vshll.u32 %v288_v16, 16 }
  0x54   : > { %3046 = vmatprep.subr.bf16.mxu1 %v5386_v1  ;;  %7218 = vst [vmem:[#allocation5_spill] sm:$0xff] %v5969_v30  ;;  %v5983_v40 = vcombine.low %v815_v48, %v816_v53  ;;  %3430 = vmatprep.subr.bf16.mxu0 %v5372_v4  ;;  %v1078_v44 = vrot.slane %v1077_v31, 4  ;;  %v1088_v46 = vrot.slane %v1087_v32, 4  ;;  %713 = vst [vmem:[#allocation2 + $0x24] sm:$0xf] %v712_v38  ;;  %v425_v47 = vrot.slane %v423_v35, 7 }
  0x55   : > { %3277 = vmatprep.mubr.bf16.mxu0 %v5969_v30  ;;  %717 = vst [vmem:[#allocation2 + $0x2c] sm:$0x1] %v716_v39  ;;  %v5988_v51 = vld [vmem:[%s5790_s30 + $0x24] sm:$0xf]  ;;  %v5377_v54 = vld [vmem:[%s7172_s1 + $0x320] ss:$8 sps:$4 sm:$0xff]  }
  0x56   : > { %2892 = vmatmul.mubr.bf16.gmra.mrb[4].mxu1 %v5933_v43  ;;  %v431_v48 = vshrl.u32 %v289_v34, 16  ;;  %v434_v53 = vshll.u32 %v289_v34, 16  ;;  %v5394_v55 = vld [vmem:[%s7172_s1 + $0x130] ss:$8 sps:$4 sm:$0xff]   ;;  %v440_v56 = vshrl.u32 %v290_v42, 16  ;;  %v443_v57 = vshll.u32 %v290_v42, 16 }
  0x57   : > { %3047 = vmatpush1.bf16.msra.mxu1 %v5384_v29  ;;  %v1083_v58 = vsel %vm5815_vm8, %v1078_v44, %v1082_v19  ;;  %v1093_v59 = vsel %vm5815_vm8, %v1088_v46, %v1092_v37  ;;  %v5382_v61 = vld [vmem:[%s7172_s1 + $0x334] ss:$8 sps:$4 sm:$0xff]   ;;  %v428_v62 = vor.u32 %v426_v50, %v425_v47  ;;  %v429_v0 = vrot.slane %v425_v47, 4  ;;  %v5406_v1 = vld [vmem:[%s7172_s1 + $0x144] ss:$8 sps:$4 sm:$0xff]   ;;  %3431 = vmatpush1.bf16.msra.mxu0 %v5370_v23 }
  0x58   : > { %3048 = vmatprep.subr.bf16.mxu1 %v5396_v36  ;;  %v6006_v3 = vcombine.low %v1083_v58, %v1093_v59  ;;  %v433_v4 = vrot.slane %v431_v48, 7  ;;  %v6008_v5 = vrot.slane %v440_v56, 7  ;;  %v448_v6 = vshrl.u32 %v5988_v51, 16  ;;  %3432 = vmatprep.subr.bf16.mxu0 %v5379_v33  ;;  %v722_v10 = vld [vmem:[#allocation2 + $0x38] sm:$0x1] }
  0x59   : > { %v4466_v8 = vrot.slane %v5798_v49, 9  ;;  %v719_v9 = vsel %vm5849_vm12, %v428_v62, %v718_v41  ;;  %v725_v11 = vld [vmem:[#allocation2 + $0x3c] sm:$0xf]  ;;  %v451_v17 = vshll.u32 %v5988_v51, 16  ;;  %v5404_v18 = vld [vmem:[%s7172_s1 + $0x140] ss:$8 sps:$4 sm:$0xff]  }
  0x5a   : > { %2901 = vmatprep.mubr.bf16.mxu1 %v6006_v3  ;;  %v819_v12 = vld [vmem:[#allocation2 + $0x28] sm:$0xf]  ;;  %v436_v14 = vor.u32 %v434_v53, %v433_v4  ;;  %v438_v15 = vrot.slane %v433_v4, 4  ;;  %720 = vst [vmem:[#allocation2 + $0x30] sm:$0xf] %v719_v9  ;;  %v445_v16 = vor.u32 %v443_v57, %v6008_v5  ;;  %3278 = vmatmul.mubr.bf16.gmra.mrb[4].mxu0 %v6006_v3  ;;  %v446_v25 = vrot.slane %v6008_v5, 4 }
  0x5b   : > { %3049 = vmatpush1.bf16.msra.mxu1 %v5394_v55  ;;  %v5380_v19 = vld [vmem:[%s7172_s1 + $0x330] ss:$8 sps:$4 sm:$0xff]   ;;  %v1616_v21 = vrot.slane %v819_v12, 5  ;;  %v1104_v23 = vshll.u32 %v819_v12, 16  ;;  %v1108_v24 = vshrl.u32 %v819_v12, 16  ;;  %3433 = vmatpush1.bf16.msra.mxu0 %v5377_v54  ;;  %v450_v32 = vrot.slane %v448_v6, 7 }
  0x5c   : > { %3050 = vmatprep.subr.bf16.mxu1 %v5406_v1  ;;  %v818_v26 = vld [vmem:[#allocation2 + $0x24] sm:$0xf]  ;;  %v820_v27 = vld [vmem:[#allocation2 + $0x2c] sm:$0xf]  ;;  %v437_v29 = vsel %vm5843_vm11, %v429_v0, %v436_v14  ;;  %v723_v31 = vsel %vm5859_vm13, %v438_v15, %v722_v10  ;;  %v726_v33 = vsel %vm5849_vm12, %v445_v16, %v725_v11  ;;  %3434 = vmatprep.subr.bf16.mxu0 %v5382_v61  ;;  %v5387_v46 = vld [vmem:[%s7172_s1 + $0x340] ss:$8 sps:$4 sm:$0xff]  }
  0x5d   : > { %v4469_v34 = vrot.slane %v818_v26, 9  ;;  %v1618_v35 = vrot.slane %v1616_v21, 4  ;;  %v1619_v36 = vrot.slane %v820_v27, 5  ;;  %v1095_v37 = vshrl.u32 %v818_v26, 16  ;;  %v5389_v38 = vld [vmem:[%s7172_s1 + $0x344] ss:$8 sps:$4 sm:$0xff]  }
  0x5e   : > { %2902 = vmatmul.mubr.bf16.gmra.mrb[8].mxu1 %v5983_v40  ;;  %721 = vst [vmem:[#allocation2 + $0x34] sm:$0xf] %v437_v29  ;;  %724 = vst [vmem:[#allocation2 + $0x38] sm:$0x1] %v723_v31  ;;  %v1098_v39 = vshll.u32 %v818_v26, 16  ;;  %v1106_v41 = vrot.slane %v1104_v23, 5  ;;  %v6048_v53 = vcombine.low %v818_v26, %v819_v12  ;;  %v453_v1 = vor.u32 %v451_v17, %v450_v32 }
  0x5f   : > { %727 = vst [vmem:[#allocation2 + $0x3c] sm:$0xf] %v726_v33  ;;  %v1110_v42 = vrot.slane %v1108_v24, 4  ;;  %v1114_v44 = vshll.u32 %v820_v27, 16  ;;  %3051 = vmatpush1.bf16.msra.mxu1 %v5404_v18  ;;  %v6039_v47 = vld [vmem:[%s5790_s30 + $0x28] sm:$0xf]  ;;  %v1617_v50 = vsel %vm5829_vm9, %v4469_v34, %v1616_v21  ;;  %v1620_v51 = vsel %vm5829_vm9, %v1618_v35, %v1619_v36  ;;  %3435 = vmatpush1.bf16.msra.mxu0 %v5380_v19 }
  0x60   : > { %v1097_v54 = vrot.slane %v1095_v37, 4  ;;  %v5392_v48 = vld [vmem:[%s7172_s1 + $0x354] ss:$8 sps:$4 sm:$0xff]   ;;  %7219 = vst [vmem:[#allocation6_spill] sm:$0xff] %v6048_v53  ;;  %v729_v55 = vld [vmem:[#allocation2 + $0x44] sm:$0x1]  ;;  %v6050_v56 = vcombine.low %v1617_v50, %v1620_v51  ;;  %3436 = vmatprep.subr.bf16.mxu0 %v5389_v38  ;;  %v454_v16 = vsel %vm5843_vm11, %v446_v25, %v453_v1  ;;  %v6078_v25 = vsel %vm5829_vm9, %v4466_v8, %v1595_v63 }
  0x61   : > { %v1100_v57 = vrot.slane %v1098_v39, 5  ;;  %v1111_v58 = vor.u32 %v1110_v42, %v1106_v41  ;;  %v1116_v59 = vrot.slane %v1114_v44, 5  ;;  %v5414_v61 = vld [vmem:[%s7172_s1 + $0x150] ss:$8 sps:$4 sm:$0xff]   ;;  %v5416_v62 = vld [vmem:[%s7172_s1 + $0x154] ss:$8 sps:$4 sm:$0xff]  }
  0x62   : > { %7220 = vst [vmem:[#allocation7_spill] sm:$0xff] %v6050_v56  ;;  %v821_v0 = vld [vmem:[#allocation2 + $0x30] sm:$0xf]  ;;  %v455_v4 = vrot.slane %v450_v32, 4  ;;  %v457_v5 = vshrl.u32 %v6039_v47, 16  ;;  %v460_v6 = vshll.u32 %v6039_v47, 16  ;;  %3287 = vmatprep.mubr.bf16.mxu0 %v6050_v56  ;;  %3052 = vmatprep.subr.bf16.mxu1 %v5416_v62 }
  0x63   : > { %v1101_v9 = vor.u32 %v1100_v57, %v1097_v54  ;;  %v1112_v10 = vrot.slane %v1111_v58, 4  ;;  %v4470_v11 = vrot.slane %v821_v0, 9  ;;  %v1119_v12 = vshrl.u32 %v821_v0, 16  ;;  %v5390_v14 = vld [vmem:[%s7172_s1 + $0x350] ss:$8 sps:$4 sm:$0xff]   ;;  %3053 = vmatpush1.bf16.msra.mxu1 %v5414_v61  ;;  %3437 = vmatpush1.bf16.msra.mxu0 %v5387_v46 }
  0x64   : > { %v1122_v15 = vshll.u32 %v821_v0, 16  ;;  %v730_v17 = vsel %vm5859_vm13, %v455_v4, %v729_v55  ;;  %v6068_v18 = vrot.slane %v457_v5, 7  ;;  %728 = vst [vmem:[#allocation2 + $0x40] sm:$0xf] %v454_v16  ;;  %3438 = vmatprep.subr.bf16.mxu0 %v5392_v48  ;;  %v5399_v49 = vld [vmem:[%s7172_s1 + $0x364] ss:$8 sps:$4 sm:$0xff]  }
  0x65   : > { %v1102_v19 = vrot.slane %v1101_v9, 4  ;;  %v1117_v21 = vsel %vm5815_vm8, %v1112_v10, %v1116_v59  ;;  %v822_v23 = vld [vmem:[#allocation2 + $0x34] sm:$0xf]  ;;  %v823_v24 = vld [vmem:[#allocation2 + $0x38] sm:$0xf]  ;;  %v1121_v26 = vrot.slane %v1119_v12, 4 }
  0x66   : > { %731 = vst [vmem:[#allocation2 + $0x44] sm:$0x1] %v730_v17  ;;  %v1623_v27 = vrot.slane %v822_v23, 5  ;;  %v1626_v29 = vrot.slane %v823_v24, 5  ;;  %v1124_v31 = vrot.slane %v1122_v15, 5  ;;  %v1128_v32 = vshll.u32 %v822_v23, 16 }
  0x67   : > { %v6080_v33 = vld [vmem:[#allocation2 + $0x3c] sm:$0xf]  ;;  %v1107_v34 = vsel %vm5815_vm8, %v1102_v19, %v1106_v41  ;;  %v1132_v35 = vshrl.u32 %v822_v23, 16  ;;  %v1138_v36 = vshll.u32 %v823_v24, 16  ;;  %3439 = vmatpush1.bf16.msra.mxu0 %v5390_v14  ;;  %v5397_v44 = vld [vmem:[%s7172_s1 + $0x360] ss:$8 sps:$4 sm:$0xff]   ;;  %v6095_v46 = vcombine.low %v821_v0, %v822_v23 }
  0x68   : > { %v4471_v52 = vrot.slane %v6080_v33, 9  ;;  %v6088_v63 = vcombine.low %v1107_v34, %v1117_v21  ;;  %v1624_v8 = vsel %vm5829_vm9, %v4470_v11, %v1623_v27  ;;  %v1625_v37 = vrot.slane %v1623_v27, 4  ;;  %v5402_v51 = vld [vmem:[%s7172_s1 + $0x374] ss:$8 sps:$4 sm:$0xff]   ;;  %3440 = vmatprep.subr.bf16.mxu0 %v5399_v49  ;;  %v5400_v58 = vld [vmem:[%s7172_s1 + $0x370] ss:$8 sps:$4 sm:$0xff]  }
  0x69   : > { %v1125_v38 = vor.u32 %v1124_v31, %v1121_v26  ;;  %v1130_v39 = vrot.slane %v1128_v32, 5  ;;  %v1134_v42 = vrot.slane %v1132_v35, 4  ;;  %v1140_v41 = vrot.slane %v1138_v36, 5  ;;  %7221 = vst [vmem:[#allocation8_spill] sm:$0xff] %v6095_v46  ;;  %v293_v59 = vld [vmem:[%s5790_s30 + $0x2c] sm:$0xf] }
  0x6a   : > { %3288 = vmatmul.mubr.bf16.gmra.mrb[8].mxu0 %v6088_v63  ;;  %2911 = vmatprep.mubr.bf16.mxu1 %v6088_v63  ;;  %v1627_v47 = vsel %vm5829_vm9, %v1625_v37, %v1626_v29  ;;  %v1143_v54 = vshrl.u32 %v6080_v33, 16  ;;  %v1146_v48 = vshll.u32 %v6080_v33, 16  ;;  %v462_v61 = vor.u32 %v460_v6, %v6068_v18  ;;  %v5424_v0 = vld [vmem:[%s7172_s1 + $0x160] ss:$8 sps:$4 sm:$0xff]   ;;  %v5426_v16 = vld [vmem:[%s7172_s1 + $0x164] ss:$8 sps:$4 sm:$0xff]  }
  0x6b   : > { %v1126_v50 = vrot.slane %v1125_v38, 4  ;;  %v6106_v55 = vcombine.low %v1624_v8, %v1627_v47  ;;  %2912 = vmatmul.mubr.bf16.gmra.mrb[12].mxu1 %v6048_v53  ;;  %v1135_v57 = vor.u32 %v1134_v42, %v1130_v39  ;;  %v463_v62 = vrot.slane %v6068_v18, 4  ;;  %v825_v4 = vld [vmem:[#allocation2 + $0x40] sm:$0xf]  ;;  %3441 = vmatpush1.bf16.msra.mxu0 %v5397_v44  ;;  %v732_v24 = vld [vmem:[#allocation2 + $0x48] sm:$0xf] }
  0x6c   : > { %v1145_v9 = vrot.slane %v1143_v54, 4  ;;  %v1148_v10 = vrot.slane %v1146_v48, 5  ;;  %v1630_v6 = vrot.slane %v825_v4, 5  ;;  %v1152_v15 = vshll.u32 %v825_v4, 16  ;;  %3442 = vmatprep.subr.bf16.mxu0 %v5402_v51  ;;  %v5407_v32 = vld [vmem:[%s7172_s1 + $0x380] ss:$8 sps:$4 sm:$0xff]   ;;  %3054 = vmatprep.subr.bf16.mxu1 %v5426_v16 }
  0x6d   : > { %7222 = vst [vmem:[#allocation9_spill] sm:$0xff] %v6106_v55  ;;  %v1131_v1 = vsel %vm5815_vm8, %v1126_v50, %v1130_v39  ;;  %v826_v5 = vld [vmem:[#allocation2 + $0x44] sm:$0xf]  ;;  %3297 = vmatprep.mubr.bf16.mxu0 %v6106_v55  ;;  %v1136_v12 = vrot.slane %v1135_v57, 4  ;;  %v1156_v19 = vshrl.u32 %v825_v4, 16  ;;  %v465_v23 = vshrl.u32 %v293_v59, 16  ;;  %3055 = vmatpush1.bf16.msra.mxu1 %v5424_v0 }
  0x6e   : > { %v1633_v14 = vrot.slane %v826_v5, 5  ;;  %v1149_v17 = vor.u32 %v1148_v10, %v1145_v9  ;;  %v1162_v21 = vshll.u32 %v826_v5, 16  ;;  %v1631_v27 = vsel %vm5829_vm9, %v4471_v52, %v1630_v6  ;;  %v5409_v34 = vld [vmem:[%s7172_s1 + $0x384] ss:$8 sps:$4 sm:$0xff]   ;;  %v294_v35 = vld [vmem:[%s5790_s30 + $0x30] sm:$0xf] }
  0x6f   : > { %v1141_v26 = vsel %vm5815_vm8, %v1136_v12, %v1140_v41  ;;  %v1632_v29 = vrot.slane %v1630_v6, 4  ;;  %v1154_v31 = vrot.slane %v1152_v15, 5  ;;  %v1158_v8 = vrot.slane %v1156_v19, 4  ;;  %v5412_v52 = vld [vmem:[%s7172_s1 + $0x394] ss:$8 sps:$4 sm:$0xff]   ;;  %3443 = vmatpush1.bf16.msra.mxu0 %v5400_v58 }
  0x70   : > { %v6137_v36 = vcombine.low %v1131_v1, %v1141_v26  ;;  %v1150_v49 = vrot.slane %v1149_v17, 4  ;;  %v1164_v37 = vrot.slane %v1162_v21, 5  ;;  %v467_v39 = vrot.slane %v465_v23, 7  ;;  %v736_v44 = vld [vmem:[#allocation2 + $0x50] sm:$0x1]  ;;  %3444 = vmatprep.subr.bf16.mxu0 %v5409_v34 }
  0x71   : > { %v1634_v38 = vsel %vm5829_vm9, %v1632_v29, %v1633_v14  ;;  %v468_v42 = vshll.u32 %v293_v59, 16  ;;  %v733_v41 = vsel %vm5849_vm12, %v462_v61, %v732_v24  ;;  %v295_v47 = vld [vmem:[%s5790_s30 + $0x34] sm:$0xf]  ;;  %v1159_v54 = vor.u32 %v1158_v8, %v1154_v31  ;;  %v296_v57 = vld [vmem:[%s5790_s30 + $0x38] sm:$0xf] }
  0x72   : > { %3298 = vmatmul.mubr.bf16.gmra.mrb[12].mxu0 %v6137_v36  ;;  %2921 = vmatprep.mubr.bf16.mxu1 %v6137_v36  ;;  %v6149_v50 = vcombine.low %v1631_v27, %v1634_v38  ;;  %v1155_v51 = vsel %vm5815_vm8, %v1150_v49, %v1154_v31  ;;  %734 = vst [vmem:[#allocation2 + $0x48] sm:$0xf] %v733_v41  ;;  %v474_v48 = vshrl.u32 %v294_v35, 16  ;;  %v297_v58 = vld [vmem:[%s5790_s30 + $0x3c] sm:$0xf]  ;;  %v472_v0 = vrot.slane %v467_v39, 4 }
  0x73   : > { %2922 = vmatmul.mubr.bf16.gmra.mrb[16].mxu1 %v6095_v46  ;;  %v5410_v59 = vld [vmem:[%s7172_s1 + $0x390] ss:$8 sps:$4 sm:$0xff]   ;;  %v470_v61 = vor.u32 %v468_v42, %v467_v39  ;;  %v6160_v1 = vcombine.low %v6080_v33, %v825_v4  ;;  %v477_v5 = vshll.u32 %v294_v35, 16  ;;  %v5436_v10 = vld [vmem:[%s7172_s1 + $0x174] ss:$8 sps:$4 sm:$0xff]   ;;  %v1160_v12 = vrot.slane %v1159_v54, 4  ;;  %3445 = vmatpush1.bf16.msra.mxu0 %v5407_v32 }
  0x74   : > { %7223 = vst [vmem:[#allocation10_spill] sm:$0xff] %v6149_v50  ;;  %v5434_v9 = vld [vmem:[%s7172_s1 + $0x170] ss:$8 sps:$4 sm:$0xff]   ;;  %3307 = vmatprep.mubr.bf16.mxu0 %v6149_v50  ;;  %v476_v6 = vrot.slane %v474_v48, 7  ;;  %v482_v14 = vshrl.u32 %v295_v47, 16  ;;  %v485_v15 = vshll.u32 %v295_v47, 16  ;;  %v737_v4 = vsel %vm5859_vm13, %v472_v0, %v736_v44  ;;  %3056 = vmatprep.subr.bf16.mxu1 %v5436_v10 }
  0x75   : > { %7224 = vst [vmem:[#allocation11_spill] sm:$0xff] %v6160_v1  ;;  %v471_v33 = vsel %vm5843_vm11, %v463_v62, %v470_v61  ;;  %v5419_v16 = vld [vmem:[%s7172_s1 + $0x3a4] ss:$8 sps:$4 sm:$0xff]   ;;  %v739_v17 = vld [vmem:[#allocation2 + $0x54] sm:$0xf]  ;;  %v491_v19 = vshrl.u32 %v296_v57, 16  ;;  %v1165_v23 = vsel %vm5815_vm8, %v1160_v12, %v1164_v37  ;;  %3446 = vmatprep.subr.bf16.mxu0 %v5412_v52  ;;  %3057 = vmatpush1.bf16.msra.mxu1 %v5434_v9 }
  0x76   : > { %v494_v21 = vshll.u32 %v296_v57, 16  ;;  %735 = vst [vmem:[#allocation2 + $0x4c] sm:$0xf] %v471_v33  ;;  %738 = vst [vmem:[#allocation2 + $0x50] sm:$0x1] %v737_v4  ;;  %v479_v18 = vor.u32 %v477_v5, %v476_v6  ;;  %v480_v24 = vrot.slane %v476_v6, 4  ;;  %v6180_v27 = vcombine.low %v1155_v51, %v1165_v23 }
  0x77   : > { %v484_v62 = vrot.slane %v482_v14, 7  ;;  %v743_v26 = vld [vmem:[#allocation2 + $0x5c] sm:$0x1]  ;;  %v5417_v29 = vld [vmem:[%s7172_s1 + $0x3a0] ss:$8 sps:$4 sm:$0xff]   ;;  %v493_v31 = vrot.slane %v491_v19, 7  ;;  %3447 = vmatpush1.bf16.msra.mxu0 %v5410_v59 }
  0x78   : > { %v499_v32 = vshrl.u32 %v297_v58, 16  ;;  %v502_v34 = vshll.u32 %v297_v58, 16  ;;  %v746_v35 = vld [vmem:[#allocation2 + $0x60] sm:$0xf]  ;;  %v5422_v49 = vld [vmem:[%s7172_s1 + $0x3b4] ss:$8 sps:$4 sm:$0xff]   ;;  %v740_v52 = vsel %vm5849_vm12, %v479_v18, %v739_v17  ;;  %2931 = vmatprep.mubr.bf16.mxu1 %v6180_v27  ;;  %3448 = vmatprep.subr.bf16.mxu0 %v5419_v16 }
  0x79   : > { %v487_v8 = vor.u32 %v485_v15, %v484_v62  ;;  %v489_v37 = vrot.slane %v484_v62, 4  ;;  %v5444_v38 = vld [vmem:[%s7172_s1 + $0x180] ss:$8 sps:$4 sm:$0xff]   ;;  %v5446_v39 = vld [vmem:[%s7172_s1 + $0x184] ss:$8 sps:$4 sm:$0xff]   ;;  %v496_v41 = vor.u32 %v494_v21, %v493_v31  ;;  %v497_v44 = vrot.slane %v493_v31, 4 }
  0x7a   : > { %v6197_v42 = vld [vmem:[#allocation2 + $0x48] sm:$0xf]  ;;  %741 = vst [vmem:[#allocation2 + $0x54] sm:$0xf] %v740_v52  ;;  %v501_v47 = vrot.slane %v499_v32, 7  ;;  %3308 = vmatmul.mubr.bf16.gmra.mrb[16].mxu0 %v6180_v27  ;;  %3058 = vmatprep.subr.bf16.mxu1 %v5446_v39 }
  0x7b   : > { %v1167_v51 = vshrl.u32 %v6197_v42, 16  ;;  %v1170_v54 = vshll.u32 %v6197_v42, 16  ;;  %v488_v48 = vsel %vm5843_vm11, %v480_v24, %v487_v8  ;;  %v750_v57 = vld [vmem:[#allocation2 + $0x68] sm:$0x1]  ;;  %2932 = vmatmul.mubr.bf16.gmra.mrb[20].mxu1 %v6160_v1  ;;  %v5420_v58 = vld [vmem:[%s7172_s1 + $0x3b0] ss:$8 sps:$4 sm:$0xff]   ;;  %v744_v59 = vsel %vm5859_vm13, %v489_v37, %v743_v26  ;;  %3449 = vmatpush1.bf16.msra.mxu0 %v5417_v29 }
  0x7c   : > { %742 = vst [vmem:[#allocation2 + $0x58] sm:$0xf] %v488_v48  ;;  %v504_v61 = vor.u32 %v502_v34, %v501_v47  ;;  %v506_v0 = vrot.slane %v501_v47, 4  ;;  %v747_v5 = vsel %vm5849_vm12, %v496_v41, %v746_v35  ;;  %v6213_v9 = vld [vmem:[%s5790_s30 + $0x40] sm:$0xf]  ;;  %v4472_v10 = vrot.slane %v6197_v42, 9  ;;  %3059 = vmatpush1.bf16.msra.mxu1 %v5444_v38  ;;  %3450 = vmatprep.subr.bf16.mxu0 %v5422_v49 }
  0x7d   : > { %v1169_v12 = vrot.slane %v1167_v51, 4  ;;  %v1172_v6 = vrot.slane %v1170_v54, 5  ;;  %745 = vst [vmem:[#allocation2 + $0x5c] sm:$0x1] %v744_v59  ;;  %748 = vst [vmem:[#allocation2 + $0x60] sm:$0xf] %v747_v5 }
  0x7e   : > { %v6217_v14 = vld [vmem:[%s5790_s30 + $0x44] sm:$0xf]  ;;  %v508_v15 = vshrl.u32 %v6213_v9, 16  ;;  %v828_v33 = vld [vmem:[#allocation2 + $0x4c] sm:$0xf]  ;;  %v505_v16 = vsel %vm5843_vm11, %v497_v44, %v504_v61  ;;  %v751_v17 = vsel %vm5859_vm13, %v506_v0, %v750_v57  ;;  %v511_v19 = vshll.u32 %v6213_v9, 16 }
  0x7f   : > { %v829_v4 = vld [vmem:[#allocation2 + $0x50] sm:$0xf]  ;;  %v516_v21 = vshrl.u32 %v6217_v14, 16  ;;  %v1637_v23 = vrot.slane %v828_v33, 5  ;;  %v1173_v24 = vor.u32 %v1172_v6, %v1169_v12  ;;  %v1176_v62 = vshll.u32 %v828_v33, 16  ;;  %3451 = vmatpush1.bf16.msra.mxu0 %v5420_v58 }
  0x80   : > { %v1640_v18 = vrot.slane %v829_v4, 5  ;;  %v5429_v26 = vld [vmem:[%s7172_s1 + $0x3c4] ss:$8 sps:$4 sm:$0xff]   ;;  %749 = vst [vmem:[#allocation2 + $0x64] sm:$0xf] %v505_v16  ;;  %v1180_v29 = vshrl.u32 %v828_v33, 16  ;;  %v6254_v61 = vcombine.low %v6197_v42, %v828_v33 }
  0x81   : > { %752 = vst [vmem:[#allocation2 + $0x68] sm:$0x1] %v751_v17  ;;  %v1186_v31 = vshll.u32 %v829_v4, 16  ;;  %v5427_v32 = vld [vmem:[%s7172_s1 + $0x3c0] ss:$8 sps:$4 sm:$0xff]   ;;  %v6232_v34 = vrot.slane %v508_v15, 7  ;;  %v1638_v8 = vsel %vm5829_vm9, %v4472_v10, %v1637_v23  ;;  %3452 = vmatprep.subr.bf16.mxu0 %v5429_v26 }
  0x82   : > { %v519_v35 = vshll.u32 %v6217_v14, 16  ;;  %v1639_v49 = vrot.slane %v1637_v23, 4  ;;  %v1174_v37 = vrot.slane %v1173_v24, 4  ;;  %v1178_v52 = vrot.slane %v1176_v62, 5  ;;  %v6237_v38 = vld [vmem:[#allocation2 + $0x54] sm:$0xf] }
  0x83   : > { %v5432_v39 = vld [vmem:[%s7172_s1 + $0x3d4] ss:$8 sps:$4 sm:$0xff]   ;;  %v1182_v41 = vrot.slane %v1180_v29, 4  ;;  %v1188_v44 = vrot.slane %v1186_v31, 5  ;;  %v4473_v47 = vrot.slane %v6237_v38, 9  ;;  %v1191_v51 = vshrl.u32 %v6237_v38, 16  ;;  %3453 = vmatpush1.bf16.msra.mxu0 %v5427_v32 }
  0x84   : > { %v5451_v54 = vld [vmem:[%s7172_s1 + $0x190] ss:$8 sps:$4 sm:$0xff]   ;;  %v1641_v48 = vsel %vm5829_vm9, %v1639_v49, %v1640_v18  ;;  %v1179_v57 = vsel %vm5815_vm8, %v1174_v37, %v1178_v52  ;;  %7225 = vst [vmem:[#allocation12_spill] sm:$0xff] %v6254_v61  ;;  %v1194_v58 = vshll.u32 %v6237_v38, 16  ;;  %v5453_v0 = vld [vmem:[%s7172_s1 + $0x194] ss:$8 sps:$4 sm:$0xff]   ;;  %3454 = vmatprep.subr.bf16.mxu0 %v5432_v39 }
  0x85   : > { %v6251_v59 = vld [vmem:[#allocation2 + $0x58] sm:$0xf]  ;;  %v6260_v5 = vcombine.low %v1638_v8, %v1641_v48  ;;  %v1183_v10 = vor.u32 %v1182_v41, %v1178_v52  ;;  %v832_v12 = vld [vmem:[#allocation2 + $0x5c] sm:$0xf]  ;;  %v1193_v15 = vrot.slane %v1191_v51, 4  ;;  %3060 = vmatprep.subr.bf16.mxu1 %v5453_v0 }
  0x86   : > { %v1644_v6 = vrot.slane %v6251_v59, 5  ;;  %v5430_v4 = vld [vmem:[%s7172_s1 + $0x3d0] ss:$8 sps:$4 sm:$0xff]   ;;  %v1647_v42 = vrot.slane %v832_v12, 5  ;;  %v1196_v33 = vrot.slane %v1194_v58, 5  ;;  %v1200_v16 = vshll.u32 %v6251_v59, 16  ;;  %3061 = vmatpush1.bf16.msra.mxu1 %v5451_v54 }
  0x87   : > { %7226 = vst [vmem:[#allocation13_spill] sm:$0xff] %v6260_v5  ;;  %v1204_v17 = vshrl.u32 %v6251_v59, 16  ;;  %v6268_v23 = vld [vmem:[#allocation2 + $0x60] sm:$0xf]  ;;  %3317 = vmatprep.mubr.bf16.mxu0 %v6260_v5  ;;  %v1184_v18 = vrot.slane %v1183_v10, 4  ;;  %v1210_v26 = vshll.u32 %v832_v12, 16  ;;  %3455 = vmatpush1.bf16.msra.mxu0 %v5430_v4 }
  0x88   : > { %v1645_v24 = vsel %vm5829_vm9, %v4473_v47, %v1644_v6  ;;  %v1646_v62 = vrot.slane %v1644_v6, 4  ;;  %v6273_v29 = vld [vmem:[#allocation2 + $0x64] sm:$0xf]  ;;  %v1197_v31 = vor.u32 %v1196_v33, %v1193_v15  ;;  %v1202_v8 = vrot.slane %v1200_v16, 5  ;;  %v835_v37 = vld [vmem:[#allocation2 + $0x68] sm:$0xf] }
  0x89   : > { %v1206_v49 = vrot.slane %v1204_v17, 4  ;;  %v4474_v52 = vrot.slane %v6268_v23, 9  ;;  %v1189_v41 = vsel %vm5815_vm8, %v1184_v18, %v1188_v44  ;;  %v1212_v47 = vrot.slane %v1210_v26, 5  ;;  %v5437_v39 = vld [vmem:[%s7172_s1 + $0x3e0] ss:$8 sps:$4 sm:$0xff]  }
  0x8a   : > { %v1648_v51 = vsel %vm5829_vm9, %v1646_v62, %v1647_v42  ;;  %v1651_v48 = vrot.slane %v6273_v29, 5  ;;  %v6281_v32 = vcombine.low %v1179_v57, %v1189_v41  ;;  %v1198_v0 = vrot.slane %v1197_v31, 4  ;;  %v5439_v44 = vld [vmem:[%s7172_s1 + $0x3e4] ss:$8 sps:$4 sm:$0xff]   ;;  %v5455_v15 = vld [vmem:[%s7172_s1 + $0x1a0] ss:$8 sps:$4 sm:$0xff]  }
  0x8b   : > { %v6283_v58 = vcombine.low %v1645_v24, %v1648_v51  ;;  %v1207_v10 = vor.u32 %v1206_v49, %v1202_v8  ;;  %v1654_v6 = vrot.slane %v835_v37, 5  ;;  %v513_v57 = vor.u32 %v511_v19, %v6232_v34  ;;  %v5457_v42 = vld [vmem:[%s7172_s1 + $0x1a4] ss:$8 sps:$4 sm:$0xff]   ;;  %v5442_v19 = vld [vmem:[%s7172_s1 + $0x3f4] ss:$8 sps:$4 sm:$0xff]   ;;  %3456 = vmatprep.subr.bf16.mxu0 %v5439_v44 }
  0x8c   : > { %v1652_v54 = vsel %vm5829_vm9, %v4474_v52, %v1651_v48  ;;  %v1653_v12 = vrot.slane %v1651_v48, 4  ;;  %3318 = vmatmul.mubr.bf16.gmra.mrb[20].mxu0 %v6281_v32  ;;  %2941 = vmatprep.mubr.bf16.mxu1 %v6281_v32  ;;  %v1203_v4 = vsel %vm5815_vm8, %v1198_v0, %v1202_v8  ;;  %v1215_v16 = vshrl.u32 %v6268_v23, 16  ;;  %v5440_v26 = vld [vmem:[%s7172_s1 + $0x3f0] ss:$8 sps:$4 sm:$0xff]   ;;  %v753_v31 = vld [vmem:[#allocation2 + $0x6c] sm:$0xf] }
  0x8d   : > { %7227 = vst [vmem:[#allocation14_spill] sm:$0xff] %v6283_v58  ;;  %v1208_v33 = vrot.slane %v1207_v10, 4  ;;  %v1218_v9 = vshll.u32 %v6268_v23, 16  ;;  %3327 = vmatprep.mubr.bf16.mxu0 %v6283_v58  ;;  %2942 = vmatmul.mubr.bf16.gmra.mrb[24].mxu1 %v6254_v61  ;;  %v1224_v18 = vshll.u32 %v6273_v29, 16  ;;  %v1228_v24 = vshrl.u32 %v6273_v29, 16 }
  0x8e   : > { %v1655_v17 = vsel %vm5829_vm9, %v1653_v12, %v1654_v6  ;;  %v1234_v62 = vshll.u32 %v835_v37, 16  ;;  %v6324_v49 = vcombine.low %v6237_v38, %v6251_v59  ;;  %v1217_v52 = vrot.slane %v1215_v16, 4  ;;  %v5449_v37 = vld [vmem:[%s7172_s1 + $0x404] ss:$8 sps:$4 sm:$0xff]   ;;  %v300_v51 = vld [vmem:[%s5790_s30 + $0x48] sm:$0xf]  ;;  %3062 = vmatprep.subr.bf16.mxu1 %v5457_v42  ;;  %3457 = vmatpush1.bf16.msra.mxu0 %v5437_v39 }
  0x8f   : > { %v1213_v8 = vsel %vm5815_vm8, %v1208_v33, %v1212_v47  ;;  %v1220_v41 = vrot.slane %v1218_v9, 5  ;;  %v301_v48 = vld [vmem:[%s5790_s30 + $0x4c] sm:$0xf]  ;;  %v1226_v10 = vrot.slane %v1224_v18, 5  ;;  %v1230_v12 = vrot.slane %v1228_v24, 4  ;;  %3063 = vmatpush1.bf16.msra.mxu1 %v5455_v15  ;;  %3458 = vmatprep.subr.bf16.mxu0 %v5442_v19  ;;  %v7248_v60 = vld [vmem:[#allocation13_spill] sm:$0xff] }
  0x90   : > { %v6331_v0 = vcombine.low %v1203_v4, %v1213_v8  ;;  %v1236_v6 = vrot.slane %v1234_v62, 5  ;;  %v6334_v47 = vld [vmem:[%s5790_s30 + $0x50] sm:$0xf]  ;;  %v6336_v38 = vcombine.low %v1652_v54, %v1655_v17  ;;  %v514_v44 = vrot.slane %v6232_v34, 4  ;;  %v5464_v39 = vld [vmem:[%s7172_s1 + $0x1b4] ss:$8 sps:$4 sm:$0xff]  }
  0x91   : > { %v1221_v59 = vor.u32 %v1220_v41, %v1217_v52  ;;  %v518_v33 = vrot.slane %v516_v21, 7  ;;  %v5462_v42 = vld [vmem:[%s7172_s1 + $0x1b0] ss:$8 sps:$4 sm:$0xff]   ;;  %v1231_v15 = vor.u32 %v1230_v12, %v1226_v10  ;;  %v754_v54 = vsel %vm5849_vm12, %v513_v57, %v753_v31  ;;  %v757_v4 = vld [vmem:[#allocation2 + $0x74] sm:$0x1]  ;;  %3064 = vmatprep.subr.bf16.mxu1 %v5464_v39 }
  0x92   : > { %7228 = vst [vmem:[#allocation15_spill] sm:$0xff] %v6336_v38  ;;  %2951 = vmatprep.mubr.bf16.mxu1 %v6331_v0  ;;  %v525_v34 = vshrl.u32 %v300_v51, 16  ;;  %v528_v16 = vshll.u32 %v300_v51, 16  ;;  %755 = vst [vmem:[#allocation2 + $0x6c] sm:$0xf] %v754_v54  ;;  %v533_v17 = vshrl.u32 %v301_v48, 16  ;;  %3459 = vmatpush1.bf16.msra.mxu0 %v5440_v26 }
  0x93   : > { %v1222_v9 = vrot.slane %v1221_v59, 4  ;;  %v521_v21 = vor.u32 %v519_v35, %v518_v33  ;;  %v523_v19 = vrot.slane %v518_v33, 4  ;;  %v760_v18 = vld [vmem:[#allocation2 + $0x78] sm:$0xf]  ;;  %v1232_v24 = vrot.slane %v1231_v15, 4  ;;  %3065 = vmatpush1.bf16.msra.mxu1 %v5462_v42  ;;  %3621 = vmatprep.subr.bf16.mxu0 %v5449_v37 }
  0x94   : > { %v527_v62 = vrot.slane %v525_v34, 7  ;;  %v536_v8 = vshll.u32 %v301_v48, 16  ;;  %v303_v52 = vld [vmem:[%s5790_s30 + $0x54] sm:$0xf]  ;;  %v542_v41 = vshrl.u32 %v6334_v47, 16  ;;  %3328 = vmatmul.mubr.bf16.gmra.mrb[24].mxu0 %v6331_v0  ;;  %v535_v26 = vrot.slane %v533_v17, 7 }
  0x95   : > { %v1227_v57 = vsel %vm5815_vm8, %v1222_v9, %v1226_v10  ;;  %v522_v14 = vsel %vm5843_vm11, %v514_v44, %v521_v21  ;;  %v758_v35 = vsel %vm5859_vm13, %v523_v19, %v757_v4  ;;  %v5466_v31 = vld [vmem:[%s7172_s1 + $0x1c0] ss:$8 sps:$4 sm:$0xff]   ;;  %v5468_v51 = vld [vmem:[%s7172_s1 + $0x1c4] ss:$8 sps:$4 sm:$0xff]   ;;  %3337 = vmatprep.mubr.bf16.mxu0 %v6336_v38  ;;  %2952 = vmatmul.mubr.bf16.gmra.mrb[28].mxu1 %v6324_v49  ;;  %v304_v44 = vld [vmem:[%s5790_s30 + $0x58] sm:$0xf] }
  0x96   : > { %v1237_v37 = vsel %vm5815_vm8, %v1232_v24, %v1236_v6  ;;  %756 = vst [vmem:[#allocation2 + $0x70] sm:$0xf] %v522_v14  ;;  %759 = vst [vmem:[#allocation2 + $0x74] sm:$0x1] %v758_v35  ;;  %v530_v48 = vor.u32 %v528_v16, %v527_v62  ;;  %v531_v10 = vrot.slane %v527_v62, 4  ;;  %v544_v59 = vrot.slane %v542_v41, 7  ;;  %3066 = vmatprep.subr.bf16.mxu1 %v5468_v51 }
  0x97   : > { %v764_v12 = vld [vmem:[#allocation2 + $0x80] sm:$0x1]  ;;  %v6372_v33 = vcombine.low %v1227_v57, %v1237_v37  ;;  %v538_v42 = vor.u32 %v536_v8, %v535_v26  ;;  %v540_v39 = vrot.slane %v535_v26, 4  ;;  %v545_v15 = vshll.u32 %v6334_v47, 16  ;;  %v6376_v54 = vld [vmem:[%s5790_s30 + $0x5c] sm:$0xf]  ;;  %3067 = vmatpush1.bf16.msra.mxu1 %v5466_v31 }
  0x98   : > { %v6380_v6 = vcombine.low %v6268_v23, %v6273_v29  ;;  %v761_v4 = vsel %vm5849_vm12, %v530_v48, %v760_v18  ;;  %v550_v34 = vshrl.u32 %v303_v52, 16  ;;  %v553_v16 = vshll.u32 %v303_v52, 16  ;;  %v767_v9 = vld [vmem:[#allocation2 + $0x84] sm:$0xf]  ;;  %v6390_v23 = vld [vmem:[%s5790_s30 + $0x60] sm:$0xf] }
  0x99   : > { %2961 = vmatprep.mubr.bf16.mxu1 %v6372_v33  ;;  %v539_v21 = vsel %vm5843_vm11, %v531_v10, %v538_v42  ;;  %762 = vst [vmem:[#allocation2 + $0x78] sm:$0xf] %v761_v4  ;;  %v765_v47 = vsel %vm5859_vm13, %v540_v39, %v764_v12  ;;  %v547_v19 = vor.u32 %v545_v15, %v544_v59  ;;  %v559_v17 = vshrl.u32 %v304_v44, 16  ;;  %v5473_v29 = vld [vmem:[%s7172_s1 + $0x1d0] ss:$8 sps:$4 sm:$0xff]  }
  0x9a   : > { %v6395_v18 = vld [vmem:[#allocation2 + $0x6c] sm:$0xf]  ;;  %763 = vst [vmem:[#allocation2 + $0x7c] sm:$0xf] %v539_v21  ;;  %766 = vst [vmem:[#allocation2 + $0x80] sm:$0x1] %v765_v47 }
  0x9b   : > { %v548_v24 = vrot.slane %v544_v59, 4  ;;  %v552_v62 = vrot.slane %v550_v34, 7  ;;  %v771_v8 = vld [vmem:[#allocation2 + $0x8c] sm:$0x1]  ;;  %v562_v52 = vshll.u32 %v304_v44, 16  ;;  %v567_v41 = vshrl.u32 %v6376_v54, 16 }
  0x9c   : > { %v1239_v57 = vshrl.u32 %v6395_v18, 16  ;;  %v1242_v14 = vshll.u32 %v6395_v18, 16  ;;  %v768_v35 = vsel %vm5849_vm12, %v547_v19, %v767_v9  ;;  %v6402_v26 = vrot.slane %v559_v17, 7  ;;  %v5475_v31 = vld [vmem:[%s7172_s1 + $0x1d4] ss:$8 sps:$4 sm:$0xff]   ;;  %3338 = vmatmul.mubr.bf16.gmra.mrb[28].mxu0 %v6372_v33 }
  0x9d   : > { %v555_v51 = vor.u32 %v553_v16, %v552_v62  ;;  %v557_v37 = vrot.slane %v552_v62, 4  ;;  %769 = vst [vmem:[#allocation2 + $0x84] sm:$0xf] %v768_v35  ;;  %v6407_v48 = vrot.slane %v567_v41, 7  ;;  %v570_v10 = vshll.u32 %v6376_v54, 16  ;;  %3068 = vmatprep.subr.bf16.mxu1 %v5475_v31  ;;  %3460 = vmatprep.mubr.bf16.mxu0 %v6006_v3 }
  0x9e   : > { %v774_v12 = vld [vmem:[#allocation2 + $0x90] sm:$0xf]  ;;  %v6413_v44 = vld [vmem:[#allocation2 + $0x74] sm:$0xf]  ;;  %v1241_v42 = vrot.slane %v1239_v57, 4  ;;  %v1244_v39 = vrot.slane %v1242_v14, 5  ;;  %v564_v15 = vor.u32 %v562_v52, %v6402_v26  ;;  %2962 = vmatmul.mubr.bf16.gmra.mrb[32].mxu1 %v6380_v6 }
  0x9f   : > { %v6411_v59 = vld [vmem:[#allocation2 + $0x70] sm:$0xf]  ;;  %v1258_v34 = vshll.u32 %v6413_v44, 16  ;;  %v556_v21 = vsel %vm5843_vm11, %v548_v24, %v555_v51  ;;  %v772_v47 = vsel %vm5859_vm13, %v557_v37, %v771_v8  ;;  %v565_v19 = vrot.slane %v6402_v26, 4  ;;  %3069 = vmatpush1.bf16.msra.mxu1 %v5473_v29  ;;  %v5447_v3 = vld [vmem:[%s7172_s1 + $0x400] ss:$8 sps:$4 sm:$0xff]  }
  0xa0   : > { %v1248_v4 = vshll.u32 %v6411_v59, 16  ;;  %v1252_v54 = vshrl.u32 %v6411_v59, 16  ;;  %v1245_v9 = vor.u32 %v1244_v39, %v1241_v42  ;;  %v6430_v41 = vld [vmem:[#allocation2 + $0x78] sm:$0xf]  ;;  %770 = vst [vmem:[#allocation2 + $0x88] sm:$0xf] %v556_v21  ;;  %v572_v35 = vor.u32 %v570_v10, %v6407_v48 }
  0xa1   : > { %v1260_v52 = vrot.slane %v1258_v34, 5  ;;  %773 = vst [vmem:[#allocation2 + $0x8c] sm:$0x1] %v772_v47  ;;  %v6432_v14 = vld [vmem:[#allocation2 + $0x7c] sm:$0xf]  ;;  %v1263_v8 = vshrl.u32 %v6430_v41, 16  ;;  %v775_v26 = vsel %vm5849_vm12, %v564_v15, %v774_v12  ;;  %v6453_v10 = vcombine.low %v6395_v18, %v6411_v59 }
  0xa2   : > { %v1250_v17 = vrot.slane %v1248_v4, 5  ;;  %v1254_v62 = vrot.slane %v1252_v54, 4  ;;  %v1246_v57 = vrot.slane %v1245_v9, 4  ;;  %v6434_v24 = vld [vmem:[#allocation2 + $0x80] sm:$0xf]  ;;  %v1266_v51 = vshll.u32 %v6430_v41, 16 }
  0xa3   : > { %v5460_v29 = vld [vmem:[%s7172_s1 + $0x414] ss:$8 sps:$4 sm:$0xff]   ;;  %v1272_v37 = vshll.u32 %v6432_v14, 16  ;;  %v1276_v42 = vshrl.u32 %v6432_v14, 16  ;;  %776 = vst [vmem:[#allocation2 + $0x90] sm:$0xf] %v775_v26  ;;  %v573_v2 = vsel %vm5843_vm11, %v565_v19, %v572_v35 }
  0xa4   : > { %v1255_v31 = vor.u32 %v1254_v62, %v1250_v17  ;;  %v5477_v39 = vld [vmem:[%s7172_s1 + $0x1e0] ss:$8 sps:$4 sm:$0xff]   ;;  %v1251_v4 = vsel %vm5815_vm8, %v1246_v57, %v1250_v17  ;;  %v1265_v12 = vrot.slane %v1263_v8, 4  ;;  %v1282_v15 = vshll.u32 %v6434_v24, 16  ;;  %v6456_v54 = vld [vmem:[#allocation2 + $0x84] sm:$0xf]  ;;  %3461 = vmatmul.mubr.bf16.vlgmr.msra.gmra.mrb[0].mxu0 %v5983_v40 }
  0xa5   : > { %v5479_v34 = vld [vmem:[%s7172_s1 + $0x1e4] ss:$8 sps:$4 sm:$0xff]   ;;  %v1268_v21 = vrot.slane %v1266_v51, 5  ;;  %v1274_v47 = vrot.slane %v1272_v37, 5  ;;  %v1278_v62 = vrot.slane %v1276_v42, 4  ;;  %v1287_v8 = vshrl.u32 %v6456_v54, 16  ;;  %3622 = vmatpush1.bf16.msra.mxu0 %v5447_v3  ;;  %3470 = vmatprep.mubr.bf16.mxu0 %v6088_v63 }
  0xa6   : > { %v1256_v9 = vrot.slane %v1255_v31, 4  ;;  %v1284_v17 = vrot.slane %v1282_v15, 5  ;;  %v5458_v57 = vld [vmem:[%s7172_s1 + $0x410] ss:$8 sps:$4 sm:$0xff]   ;;  %v1290_v26 = vshll.u32 %v6456_v54, 16  ;;  %3070 = vmatprep.subr.bf16.mxu1 %v5479_v34  ;;  %v574_v42 = vrot.slane %v6407_v48, 4  ;;  %3623 = vmatprep.subr.bf16.mxu0 %v5460_v29 }
  0xa7   : > { %v1269_v51 = vor.u32 %v1268_v21, %v1265_v12  ;;  %v1279_v37 = vor.u32 %v1278_v62, %v1274_v47  ;;  %777 = vst [vmem:[#allocation2 + $0x94] sm:$0xf] %v573_v2  ;;  %v778_v15 = vld [vmem:[#allocation2 + $0x98] sm:$0x1]  ;;  %v5471_v11 = vld [vmem:[%s7172_s1 + $0x424] ss:$8 sps:$4 sm:$0xff]   ;;  %3071 = vmatpush1.bf16.msra.mxu1 %v5477_v39  ;;  %v6490_v29 = vcombine.low %v6430_v41, %v6432_v14 }
  0xa8   : > { %v1261_v31 = vsel %vm5815_vm8, %v1256_v9, %v1260_v52  ;;  %v6478_v19 = vld [vmem:[#allocation2 + $0x88] sm:$0xf]  ;;  %v6480_v3 = vld [vmem:[#allocation2 + $0x8c] sm:$0xf]  ;;  %v1289_v52 = vrot.slane %v1287_v8, 4  ;;  %v1292_v63 = vrot.slane %v1290_v26, 5  ;;  %v779_v39 = vsel %vm5859_vm13, %v574_v42, %v778_v15 }
  0xa9   : > { %v6476_v16 = vcombine.low %v1251_v4, %v1261_v31  ;;  %v1270_v35 = vrot.slane %v1269_v51, 4  ;;  %v1280_v12 = vrot.slane %v1279_v37, 4  ;;  %v1296_v2 = vshll.u32 %v6478_v19, 16  ;;  %v5469_v4 = vld [vmem:[%s7172_s1 + $0x420] ss:$8 sps:$4 sm:$0xff]   ;;  %3624 = vmatpush1.bf16.msra.mxu0 %v5458_v57 }
  0xaa   : > { %v1300_v48 = vshrl.u32 %v6478_v19, 16  ;;  %v1293_v34 = vor.u32 %v1292_v63, %v1289_v52  ;;  %v1306_v9 = vshll.u32 %v6480_v3, 16  ;;  %v6495_v21 = vld [vmem:[#allocation2 + $0x90] sm:$0xf]  ;;  %v307_v62 = vld [vmem:[%s5790_s30 + $0x64] sm:$0xf]  ;;  %3625 = vmatprep.subr.bf16.mxu0 %v5471_v11 }
  0xab   : > { %2971 = vmatprep.mubr.bf16.mxu1 %v6476_v16  ;;  %v1275_v8 = vsel %vm5815_vm8, %v1270_v35, %v1274_v47  ;;  %v1285_v26 = vsel %vm5815_vm8, %v1280_v12, %v1284_v17  ;;  %v1298_v31 = vrot.slane %v1296_v2, 5  ;;  %780 = vst [vmem:[#allocation2 + $0x98] sm:$0x1] %v779_v39  ;;  %v5482_v37 = vld [vmem:[%s7172_s1 + $0x434] ss:$8 sps:$4 sm:$0xff]   ;;  %v1311_v47 = vshrl.u32 %v6495_v21, 16 }
  0xac   : > { %2972 = vmatmul.mubr.bf16.gmra.mrb[36].mxu1 %v6453_v10  ;;  %v1302_v51 = vrot.slane %v1300_v48, 4  ;;  %v5486_v42 = vld [vmem:[%s7172_s1 + $0x1f4] ss:$8 sps:$4 sm:$0xff]   ;;  %v6509_v15 = vcombine.low %v1275_v8, %v1285_v26  ;;  %v1294_v52 = vrot.slane %v1293_v34, 4  ;;  %v1308_v63 = vrot.slane %v1306_v9, 5  ;;  %3471 = vmatmul.mubr.bf16.gmra.mrb[4].mxu0 %v6048_v53 }
  0xad   : > { %v5484_v17 = vld [vmem:[%s7172_s1 + $0x1f0] ss:$8 sps:$4 sm:$0xff]   ;;  %v1314_v35 = vshll.u32 %v6495_v21, 16  ;;  %v7229_v12 = vshrl.u32 %v6390_v23, 16  ;;  %v579_v48 = vshll.u32 %v6390_v23, 16  ;;  %3072 = vmatprep.subr.bf16.mxu1 %v5486_v42  ;;  %v1313_v9 = vrot.slane %v1311_v47, 4  ;;  %3480 = vmatprep.mubr.bf16.mxu0 %v6137_v36 }
  0xae   : > { %v1303_v57 = vor.u32 %v1302_v51, %v1298_v31  ;;  %v781_v39 = vld [vmem:[#allocation2 + $0x9c] sm:$0xf]  ;;  %2981 = vmatprep.mubr.bf16.mxu1 %v6509_v15  ;;  %v1299_v11 = vsel %vm5815_vm8, %v1294_v52, %v1298_v31  ;;  %v6523_v34 = vld [vmem:[#allocation2 + $0x94] sm:$0xf]  ;;  %v584_v8 = vshrl.u32 %v307_v62, 16  ;;  %v587_v26 = vshll.u32 %v307_v62, 16  ;;  %3626 = vmatpush1.bf16.msra.mxu0 %v5469_v4 }
  0xaf   : > { %v578_v2 = vrot.slane %v7229_v12, 7  ;;  %v1316_v12 = vrot.slane %v1314_v35, 5  ;;  %v1320_v23 = vshll.u32 %v6523_v34, 16  ;;  %v1324_v42 = vshrl.u32 %v6523_v34, 16  ;;  %v5480_v31 = vld [vmem:[%s7172_s1 + $0x430] ss:$8 sps:$4 sm:$0xff]   ;;  %3627 = vmatprep.subr.bf16.mxu0 %v5482_v37  ;;  %3073 = vmatpush1.bf16.msra.mxu1 %v5484_v17 }
  0xb0   : > { %v1304_v51 = vrot.slane %v1303_v57, 4  ;;  %v6533_v52 = vcombine.low %v6456_v54, %v6478_v19  ;;  %v586_v38 = vrot.slane %v584_v8, 7  ;;  %v308_v36 = vld [vmem:[%s5790_s30 + $0x68] sm:$0xf]  ;;  %v5489_v57 = vld [vmem:[%s7172_s1 + $0x444] ss:$8 sps:$4 sm:$0xff]  }
  0xb1   : > { %v581_v47 = vor.u32 %v579_v48, %v578_v2  ;;  %v582_v62 = vrot.slane %v578_v2, 4  ;;  %v1317_v35 = vor.u32 %v1316_v12, %v1313_v9  ;;  %v1322_v58 = vrot.slane %v1320_v23, 5  ;;  %v785_v50 = vld [vmem:[#allocation2 + $0xa4] sm:$0x1]  ;;  %v309_v55 = vld [vmem:[%s5790_s30 + $0x6c] sm:$0xf] }
  0xb2   : > { %7230 = vst [vmem:[#allocation16_spill] sm:$0xff] %v6533_v52  ;;  %v1309_v4 = vsel %vm5815_vm8, %v1304_v51, %v1308_v63  ;;  %v1326_v5 = vrot.slane %v1324_v42, 4  ;;  %v5501_v2 = vld [vmem:[%s7172_s1 + $0x204] ss:$8 sps:$4 sm:$0xff]   ;;  %v6547_v17 = vld [vmem:[#allocation2 + $0x98] sm:$0xf]  ;;  %v589_v48 = vor.u32 %v587_v26, %v586_v38  ;;  %3628 = vmatpush1.bf16.msra.mxu0 %v5480_v31 }
  0xb3   : > { %4970 = vmatprep.subr.bf16.mxu1 %v5501_v2  ;;  %v6545_v37 = vcombine.low %v1299_v11, %v1309_v4  ;;  %v591_v8 = vrot.slane %v586_v38, 4  ;;  %v782_v63 = vsel %vm5849_vm12, %v581_v47, %v781_v39  ;;  %v310_v9 = vld [vmem:[%s5790_s30 + $0x70] sm:$0xf]  ;;  %v1318_v51 = vrot.slane %v1317_v35, 4  ;;  %v5487_v11 = vld [vmem:[%s7172_s1 + $0x440] ss:$8 sps:$4 sm:$0xff]   ;;  %3629 = vmatprep.subr.bf16.mxu0 %v5489_v57 }
  0xb4   : > { %2982 = vmatmul.mubr.bf16.gmra.mrb[40].mxu1 %v6490_v29  ;;  %v1327_v12 = vor.u32 %v1326_v5, %v1322_v58  ;;  %v1330_v23 = vshll.u32 %v6547_v17, 16  ;;  %783 = vst [vmem:[#allocation2 + $0x9c] sm:$0xf] %v782_v63  ;;  %v593_v42 = vshrl.u32 %v308_v36, 16  ;;  %v590_v38 = vsel %vm5843_vm11, %v582_v62, %v589_v48  ;;  %v311_v5 = vld [vmem:[%s5790_s30 + $0x74] sm:$0xf]  ;;  %3481 = vmatmul.mubr.bf16.gmra.mrb[8].mxu0 %v6095_v46 }
  0xb5   : > { %2991 = vmatprep.mubr.bf16.mxu1 %v6545_v37  ;;  %v786_v39 = vsel %vm5859_vm13, %v591_v8, %v785_v50  ;;  %v596_v26 = vshll.u32 %v308_v36, 16  ;;  %v601_v47 = vshrl.u32 %v309_v55, 16  ;;  %v5492_v31 = vld [vmem:[%s7172_s1 + $0x454] ss:$8 sps:$4 sm:$0xff]   ;;  %v1323_v4 = vsel %vm5815_vm8, %v1318_v51, %v1322_v58  ;;  %784 = vst [vmem:[#allocation2 + $0xa0] sm:$0xf] %v590_v38  ;;  %3490 = vmatprep.mubr.bf16.mxu0 %v6180_v27 }
  0xb6   : > { %v1328_v35 = vrot.slane %v1327_v12, 4  ;;  %v1332_v2 = vrot.slane %v1330_v23, 5  ;;  %787 = vst [vmem:[#allocation2 + $0xa4] sm:$0x1] %v786_v39  ;;  %v595_v62 = vrot.slane %v593_v42, 7  ;;  %v604_v36 = vshll.u32 %v309_v55, 16  ;;  %3630 = vmatpush1.bf16.msra.mxu0 %v5487_v11 }
  0xb7   : > { %v788_v48 = vld [vmem:[#allocation2 + $0xa8] sm:$0xf]  ;;  %v603_v50 = vrot.slane %v601_v47, 7  ;;  %v610_v8 = vshrl.u32 %v310_v9, 16  ;;  %v613_v63 = vshll.u32 %v310_v9, 16  ;;  %v618_v23 = vshrl.u32 %v311_v5, 16  ;;  %3631 = vmatprep.subr.bf16.mxu0 %v5492_v31 }
  0xb8   : > { %v6570_v57 = vld [vmem:[%s5790_s30 + $0x78] sm:$0xf]  ;;  %v1333_v56 = vsel %vm5815_vm8, %v1328_v35, %v1332_v2  ;;  %v598_v58 = vor.u32 %v596_v26, %v595_v62  ;;  %v599_v51 = vrot.slane %v595_v62, 4  ;;  %v792_v12 = vld [vmem:[#allocation2 + $0xb0] sm:$0x1]  ;;  %v621_v11 = vshll.u32 %v311_v5, 16 }
  0xb9   : > { %v5490_v42 = vld [vmem:[%s7172_s1 + $0x450] ss:$8 sps:$4 sm:$0xff]   ;;  %v6578_v38 = vcombine.low %v1323_v4, %v1333_v56  ;;  %v606_v55 = vor.u32 %v604_v36, %v603_v50  ;;  %v608_v9 = vrot.slane %v603_v50, 4  ;;  %v612_v39 = vrot.slane %v610_v8, 7  ;;  %v795_v47 = vld [vmem:[#allocation2 + $0xb4] sm:$0xf] }
  0xba   : > { %v5495_v27 = vld [vmem:[%s7172_s1 + $0x464] ss:$8 sps:$4 sm:$0xff]   ;;  %v789_v26 = vsel %vm5849_vm12, %v598_v58, %v788_v48  ;;  %v620_v35 = vrot.slane %v618_v23, 7  ;;  %v799_v2 = vld [vmem:[#allocation2 + $0xbc] sm:$0x1]  ;;  %v627_v62 = vshrl.u32 %v6570_v57, 16  ;;  %3632 = vmatpush1.bf16.msra.mxu0 %v5490_v42 }
  0xbb   : > { %7231 = vst [vmem:[#allocation17_spill] sm:$0xff] %v6578_v38  ;;  %v6586_v46 = vld [vmem:[#allocation2 + $0x9c] sm:$0xf]  ;;  %v607_v56 = vsel %vm5843_vm11, %v599_v51, %v606_v55  ;;  %790 = vst [vmem:[#allocation2 + $0xa8] sm:$0xf] %v789_v26  ;;  %v793_v31 = vsel %vm5859_vm13, %v608_v9, %v792_v12  ;;  %v615_v4 = vor.u32 %v613_v63, %v612_v39  ;;  %v616_v50 = vrot.slane %v612_v39, 4 }
  0xbc   : > { %v5493_v48 = vld [vmem:[%s7172_s1 + $0x460] ss:$8 sps:$4 sm:$0xff]   ;;  %2992 = vmatmul.mubr.bf16.gmra.mrb[44].mxu1 %v6533_v52  ;;  %v1335_v5 = vshrl.u32 %v6586_v46, 16  ;;  %v1338_v36 = vshll.u32 %v6586_v46, 16  ;;  %791 = vst [vmem:[#allocation2 + $0xac] sm:$0xf] %v607_v56  ;;  %v623_v8 = vor.u32 %v621_v11, %v620_v35  ;;  %3633 = vmatprep.subr.bf16.mxu0 %v5495_v27  ;;  %v6616_v11 = vcombine.low %v6495_v21, %v6523_v34 }
  0xbd   : > { %794 = vst [vmem:[#allocation2 + $0xb0] sm:$0x1] %v793_v31  ;;  %v625_v58 = vrot.slane %v620_v35, 4  ;;  %v5499_v63 = vld [vmem:[%s7172_s1 + $0x474] ss:$8 sps:$4 sm:$0xff]   ;;  %3001 = vmatprep.mubr.bf16.mxu1 %v6578_v38  ;;  %v796_v23 = vsel %vm5849_vm12, %v615_v4, %v795_v47  ;;  %v6608_v55 = vrot.slane %v627_v62, 7  ;;  %3491 = vmatmul.mubr.bf16.gmra.mrb[12].mxu0 %v6160_v1 }
  0xbe   : > { %v6602_v51 = vld [vmem:[#allocation2 + $0xa0] sm:$0xf]  ;;  %v6604_v12 = vld [vmem:[#allocation2 + $0xa4] sm:$0xf]  ;;  %v630_v9 = vshll.u32 %v6570_v57, 16  ;;  %v1337_v42 = vrot.slane %v1335_v5, 4  ;;  %v624_v27 = vsel %vm5843_vm11, %v616_v50, %v623_v8  ;;  %3500 = vmatprep.mubr.bf16.mxu0 %v6281_v32  ;;  %3634 = vmatpush1.bf16.msra.mxu0 %v5493_v48 }
  0xbf   : > { %v1340_v39 = vrot.slane %v1338_v36, 5  ;;  %v1344_v26 = vshll.u32 %v6602_v51, 16  ;;  %v1348_v35 = vshrl.u32 %v6602_v51, 16  ;;  %797 = vst [vmem:[#allocation2 + $0xb4] sm:$0xf] %v796_v23  ;;  %7232 = vst [vmem:[#allocation18_spill] sm:$0xff] %v6616_v11  ;;  %v800_v57 = vsel %vm5859_vm13, %v625_v58, %v799_v2  ;;  %3635 = vmatprep.subr.bf16.mxu0 %v5499_v63 }
  0xc0   : > { %v1354_v47 = vshll.u32 %v6604_v12, 16  ;;  %v6624_v62 = vld [vmem:[%s5790_s30 + $0x7c] sm:$0xf]  ;;  %v802_v56 = vld [vmem:[#allocation2 + $0xc0] sm:$0xf]  ;;  %v632_v36 = vor.u32 %v630_v9, %v6608_v55  ;;  %v6638_v48 = vcombine.low %v6586_v46, %v6602_v51  ;;  %v4475_v28 = vrot.slane %v6395_v18, 9 }
  0xc1   : > { %v1341_v31 = vor.u32 %v1340_v39, %v1337_v42  ;;  %v1346_v4 = vrot.slane %v1344_v26, 5  ;;  %v1350_v5 = vrot.slane %v1348_v35, 4  ;;  %798 = vst [vmem:[#allocation2 + $0xb8] sm:$0xf] %v624_v27  ;;  %801 = vst [vmem:[#allocation2 + $0xbc] sm:$0x1] %v800_v57 }
  0xc2   : > { %v5497_v50 = vld [vmem:[%s7172_s1 + $0x470] ss:$8 sps:$4 sm:$0xff]   ;;  %v1356_v8 = vrot.slane %v1354_v47, 5  ;;  %v6631_v23 = vld [vmem:[#allocation2 + $0xa8] sm:$0xf]  ;;  %v635_v32 = vshrl.u32 %v6624_v62, 16  ;;  %v803_v42 = vsel %vm5849_vm12, %v632_v36, %v802_v56 }
  0xc3   : > { %v1342_v2 = vrot.slane %v1341_v31, 4  ;;  %v1351_v58 = vor.u32 %v1350_v5, %v1346_v4  ;;  %v6640_v9 = vld [vmem:[#allocation2 + $0xac] sm:$0xf]  ;;  %v1359_v26 = vshrl.u32 %v6631_v23, 16  ;;  %v1362_v63 = vshll.u32 %v6631_v23, 16  ;;  %3636 = vmatpush1.bf16.msra.mxu0 %v5497_v50 }
  0xc4   : > { %v6642_v39 = vld [vmem:[#allocation2 + $0xb0] sm:$0xf]  ;;  %804 = vst [vmem:[#allocation2 + $0xc0] sm:$0xf] %v803_v42  ;;  %3002 = vmatmul.mubr.bf16.gmra.mrb[48].mxu1 %v6616_v11  ;;  %v1368_v47 = vshll.u32 %v6640_v9, 16  ;;  %v1372_v27 = vshrl.u32 %v6640_v9, 16 }
  0xc5   : > { %v1347_v35 = vsel %vm5815_vm8, %v1342_v2, %v1346_v4  ;;  %v1352_v20 = vrot.slane %v1351_v58, 4  ;;  %v1361_v57 = vrot.slane %v1359_v26, 4  ;;  %v1364_v56 = vrot.slane %v1362_v63, 5  ;;  %3501 = vmatmul.mubr.bf16.gmra.mrb[16].mxu0 %v6254_v61  ;;  %v806_v52 = vld [vmem:[#allocation2 + $0xc8] sm:$0x1] }
  0xc6   : > { %v1378_v31 = vshll.u32 %v6642_v39, 16  ;;  %v6652_v5 = vld [vmem:[#allocation2 + $0xb4] sm:$0xf]  ;;  %v638_v36 = vshll.u32 %v6624_v62, 16  ;;  %v1370_v1 = vrot.slane %v1368_v47, 5  ;;  %v1374_v11 = vrot.slane %v1372_v27, 4  ;;  %3510 = vmatprep.mubr.bf16.mxu0 %v6331_v0 }
  0xc7   : > { %v1357_v42 = vsel %vm5815_vm8, %v1352_v20, %v1356_v8  ;;  %v1383_v4 = vshrl.u32 %v6652_v5, 16  ;;  %v1365_v50 = vor.u32 %v1364_v56, %v1361_v57  ;;  %v1386_v30 = vshll.u32 %v6652_v5, 16 }
  0xc8   : > { %v6659_v2 = vcombine.low %v1347_v35, %v1357_v42  ;;  %v1380_v58 = vrot.slane %v1378_v31, 5  ;;  %v6661_v26 = vld [vmem:[#allocation2 + $0xb8] sm:$0xf]  ;;  %v6663_v63 = vld [vmem:[#allocation2 + $0xbc] sm:$0xf]  ;;  %v1375_v62 = vor.u32 %v1374_v11, %v1370_v1  ;;  %v633_v56 = vrot.slane %v6608_v55, 4 }
  0xc9   : > { %v1385_v8 = vrot.slane %v1383_v4, 4  ;;  %v1392_v20 = vshll.u32 %v6661_v26, 16  ;;  %v1396_v47 = vshrl.u32 %v6661_v26, 16  ;;  %v1366_v35 = vrot.slane %v1365_v50, 4 }
  0xca   : > { %7233 = vst [vmem:[#allocation19_spill] sm:$0xff] %v6659_v2  ;;  %3011 = vmatprep.mubr.bf16.mxu1 %v6659_v2  ;;  %v1388_v27 = vrot.slane %v1386_v30, 5  ;;  %v1402_v57 = vshll.u32 %v6663_v63, 16  ;;  %v1376_v31 = vrot.slane %v1375_v62, 4  ;;  %v637_v38 = vrot.slane %v635_v32, 7 }
  0xcb   : > { %v1394_v42 = vrot.slane %v1392_v20, 5  ;;  %v1398_v61 = vrot.slane %v1396_v47, 4  ;;  %v1371_v0 = vsel %vm5815_vm8, %v1366_v35, %v1370_v1  ;;  %v1668_v20 = vrot.slane %v6434_v24, 5 }
  0xcc   : > { %v1389_v11 = vor.u32 %v1388_v27, %v1385_v8  ;;  %v1404_v4 = vrot.slane %v1402_v57, 5  ;;  %3012 = vmatmul.mubr.bf16.gmra.mrb[52].mxu1 %v6638_v48  ;;  %v1381_v50 = vsel %vm5815_vm8, %v1376_v31, %v1380_v58  ;;  %v640_v2 = vor.u32 %v638_v36, %v637_v38 }
  0xcd   : > { %v1399_v30 = vor.u32 %v1398_v61, %v1394_v42  ;;  %v642_v53 = vrot.slane %v637_v38, 4  ;;  %v6677_v45 = vcombine.low %v1371_v0, %v1381_v50  ;;  %3511 = vmatmul.mubr.bf16.gmra.mrb[20].mxu0 %v6324_v49  ;;  %v6690_v61 = vcombine.low %v6631_v23, %v6640_v9 }
  0xce   : > { %v1390_v55 = vrot.slane %v1389_v11, 4  ;;  %v641_v32 = vsel %vm5843_vm11, %v633_v56, %v640_v2  ;;  %3520 = vmatprep.mubr.bf16.mxu0 %v6372_v33  ;;  %v1661_v38 = vrot.slane %v6413_v44, 5  ;;  %v4476_v36 = vrot.slane %v6430_v41, 9 }
  0xcf   : > { %v1400_v62 = vrot.slane %v1399_v30, 4  ;;  %v807_v1 = vsel %vm5859_vm13, %v642_v53, %v806_v52  ;;  %3021 = vmatprep.mubr.bf16.mxu1 %v6677_v45  ;;  %805 = vst [vmem:[#allocation2 + $0xc4] sm:$0xf] %v641_v32  ;;  %v1658_v52 = vrot.slane %v6411_v59, 5  ;;  %v1665_v2 = vrot.slane %v6432_v14, 5 }
  0xd0   : > { %v1395_v58 = vsel %vm5815_vm8, %v1390_v55, %v1394_v42  ;;  %808 = vst [vmem:[#allocation2 + $0xc8] sm:$0x1] %v807_v1  ;;  %v4477_v41 = vrot.slane %v6456_v54, 9  ;;  %v1672_v14 = vrot.slane %v6478_v19, 5  ;;  %v6716_v24 = vcombine.low %v6652_v5, %v6661_v26 }
  0xd1   : > { %v1405_v13 = vsel %vm5815_vm8, %v1400_v62, %v1404_v4  ;;  %v1659_v33 = vsel %vm5829_vm9, %v4475_v28, %v1658_v52  ;;  %v1660_v8 = vrot.slane %v1658_v52, 4  ;;  %v1666_v18 = vsel %vm5829_vm9, %v4476_v36, %v1665_v2  ;;  %v5502_v36 = vld [vmem:[%s7172_s1 + $0x200] ss:$8 sps:$4 sm:$0xff]  }
  0xd2   : > { %v6695_v53 = vcombine.low %v1395_v58, %v1405_v13  ;;  %v1667_v59 = vrot.slane %v1665_v2, 4  ;;  %v1673_v54 = vsel %vm5829_vm9, %v4477_v41, %v1672_v14  ;;  %v1674_v57 = vrot.slane %v1672_v14, 4  ;;  %v5509_v41 = vld [vmem:[%s7172_s1 + $0x244] ss:$8 sps:$4 sm:$0xff]  }
  0xd3   : > { %v1662_v44 = vsel %vm5829_vm9, %v1660_v8, %v1661_v38  ;;  %v1675_v19 = vrot.slane %v6480_v3, 5  ;;  %v4478_v56 = vrot.slane %v6495_v21, 9  ;;  %v1679_v31 = vrot.slane %v6523_v34, 5  ;;  %v5506_v8 = vld [vmem:[%s7172_s1 + $0x220] ss:$8 sps:$4 sm:$0xff]  }
  0xd4   : > { %3022 = vmatmul.mubr.bf16.gmra.mrb[56].mxu1 %v6690_v61  ;;  %v6718_v47 = vcombine.low %v1659_v33, %v1662_v44  ;;  %v1669_v35 = vsel %vm5829_vm9, %v1667_v59, %v1668_v20  ;;  %v1682_v0 = vrot.slane %v6547_v17, 5  ;;  %v4479_v11 = vrot.slane %v6586_v46, 9  ;;  %v7236_v33 = vld [vmem:[#allocation6_spill] sm:$0xff]  ;;  %v5507_v20 = vld [vmem:[%s7172_s1 + $0x234] ss:$8 sps:$4 sm:$0xff]   ;;  %v7238_v59 = vld [vmem:[#allocation17_spill] sm:$0xff] }
  0xd5   : > { %3031 = vmatprep.mubr.bf16.mxu1 %v6695_v53  ;;  %3521 = vmatmul.mubr.bf16.gmra.mrb[24].mxu0 %v6380_v6  ;;  %v6722_v27 = vcombine.low %v1666_v18, %v1669_v35  ;;  %v1676_v42 = vsel %vm5829_vm9, %v1674_v57, %v1675_v19  ;;  %v1686_v4 = vrot.slane %v6602_v51, 5  ;;  %v1680_v3 = vsel %vm5829_vm9, %v4478_v56, %v1679_v31  ;;  %v7237_v18 = vld [vmem:[#allocation16_spill] sm:$0xff]  ;;  %v7239_v14 = vld [vmem:[#allocation5_spill] sm:$0xff] }
  0xd6   : > { %3530 = vmatprep.mubr.bf16.mxu0 %v6476_v16  ;;  %v6736_v50 = vcombine.low %v1673_v54, %v1676_v42  ;;  %v1681_v21 = vrot.slane %v1679_v31, 4  ;;  %v1689_v55 = vrot.slane %v6604_v12, 5  ;;  %v4480_v17 = vrot.slane %v6631_v23, 9  ;;  %v5508_v44 = vld [vmem:[%s7172_s1 + $0x230] ss:$8 sps:$4 sm:$0xff]   ;;  %v7241_v31 = vld [vmem:[#allocation18_spill] sm:$0xff] }
  0xd7   : > { %v1687_v34 = vsel %vm5829_vm9, %v4479_v11, %v1686_v4  ;;  %v1688_v30 = vrot.slane %v1686_v4, 4  ;;  %v1696_v51 = vrot.slane %v6642_v39, 5  ;;  %v4481_v12 = vrot.slane %v6652_v5, 9  ;;  %v7240_v35 = vld [vmem:[#allocation8_spill] sm:$0xff]  ;;  %v5510_v54 = vld [vmem:[%s7172_s1 + $0x240] ss:$8 sps:$4 sm:$0xff]  }
  0xd8   : > { %v1683_v46 = vsel %vm5829_vm9, %v1681_v21, %v1682_v0  ;;  %v1700_v13 = vrot.slane %v6661_v26, 5  ;;  %v7234_v5 = vcombine.low %v6078_v25, %v5855_v22  ;;  %v5504_v22 = vld [vmem:[%s7172_s1 + $0x210] ss:$8 sps:$4 sm:$0xff]   ;;  %v5511_v57 = vld [vmem:[%s7172_s1 + $0x254] ss:$8 sps:$4 sm:$0xff]  }
  0xd9   : > { %v6750_v62 = vcombine.low %v1680_v3, %v1683_v46  ;;  %v1690_v32 = vsel %vm5829_vm9, %v1688_v30, %v1689_v55  ;;  %v7235_v25 = vld [vmem:[#allocation4_spill] sm:$0xff]  ;;  %v6813_v19 = vld [vmem:[#allocation2 + $0xc0] sm:$0xf]  ;;  %v6815_v56 = vld [vmem:[#allocation2 + $0xc4] sm:$0xf] }
  0xda   : > { %v6755_v1 = vcombine.low %v1687_v34, %v1690_v32  ;;  %v1701_v28 = vsel %vm5829_vm9, %v4481_v12, %v1700_v13  ;;  %v1702_v52 = vrot.slane %v1700_v13, 4  ;;  %v7242_v42 = vld [vmem:[#allocation19_spill] sm:$0xff]  ;;  %v1487_v11 = vshrl.u32 %v6813_v19, 16  ;;  %v5513_v34 = vld [vmem:[%s7172_s1 + $0x264] ss:$8 sps:$4 sm:$0xff]  }
  0xdb   : > { %v5512_v0 = vld [vmem:[%s7172_s1 + $0x250] ss:$8 sps:$4 sm:$0xff]   ;;  %v1490_v4 = vshll.u32 %v6813_v19, 16  ;;  %v1496_v3 = vshll.u32 %v6815_v56, 16  ;;  %v1500_v21 = vshrl.u32 %v6815_v56, 16 }
  0xdc   : > { %3032 = vmatmul.mubr.bf16.gmra.mrb[60].mxu1 %v6716_v24  ;;  %v7243_v30 = vld [vmem:[#allocation7_spill] sm:$0xff]  ;;  %v6830_v55 = vld [vmem:[#allocation2 + $0xcc] sm:$0xf]  ;;  %v1489_v46 = vrot.slane %v1487_v11, 4  ;;  %v5514_v12 = vld [vmem:[%s7172_s1 + $0x260] ss:$8 sps:$4 sm:$0xff]  }
  0xdd   : > { %3074 = vmatprep.mubr.bf16.mxu1 %v5933_v43  ;;  %3531 = vmatmul.mubr.bf16.gmra.mrb[28].mxu0 %v6453_v10  ;;  %v1693_v43 = vrot.slane %v6640_v9, 5  ;;  %v1703_v9 = vrot.slane %v6663_v63, 5  ;;  %v5503_v63 = vld [vmem:[%s7172_s1 + $0x214] ss:$8 sps:$4 sm:$0xff]   ;;  %v1502_v32 = vrot.slane %v1500_v21, 4 }
  0xde   : > { %3540 = vmatprep.mubr.bf16.mxu0 %v6509_v15  ;;  %v5515_v13 = vld [vmem:[%s7172_s1 + $0x274] ss:$8 sps:$4 sm:$0xff]  }
  0xdf   : > { %v1694_v23 = vsel %vm5829_vm9, %v4480_v17, %v1693_v43  ;;  %v1695_v58 = vrot.slane %v1693_v43, 4  ;;  %v1704_v26 = vsel %vm5829_vm9, %v1702_v52, %v1703_v9  ;;  %v7244_v17 = vld [vmem:[#allocation11_spill] sm:$0xff]  ;;  %v1492_v43 = vrot.slane %v1490_v4, 5 }
  0xe0   : > { %v6779_v2 = vcombine.low %v1701_v28, %v1704_v26  ;;  %v1531_v9 = vshrl.u32 %v6830_v55, 16  ;;  %v5519_v11 = vld [vmem:[%s7172_s1 + $0x294] ss:$8 sps:$4 sm:$0xff]  }
  0xe1   : > { %v1697_v39 = vsel %vm5829_vm9, %v1695_v58, %v1696_v51  ;;  %v1498_v51 = vrot.slane %v1496_v3, 5  ;;  %v6838_v58 = vld [vmem:[#allocation2 + $0xc8] sm:$0xf]  ;;  %v1493_v52 = vor.u32 %v1492_v43, %v1489_v46  ;;  %v5520_v46 = vld [vmem:[%s7172_s1 + $0x290] ss:$8 sps:$4 sm:$0xff]  }
  0xe2   : > { %v6768_v38 = vcombine.low %v1694_v23, %v1697_v39  ;;  %v6836_v23 = vld [vmem:[#allocation2 + $0xd0] sm:$0xf]  ;;  %v1534_v39 = vshll.u32 %v6830_v55, 16  ;;  %v5521_v43 = vld [vmem:[%s7172_s1 + $0x2a4] ss:$8 sps:$4 sm:$0xff]  }
  0xe3   : > { %v1540_v28 = vshll.u32 %v6836_v23, 16  ;;  %v1544_v26 = vshrl.u32 %v6836_v23, 16 }
  0xe4   : > { %3075 = vmatmul.mubr.bf16.vlgmr.msra.gmra.mrb[0].mxu1 %v7234_v5  ;;  %v1503_v5 = vor.u32 %v1502_v32, %v1498_v51  ;;  %v7247_v32 = vld [vmem:[#allocation10_spill] sm:$0xff] }
  0xe5   : > { %4986 = vmatpush1.bf16.msra.mxu1 %v5502_v36  ;;  %3084 = vmatprep.mubr.bf16.mxu1 %v5983_v40  ;;  %v5505_v40 = vld [vmem:[%s7172_s1 + $0x224] ss:$8 sps:$4 sm:$0xff]   ;;  %v1506_v36 = vshll.u32 %v6838_v58, 16 }
  0xe6   : > { %4971 = vmatprep.subr.bf16.mxu1 %v5503_v63  ;;  %3541 = vmatmul.mubr.bf16.gmra.mrb[32].mxu0 %v6490_v29  ;;  %v5516_v63 = vld [vmem:[%s7172_s1 + $0x270] ss:$8 sps:$4 sm:$0xff]  }
  0xe7   : > { %3550 = vmatprep.mubr.bf16.mxu0 %v6545_v37 }
  0xe9   : > { %4987 = vmatpush1.bf16.msra.mxu1 %v5504_v22  ;;  %v5517_v22 = vld [vmem:[%s7172_s1 + $0x284] ss:$8 sps:$4 sm:$0xff]  }
  0xea   : > { %4972 = vmatprep.subr.bf16.mxu1 %v5505_v40  ;;  %v7245_v40 = vld [vmem:[#allocation9_spill] sm:$0xff] }
  0xec   : > { %3085 = vmatmul.mubr.bf16.gmra.mrb[4].mxu1 %v7235_v25  ;;  %v1533_v25 = vrot.slane %v1531_v9, 4 }
  0xed   : > { %3094 = vmatprep.mubr.bf16.mxu1 %v7236_v33  ;;  %4988 = vmatpush1.bf16.msra.mxu1 %v5506_v8  ;;  %v1536_v33 = vrot.slane %v1534_v39, 5  ;;  %v1542_v8 = vrot.slane %v1540_v28, 5  ;;  %v5522_v39 = vld [vmem:[%s7172_s1 + $0x2a0] ss:$8 sps:$4 sm:$0xff]   ;;  %v5523_v28 = vld [vmem:[%s7172_s1 + $0x2b4] ss:$8 sps:$4 sm:$0xff]  }
  0xee   : > { %4973 = vmatprep.subr.bf16.mxu1 %v5507_v20  ;;  %3551 = vmatmul.mubr.bf16.gmra.mrb[36].mxu0 %v7237_v18  ;;  %v7246_v20 = vld [vmem:[#allocation12_spill] sm:$0xff] }
  0xef   : > { %3560 = vmatprep.mubr.bf16.mxu0 %v7238_v59 }
  0xf1   : > { %4989 = vmatpush1.bf16.msra.mxu1 %v5508_v44  ;;  %v1494_v44 = vrot.slane %v1493_v52, 4  ;;  %v1788_v52 = vrot.slane %v6815_v56, 5 }
  0xf2   : > { %4974 = vmatprep.subr.bf16.mxu1 %v5509_v41  ;;  %v1504_v41 = vrot.slane %v1503_v5, 4 }
  0xf3   : > { %v1499_v3 = vsel %vm5815_vm8, %v1494_v44, %v1498_v51 }
  0xf4   : > { %3095 = vmatmul.mubr.bf16.gmra.mrb[8].mxu1 %v7239_v14 }
  0xf5   : > { %3104 = vmatprep.mubr.bf16.mxu1 %v7240_v35  ;;  %4990 = vmatpush1.bf16.msra.mxu1 %v5510_v54  ;;  %v1508_v35 = vrot.slane %v1506_v36, 5  ;;  %v6858_v54 = vld [vmem:[#allocation2 + $0xd4] sm:$0xf]  ;;  %v5524_v36 = vld [vmem:[%s7172_s1 + $0x2b0] ss:$8 sps:$4 sm:$0xff]  }
  0xf6   : > { %4975 = vmatprep.subr.bf16.mxu1 %v5511_v57  ;;  %3561 = vmatmul.mubr.bf16.gmra.mrb[40].mxu0 %v7241_v31  ;;  %v1546_v57 = vrot.slane %v1544_v26, 4  ;;  %v1550_v4 = vshll.u32 %v6858_v54, 16  ;;  %v5525_v26 = vld [vmem:[%s7172_s1 + $0x2c4] ss:$8 sps:$4 sm:$0xff]  }
  0xf7   : > { %3570 = vmatprep.mubr.bf16.mxu0 %v7242_v42  ;;  %v1509_v21 = vsel %vm5815_vm8, %v1504_v41, %v1508_v35  ;;  %v5526_v41 = vld [vmem:[%s7172_s1 + $0x2c0] ss:$8 sps:$4 sm:$0xff]   ;;  %v4447_v35 = vcombine.low %v6830_v55, %v6836_v23 }
  0xf8   : > { %v1552_v9 = vrot.slane %v1550_v4, 5  ;;  %v7250_v4 = vmov 0  }
  0xf9   : > { %4991 = vmatpush1.bf16.msra.mxu1 %v5512_v0  ;;  %v5518_v0 = vld [vmem:[%s7172_s1 + $0x280] ss:$8 sps:$4 sm:$0xff]  }
  0xfa   : > { %4976 = vmatprep.subr.bf16.mxu1 %v5513_v34  ;;  %v1537_v34 = vor.u32 %v1536_v33, %v1533_v25  ;;  %v1791_v25 = vrot.slane %v6838_v58, 5  ;;  %v4446_v33 = vcombine.low %v6813_v19, %v6815_v56  ;;  %v5528_v56 = vld [vmem:[%s7172_s1 + $0x2d0] ss:$8 sps:$4 sm:$0xff]  }
  0xfc   : > { %3105 = vmatmul.mubr.bf16.gmra.mrb[12].mxu1 %v7243_v30  ;;  %v1538_v51 = vrot.slane %v1537_v34, 4 }
  0xfd   : > { %3114 = vmatprep.mubr.bf16.mxu1 %v7244_v17  ;;  %4992 = vmatpush1.bf16.msra.mxu1 %v5514_v12  ;;  %v1547_v17 = vor.u32 %v1546_v57, %v1542_v8  ;;  %v6880_v12 = vcombine.low %v1499_v3, %v1509_v21  ;;  %v7249_v57 = vld [vmem:[#allocation14_spill] sm:$0xff]  ;;  %v5532_v3 = vld [vmem:[%s7172_s1 + $0x2f0] ss:$8 sps:$4 sm:$0xff]  }
  0xfe   : > { %4977 = vmatprep.subr.bf16.mxu1 %v5515_v13  ;;  %3571 = vmatmul.mubr.bf16.gmra.mrb[44].mxu0 %v6638_v48  ;;  %v7251_v21 = vld [vmem:[#allocation15_spill] sm:$0xff] }
  0xff   : > { %3580 = vmatprep.mubr.bf16.mxu0 %v6677_v45  ;;  %v1548_v13 = vrot.slane %v1547_v17, 4 }
 0x101   : > { %4993 = vmatpush1.bf16.msra.mxu1 %v5516_v63  ;;  %v1553_v5 = vsel %vm5815_vm8, %v1548_v13, %v1552_v9  ;;  %v4498_v63 = vrot.slane %v6813_v19, 9  ;;  %v5527_v19 = vld [vmem:[%s7172_s1 + $0x2d4] ss:$8 sps:$4 sm:$0xff]  }
 0x102   : > { %4978 = vmatprep.subr.bf16.mxu1 %v5517_v22  ;;  %v1790_v22 = vrot.slane %v1788_v52, 4 }
 0x104   : > { %3115 = vmatmul.mubr.bf16.gmra.mrb[16].mxu1 %v7245_v40  ;;  %v1792_v44 = vsel %vm5829_vm9, %v1790_v22, %v1791_v25 }
 0x105   : > { %3124 = vmatprep.mubr.bf16.mxu1 %v7246_v20  ;;  %4994 = vmatpush1.bf16.msra.mxu1 %v5518_v0  ;;  %v1789_v20 = vsel %vm5829_vm9, %v4498_v63, %v1788_v52  ;;  %v5530_v0 = vld [vmem:[%s7172_s1 + $0x2e0] ss:$8 sps:$4 sm:$0xff]  }
 0x106   : > { %4979 = vmatprep.subr.bf16.mxu1 %v5519_v11  ;;  %3581 = vmatmul.mubr.bf16.gmra.mrb[48].mxu0 %v6690_v61  ;;  %v6915_v58 = vcombine.low %v1789_v20, %v1792_v44  ;;  %v5531_v11 = vld [vmem:[%s7172_s1 + $0x2f4] ss:$8 sps:$4 sm:$0xff]   ;;  %v7058_v63 = vld [vmem:[%s7173_s2] ss:$0 sm:$0xff] }
 0x107   : > { %3590 = vmatprep.mubr.bf16.mxu0 %v6695_v53 }
 0x109   : > { %4995 = vmatpush1.bf16.msra.mxu1 %v5520_v46 }
 0x10a   : > { %4980 = vmatprep.subr.bf16.mxu1 %v5521_v43 }
 0x10c   : > { %3125 = vmatmul.mubr.bf16.gmra.mrb[20].mxu1 %v7247_v32 }
 0x10d   : > { %3134 = vmatprep.mubr.bf16.mxu1 %v6324_v49  ;;  %4996 = vmatpush1.bf16.msra.mxu1 %v5522_v39  ;;  %v1543_v49 = vsel %vm5815_vm8, %v1538_v51, %v1542_v8 }
 0x10e   : > { %4981 = vmatprep.subr.bf16.mxu1 %v5523_v28  ;;  %3591 = vmatmul.mubr.bf16.gmra.mrb[52].mxu0 %v6716_v24  ;;  %v4465_v8 = vcombine.low %v1543_v49, %v1553_v5 }
 0x10f   : > { %3600 = vmatprep.mubr.bf16.mxu0 %v6880_v12 }
 0x111   : > { %4997 = vmatpush1.bf16.msra.mxu1 %v5524_v36 }
 0x112   : > { %4982 = vmatprep.subr.bf16.mxu1 %v5525_v26 }
 0x114   : > { %3135 = vmatmul.mubr.bf16.gmra.mrb[24].mxu1 %v7248_v60 }
 0x115   : > { %3144 = vmatprep.mubr.bf16.mxu1 %v6380_v6  ;;  %4998 = vmatpush1.bf16.msra.mxu1 %v5526_v41  ;;  %v5529_v6 = vld [vmem:[%s7172_s1 + $0x2e4] ss:$8 sps:$4 sm:$0xff]  }
 0x116   : > { %4983 = vmatprep.subr.bf16.mxu1 %v5527_v19  ;;  %3601 = vmatmul.mubr.bf16.gmra.mrb[56].mxu0 %v4446_v33 }
 0x117   : > { %3610 = vmatprep.mubr.bf16.mxu0 %v4465_v8 }
 0x119   : > { %4999 = vmatpush1.bf16.msra.mxu1 %v5528_v56 }
 0x11a   : > { %4984 = vmatprep.subr.bf16.mxu1 %v5529_v6 }
 0x11c   : > { %3145 = vmatmul.mubr.bf16.gmra.mrb[28].mxu1 %v7249_v57 }
 0x11d   : > { %3154 = vmatprep.mubr.bf16.mxu1 %v6453_v10  ;;  %5000 = vmatpush1.bf16.msra.mxu1 %v5530_v0  ;;  %v4500_v10 = vrot.slane %v6830_v55, 9 }
 0x11e   : > { %4985 = vmatprep.subr.bf16.mxu1 %v5531_v11  ;;  %3611 = vmatmul.mubr.bf16.gmra.mrb[60].mxu0 %v4447_v35 }
 0x11f   : > { %3653 = vmatprep.mubr.bf16.mxu0 %v7250_v4 }
 0x121   : > { %5001 = vmatpush1.bf16.msra.mxu1 %v5532_v3 }
 0x124   : > { %3155 = vmatmul.mubr.bf16.gmra.mrb[32].mxu1 %v7251_v21 }
 0x125   : > { %3164 = vmatprep.mubr.bf16.mxu1 %v6490_v29 }
 0x126   : > { %3654 = vmatmul.mubr.bf16.vlgmr.msra.gmra.mrb[0].mxu0 %v7239_v14 }
 0x127   : > { %3663 = vmatprep.mubr.bf16.mxu0 %v7250_v4 }
 0x12c   : > { %3165 = vmatmul.mubr.bf16.gmra.mrb[36].mxu1 %v6718_v47 }
 0x12d   : > { %3174 = vmatprep.mubr.bf16.mxu1 %v7237_v18 }
 0x12e   : > { %3664 = vmatmul.mubr.bf16.gmra.mrb[4].mxu0 %v7243_v30 }
 0x12f   : > { %3673 = vmatprep.mubr.bf16.mxu0 %v7250_v4 }
 0x134   : > { %3175 = vmatmul.mubr.bf16.gmra.mrb[40].mxu1 %v6722_v27 }
 0x135   : > { %3184 = vmatprep.mubr.bf16.mxu1 %v7241_v31 }
 0x136   : > { %3674 = vmatmul.mubr.bf16.gmra.mrb[8].mxu0 %v7245_v40 }
 0x137   : > { %3683 = vmatprep.mubr.bf16.mxu0 %v7250_v4 }
 0x13c   : > { %3185 = vmatmul.mubr.bf16.gmra.mrb[44].mxu1 %v6736_v50 }
 0x13d   : > { %3194 = vmatprep.mubr.bf16.mxu1 %v6638_v48 }
 0x13e   : > { %3684 = vmatmul.mubr.bf16.gmra.mrb[12].mxu0 %v7247_v32 }
 0x13f   : > { %3693 = vmatprep.mubr.bf16.mxu0 %v7250_v4 }
 0x144   : > { %3195 = vmatmul.mubr.bf16.gmra.mrb[48].mxu1 %v6750_v62 }
 0x145   : > { %3204 = vmatprep.mubr.bf16.mxu1 %v6690_v61 }
 0x146   : > { %3694 = vmatmul.mubr.bf16.gmra.mrb[16].mxu0 %v7248_v60 }
 0x147   : > { %3703 = vmatprep.mubr.bf16.mxu0 %v7250_v4 }
 0x14c   : > { %3205 = vmatmul.mubr.bf16.gmra.mrb[52].mxu1 %v6755_v1 }
 0x14d   : > { %3214 = vmatprep.mubr.bf16.mxu1 %v6716_v24 }
 0x14e   : > { %3704 = vmatmul.mubr.bf16.gmra.mrb[20].mxu0 %v7249_v57 }
 0x14f   : > { %3713 = vmatprep.mubr.bf16.mxu0 %v7250_v4 }
 0x154   : > { %3215 = vmatmul.mubr.bf16.gmra.mrb[56].mxu1 %v6768_v38 }
 0x155   : > { %3224 = vmatprep.mubr.bf16.mxu1 %v4446_v33 }
 0x156   : > { %3714 = vmatmul.mubr.bf16.gmra.mrb[24].mxu0 %v7251_v21 }
 0x157   : > { %3723 = vmatprep.mubr.bf16.mxu0 %v7250_v4 }
 0x15c   : > { %3225 = vmatmul.mubr.bf16.gmra.mrb[60].mxu1 %v6779_v2 }
 0x15d   : > { %3347 = vmatprep.mubr.bf16.mxu1 %v6718_v47 }
 0x15e   : > { %3724 = vmatmul.mubr.bf16.gmra.mrb[28].mxu0 %v6718_v47 }
 0x15f   : > { %3733 = vmatprep.mubr.bf16.mxu0 %v7250_v4 }
 0x164   : > { %3348 = vmatmul.mubr.bf16.vlgmr.msra.gmra.mrb[32].mxu1 %v6476_v16  ;;  %v1816_v16 = vrot.slane %v6836_v23, 5 }
 0x165   : > { %3357 = vmatprep.mubr.bf16.mxu1 %v6722_v27 }
 0x166   : > { %3734 = vmatmul.mubr.bf16.gmra.mrb[32].mxu0 %v6722_v27  ;;  %v1818_v29 = vrot.slane %v1816_v16, 4 }
 0x167   : > { %3743 = vmatprep.mubr.bf16.mxu0 %v7250_v4 }
 0x16c   : > { %3358 = vmatmul.mubr.bf16.gmra.mrb[36].mxu1 %v6509_v15  ;;  %v1819_v15 = vrot.slane %v6858_v54, 5 }
 0x16d   : > { %3367 = vmatprep.mubr.bf16.mxu1 %v6736_v50 }
 0x16e   : > { %3744 = vmatmul.mubr.bf16.gmra.mrb[36].mxu0 %v6736_v50 }
 0x16f   : > { %3753 = vmatprep.mubr.bf16.mxu0 %v7250_v4 }
 0x174   : > { %3368 = vmatmul.mubr.bf16.gmra.mrb[40].mxu1 %v6545_v37  ;;  %v1820_v37 = vsel %vm5829_vm9, %v1818_v29, %v1819_v15 }
 0x175   : > { %3377 = vmatprep.mubr.bf16.mxu1 %v6750_v62 }
 0x176   : > { %3754 = vmatmul.mubr.bf16.gmra.mrb[40].mxu0 %v6750_v62 }
 0x177   : > { %3763 = vmatprep.mubr.bf16.mxu0 %v7250_v4 }
 0x17c   : > { %3378 = vmatmul.mubr.bf16.gmra.mrb[44].mxu1 %v7238_v59 }
 0x17d   : > { %3387 = vmatprep.mubr.bf16.mxu1 %v6755_v1 }
 0x17e   : > { %3764 = vmatmul.mubr.bf16.gmra.mrb[44].mxu0 %v6755_v1 }
 0x17f   : > { %3773 = vmatprep.mubr.bf16.mxu0 %v7250_v4 }
 0x184   : > { %3388 = vmatmul.mubr.bf16.gmra.mrb[48].mxu1 %v7242_v42 }
 0x185   : > { %3397 = vmatprep.mubr.bf16.mxu1 %v6768_v38 }
 0x186   : > { %3774 = vmatmul.mubr.bf16.gmra.mrb[48].mxu0 %v6768_v38 }
 0x187   : > { %3783 = vmatprep.mubr.bf16.mxu0 %v7250_v4 }
 0x18c   : > { %3398 = vmatmul.mubr.bf16.gmra.mrb[52].mxu1 %v6677_v45  ;;  %v1817_v45 = vsel %vm5829_vm9, %v4500_v10, %v1816_v16 }
 0x18d   : > { %3407 = vmatprep.mubr.bf16.mxu1 %v6779_v2  ;;  %v4501_v48 = vcombine.low %v1817_v45, %v1820_v37 }
 0x18e   : > { %3784 = vmatmul.mubr.bf16.gmra.mrb[52].mxu0 %v6779_v2 }
 0x18f   : > { %3793 = vmatprep.mubr.bf16.mxu0 %v7250_v4 }
 0x194   : > { %3408 = vmatmul.mubr.bf16.gmra.mrb[56].mxu1 %v6695_v53 }
 0x195   : > { %3417 = vmatprep.mubr.bf16.mxu1 %v6915_v58 }
 0x196   : > { %3794 = vmatmul.mubr.bf16.gmra.mrb[56].mxu0 %v6915_v58 }
 0x197   : > { %3803 = vmatprep.mubr.bf16.mxu0 %v7250_v4 }
 0x19c   : > { %3418 = vmatmul.mubr.bf16.gmra.mrb[60].mxu1 %v6880_v12 }
 0x19e   : > { %3804 = vmatmul.mubr.bf16.gmra.mrb[60].mxu0 %v4501_v48 }
 0x1b7   : > { %v3076_v61 = vpop.f32.mrb[0].mxu1 }
 0x1b8   : > { %v3078_v53 = vpop.f32.mrb[1].mxu1 }
 0x1b9   : > { %v3080_v24 = vpop.f32.mrb[2].mxu1 }
 0x1ba   : > { %v3082_v47 = vpop.f32.mrb[3].mxu1 }
 0x1bf   : > { %v3086_v27 = vpop.f32.mrb[4].mxu1 }
 0x1c0   : > { %v3088_v50 = vpop.f32.mrb[5].mxu1 }
 0x1c1   : > { %v3090_v62 = vpop.f32.mrb[6].mxu1 }
 0x1c2   : > { %v3092_v1 = vpop.f32.mrb[7].mxu1 }
 0x1c7   : > { %v7007_v38 = vpop.f32.mrb[8].mxu1 }
 0x1c8   : > { %v7009_v2 = vpop.f32.mrb[9].mxu1 }
 0x1c9   : > { %v7011_v18 = vpop.f32.mrb[10].mxu1 }
 0x1ca   : > { %v7013_v7 = vpop.f32.mrb[11].mxu1 }
 0x1cf   : > { %v7015_v59 = vpop.f32.mrb[12].mxu1 }
 0x1d0   : > { %v7017_v14 = vpop.f32.mrb[13].mxu1 }
 0x1d1   : > { %v7019_v31 = vpop.f32.mrb[14].mxu1 }
 0x1d2   : > { %v7021_v42 = vpop.f32.mrb[15].mxu1 }
 0x1d7   : > { %v7023_v30 = vpop.f32.mrb[16].mxu1 }
 0x1d8   : > { %v7025_v55 = vpop.f32.mrb[17].mxu1 }
 0x1d9   : > { %v7027_v23 = vpop.f32.mrb[18].mxu1 }
 0x1da   : > { %v7029_v40 = vpop.f32.mrb[19].mxu1 }
 0x1df   : > { %v7031_v54 = vpop.f32.mrb[20].mxu1 }
 0x1e0   : > { %v7033_v34 = vpop.f32.mrb[21].mxu1 }
 0x1e1   : > { %v7035_v17 = vpop.f32.mrb[22].mxu1 }
 0x1e2   : > { %v7037_v46 = vpop.f32.mrb[23].mxu1 }
 0x1e7   : > { %v7039_v43 = vpop.f32.mrb[24].mxu1 }
 0x1e8   : > { %v7041_v32 = vpop.f32.mrb[25].mxu1 }
 0x1e9   : > { %v7043_v12 = vpop.f32.mrb[26].mxu1 }
 0x1ea   : > { %v7045_v51 = vpop.f32.mrb[27].mxu1 }
 0x1ef   : > { %v7047_v13 = vpop.f32.mrb[28].mxu1 }
 0x1f0   : > { %v7049_v9 = vpop.f32.mrb[29].mxu1 }
 0x1f1   : > { %v7051_v39 = vpop.f32.mrb[30].mxu1 }
 0x1f2   : > { %v7053_v28 = vpop.f32.mrb[31].mxu1 }
 0x1f9   : > { %v3655_v52 = vpop.f32.mrb[0].mxu0 }
 0x1fa   : > { %v5002_v49 = vadd.f32 %v3655_v52, %v3076_v61  ;;  %v3657_v5 = vpop.f32.mrb[1].mxu0 }
 0x1fb   : > { %v5003_v36 = vadd.f32 %v3657_v5, %v3078_v53  ;;  %v3659_v26 = vpop.f32.mrb[2].mxu0 }
 0x1fc   : > { %v5004_v22 = vadd.f32 %v3659_v26, %v3080_v24  ;;  %v3661_v25 = vpop.f32.mrb[3].mxu0  ;;  %v3852_v60 = vmul.f32 %v5002_v49, %v5002_v49 }
 0x1fd   : > { %v5005_v33 = vadd.f32 %v3661_v25, %v3082_v47  ;;  %v4089_v41 = vadd.f32 %v5003_v36, %v7058_v63 }
 0x1fe   : > { %v3814_v8 = vadd.f32 %v5004_v22, %v5002_v49  ;;  %v3853_v20 = vmul.f32 %v5004_v22, %v5004_v22  ;;  %v4783_v44 = vpack.c.bf16 %v5004_v22, %v5002_v49 }
 0x1ff   : > { %v4090_v58 = vadd.f32 %v5005_v33, %v7058_v63 }
 0x200   : > { %v3884_v19 = vadd.f32 %v3853_v20, %v3852_v60  ;;  %4784 = vst [vmem:[%s7064_s7] sm:$0xff] %v4783_v44  }
 0x201   : > { %v4863_v56 = vpack.c.bf16 %v4090_v58, %v4089_v41  ;;  %v3665_v6 = vpop.f32.mrb[4].mxu0 }
 0x202   : > { %v5006_v35 = vadd.f32 %v3665_v6, %v3086_v27  ;;  %v3667_v57 = vpop.f32.mrb[5].mxu0 }
 0x203   : > { %4864 = vst [vmem:[%s7073_s10] sm:$0xff] %v4863_v56   ;;  %v5007_v0 = vadd.f32 %v3667_v57, %v3088_v50  ;;  %v3669_v11 = vpop.f32.mrb[6].mxu0 }
 0x204   : > { %v3815_v4 = vadd.f32 %v5006_v35, %v3814_v8  ;;  %v3854_v3 = vmul.f32 %v5006_v35, %v5006_v35  ;;  %v5008_v21 = vadd.f32 %v3669_v11, %v3090_v62  ;;  %v3671_v16 = vpop.f32.mrb[7].mxu0 }
 0x205   : > { %v5009_v10 = vadd.f32 %v3671_v16, %v3092_v1  ;;  %v4091_v48 = vadd.f32 %v5007_v0, %v7058_v63 }
 0x206   : > { %v3885_v29 = vadd.f32 %v3884_v19, %v3854_v3  ;;  %v3816_v15 = vadd.f32 %v5008_v21, %v3815_v4  ;;  %v3855_v45 = vmul.f32 %v5008_v21, %v5008_v21  ;;  %v4788_v37 = vpack.c.bf16 %v5008_v21, %v5006_v35 }
 0x207   : > { %v4092_v61 = vadd.f32 %v5009_v10, %v7058_v63 }
 0x208   : > { %v3886_v53 = vadd.f32 %v3885_v29, %v3855_v45  ;;  %4940 = vst [vmem:[%s7064_s7 + $0x8] sm:$0xff] %v4788_v37  }
 0x209   : > { %v4868_v24 = vpack.c.bf16 %v4092_v61, %v4091_v48  ;;  %v3675_v47 = vpop.f32.mrb[8].mxu0 }
 0x20a   : > { %v5010_v27 = vadd.f32 %v3675_v47, %v7007_v38  ;;  %v3677_v50 = vpop.f32.mrb[9].mxu0 }
 0x20b   : > { %4955 = vst [vmem:[%s7073_s10 + $0x8] sm:$0xff] %v4868_v24   ;;  %v5011_v62 = vadd.f32 %v3677_v50, %v7009_v2  ;;  %v3679_v1 = vpop.f32.mrb[10].mxu0 }
 0x20c   : > { %v3817_v52 = vadd.f32 %v5010_v27, %v3816_v15  ;;  %v3856_v49 = vmul.f32 %v5010_v27, %v5010_v27  ;;  %v5012_v5 = vadd.f32 %v3679_v1, %v7011_v18  ;;  %v3681_v36 = vpop.f32.mrb[11].mxu0 }
 0x20d   : > { %v5013_v26 = vadd.f32 %v3681_v36, %v7013_v7  ;;  %v4093_v38 = vadd.f32 %v5011_v62, %v7058_v63 }
 0x20e   : > { %v3887_v22 = vadd.f32 %v3886_v53, %v3856_v49  ;;  %v3818_v25 = vadd.f32 %v5012_v5, %v3817_v52  ;;  %v3857_v33 = vmul.f32 %v5012_v5, %v5012_v5  ;;  %v4793_v60 = vpack.c.bf16 %v5012_v5, %v5010_v27 }
 0x20f   : > { %v4094_v8 = vadd.f32 %v5013_v26, %v7058_v63 }
 0x210   : > { %v3888_v20 = vadd.f32 %v3887_v22, %v3857_v33  ;;  %4941 = vst [vmem:[%s7064_s7 + $0x10] sm:$0xff] %v4793_v60  }
 0x211   : > { %v4873_v2 = vpack.c.bf16 %v4094_v8, %v4093_v38  ;;  %v3685_v44 = vpop.f32.mrb[12].mxu0 }
 0x212   : > { %v5014_v41 = vadd.f32 %v3685_v44, %v7015_v59  ;;  %v3687_v58 = vpop.f32.mrb[13].mxu0 }
 0x213   : > { %4956 = vst [vmem:[%s7073_s10 + $0x10] sm:$0xff] %v4873_v2   ;;  %v5015_v18 = vadd.f32 %v3687_v58, %v7017_v14  ;;  %v3689_v7 = vpop.f32.mrb[14].mxu0 }
 0x214   : > { %v3819_v19 = vadd.f32 %v5014_v41, %v3818_v25  ;;  %v3858_v56 = vmul.f32 %v5014_v41, %v5014_v41  ;;  %v5016_v6 = vadd.f32 %v3689_v7, %v7019_v31  ;;  %v3691_v35 = vpop.f32.mrb[15].mxu0 }
 0x215   : > { %v5017_v57 = vadd.f32 %v3691_v35, %v7021_v42  ;;  %v4095_v59 = vadd.f32 %v5015_v18, %v7058_v63 }
 0x216   : > { %v3889_v0 = vadd.f32 %v3888_v20, %v3858_v56  ;;  %v3820_v11 = vadd.f32 %v5016_v6, %v3819_v19  ;;  %v3859_v4 = vmul.f32 %v5016_v6, %v5016_v6  ;;  %v4798_v3 = vpack.c.bf16 %v5016_v6, %v5014_v41 }
 0x217   : > { %v4096_v21 = vadd.f32 %v5017_v57, %v7058_v63 }
 0x218   : > { %v3890_v16 = vadd.f32 %v3889_v0, %v3859_v4  ;;  %4942 = vst [vmem:[%s7064_s7 + $0x18] sm:$0xff] %v4798_v3  }
 0x219   : > { %v4878_v14 = vpack.c.bf16 %v4096_v21, %v4095_v59  ;;  %v3695_v10 = vpop.f32.mrb[16].mxu0 }
 0x21a   : > { %v5018_v29 = vadd.f32 %v3695_v10, %v7023_v30  ;;  %v3697_v15 = vpop.f32.mrb[17].mxu0 }
 0x21b   : > { %4957 = vst [vmem:[%s7073_s10 + $0x18] sm:$0xff] %v4878_v14   ;;  %v5019_v31 = vadd.f32 %v3697_v15, %v7025_v55  ;;  %v3699_v42 = vpop.f32.mrb[18].mxu0 }
 0x21c   : > { %v3821_v45 = vadd.f32 %v5018_v29, %v3820_v11  ;;  %v3860_v37 = vmul.f32 %v5018_v29, %v5018_v29  ;;  %v5020_v48 = vadd.f32 %v3699_v42, %v7027_v23  ;;  %v3701_v61 = vpop.f32.mrb[19].mxu0 }
 0x21d   : > { %v5021_v53 = vadd.f32 %v3701_v61, %v7029_v40  ;;  %v4097_v30 = vadd.f32 %v5019_v31, %v7058_v63 }
 0x21e   : > { %v3891_v24 = vadd.f32 %v3890_v16, %v3860_v37  ;;  %v3822_v47 = vadd.f32 %v5020_v48, %v3821_v45  ;;  %v3861_v27 = vmul.f32 %v5020_v48, %v5020_v48  ;;  %v4803_v50 = vpack.c.bf16 %v5020_v48, %v5018_v29 }
 0x21f   : > { %v4098_v62 = vadd.f32 %v5021_v53, %v7058_v63 }
 0x220   : > { %v3892_v1 = vadd.f32 %v3891_v24, %v3861_v27  ;;  %4943 = vst [vmem:[%s7064_s7 + $0x20] sm:$0xff] %v4803_v50  }
 0x221   : > { %v4883_v55 = vpack.c.bf16 %v4098_v62, %v4097_v30  ;;  %v3705_v52 = vpop.f32.mrb[20].mxu0 }
 0x222   : > { %v5022_v49 = vadd.f32 %v3705_v52, %v7031_v54  ;;  %v3707_v5 = vpop.f32.mrb[21].mxu0 }
 0x223   : > { %4958 = vst [vmem:[%s7073_s10 + $0x20] sm:$0xff] %v4883_v55   ;;  %v5023_v23 = vadd.f32 %v3707_v5, %v7033_v34  ;;  %v3709_v40 = vpop.f32.mrb[22].mxu0 }
 0x224   : > { %v3823_v36 = vadd.f32 %v5022_v49, %v3822_v47  ;;  %v3862_v26 = vmul.f32 %v5022_v49, %v5022_v49  ;;  %v5024_v22 = vadd.f32 %v3709_v40, %v7035_v17  ;;  %v3711_v25 = vpop.f32.mrb[23].mxu0 }
 0x225   : > { %v5025_v33 = vadd.f32 %v3711_v25, %v7037_v46  ;;  %v4099_v54 = vadd.f32 %v5023_v23, %v7058_v63 }
 0x226   : > { %v3893_v60 = vadd.f32 %v3892_v1, %v3862_v26  ;;  %v3824_v38 = vadd.f32 %v5024_v22, %v3823_v36  ;;  %v3863_v8 = vmul.f32 %v5024_v22, %v5024_v22  ;;  %v4808_v20 = vpack.c.bf16 %v5024_v22, %v5022_v49 }
 0x227   : > { %v4100_v2 = vadd.f32 %v5025_v33, %v7058_v63 }
 0x228   : > { %v3894_v44 = vadd.f32 %v3893_v60, %v3863_v8  ;;  %4944 = vst [vmem:[%s7064_s7 + $0x28] sm:$0xff] %v4808_v20  }
 0x229   : > { %v4888_v34 = vpack.c.bf16 %v4100_v2, %v4099_v54  ;;  %v3715_v41 = vpop.f32.mrb[24].mxu0 }
 0x22a   : > { %v5026_v58 = vadd.f32 %v3715_v41, %v7039_v43  ;;  %v3717_v18 = vpop.f32.mrb[25].mxu0 }
 0x22b   : > { %4959 = vst [vmem:[%s7073_s10 + $0x28] sm:$0xff] %v4888_v34   ;;  %v5027_v17 = vadd.f32 %v3717_v18, %v7041_v32  ;;  %v3719_v46 = vpop.f32.mrb[26].mxu0 }
 0x22c   : > { %v3825_v7 = vadd.f32 %v5026_v58, %v3824_v38  ;;  %v3864_v19 = vmul.f32 %v5026_v58, %v5026_v58  ;;  %v5028_v56 = vadd.f32 %v3719_v46, %v7043_v12  ;;  %v3721_v6 = vpop.f32.mrb[27].mxu0 }
 0x22d   : > { %v5029_v35 = vadd.f32 %v3721_v6, %v7045_v51  ;;  %v4101_v43 = vadd.f32 %v5027_v17, %v7058_v63 }
 0x22e   : > { %v3895_v57 = vadd.f32 %v3894_v44, %v3864_v19  ;;  %v3826_v0 = vadd.f32 %v5028_v56, %v3825_v7  ;;  %v3865_v11 = vmul.f32 %v5028_v56, %v5028_v56  ;;  %v4813_v4 = vpack.c.bf16 %v5028_v56, %v5026_v58 }
 0x22f   : > { %v4102_v3 = vadd.f32 %v5029_v35, %v7058_v63 }
 0x230   : > { %v3896_v59 = vadd.f32 %v3895_v57, %v3865_v11  ;;  %4945 = vst [vmem:[%s7064_s7 + $0x30] sm:$0xff] %v4813_v4  }
 0x231   : > { %v4893_v32 = vpack.c.bf16 %v4102_v3, %v4101_v43  ;;  %v3725_v21 = vpop.f32.mrb[28].mxu0 }
 0x232   : > { %v5030_v16 = vadd.f32 %v3725_v21, %v7047_v13  ;;  %v3727_v14 = vpop.f32.mrb[29].mxu0 }
 0x233   : > { %4960 = vst [vmem:[%s7073_s10 + $0x30] sm:$0xff] %v4893_v32   ;;  %v5031_v12 = vadd.f32 %v3727_v14, %v7049_v9  ;;  %v3729_v51 = vpop.f32.mrb[30].mxu0 }
 0x234   : > { %v3827_v10 = vadd.f32 %v5030_v16, %v3826_v0  ;;  %v3866_v29 = vmul.f32 %v5030_v16, %v5030_v16  ;;  %v5032_v15 = vadd.f32 %v3729_v51, %v7051_v39  ;;  %v3731_v31 = vpop.f32.mrb[31].mxu0 }
 0x235   : > { %v5033_v42 = vadd.f32 %v3731_v31, %v7053_v28  ;;  %v4103_v13 = vadd.f32 %v5031_v12, %v7058_v63 }
 0x236   : > { %v3897_v45 = vadd.f32 %v3896_v59, %v3866_v29  ;;  %v3828_v37 = vadd.f32 %v5032_v15, %v3827_v10  ;;  %v3867_v48 = vmul.f32 %v5032_v15, %v5032_v15  ;;  %v4818_v61 = vpack.c.bf16 %v5032_v15, %v5030_v16 }
 0x237   : > { %v3349_v53 = vpop.f32.mrb[32].mxu1  ;;  %v4104_v24 = vadd.f32 %v5033_v42, %v7058_v63 }
 0x238   : > { %v3351_v9 = vpop.f32.mrb[33].mxu1  ;;  %v3898_v47 = vadd.f32 %v3897_v45, %v3867_v48  ;;  %4946 = vst [vmem:[%s7064_s7 + $0x38] sm:$0xff] %v4818_v61  }
 0x239   : > { %v3353_v27 = vpop.f32.mrb[34].mxu1  ;;  %v4898_v50 = vpack.c.bf16 %v4104_v24, %v4103_v13  ;;  %v3735_v30 = vpop.f32.mrb[32].mxu0 }
 0x23a   : > { %v3355_v39 = vpop.f32.mrb[35].mxu1  ;;  %v5034_v62 = vadd.f32 %v3735_v30, %v3349_v53  ;;  %v3737_v1 = vpop.f32.mrb[33].mxu0 }
 0x23b   : > { %4961 = vst [vmem:[%s7073_s10 + $0x38] sm:$0xff] %v4898_v50   ;;  %v5035_v28 = vadd.f32 %v3737_v1, %v3351_v9  ;;  %v3739_v55 = vpop.f32.mrb[34].mxu0 }
 0x23c   : > { %v3829_v52 = vadd.f32 %v5034_v62, %v3828_v37  ;;  %v3868_v49 = vmul.f32 %v5034_v62, %v5034_v62  ;;  %v5036_v5 = vadd.f32 %v3739_v55, %v3353_v27  ;;  %v3741_v23 = vpop.f32.mrb[35].mxu0 }
 0x23d   : > { %v5037_v40 = vadd.f32 %v3741_v23, %v3355_v39  ;;  %v4105_v60 = vadd.f32 %v5035_v28, %v7058_v63 }
 0x23e   : > { %v3899_v36 = vadd.f32 %v3898_v47, %v3868_v49  ;;  %v3830_v26 = vadd.f32 %v5036_v5, %v3829_v52  ;;  %v3869_v22 = vmul.f32 %v5036_v5, %v5036_v5  ;;  %v4823_v25 = vpack.c.bf16 %v5036_v5, %v5034_v62 }
 0x23f   : > { %v3359_v33 = vpop.f32.mrb[36].mxu1  ;;  %v4106_v38 = vadd.f32 %v5037_v40, %v7058_v63 }
 0x240   : > { %v3361_v8 = vpop.f32.mrb[37].mxu1  ;;  %v3900_v20 = vadd.f32 %v3899_v36, %v3869_v22  ;;  %4947 = vst [vmem:[%s7064_s7 + $0x40] sm:$0xff] %v4823_v25  }
 0x241   : > { %v3363_v54 = vpop.f32.mrb[38].mxu1  ;;  %v4903_v2 = vpack.c.bf16 %v4106_v38, %v4105_v60  ;;  %v3745_v44 = vpop.f32.mrb[36].mxu0 }
 0x242   : > { %v3365_v34 = vpop.f32.mrb[39].mxu1  ;;  %v5038_v41 = vadd.f32 %v3745_v44, %v3359_v33  ;;  %v3747_v58 = vpop.f32.mrb[37].mxu0 }
 0x243   : > { %4962 = vst [vmem:[%s7073_s10 + $0x40] sm:$0xff] %v4903_v2   ;;  %v5039_v18 = vadd.f32 %v3747_v58, %v3361_v8  ;;  %v3749_v17 = vpop.f32.mrb[38].mxu0 }
 0x244   : > { %v3831_v46 = vadd.f32 %v5038_v41, %v3830_v26  ;;  %v3870_v7 = vmul.f32 %v5038_v41, %v5038_v41  ;;  %v5040_v19 = vadd.f32 %v3749_v17, %v3363_v54  ;;  %v3751_v56 = vpop.f32.mrb[39].mxu0 }
 0x245   : > { %v5041_v6 = vadd.f32 %v3751_v56, %v3365_v34  ;;  %v4107_v43 = vadd.f32 %v5039_v18, %v7058_v63 }
 0x246   : > { %v3901_v35 = vadd.f32 %v3900_v20, %v3870_v7  ;;  %v3832_v57 = vadd.f32 %v5040_v19, %v3831_v46  ;;  %v3871_v0 = vmul.f32 %v5040_v19, %v5040_v19  ;;  %v4828_v11 = vpack.c.bf16 %v5040_v19, %v5038_v41 }
 0x247   : > { %v3369_v4 = vpop.f32.mrb[40].mxu1  ;;  %v4108_v3 = vadd.f32 %v5041_v6, %v7058_v63 }
 0x248   : > { %v3371_v59 = vpop.f32.mrb[41].mxu1  ;;  %v3902_v32 = vadd.f32 %v3901_v35, %v3871_v0  ;;  %4948 = vst [vmem:[%s7064_s7 + $0x48] sm:$0xff] %v4828_v11  }
 0x249   : > { %v3373_v21 = vpop.f32.mrb[42].mxu1  ;;  %v4908_v16 = vpack.c.bf16 %v4108_v3, %v4107_v43  ;;  %v3755_v14 = vpop.f32.mrb[40].mxu0 }
 0x24a   : > { %v3375_v12 = vpop.f32.mrb[43].mxu1  ;;  %v5042_v51 = vadd.f32 %v3755_v14, %v3369_v4  ;;  %v3757_v10 = vpop.f32.mrb[41].mxu0 }
 0x24b   : > { %4963 = vst [vmem:[%s7073_s10 + $0x48] sm:$0xff] %v4908_v16   ;;  %v5043_v29 = vadd.f32 %v3757_v10, %v3371_v59  ;;  %v3759_v15 = vpop.f32.mrb[42].mxu0 }
 0x24c   : > { %v3833_v31 = vadd.f32 %v5042_v51, %v3832_v57  ;;  %v3872_v42 = vmul.f32 %v5042_v51, %v5042_v51  ;;  %v5044_v45 = vadd.f32 %v3759_v15, %v3373_v21  ;;  %v3761_v37 = vpop.f32.mrb[43].mxu0 }
 0x24d   : > { %v5045_v48 = vadd.f32 %v3761_v37, %v3375_v12  ;;  %v4109_v47 = vadd.f32 %v5043_v29, %v7058_v63 }
 0x24e   : > { %v3903_v61 = vadd.f32 %v3902_v32, %v3872_v42  ;;  %v3834_v53 = vadd.f32 %v5044_v45, %v3833_v31  ;;  %v3873_v13 = vmul.f32 %v5044_v45, %v5044_v45  ;;  %v4833_v24 = vpack.c.bf16 %v5044_v45, %v5042_v51 }
 0x24f   : > { %v3379_v9 = vpop.f32.mrb[44].mxu1  ;;  %v4110_v27 = vadd.f32 %v5045_v48, %v7058_v63 }
 0x250   : > { %v3381_v50 = vpop.f32.mrb[45].mxu1  ;;  %v3904_v30 = vadd.f32 %v3903_v61, %v3873_v13  ;;  %4949 = vst [vmem:[%s7064_s7 + $0x50] sm:$0xff] %v4833_v24  }
 0x251   : > { %v3383_v39 = vpop.f32.mrb[46].mxu1  ;;  %v4913_v62 = vpack.c.bf16 %v4110_v27, %v4109_v47  ;;  %v3765_v1 = vpop.f32.mrb[44].mxu0 }
 0x252   : > { %v3385_v28 = vpop.f32.mrb[47].mxu1  ;;  %v5046_v55 = vadd.f32 %v3765_v1, %v3379_v9  ;;  %v3767_v52 = vpop.f32.mrb[45].mxu0 }
 0x253   : > { %4964 = vst [vmem:[%s7073_s10 + $0x50] sm:$0xff] %v4913_v62   ;;  %v5047_v49 = vadd.f32 %v3767_v52, %v3381_v50  ;;  %v3769_v5 = vpop.f32.mrb[46].mxu0 }
 0x254   : > { %v3835_v23 = vadd.f32 %v5046_v55, %v3834_v53  ;;  %v3874_v40 = vmul.f32 %v5046_v55, %v5046_v55  ;;  %v5048_v36 = vadd.f32 %v3769_v5, %v3383_v39  ;;  %v3771_v26 = vpop.f32.mrb[47].mxu0 }
 0x255   : > { %v5049_v22 = vadd.f32 %v3771_v26, %v3385_v28  ;;  %v4111_v20 = vadd.f32 %v5047_v49, %v7058_v63 }
 0x256   : > { %v3905_v25 = vadd.f32 %v3904_v30, %v3874_v40  ;;  %v3836_v33 = vadd.f32 %v5048_v36, %v3835_v23  ;;  %v3875_v60 = vmul.f32 %v5048_v36, %v5048_v36  ;;  %v4838_v38 = vpack.c.bf16 %v5048_v36, %v5046_v55 }
 0x257   : > { %v3389_v8 = vpop.f32.mrb[48].mxu1  ;;  %v4112_v54 = vadd.f32 %v5049_v22, %v7058_v63 }
 0x258   : > { %v3391_v2 = vpop.f32.mrb[49].mxu1  ;;  %v3906_v44 = vadd.f32 %v3905_v25, %v3875_v60  ;;  %4950 = vst [vmem:[%s7064_s7 + $0x58] sm:$0xff] %v4838_v38  }
 0x259   : > { %v3393_v34 = vpop.f32.mrb[50].mxu1  ;;  %v4918_v41 = vpack.c.bf16 %v4112_v54, %v4111_v20  ;;  %v3775_v58 = vpop.f32.mrb[48].mxu0 }
 0x25a   : > { %v3395_v18 = vpop.f32.mrb[51].mxu1  ;;  %v5050_v17 = vadd.f32 %v3775_v58, %v3389_v8  ;;  %v3777_v46 = vpop.f32.mrb[49].mxu0 }
 0x25b   : > { %4965 = vst [vmem:[%s7073_s10 + $0x58] sm:$0xff] %v4918_v41   ;;  %v5051_v7 = vadd.f32 %v3777_v46, %v3391_v2  ;;  %v3779_v19 = vpop.f32.mrb[50].mxu0 }
 0x25c   : > { %v3837_v56 = vadd.f32 %v5050_v17, %v3836_v33  ;;  %v3876_v6 = vmul.f32 %v5050_v17, %v5050_v17  ;;  %v5052_v35 = vadd.f32 %v3779_v19, %v3393_v34  ;;  %v3781_v57 = vpop.f32.mrb[51].mxu0 }
 0x25d   : > { %v5053_v0 = vadd.f32 %v3781_v57, %v3395_v18  ;;  %v4113_v32 = vadd.f32 %v5051_v7, %v7058_v63 }
 0x25e   : > { %v3907_v11 = vadd.f32 %v3906_v44, %v3876_v6  ;;  %v3838_v4 = vadd.f32 %v5052_v35, %v3837_v56  ;;  %v3877_v43 = vmul.f32 %v5052_v35, %v5052_v35  ;;  %v4843_v3 = vpack.c.bf16 %v5052_v35, %v5050_v17 }
 0x25f   : > { %v3399_v59 = vpop.f32.mrb[52].mxu1  ;;  %v4114_v21 = vadd.f32 %v5053_v0, %v7058_v63 }
 0x260   : > { %v3401_v16 = vpop.f32.mrb[53].mxu1  ;;  %v3908_v14 = vadd.f32 %v3907_v11, %v3877_v43  ;;  %4951 = vst [vmem:[%s7064_s7 + $0x60] sm:$0xff] %v4843_v3  }
 0x261   : > { %v3403_v12 = vpop.f32.mrb[54].mxu1  ;;  %v4923_v51 = vpack.c.bf16 %v4114_v21, %v4113_v32  ;;  %v3785_v10 = vpop.f32.mrb[52].mxu0 }
 0x262   : > { %v3405_v29 = vpop.f32.mrb[55].mxu1  ;;  %v5054_v15 = vadd.f32 %v3785_v10, %v3399_v59  ;;  %v3787_v31 = vpop.f32.mrb[53].mxu0 }
 0x263   : > { %4966 = vst [vmem:[%s7073_s10 + $0x60] sm:$0xff] %v4923_v51   ;;  %v5055_v42 = vadd.f32 %v3787_v31, %v3401_v16  ;;  %v3789_v45 = vpop.f32.mrb[54].mxu0 }
 0x264   : > { %v3839_v37 = vadd.f32 %v5054_v15, %v3838_v4  ;;  %v3878_v48 = vmul.f32 %v5054_v15, %v5054_v15  ;;  %v5056_v61 = vadd.f32 %v3789_v45, %v3403_v12  ;;  %v3791_v53 = vpop.f32.mrb[55].mxu0 }
 0x265   : > { %v5057_v13 = vadd.f32 %v3791_v53, %v3405_v29  ;;  %v4115_v30 = vadd.f32 %v5055_v42, %v7058_v63 }
 0x266   : > { %v3909_v24 = vadd.f32 %v3908_v14, %v3878_v48  ;;  %v3840_v9 = vadd.f32 %v5056_v61, %v3839_v37  ;;  %v3879_v47 = vmul.f32 %v5056_v61, %v5056_v61  ;;  %v4848_v27 = vpack.c.bf16 %v5056_v61, %v5054_v15 }
 0x267   : > { %v3409_v50 = vpop.f32.mrb[56].mxu1  ;;  %v4116_v39 = vadd.f32 %v5057_v13, %v7058_v63 }
 0x268   : > { %v3411_v62 = vpop.f32.mrb[57].mxu1  ;;  %v3910_v1 = vadd.f32 %v3909_v24, %v3879_v47  ;;  %4952 = vst [vmem:[%s7064_s7 + $0x68] sm:$0xff] %v4848_v27  }
 0x269   : > { %v3413_v28 = vpop.f32.mrb[58].mxu1  ;;  %v4928_v55 = vpack.c.bf16 %v4116_v39, %v4115_v30  ;;  %v3795_v52 = vpop.f32.mrb[56].mxu0 }
 0x26a   : > { %v3415_v49 = vpop.f32.mrb[59].mxu1  ;;  %v5058_v5 = vadd.f32 %v3795_v52, %v3409_v50  ;;  %v3797_v23 = vpop.f32.mrb[57].mxu0 }
 0x26b   : > { %4967 = vst [vmem:[%s7073_s10 + $0x68] sm:$0xff] %v4928_v55   ;;  %v5059_v40 = vadd.f32 %v3797_v23, %v3411_v62  ;;  %v3799_v36 = vpop.f32.mrb[58].mxu0 }
 0x26c   : > { %v3841_v26 = vadd.f32 %v5058_v5, %v3840_v9  ;;  %v3880_v22 = vmul.f32 %v5058_v5, %v5058_v5  ;;  %v5060_v25 = vadd.f32 %v3799_v36, %v3413_v28  ;;  %v3801_v33 = vpop.f32.mrb[59].mxu0 }
 0x26d   : > { %v5061_v60 = vadd.f32 %v3801_v33, %v3415_v49  ;;  %v4117_v44 = vadd.f32 %v5059_v40, %v7058_v63 }
 0x26e   : > { %v3911_v38 = vadd.f32 %v3910_v1, %v3880_v22  ;;  %v3842_v8 = vadd.f32 %v5060_v25, %v3841_v26  ;;  %v3881_v20 = vmul.f32 %v5060_v25, %v5060_v25  ;;  %v4853_v54 = vpack.c.bf16 %v5060_v25, %v5058_v5 }
 0x26f   : > { %v3419_v2 = vpop.f32.mrb[60].mxu1  ;;  %v4118_v34 = vadd.f32 %v5061_v60, %v7058_v63 }
 0x270   : > { %v3421_v41 = vpop.f32.mrb[61].mxu1  ;;  %v3912_v58 = vadd.f32 %v3911_v38, %v3881_v20  ;;  %4953 = vst [vmem:[%s7064_s7 + $0x70] sm:$0xff] %v4853_v54  }
 0x271   : > { %v3423_v18 = vpop.f32.mrb[62].mxu1  ;;  %v4933_v17 = vpack.c.bf16 %v4118_v34, %v4117_v44  ;;  %v3805_v46 = vpop.f32.mrb[60].mxu0 }
 0x272   : > { %v3425_v7 = vpop.f32.mrb[63].mxu1  ;;  %v5062_v19 = vadd.f32 %v3805_v46, %v3419_v2  ;;  %v3807_v56 = vpop.f32.mrb[61].mxu0 }
 0x273   : > { %4968 = vst [vmem:[%s7073_s10 + $0x70] sm:$0xff] %v4933_v17   ;;  %v5063_v6 = vadd.f32 %v3807_v56, %v3421_v41  ;;  %v3809_v35 = vpop.f32.mrb[62].mxu0 }
 0x274   : > { %v3843_v57 = vadd.f32 %v5062_v19, %v3842_v8  ;;  %v3882_v0 = vmul.f32 %v5062_v19, %v5062_v19  ;;  %v5064_v11 = vadd.f32 %v3809_v35, %v3423_v18  ;;  %v3811_v4 = vpop.f32.mrb[63].mxu0 }
 0x275   : > { %v5065_v43 = vadd.f32 %v3811_v4, %v3425_v7  ;;  %v4119_v16 = vadd.f32 %v5063_v6, %v7058_v63 }
 0x276   : > { %v3913_v3 = vadd.f32 %v3912_v58, %v3882_v0  ;;  %v3844_v59 = vadd.f32 %v5064_v11, %v3843_v57  ;;  %v3883_v32 = vmul.f32 %v5064_v11, %v5064_v11  ;;  %v4858_v21 = vpack.c.bf16 %v5064_v11, %v5062_v19 }
 0x277   : > { %v4120_v14 = vadd.f32 %v5065_v43, %v7058_v63 }
 0x278   : > { %v3845_v12 = vrot.slane %v3844_v59, 4  ;;  %v3914_v51 = vadd.f32 %v3913_v3, %v3883_v32  ;;  %4954 = vst [vmem:[%s7064_s7 + $0x78] sm:$0xff] %v4858_v21  }
 0x279   : > { %v4938_v10 = vpack.c.bf16 %v4120_v14, %v4119_v16 }
 0x27a   : > { %v3846_v29 = vadd.f32 %v3845_v12, %v3844_v59  ;;  %v3915_v15 = vrot.slane %v3914_v51, 4 }
 0x27b   : > { %4969 = vst [vmem:[%s7073_s10 + $0x78] sm:$0xff] %v4938_v10  }
 0x27c   : > { %v3847_v31 = vrot.slane %v3846_v29, 2  ;;  %v3916_v42 = vadd.f32 %v3915_v15, %v3914_v51 }
 0x27e   : > { %v3848_v45 = vadd.f32 %v3847_v31, %v3846_v29  ;;  %v3917_v37 = vrot.slane %v3916_v42, 2 }
 0x280   : > { %v3849_v48 = vrot.slane %v3848_v45, 1  ;;  %v3918_v61 = vadd.f32 %v3917_v37, %v3916_v42 }
 0x282   : > { %v3850_v53 = vadd.f32 %v3849_v48, %v3848_v45  ;;  %v3919_v63 = vrot.slane %v3918_v61, 1 }
 0x284   : > { %3851 = vst [vmem:[%s277_s12] sm:$0x1] %v3850_v53  ;;  %v3920_v13 = vadd.f32 %v3919_v63, %v3918_v61 }
 0x286   : > { %3921 = vst [vmem:[%s280_s15] sm:$0x1] %v3920_v13 }
 0x287 PF: > { %s17_s21 = sadd.s32 1, %s5539_s21  }
 0x288   : > { %p14_p4 = scmp.ge.s32.totalorder %s17_s21, 4  }
 0x28a   :  { %16 = sbr.rel (!%p14_p4) target bundleno = 1 (0x1), region = 99 }

</bundles_post_ra>
